<compile_context>
chip_gen: v7x
topology: tpu7x:2x2x1
jax: 0.10.0
libtpu: 0.0.40
codegen_flags: <defaults>
</compile_context>

<pallas_src>
import jax
import jax.numpy as jnp
from jax.experimental import pallas as pl
from jax.experimental.pallas import tpu as pltpu

# Dims fixed by Memorizer.__init__
FEATURE_DIM = 512
DIM = 513            # 512 features + 1 clip/test flag channel (folded into bias)
MEMORY_DIM = 256
HIDDEN2 = 100
HIDDEN2_PAD = 128    # zero-padded head width (lane-full)

VMEM_SPEC = pl.BlockSpec(memory_space=pltpu.MemorySpace.VMEM)
SMEM_SPEC = pl.BlockSpec(memory_space=pltpu.MemorySpace.SMEM)


# ------------------------------ fused kernel --------------------------------

def _fused_kernel(idx_ref,          # SMEM (n_sel,) int32  : indices_classifier
                  x_ref,            # VMEM (T, 512)        : clip features
                  wcomb_ref,        # VMEM (512, 4H)       : w1_feat.T @ w_ih.T
                  bias_ref,         # VMEM (T, 4H)         : per-step folded bias
                  whh_t_ref,        # VMEM (H, 4H)         : w_hh.T
                  w2t_ref,          # VMEM (H, 128)        : padded w2.T
                  b2_ref,           # VMEM (1, 128)        : padded b2
                  w3t_ref,          # VMEM (128, 1)        : padded w3.T
                  b3_ref,           # VMEM (1, 1)
                  o_ref,            # VMEM (n_sel, 1)      : sigmoid output
                  h_buf):           # VMEM scratch (T, H)  : ReLU(LSTM output)
    T = x_ref.shape[0]
    H = MEMORY_DIM
    n_sel = o_ref.shape[0]

    # ---- input projection for ALL timesteps in one MXU matmul (K=512) ------
    # linear1 (feature part) is folded into w_ih; flag channel, b1, b_ih, b_hh
    # are folded into bias_ref, so nothing input-dependent remains in the loop.
    gates_ih = (jnp.dot(x_ref[...], wcomb_ref[...],
                        preferred_element_type=jnp.float32)
                + bias_ref[...])                                   # (T, 4H)

    whh_t = whh_t_ref[...]                                         # (H, 4H)

    # ---- serial LSTM recurrence, statically unrolled (T small, static) -----
    h = jnp.zeros((1, H), jnp.float32)
    c = jnp.zeros((1, H), jnp.float32)
    for t in range(T):
        g = gates_ih[t:t + 1, :] + jnp.dot(h, whh_t,
                                           preferred_element_type=jnp.float32)
        i_g = jax.nn.sigmoid(g[:, 0 * H:1 * H])
        f_g = jax.nn.sigmoid(g[:, 1 * H:2 * H])
        g_g = jnp.tanh(g[:, 2 * H:3 * H])
        o_g = jax.nn.sigmoid(g[:, 3 * H:4 * H])
        c = f_g * c + i_g * g_g
        h = o_g * jnp.tanh(c)                                      # carry: no ReLU
        h_buf[pl.ds(t, 1), :] = jnp.maximum(h, 0.0)                # Memorizer ReLU
        # TODO(synk): for B=1, gates could be repacked (8,128) to fill vregs on
        # v5e; skipped here to avoid the lane<->sublane relayout on the hot path.

    # ---- classifier head on selected timesteps (gather from VMEM scratch) --
    rows = [h_buf[pl.ds(idx_ref[i], 1), :] for i in range(n_sel)]  # dyn. sublane reads
    sel = jnp.concatenate(rows, axis=0) if n_sel > 1 else rows[0]  # (n_sel, H)
    hh = jnp.maximum(
        jnp.dot(sel, w2t_ref[...], preferred_element_type=jnp.float32)
        + b2_ref[...], 0.0)                                        # (n_sel, 128)
    y = jnp.dot(hh, w3t_ref[...], preferred_element_type=jnp.float32) + b3_ref[...]
    o_ref[...] = jax.nn.sigmoid(y)                                 # (n_sel, 1)


# ------------------------------ Python wrapper -------------------------------

def init_params(key):
    """Deterministic parameter init mirroring the module's layer shapes."""
    ks = jax.random.split(key, 10)

    def unif(k, shape, fan_in):
        bound = 1.0 / jnp.sqrt(jnp.float32(fan_in))
        return jax.random.uniform(k, shape, jnp.float32, -bound, bound)

    H = MEMORY_DIM
    return {
        "w1": unif(ks[0], (H, DIM), DIM),                 # nn.Linear(513, 256)
        "b1": unif(ks[1], (H,), DIM),
        "w_ih": unif(ks[2], (4 * H, H), H),               # nn.LSTM(256, 256)
        "w_hh": unif(ks[3], (4 * H, H), H),
        "b_ih": unif(ks[4], (4 * H,), H),
        "b_hh": unif(ks[5], (4 * H,), H),
        "w2": unif(ks[6], (HIDDEN2, H), H),               # nn.Linear(256, 100)
        "b2": unif(ks[7], (HIDDEN2,), H),
        "w3": unif(ks[8], (1, HIDDEN2), HIDDEN2),         # nn.Linear(100, 1)
        "b3": unif(ks[9], (1,), HIDDEN2),
    }


def fuse_params(params, length_clips, length_tests):
    """One-time weight folding / transposition (done at init, not per forward)."""
    H = MEMORY_DIM
    w1 = params["w1"].astype(jnp.float32)                 # (H, 513)
    b1 = params["b1"].astype(jnp.float32)                 # (H,)
    wih_t = params["w_ih"].T.astype(jnp.float32)          # (H, 4H)
    whh_t = params["w_hh"].T.astype(jnp.float32)          # (H, 4H)
    bias_lstm = (params["b_ih"] + params["b_hh"]).astype(jnp.float32)   # (4H,)

    w1_feat_t = w1[:, :FEATURE_DIM].T                     # (512, H)
    w1_flag = w1[:, FEATURE_DIM]                          # (H,)  weight of flag channel

    wcomb = w1_feat_t @ wih_t                             # (512, 4H)
    bias_clip = (b1 + w1_flag) @ wih_t + bias_lstm        # timesteps with flag = 1
    bias_test = b1 @ wih_t + bias_lstm                    # timesteps with flag = 0

    T = int(length_clips) + int(length_tests)
    is_clip = (jnp.arange(T) < int(length_clips))[:, None]
    bias_mat = jnp.where(is_clip, bias_clip[None, :], bias_test[None, :])  # (T, 4H)

    w2t = jnp.zeros((H, HIDDEN2_PAD), jnp.float32).at[:, :HIDDEN2].set(params["w2"].T)
    b2 = jnp.zeros((1, HIDDEN2_PAD), jnp.float32).at[0, :HIDDEN2].set(params["b2"])
    w3t = jnp.zeros((HIDDEN2_PAD, 1), jnp.float32).at[:HIDDEN2, :].set(params["w3"].T)
    b3 = params["b3"].reshape(1, 1).astype(jnp.float32)

    return dict(wcomb=wcomb, bias_mat=bias_mat, whh_t=whh_t,
                w2t=w2t, b2=b2, w3t=w3t, b3=b3)


def clip_memorizer_forward(fused, x, indices_classifier, batch_size,
                           length_clips, length_tests):
    """ClipMemorizer.forward, input_type='clip' path (single fused Pallas call)."""
    batch_size = int(batch_size)
    length_clips = int(length_clips)
    length_tests = int(length_tests)
    # 'clip' path reshapes to batch 1 (same implicit assumption as the PyTorch code).
    assert batch_size == 1
    T = length_clips + length_tests

    x_feat = x.reshape(T, FEATURE_DIM).astype(jnp.float32)
    idx = indices_classifier.astype(jnp.int32)
    n_sel = idx.shape[0]

    y = pl.pallas_call(
        _fused_kernel,
        out_shape=jax.ShapeDtypeStruct((n_sel, 1), jnp.float32),
        in_specs=[SMEM_SPEC] + [VMEM_SPEC] * 8,
        out_specs=VMEM_SPEC,
        scratch_shapes=[pltpu.VMEM((T, MEMORY_DIM), jnp.float32)],
    )(idx, x_feat, fused["wcomb"], fused["bias_mat"], fused["whh_t"],
      fused["w2t"], fused["b2"], fused["w3t"], fused["b3"])
    return jnp.squeeze(y)


# --------------------------- pure-JAX reference ------------------------------

def reference_forward(params, x, indices_classifier, batch_size,
                      length_clips, length_tests):
    H = MEMORY_DIM
    x = x.reshape((1, -1, FEATURE_DIM)).astype(jnp.float32)
    flags = jnp.concatenate(
        [jnp.ones((batch_size, length_clips, 1), jnp.float32),
         jnp.zeros((batch_size, length_tests, 1), jnp.float32)], axis=1)
    x = jnp.concatenate([x, flags], axis=2)
    B, T, _ = x.shape
    z = (x.reshape(B * T, DIM) @ params["w1"].T + params["b1"]).reshape(B, T, H)

    h = jnp.zeros((B, H), jnp.float32)
    c = jnp.zeros((B, H), jnp.float32)
    outs = []
    for t in range(T):
        g = (z[:, t, :] @ params["w_ih"].T + params["b_ih"]
             + h @ params["w_hh"].T + params["b_hh"])
        i_g = jax.nn.sigmoid(g[:, 0 * H:1 * H])
        f_g = jax.nn.sigmoid(g[:, 1 * H:2 * H])
        g_g = jnp.tanh(g[:, 2 * H:3 * H])
        o_g = jax.nn.sigmoid(g[:, 3 * H:4 * H])
        c = f_g * c + i_g * g_g
        h = o_g * jnp.tanh(c)
        outs.append(jnp.maximum(h, 0.0))
    hs = jnp.stack(outs, axis=1)                             # (B, T, H)
    sel = hs[:, indices_classifier, :].reshape(-1, H)
    y = jnp.maximum(sel @ params["w2"].T + params["b2"], 0.0)
    y = y @ params["w3"].T + params["b3"]
    return jnp.squeeze(jax.nn.sigmoid(y))


# ---------------------------------- main -------------------------------------

if __name__ == "__main__":
    key = jax.random.PRNGKey(0)
    k_param, k_x = jax.random.split(key)

    batch_size, length_clips, length_tests = 1, 6, 2        # 'clip' path => batch 1
    T = length_clips + length_tests

    params = init_params(k_param)
    fused = fuse_params(params, length_clips, length_tests)  # one-time folding

    x = jax.random.normal(k_x, (T, FEATURE_DIM), jnp.float32)
    indices_classifier = jnp.array([length_clips, length_clips + 1], dtype=jnp.int32)

    out = clip_memorizer_forward(fused, x, indices_classifier,
                                 batch_size, length_clips, length_tests)
    out = jax.block_until_ready(out)

    ref = reference_forward(params, x, indices_classifier,
                            batch_size, length_clips, length_tests)
    assert out.shape == ref.shape
    assert jnp.allclose(out, ref, rtol=1e-3, atol=1e-3), (out, ref)

    print("KERNEL_OK")
</pallas_src>

<mosaic_0001>
module attributes {stable_mosaic.version = 11 : i64} {
  func.func @_fused_kernel(%arg0: memref<2xi32, #tpu.memory_space<smem>>, %arg1: memref<8x512xf32, #tpu.memory_space<vmem>>, %arg2: memref<512x1024xf32, #tpu.memory_space<vmem>>, %arg3: memref<8x1024xf32, #tpu.memory_space<vmem>>, %arg4: memref<256x1024xf32, #tpu.memory_space<vmem>>, %arg5: memref<256x128xf32, #tpu.memory_space<vmem>>, %arg6: memref<1x128xf32, #tpu.memory_space<vmem>>, %arg7: memref<128x1xf32, #tpu.memory_space<vmem>>, %arg8: memref<1x1xf32, #tpu.memory_space<vmem>>, %arg9: memref<2x1xf32, #tpu.memory_space<vmem>>, %arg10: memref<8x256xf32, #tpu.memory_space<vmem>>) attributes {dimension_semantics = [], scalar_prefetch = 0 : i64, scratch_operands = 1 : i64, tpu.core_type = #tpu.core_type<tc>} {
    %c0 = arith.constant 0 : index
    %c0_0 = arith.constant 0 : index
    %0 = vector.load %arg1[%c0, %c0_0] : memref<8x512xf32, #tpu.memory_space<vmem>>, vector<8x512xf32>
    %c0_1 = arith.constant 0 : index
    %c0_2 = arith.constant 0 : index
    %1 = vector.load %arg2[%c0_1, %c0_2] : memref<512x1024xf32, #tpu.memory_space<vmem>>, vector<512x1024xf32>
    %cst = arith.constant dense<0.000000e+00> : vector<8x1024xf32>
    %2 = tpu.matmul %0, %1, %cst {dimension_numbers = #tpu.dot_dimension_numbers<[1], [0], [0], [1], [0, 0, 1, 1], [], []>} : vector<8x512xf32>, vector<512x1024xf32>, vector<8x1024xf32> -> vector<8x1024xf32>
    %c0_3 = arith.constant 0 : index
    %c0_4 = arith.constant 0 : index
    %3 = vector.load %arg3[%c0_3, %c0_4] : memref<8x1024xf32, #tpu.memory_space<vmem>>, vector<8x1024xf32>
    %4 = arith.addf %2, %3 : vector<8x1024xf32>
    %c0_5 = arith.constant 0 : index
    %c0_6 = arith.constant 0 : index
    %5 = vector.load %arg4[%c0_5, %c0_6] : memref<256x1024xf32, #tpu.memory_space<vmem>>, vector<256x1024xf32>
    %cst_7 = arith.constant 0.000000e+00 : f32
    %6 = vector.broadcast %cst_7 : f32 to vector<1x256xf32>
    %cst_8 = arith.constant 0.000000e+00 : f32
    %7 = vector.broadcast %cst_8 : f32 to vector<1x256xf32>
    %8 = vector.extract_strided_slice %4 {offsets = [0, 0], sizes = [1, 1024], strides = [1, 1]} : vector<8x1024xf32> to vector<1x1024xf32>
    %cst_9 = arith.constant dense<0.000000e+00> : vector<1x1024xf32>
    %9 = tpu.matmul %6, %5, %cst_9 {dimension_numbers = #tpu.dot_dimension_numbers<[1], [0], [0], [1], [0, 0, 1, 1], [], []>} : vector<1x256xf32>, vector<256x1024xf32>, vector<1x1024xf32> -> vector<1x1024xf32>
    %10 = arith.addf %8, %9 : vector<1x1024xf32>
    %11 = vector.extract_strided_slice %10 {offsets = [0, 0], sizes = [1, 256], strides = [1, 1]} : vector<1x1024xf32> to vector<1x256xf32>
    %12 = arith.negf %11 : vector<1x256xf32>
    %13 = math.exp %12 : vector<1x256xf32>
    %cst_10 = arith.constant 1.000000e+00 : f32
    %14 = vector.broadcast %cst_10 : f32 to vector<1x256xf32>
    %15 = arith.addf %14, %13 : vector<1x256xf32>
    %16 = arith.divf %14, %15 : vector<1x256xf32>
    %17 = vector.extract_strided_slice %10 {offsets = [0, 256], sizes = [1, 256], strides = [1, 1]} : vector<1x1024xf32> to vector<1x256xf32>
    %18 = arith.negf %17 : vector<1x256xf32>
    %19 = math.exp %18 : vector<1x256xf32>
    %cst_11 = arith.constant 1.000000e+00 : f32
    %20 = vector.broadcast %cst_11 : f32 to vector<1x256xf32>
    %21 = arith.addf %20, %19 : vector<1x256xf32>
    %22 = arith.divf %20, %21 : vector<1x256xf32>
    %23 = vector.extract_strided_slice %10 {offsets = [0, 512], sizes = [1, 256], strides = [1, 1]} : vector<1x1024xf32> to vector<1x256xf32>
    %24 = math.tanh %23 : vector<1x256xf32>
    %25 = vector.extract_strided_slice %10 {offsets = [0, 768], sizes = [1, 256], strides = [1, 1]} : vector<1x1024xf32> to vector<1x256xf32>
    %26 = arith.negf %25 : vector<1x256xf32>
    %27 = math.exp %26 : vector<1x256xf32>
    %cst_12 = arith.constant 1.000000e+00 : f32
    %28 = vector.broadcast %cst_12 : f32 to vector<1x256xf32>
    %29 = arith.addf %28, %27 : vector<1x256xf32>
    %30 = arith.divf %28, %29 : vector<1x256xf32>
    %31 = arith.mulf %22, %7 : vector<1x256xf32>
    %32 = arith.mulf %16, %24 : vector<1x256xf32>
    %33 = arith.addf %31, %32 : vector<1x256xf32>
    %34 = math.tanh %33 : vector<1x256xf32>
    %35 = arith.mulf %30, %34 : vector<1x256xf32>
    %cst_13 = arith.constant 0.000000e+00 : f32
    %36 = vector.broadcast %cst_13 : f32 to vector<1x256xf32>
    %37 = arith.maximumf %35, %36 : vector<1x256xf32>
    %c0_14 = arith.constant 0 : index
    %c0_15 = arith.constant 0 : index
    %38 = vector.load %arg10[%c0_14, %c0_15] : memref<8x256xf32, #tpu.memory_space<vmem>>, vector<1x256xf32>
    tpu.vector_store %arg10[%c0_14, %c0_15], %37 {strides = array<i32>} : memref<8x256xf32, #tpu.memory_space<vmem>>, vector<1x256xf32>,
    %39 = vector.extract_strided_slice %4 {offsets = [1, 0], sizes = [1, 1024], strides = [1, 1]} : vector<8x1024xf32> to vector<1x1024xf32>
    %cst_16 = arith.constant dense<0.000000e+00> : vector<1x1024xf32>
    %40 = tpu.matmul %35, %5, %cst_16 {dimension_numbers = #tpu.dot_dimension_numbers<[1], [0], [0], [1], [0, 0, 1, 1], [], []>} : vector<1x256xf32>, vector<256x1024xf32>, vector<1x1024xf32> -> vector<1x1024xf32>
    %41 = arith.addf %39, %40 : vector<1x1024xf32>
    %42 = vector.extract_strided_slice %41 {offsets = [0, 0], sizes = [1, 256], strides = [1, 1]} : vector<1x1024xf32> to vector<1x256xf32>
    %43 = arith.negf %42 : vector<1x256xf32>
    %44 = math.exp %43 : vector<1x256xf32>
    %cst_17 = arith.constant 1.000000e+00 : f32
    %45 = vector.broadcast %cst_17 : f32 to vector<1x256xf32>
    %46 = arith.addf %45, %44 : vector<1x256xf32>
    %47 = arith.divf %45, %46 : vector<1x256xf32>
    %48 = vector.extract_strided_slice %41 {offsets = [0, 256], sizes = [1, 256], strides = [1, 1]} : vector<1x1024xf32> to vector<1x256xf32>
    %49 = arith.negf %48 : vector<1x256xf32>
    %50 = math.exp %49 : vector<1x256xf32>
    %cst_18 = arith.constant 1.000000e+00 : f32
    %51 = vector.broadcast %cst_18 : f32 to vector<1x256xf32>
    %52 = arith.addf %51, %50 : vector<1x256xf32>
    %53 = arith.divf %51, %52 : vector<1x256xf32>
    %54 = vector.extract_strided_slice %41 {offsets = [0, 512], sizes = [1, 256], strides = [1, 1]} : vector<1x1024xf32> to vector<1x256xf32>
    %55 = math.tanh %54 : vector<1x256xf32>
    %56 = vector.extract_strided_slice %41 {offsets = [0, 768], sizes = [1, 256], strides = [1, 1]} : vector<1x1024xf32> to vector<1x256xf32>
    %57 = arith.negf %56 : vector<1x256xf32>
    %58 = math.exp %57 : vector<1x256xf32>
    %cst_19 = arith.constant 1.000000e+00 : f32
    %59 = vector.broadcast %cst_19 : f32 to vector<1x256xf32>
    %60 = arith.addf %59, %58 : vector<1x256xf32>
    %61 = arith.divf %59, %60 : vector<1x256xf32>
    %62 = arith.mulf %53, %33 : vector<1x256xf32>
    %63 = arith.mulf %47, %55 : vector<1x256xf32>
    %64 = arith.addf %62, %63 : vector<1x256xf32>
    %65 = math.tanh %64 : vector<1x256xf32>
    %66 = arith.mulf %61, %65 : vector<1x256xf32>
    %cst_20 = arith.constant 0.000000e+00 : f32
    %67 = vector.broadcast %cst_20 : f32 to vector<1x256xf32>
    %68 = arith.maximumf %66, %67 : vector<1x256xf32>
    %c1 = arith.constant 1 : index
    %c0_21 = arith.constant 0 : index
    %69 = vector.load %arg10[%c1, %c0_21] : memref<8x256xf32, #tpu.memory_space<vmem>>, vector<1x256xf32>
    tpu.vector_store %arg10[%c1, %c0_21], %68 {strides = array<i32>} : memref<8x256xf32, #tpu.memory_space<vmem>>, vector<1x256xf32>,
    %70 = vector.extract_strided_slice %4 {offsets = [2, 0], sizes = [1, 1024], strides = [1, 1]} : vector<8x1024xf32> to vector<1x1024xf32>
    %cst_22 = arith.constant dense<0.000000e+00> : vector<1x1024xf32>
    %71 = tpu.matmul %66, %5, %cst_22 {dimension_numbers = #tpu.dot_dimension_numbers<[1], [0], [0], [1], [0, 0, 1, 1], [], []>} : vector<1x256xf32>, vector<256x1024xf32>, vector<1x1024xf32> -> vector<1x1024xf32>
    %72 = arith.addf %70, %71 : vector<1x1024xf32>
    %73 = vector.extract_strided_slice %72 {offsets = [0, 0], sizes = [1, 256], strides = [1, 1]} : vector<1x1024xf32> to vector<1x256xf32>
    %74 = arith.negf %73 : vector<1x256xf32>
    %75 = math.exp %74 : vector<1x256xf32>
    %cst_23 = arith.constant 1.000000e+00 : f32
    %76 = vector.broadcast %cst_23 : f32 to vector<1x256xf32>
    %77 = arith.addf %76, %75 : vector<1x256xf32>
    %78 = arith.divf %76, %77 : vector<1x256xf32>
    %79 = vector.extract_strided_slice %72 {offsets = [0, 256], sizes = [1, 256], strides = [1, 1]} : vector<1x1024xf32> to vector<1x256xf32>
    %80 = arith.negf %79 : vector<1x256xf32>
    %81 = math.exp %80 : vector<1x256xf32>
    %cst_24 = arith.constant 1.000000e+00 : f32
    %82 = vector.broadcast %cst_24 : f32 to vector<1x256xf32>
    %83 = arith.addf %82, %81 : vector<1x256xf32>
    %84 = arith.divf %82, %83 : vector<1x256xf32>
    %85 = vector.extract_strided_slice %72 {offsets = [0, 512], sizes = [1, 256], strides = [1, 1]} : vector<1x1024xf32> to vector<1x256xf32>
    %86 = math.tanh %85 : vector<1x256xf32>
    %87 = vector.extract_strided_slice %72 {offsets = [0, 768], sizes = [1, 256], strides = [1, 1]} : vector<1x1024xf32> to vector<1x256xf32>
    %88 = arith.negf %87 : vector<1x256xf32>
    %89 = math.exp %88 : vector<1x256xf32>
    %cst_25 = arith.constant 1.000000e+00 : f32
    %90 = vector.broadcast %cst_25 : f32 to vector<1x256xf32>
    %91 = arith.addf %90, %89 : vector<1x256xf32>
    %92 = arith.divf %90, %91 : vector<1x256xf32>
    %93 = arith.mulf %84, %64 : vector<1x256xf32>
    %94 = arith.mulf %78, %86 : vector<1x256xf32>
    %95 = arith.addf %93, %94 : vector<1x256xf32>
    %96 = math.tanh %95 : vector<1x256xf32>
    %97 = arith.mulf %92, %96 : vector<1x256xf32>
    %cst_26 = arith.constant 0.000000e+00 : f32
    %98 = vector.broadcast %cst_26 : f32 to vector<1x256xf32>
    %99 = arith.maximumf %97, %98 : vector<1x256xf32>
    %c2 = arith.constant 2 : index
    %c0_27 = arith.constant 0 : index
    %100 = vector.load %arg10[%c2, %c0_27] : memref<8x256xf32, #tpu.memory_space<vmem>>, vector<1x256xf32>
    tpu.vector_store %arg10[%c2, %c0_27], %99 {strides = array<i32>} : memref<8x256xf32, #tpu.memory_space<vmem>>, vector<1x256xf32>,
    %101 = vector.extract_strided_slice %4 {offsets = [3, 0], sizes = [1, 1024], strides = [1, 1]} : vector<8x1024xf32> to vector<1x1024xf32>
    %cst_28 = arith.constant dense<0.000000e+00> : vector<1x1024xf32>
    %102 = tpu.matmul %97, %5, %cst_28 {dimension_numbers = #tpu.dot_dimension_numbers<[1], [0], [0], [1], [0, 0, 1, 1], [], []>} : vector<1x256xf32>, vector<256x1024xf32>, vector<1x1024xf32> -> vector<1x1024xf32>
    %103 = arith.addf %101, %102 : vector<1x1024xf32>
    %104 = vector.extract_strided_slice %103 {offsets = [0, 0], sizes = [1, 256], strides = [1, 1]} : vector<1x1024xf32> to vector<1x256xf32>
    %105 = arith.negf %104 : vector<1x256xf32>
    %106 = math.exp %105 : vector<1x256xf32>
    %cst_29 = arith.constant 1.000000e+00 : f32
    %107 = vector.broadcast %cst_29 : f32 to vector<1x256xf32>
    %108 = arith.addf %107, %106 : vector<1x256xf32>
    %109 = arith.divf %107, %108 : vector<1x256xf32>
    %110 = vector.extract_strided_slice %103 {offsets = [0, 256], sizes = [1, 256], strides = [1, 1]} : vector<1x1024xf32> to vector<1x256xf32>
    %111 = arith.negf %110 : vector<1x256xf32>
    %112 = math.exp %111 : vector<1x256xf32>
    %cst_30 = arith.constant 1.000000e+00 : f32
    %113 = vector.broadcast %cst_30 : f32 to vector<1x256xf32>
    %114 = arith.addf %113, %112 : vector<1x256xf32>
    %115 = arith.divf %113, %114 : vector<1x256xf32>
    %116 = vector.extract_strided_slice %103 {offsets = [0, 512], sizes = [1, 256], strides = [1, 1]} : vector<1x1024xf32> to vector<1x256xf32>
    %117 = math.tanh %116 : vector<1x256xf32>
    %118 = vector.extract_strided_slice %103 {offsets = [0, 768], sizes = [1, 256], strides = [1, 1]} : vector<1x1024xf32> to vector<1x256xf32>
    %119 = arith.negf %118 : vector<1x256xf32>
    %120 = math.exp %119 : vector<1x256xf32>
    %cst_31 = arith.constant 1.000000e+00 : f32
    %121 = vector.broadcast %cst_31 : f32 to vector<1x256xf32>
    %122 = arith.addf %121, %120 : vector<1x256xf32>
    %123 = arith.divf %121, %122 : vector<1x256xf32>
    %124 = arith.mulf %115, %95 : vector<1x256xf32>
    %125 = arith.mulf %109, %117 : vector<1x256xf32>
    %126 = arith.addf %124, %125 : vector<1x256xf32>
    %127 = math.tanh %126 : vector<1x256xf32>
    %128 = arith.mulf %123, %127 : vector<1x256xf32>
    %cst_32 = arith.constant 0.000000e+00 : f32
    %129 = vector.broadcast %cst_32 : f32 to vector<1x256xf32>
    %130 = arith.maximumf %128, %129 : vector<1x256xf32>
    %c3 = arith.constant 3 : index
    %c0_33 = arith.constant 0 : index
    %131 = vector.load %arg10[%c3, %c0_33] : memref<8x256xf32, #tpu.memory_space<vmem>>, vector<1x256xf32>
    tpu.vector_store %arg10[%c3, %c0_33], %130 {strides = array<i32>} : memref<8x256xf32, #tpu.memory_space<vmem>>, vector<1x256xf32>,
    %132 = vector.extract_strided_slice %4 {offsets = [4, 0], sizes = [1, 1024], strides = [1, 1]} : vector<8x1024xf32> to vector<1x1024xf32>
    %cst_34 = arith.constant dense<0.000000e+00> : vector<1x1024xf32>
    %133 = tpu.matmul %128, %5, %cst_34 {dimension_numbers = #tpu.dot_dimension_numbers<[1], [0], [0], [1], [0, 0, 1, 1], [], []>} : vector<1x256xf32>, vector<256x1024xf32>, vector<1x1024xf32> -> vector<1x1024xf32>
    %134 = arith.addf %132, %133 : vector<1x1024xf32>
    %135 = vector.extract_strided_slice %134 {offsets = [0, 0], sizes = [1, 256], strides = [1, 1]} : vector<1x1024xf32> to vector<1x256xf32>
    %136 = arith.negf %135 : vector<1x256xf32>
    %137 = math.exp %136 : vector<1x256xf32>
    %cst_35 = arith.constant 1.000000e+00 : f32
    %138 = vector.broadcast %cst_35 : f32 to vector<1x256xf32>
    %139 = arith.addf %138, %137 : vector<1x256xf32>
    %140 = arith.divf %138, %139 : vector<1x256xf32>
    %141 = vector.extract_strided_slice %134 {offsets = [0, 256], sizes = [1, 256], strides = [1, 1]} : vector<1x1024xf32> to vector<1x256xf32>
    %142 = arith.negf %141 : vector<1x256xf32>
    %143 = math.exp %142 : vector<1x256xf32>
    %cst_36 = arith.constant 1.000000e+00 : f32
    %144 = vector.broadcast %cst_36 : f32 to vector<1x256xf32>
    %145 = arith.addf %144, %143 : vector<1x256xf32>
    %146 = arith.divf %144, %145 : vector<1x256xf32>
    %147 = vector.extract_strided_slice %134 {offsets = [0, 512], sizes = [1, 256], strides = [1, 1]} : vector<1x1024xf32> to vector<1x256xf32>
    %148 = math.tanh %147 : vector<1x256xf32>
    %149 = vector.extract_strided_slice %134 {offsets = [0, 768], sizes = [1, 256], strides = [1, 1]} : vector<1x1024xf32> to vector<1x256xf32>
    %150 = arith.negf %149 : vector<1x256xf32>
    %151 = math.exp %150 : vector<1x256xf32>
    %cst_37 = arith.constant 1.000000e+00 : f32
    %152 = vector.broadcast %cst_37 : f32 to vector<1x256xf32>
    %153 = arith.addf %152, %151 : vector<1x256xf32>
    %154 = arith.divf %152, %153 : vector<1x256xf32>
    %155 = arith.mulf %146, %126 : vector<1x256xf32>
    %156 = arith.mulf %140, %148 : vector<1x256xf32>
    %157 = arith.addf %155, %156 : vector<1x256xf32>
    %158 = math.tanh %157 : vector<1x256xf32>
    %159 = arith.mulf %154, %158 : vector<1x256xf32>
    %cst_38 = arith.constant 0.000000e+00 : f32
    %160 = vector.broadcast %cst_38 : f32 to vector<1x256xf32>
    %161 = arith.maximumf %159, %160 : vector<1x256xf32>
    %c4 = arith.constant 4 : index
    %c0_39 = arith.constant 0 : index
    %162 = vector.load %arg10[%c4, %c0_39] : memref<8x256xf32, #tpu.memory_space<vmem>>, vector<1x256xf32>
    tpu.vector_store %arg10[%c4, %c0_39], %161 {strides = array<i32>} : memref<8x256xf32, #tpu.memory_space<vmem>>, vector<1x256xf32>,
    %163 = vector.extract_strided_slice %4 {offsets = [5, 0], sizes = [1, 1024], strides = [1, 1]} : vector<8x1024xf32> to vector<1x1024xf32>
    %cst_40 = arith.constant dense<0.000000e+00> : vector<1x1024xf32>
    %164 = tpu.matmul %159, %5, %cst_40 {dimension_numbers = #tpu.dot_dimension_numbers<[1], [0], [0], [1], [0, 0, 1, 1], [], []>} : vector<1x256xf32>, vector<256x1024xf32>, vector<1x1024xf32> -> vector<1x1024xf32>
    %165 = arith.addf %163, %164 : vector<1x1024xf32>
    %166 = vector.extract_strided_slice %165 {offsets = [0, 0], sizes = [1, 256], strides = [1, 1]} : vector<1x1024xf32> to vector<1x256xf32>
    %167 = arith.negf %166 : vector<1x256xf32>
    %168 = math.exp %167 : vector<1x256xf32>
    %cst_41 = arith.constant 1.000000e+00 : f32
    %169 = vector.broadcast %cst_41 : f32 to vector<1x256xf32>
    %170 = arith.addf %169, %168 : vector<1x256xf32>
    %171 = arith.divf %169, %170 : vector<1x256xf32>
    %172 = vector.extract_strided_slice %165 {offsets = [0, 256], sizes = [1, 256], strides = [1, 1]} : vector<1x1024xf32> to vector<1x256xf32>
    %173 = arith.negf %172 : vector<1x256xf32>
    %174 = math.exp %173 : vector<1x256xf32>
    %cst_42 = arith.constant 1.000000e+00 : f32
    %175 = vector.broadcast %cst_42 : f32 to vector<1x256xf32>
    %176 = arith.addf %175, %174 : vector<1x256xf32>
    %177 = arith.divf %175, %176 : vector<1x256xf32>
    %178 = vector.extract_strided_slice %165 {offsets = [0, 512], sizes = [1, 256], strides = [1, 1]} : vector<1x1024xf32> to vector<1x256xf32>
    %179 = math.tanh %178 : vector<1x256xf32>
    %180 = vector.extract_strided_slice %165 {offsets = [0, 768], sizes = [1, 256], strides = [1, 1]} : vector<1x1024xf32> to vector<1x256xf32>
    %181 = arith.negf %180 : vector<1x256xf32>
    %182 = math.exp %181 : vector<1x256xf32>
    %cst_43 = arith.constant 1.000000e+00 : f32
    %183 = vector.broadcast %cst_43 : f32 to vector<1x256xf32>
    %184 = arith.addf %183, %182 : vector<1x256xf32>
    %185 = arith.divf %183, %184 : vector<1x256xf32>
    %186 = arith.mulf %177, %157 : vector<1x256xf32>
    %187 = arith.mulf %171, %179 : vector<1x256xf32>
    %188 = arith.addf %186, %187 : vector<1x256xf32>
    %189 = math.tanh %188 : vector<1x256xf32>
    %190 = arith.mulf %185, %189 : vector<1x256xf32>
    %cst_44 = arith.constant 0.000000e+00 : f32
    %191 = vector.broadcast %cst_44 : f32 to vector<1x256xf32>
    %192 = arith.maximumf %190, %191 : vector<1x256xf32>
    %c5 = arith.constant 5 : index
    %c0_45 = arith.constant 0 : index
    %193 = vector.load %arg10[%c5, %c0_45] : memref<8x256xf32, #tpu.memory_space<vmem>>, vector<1x256xf32>
    tpu.vector_store %arg10[%c5, %c0_45], %192 {strides = array<i32>} : memref<8x256xf32, #tpu.memory_space<vmem>>, vector<1x256xf32>,
    %194 = vector.extract_strided_slice %4 {offsets = [6, 0], sizes = [1, 1024], strides = [1, 1]} : vector<8x1024xf32> to vector<1x1024xf32>
    %cst_46 = arith.constant dense<0.000000e+00> : vector<1x1024xf32>
    %195 = tpu.matmul %190, %5, %cst_46 {dimension_numbers = #tpu.dot_dimension_numbers<[1], [0], [0], [1], [0, 0, 1, 1], [], []>} : vector<1x256xf32>, vector<256x1024xf32>, vector<1x1024xf32> -> vector<1x1024xf32>
    %196 = arith.addf %194, %195 : vector<1x1024xf32>
    %197 = vector.extract_strided_slice %196 {offsets = [0, 0], sizes = [1, 256], strides = [1, 1]} : vector<1x1024xf32> to vector<1x256xf32>
    %198 = arith.negf %197 : vector<1x256xf32>
    %199 = math.exp %198 : vector<1x256xf32>
    %cst_47 = arith.constant 1.000000e+00 : f32
    %200 = vector.broadcast %cst_47 : f32 to vector<1x256xf32>
    %201 = arith.addf %200, %199 : vector<1x256xf32>
    %202 = arith.divf %200, %201 : vector<1x256xf32>
    %203 = vector.extract_strided_slice %196 {offsets = [0, 256], sizes = [1, 256], strides = [1, 1]} : vector<1x1024xf32> to vector<1x256xf32>
    %204 = arith.negf %203 : vector<1x256xf32>
    %205 = math.exp %204 : vector<1x256xf32>
    %cst_48 = arith.constant 1.000000e+00 : f32
    %206 = vector.broadcast %cst_48 : f32 to vector<1x256xf32>
    %207 = arith.addf %206, %205 : vector<1x256xf32>
    %208 = arith.divf %206, %207 : vector<1x256xf32>
    %209 = vector.extract_strided_slice %196 {offsets = [0, 512], sizes = [1, 256], strides = [1, 1]} : vector<1x1024xf32> to vector<1x256xf32>
    %210 = math.tanh %209 : vector<1x256xf32>
    %211 = vector.extract_strided_slice %196 {offsets = [0, 768], sizes = [1, 256], strides = [1, 1]} : vector<1x1024xf32> to vector<1x256xf32>
    %212 = arith.negf %211 : vector<1x256xf32>
    %213 = math.exp %212 : vector<1x256xf32>
    %cst_49 = arith.constant 1.000000e+00 : f32
    %214 = vector.broadcast %cst_49 : f32 to vector<1x256xf32>
    %215 = arith.addf %214, %213 : vector<1x256xf32>
    %216 = arith.divf %214, %215 : vector<1x256xf32>
    %217 = arith.mulf %208, %188 : vector<1x256xf32>
    %218 = arith.mulf %202, %210 : vector<1x256xf32>
    %219 = arith.addf %217, %218 : vector<1x256xf32>
    %220 = math.tanh %219 : vector<1x256xf32>
    %221 = arith.mulf %216, %220 : vector<1x256xf32>
    %cst_50 = arith.constant 0.000000e+00 : f32
    %222 = vector.broadcast %cst_50 : f32 to vector<1x256xf32>
    %223 = arith.maximumf %221, %222 : vector<1x256xf32>
    %c6 = arith.constant 6 : index
    %c0_51 = arith.constant 0 : index
    %224 = vector.load %arg10[%c6, %c0_51] : memref<8x256xf32, #tpu.memory_space<vmem>>, vector<1x256xf32>
    tpu.vector_store %arg10[%c6, %c0_51], %223 {strides = array<i32>} : memref<8x256xf32, #tpu.memory_space<vmem>>, vector<1x256xf32>,
    %225 = vector.extract_strided_slice %4 {offsets = [7, 0], sizes = [1, 1024], strides = [1, 1]} : vector<8x1024xf32> to vector<1x1024xf32>
    %cst_52 = arith.constant dense<0.000000e+00> : vector<1x1024xf32>
    %226 = tpu.matmul %221, %5, %cst_52 {dimension_numbers = #tpu.dot_dimension_numbers<[1], [0], [0], [1], [0, 0, 1, 1], [], []>} : vector<1x256xf32>, vector<256x1024xf32>, vector<1x1024xf32> -> vector<1x1024xf32>
    %227 = arith.addf %225, %226 : vector<1x1024xf32>
    %228 = vector.extract_strided_slice %227 {offsets = [0, 0], sizes = [1, 256], strides = [1, 1]} : vector<1x1024xf32> to vector<1x256xf32>
    %229 = arith.negf %228 : vector<1x256xf32>
    %230 = math.exp %229 : vector<1x256xf32>
    %cst_53 = arith.constant 1.000000e+00 : f32
    %231 = vector.broadcast %cst_53 : f32 to vector<1x256xf32>
    %232 = arith.addf %231, %230 : vector<1x256xf32>
    %233 = arith.divf %231, %232 : vector<1x256xf32>
    %234 = vector.extract_strided_slice %227 {offsets = [0, 256], sizes = [1, 256], strides = [1, 1]} : vector<1x1024xf32> to vector<1x256xf32>
    %235 = arith.negf %234 : vector<1x256xf32>
    %236 = math.exp %235 : vector<1x256xf32>
    %cst_54 = arith.constant 1.000000e+00 : f32
    %237 = vector.broadcast %cst_54 : f32 to vector<1x256xf32>
    %238 = arith.addf %237, %236 : vector<1x256xf32>
    %239 = arith.divf %237, %238 : vector<1x256xf32>
    %240 = vector.extract_strided_slice %227 {offsets = [0, 512], sizes = [1, 256], strides = [1, 1]} : vector<1x1024xf32> to vector<1x256xf32>
    %241 = math.tanh %240 : vector<1x256xf32>
    %242 = vector.extract_strided_slice %227 {offsets = [0, 768], sizes = [1, 256], strides = [1, 1]} : vector<1x1024xf32> to vector<1x256xf32>
    %243 = arith.negf %242 : vector<1x256xf32>
    %244 = math.exp %243 : vector<1x256xf32>
    %cst_55 = arith.constant 1.000000e+00 : f32
    %245 = vector.broadcast %cst_55 : f32 to vector<1x256xf32>
    %246 = arith.addf %245, %244 : vector<1x256xf32>
    %247 = arith.divf %245, %246 : vector<1x256xf32>
    %248 = arith.mulf %239, %219 : vector<1x256xf32>
    %249 = arith.mulf %233, %241 : vector<1x256xf32>
    %250 = arith.addf %248, %249 : vector<1x256xf32>
    %251 = math.tanh %250 : vector<1x256xf32>
    %252 = arith.mulf %247, %251 : vector<1x256xf32>
    %cst_56 = arith.constant 0.000000e+00 : f32
    %253 = vector.broadcast %cst_56 : f32 to vector<1x256xf32>
    %254 = arith.maximumf %252, %253 : vector<1x256xf32>
    %c7 = arith.constant 7 : index
    %c0_57 = arith.constant 0 : index
    %255 = vector.load %arg10[%c7, %c0_57] : memref<8x256xf32, #tpu.memory_space<vmem>>, vector<1x256xf32>
    tpu.vector_store %arg10[%c7, %c0_57], %254 {strides = array<i32>} : memref<8x256xf32, #tpu.memory_space<vmem>>, vector<1x256xf32>,
    %c0_58 = arith.constant 0 : index
    %256 = memref.load %arg0[%c0_58] : memref<2xi32, #tpu.memory_space<smem>>
    %257 = arith.index_cast %256 : i32 to index
    %c0_59 = arith.constant 0 : index
    %258 = vector.load %arg10[%257, %c0_59] : memref<8x256xf32, #tpu.memory_space<vmem>>, vector<1x256xf32>
    %c1_60 = arith.constant 1 : index
    %259 = memref.load %arg0[%c1_60] : memref<2xi32, #tpu.memory_space<smem>>
    %260 = arith.index_cast %259 : i32 to index
    %c0_61 = arith.constant 0 : index
    %261 = vector.load %arg10[%260, %c0_61] : memref<8x256xf32, #tpu.memory_space<vmem>>, vector<1x256xf32>
    %262 = tpu.concatenate %258, %261 in 0 : vector<1x256xf32>, vector<1x256xf32> -> vector<2x256xf32>
    %c0_62 = arith.constant 0 : index
    %c0_63 = arith.constant 0 : index
    %263 = vector.load %arg5[%c0_62, %c0_63] : memref<256x128xf32, #tpu.memory_space<vmem>>, vector<256x128xf32>
    %cst_64 = arith.constant dense<0.000000e+00> : vector<2x128xf32>
    %264 = tpu.matmul %262, %263, %cst_64 {dimension_numbers = #tpu.dot_dimension_numbers<[1], [0], [0], [1], [0, 0, 1, 1], [], []>} : vector<2x256xf32>, vector<256x128xf32>, vector<2x128xf32> -> vector<2x128xf32>
    %c0_65 = arith.constant 0 : index
    %c0_66 = arith.constant 0 : index
    %265 = vector.load %arg6[%c0_65, %c0_66] : memref<1x128xf32, #tpu.memory_space<vmem>>, vector<1x128xf32>
    %266 = vector.broadcast %265 : vector<1x128xf32> to vector<2x128xf32>
    %267 = arith.addf %264, %266 : vector<2x128xf32>
    %cst_67 = arith.constant 0.000000e+00 : f32
    %268 = vector.broadcast %cst_67 : f32 to vector<2x128xf32>
    %269 = arith.maximumf %267, %268 : vector<2x128xf32>
    %c0_68 = arith.constant 0 : index
    %c0_69 = arith.constant 0 : index
    %270 = vector.load %arg7[%c0_68, %c0_69] : memref<128x1xf32, #tpu.memory_space<vmem>>, vector<128x1xf32>
    %cst_70 = arith.constant dense<0.000000e+00> : vector<2x1xf32>
    %271 = tpu.matmul %269, %270, %cst_70 {dimension_numbers = #tpu.dot_dimension_numbers<[1], [0], [0], [1], [0, 0, 1, 1], [], []>} : vector<2x128xf32>, vector<128x1xf32>, vector<2x1xf32> -> vector<2x1xf32>
    %c0_71 = arith.constant 0 : index
    %c0_72 = arith.constant 0 : index
    %272 = vector.load %arg8[%c0_71, %c0_72] : memref<1x1xf32, #tpu.memory_space<vmem>>, vector<1x1xf32>
    %273 = vector.broadcast %272 : vector<1x1xf32> to vector<2x1xf32>
    %274 = arith.addf %271, %273 : vector<2x1xf32>
    %275 = arith.negf %274 : vector<2x1xf32>
    %276 = math.exp %275 : vector<2x1xf32>
    %cst_73 = arith.constant 1.000000e+00 : f32
    %277 = vector.broadcast %cst_73 : f32 to vector<2x1xf32>
    %278 = arith.addf %277, %276 : vector<2x1xf32>
    %279 = arith.divf %277, %278 : vector<2x1xf32>
    %c0_74 = arith.constant 0 : index
    %c0_75 = arith.constant 0 : index
    %280 = vector.load %arg9[%c0_74, %c0_75] : memref<2x1xf32, #tpu.memory_space<vmem>>, vector<2x1xf32>
    tpu.vector_store %arg9[%c0_74, %c0_75], %279 {strides = array<i32>} : memref<2x1xf32, #tpu.memory_space<vmem>>, vector<2x1xf32>,
    return
  }
}

</mosaic_0001>

<bundles_post_ra>
// kernel: tpu_custom_call.1
= control target key start
LH: loop header
LB: loop body
LE: loop exit
PB: predicated region body
PF: predicated region fallthrough
CT: control target
= control target key end

     0   :  { %s9853_s0 = inlined_call_operand.hbm [shape: s32[2], index: 0, kind: input, shape index: {}]   ;;  %s9854_s1 = inlined_call_operand.hbm [shape: f32[8,512], index: 1, kind: input, shape index: {}]   ;;  %s9855_s2 = inlined_call_operand.hbm [shape: f32[512,1024], index: 2, kind: input, shape index: {}]   ;;  %s9856_s3 = inlined_call_operand.hbm [shape: f32[8,1024], index: 3, kind: input, shape index: {}]   ;;  %s9857_s4 = inlined_call_operand.hbm [shape: f32[256,1024], index: 4, kind: input, shape index: {}]   ;;  %s9858_s5 = inlined_call_operand.hbm [shape: f32[256,128], index: 5, kind: input, shape index: {}]   ;;  %s9859_s6 = inlined_call_operand.hbm [shape: f32[1,128], index: 6, kind: input, shape index: {}]   ;;  %s9860_s7 = inlined_call_operand.vmem [shape: f32[128,1], index: 7, kind: input, shape index: {}]   ;;  %s9861_s8 = inlined_call_operand.<no memory space> [shape: f32[1,1], index: 8, kind: input, shape index: {}]   ;;  %s9862_s9 = inlined_call_operand.vmem [shape: f32[2,1], index: 9, kind: output, shape index: {}]  }
   0x1   :  { %v14_v0 = vstv %s9861_s8 }
   0x2   :  { %15 = vst [vmem:[#allocation3] sm:$0x1] %v14_v0 }
   0x3   :  { %16 = vsyncpa [#allocation6], 0 }
   0x4   :  { %17 = vsyncpa [#allocation5], 0 }
   0x5   :  { %18 = vsyncpa [#allocation9], 0 }
   0x6   :  { %19 = vsyncpa [#allocation12], 0 }
   0x7   :  { %20 = vsyncpa [#allocation15], 0  ;;  %s8107_s11 = smov [#allocation8]   ;;  %s7955_s15 = scalar_lea.hbm %s9855_s2, 65536 }
   0x8   :  { %s44_s12 = sshll.u32 %s8107_s11, 4  ;;  %p7956_p0 = scmp.ne.s32.totalorder %s9855_s2, %s7955_s15  ;;  %s45_s12 = int_to_ptr.vmem [resolvable:$true] %s44_s12 }
   0x9   :  { %p7959_p1 = scmp.lt.u32.totalorder %s7955_s15, %s9855_s2 }
   0xb   :  { %p7961_p2 = pnand %p7959_p1, %p7956_p0 }
   0xd   :  { %7964 = shalt.err (!%p7961_p2)
}
   0xe   :  { %s7965_s8 = scalar_lea.vmem %s45_s12, 65536  ;;  %p7970_p4 = scmp.lt.s32.totalorder %s45_s12, %s45_s12 }
   0xf   :  { %p7966_p3 = scmp.ne.s32.totalorder %s45_s12, %s7965_s8  ;;  %p7971_p5 = scmp.lt.s32.totalorder %s7965_s8, %s7965_s8 }
  0x11   :  { %p7972_p6 = por %p7971_p5, %p7970_p4 }
  0x13   :  { %p7973_p7 = pnand %p7972_p6, %p7966_p3 }
  0x15   :  { %7976 = shalt.err (!%p7973_p7)
}
  0x16   :  { %s8108_s20 = smov 1024   ;;  %s8109_s21 = smov 64  }
  0x17   :  { %50 = dma.hbm_to_vmem [thread:$0]  %s9855_s2, 65536, %s45_s12, [#allocation9], %s8108_s20, %s8108_s20, %s8109_s21  }
  0x18   :  { %s8110_s24 = smov [#allocation11]   ;;  %s7977_s28 = scalar_lea.hbm %s9857_s4, 32768 }
  0x19   :  { %s66_s25 = sshll.u32 %s8110_s24, 4  ;;  %p7978_p8 = scmp.ne.s32.totalorder %s9857_s4, %s7977_s28  ;;  %s67_s25 = int_to_ptr.vmem [resolvable:$true] %s66_s25 }
  0x1a   :  { %p7981_p9 = scmp.lt.u32.totalorder %s7977_s28, %s9857_s4 }
  0x1c   :  { %p7983_p10 = pnand %p7981_p9, %p7978_p8 }
  0x1e   :  { %7986 = shalt.err (!%p7983_p10)
}
  0x1f   :  { %s7987_s13 = scalar_lea.vmem %s67_s25, 32768  ;;  %p7992_p12 = scmp.lt.s32.totalorder %s67_s25, %s67_s25 }
  0x20   :  { %p7988_p11 = scmp.ne.s32.totalorder %s67_s25, %s7987_s13  ;;  %p7993_p13 = scmp.lt.s32.totalorder %s7987_s13, %s7987_s13 }
  0x22   :  { %p7994_p0 = por %p7993_p13, %p7992_p12 }
  0x24   :  { %p7995_p1 = pnand %p7994_p0, %p7988_p11 }
  0x26   :  { %7998 = shalt.err (!%p7995_p1)
}
  0x27   :  { %72 = dma.hbm_to_vmem [thread:$0]  %s9857_s4, 32768, %s67_s25, [#allocation12], %s8108_s20, %s8108_s20, %s8109_s21  }
  0x28   :  { %s7999_s16 = scalar_lea.hbm %s9853_s0, 16 }
  0x29   :  { %p8000_p2 = scmp.ne.s32.totalorder %s9853_s0, %s7999_s16  ;;  %p8003_p3 = scmp.lt.u32.totalorder %s7999_s16, %s9853_s0 }
  0x2b   :  { %p8005_p4 = pnand %p8003_p3, %p8000_p2 }
  0x2d   :  { %8008 = shalt.err (!%p8005_p4)
}
  0x2e   :  { %s8111_s22 = smov [#allocation4]   ;;  %s8112_s4 = smov [#allocation7]  }
  0x2f   :  { %28 = dma.hbm_to_smem %s9853_s0, 16, %s8111_s22, [#allocation6]  }
  0x30   :  { %s35_s20 = sshll.u32 %s8112_s4, 4  ;;  %s8113_s21 = smov [#allocation10]   ;;  %s36_s20 = int_to_ptr.vmem [resolvable:$true] %s35_s20 }
  0x31   :  { %s57_s25 = sshll.u32 %s8113_s21, 4  ;;  %s8009_s28 = scalar_lea.hbm %s9854_s1, 512  ;;  %s58_s25 = int_to_ptr.vmem [resolvable:$true] %s57_s25 }
  0x32   :  { %p8010_p5 = scmp.ne.s32.totalorder %s9854_s1, %s8009_s28  ;;  %p8013_p6 = scmp.lt.u32.totalorder %s8009_s28, %s9854_s1 }
  0x34   :  { %p8015_p7 = pnand %p8013_p6, %p8010_p5 }
  0x36   :  { %8018 = shalt.err (!%p8015_p7)
}
  0x37   :  { %s8019_s0 = scalar_lea.vmem %s36_s20, 512  ;;  %p8024_p9 = scmp.lt.s32.totalorder %s36_s20, %s36_s20 }
  0x38   :  { %p8020_p8 = scmp.ne.s32.totalorder %s36_s20, %s8019_s0  ;;  %p8025_p10 = scmp.lt.s32.totalorder %s8019_s0, %s8019_s0 }
  0x3a   :  { %p8026_p11 = por %p8025_p10, %p8024_p9 }
  0x3c   :  { %p8027_p12 = pnand %p8026_p11, %p8020_p8 }
  0x3e   :  { %8030 = shalt.err (!%p8027_p12)
}
  0x3f   :  { %38 = dma.hbm_to_vmem [thread:$0]  %s9854_s1, 512, %s36_s20, [#allocation5]  }
  0x40   :  { %s8031_s15 = scalar_lea.hbm %s9856_s3, 1024 }
  0x41   :  { %p8032_p13 = scmp.ne.s32.totalorder %s9856_s3, %s8031_s15  ;;  %p8035_p0 = scmp.lt.u32.totalorder %s8031_s15, %s9856_s3 }
  0x43   :  { %p8037_p1 = pnand %p8035_p0, %p8032_p13 }
  0x45   :  { %8040 = shalt.err (!%p8037_p1)
}
  0x46   :  { %s8041_s8 = scalar_lea.vmem %s58_s25, 1024  ;;  %p8046_p3 = scmp.lt.s32.totalorder %s58_s25, %s58_s25 }
  0x47   :  { %p8042_p2 = scmp.ne.s32.totalorder %s58_s25, %s8041_s8  ;;  %p8047_p4 = scmp.lt.s32.totalorder %s8041_s8, %s8041_s8 }
  0x49   :  { %p8048_p5 = por %p8047_p4, %p8046_p3 }
  0x4b   :  { %p8049_p6 = pnand %p8048_p5, %p8042_p2 }
  0x4d   :  { %8052 = shalt.err (!%p8049_p6)
}
  0x4e   :  { %60 = dma.hbm_to_vmem [thread:$0]  %s9856_s3, 1024, %s58_s25, [#allocation9]  }
  0x4f   :  { %s8114_s23 = smov [#allocation13]   ;;  %s8053_s21 = scalar_lea.hbm %s9858_s5, 4096 }
  0x50   :  { %s78_s24 = sshll.u32 %s8114_s23, 4  ;;  %p8054_p7 = scmp.ne.s32.totalorder %s9858_s5, %s8053_s21  ;;  %s79_s24 = int_to_ptr.vmem [resolvable:$true] %s78_s24 }
  0x51   :  { %p8057_p8 = scmp.lt.u32.totalorder %s8053_s21, %s9858_s5 }
  0x53   :  { %p8059_p9 = pnand %p8057_p8, %p8054_p7 }
  0x55   :  { %8062 = shalt.err (!%p8059_p9)
}
  0x56   :  { %s8063_s30 = scalar_lea.vmem %s79_s24, 4096  ;;  %p8068_p11 = scmp.lt.s32.totalorder %s79_s24, %s79_s24 }
  0x57   :  { %p8064_p10 = scmp.ne.s32.totalorder %s79_s24, %s8063_s30  ;;  %p8069_p12 = scmp.lt.s32.totalorder %s8063_s30, %s8063_s30 }
  0x59   :  { %p8070_p13 = por %p8069_p12, %p8068_p11 }
  0x5b   :  { %p8071_p0 = pnand %p8070_p13, %p8064_p10 }
  0x5d   :  { %8074 = shalt.err (!%p8071_p0)
}
  0x5e   :  { %s8115_s3 = smov 128   ;;  %s8116_s25 = smov 8  }
  0x5f   :  { %84 = dma.hbm_to_vmem [thread:$0]  %s9858_s5, 4096, %s79_s24, [#allocation12], %s8115_s3, %s8115_s3, %s8116_s25  }
  0x60   :  { %s8117_s0 = smov [#allocation14]   ;;  %s8075_s14 = scalar_lea.hbm %s9859_s6, 16 }
  0x61   :  { %s91_s13 = sshll.u32 %s8117_s0, 4  ;;  %p8076_p1 = scmp.ne.s32.totalorder %s9859_s6, %s8075_s14  ;;  %s92_s13 = int_to_ptr.vmem [resolvable:$true] %s91_s13 }
  0x62   :  { %p8079_p2 = scmp.lt.u32.totalorder %s8075_s14, %s9859_s6 }
  0x64   :  { %p8081_p3 = pnand %p8079_p2, %p8076_p1 }
  0x66   :  { %8084 = shalt.err (!%p8081_p3)
}
  0x67   :  { %s8085_s19 = scalar_lea.vmem %s92_s13, 16  ;;  %s8089_s5 = scalar_lea.vmem %s92_s13, 32 }
  0x68   :  { %p8086_p4 = scmp.ne.s32.totalorder %s92_s13, %s8085_s19  ;;  %p8090_p5 = scmp.lt.s32.totalorder %s92_s13, %s92_s13 }
  0x69   :  { %p8091_p6 = scmp.lt.s32.totalorder %s8089_s5, %s8085_s19 }
  0x6b   :  { %p8092_p7 = por %p8091_p6, %p8090_p5 }
  0x6d   :  { %p8093_p8 = pnand %p8092_p7, %p8086_p4 }
  0x6f   :  { %8096 = shalt.err (!%p8093_p8)
}
  0x70   :  { %94 = dma.hbm_to_vmem [thread:$0]  %s9859_s6, 16, %s92_s13, [#allocation15]  }
  0x71   :  { %8097 = dma.done.wait [#allocation6], 16  }
  0x72   :  { %8098 = vsyncadd [#allocation6], 4294967280 }
  0x73   :  { %8099 = dma.done.wait [#allocation5], 512  }
  0x74   :  { %8100 = vsyncadd [#allocation5], 4294966784 }
  0x75   :  { %8101 = dma.done.wait [#allocation9], 66560  }
  0x76   :  { %8102 = vsyncadd [#allocation9], 4294900736 }
  0x77   :  { %8103 = dma.done.wait [#allocation12], 36864  }
  0x78   :  { %8104 = vsyncadd [#allocation12], 4294930432 }
  0x79   :  { %8105 = dma.done.wait [#allocation15], 16  }
  0x7a   :  { %8106 = vsyncadd [#allocation15], 4294967280 }
  0x7b   :  { %120 = sfence }
  0x7c   :  { %v126_v1 = vld [vmem:[#allocation8 + $0x8] sm:$0xff]  ;;  %v128_v3 = vld [vmem:[#allocation8 + $0x18] sm:$0xff]  ;;  %v125_v6 = vld [vmem:[#allocation8] sm:$0xff]  ;;  %s4630_s18 = sld [smem:[#allocation4]]  ;;  %s4951_s19 = sld [smem:[#allocation4 + $0x1]]  ;;  %vm4672_vm1 = vcmask 1040384  }
  0x7d   :  { %v134_v2 = vld [vmem:[#allocation8 + $0x48] sm:$0xff]  ;;  %v136_v5 = vld [vmem:[#allocation8 + $0x58] sm:$0xff]  ;;  %v133_v7 = vld [vmem:[#allocation8 + $0x40] sm:$0xff]  ;;  %vm8121_vm2 = vmmov 0   ;;  %vm4884_vm3 = vcmask 1024  }
  0x7e   :  { %v5046_v4 = vpack.c.bf16 %v134_v2, %v126_v1  ;;  %v5174_v8 = vpack.c.bf16 %v136_v5, %v128_v3  ;;  %v5048_v9 = vpack.c.bf16 %v133_v7, %v125_v6  ;;  %v127_v10 = vld [vmem:[#allocation8 + $0x10] sm:$0xff]  ;;  %v142_v12 = vld [vmem:[#allocation8 + $0x88] sm:$0xff]  ;;  %v144_v15 = vld [vmem:[#allocation8 + $0x98] sm:$0xff] }
  0x7f   :  { %v135_v11 = vld [vmem:[#allocation8 + $0x50] sm:$0xff]  ;;  %v150_v14 = vld [vmem:[#allocation8 + $0xc8] sm:$0xff]  ;;  %v152_v16 = vld [vmem:[#allocation8 + $0xd8] sm:$0xff] }
  0x80   :  { %5047 = vmatprep.subr.bf16.mxu0 %v5046_v4  ;;  %v5176_v13 = vpack.c.bf16 %v135_v11, %v127_v10  ;;  %5175 = vmatprep.subr.bf16.mxu1 %v5174_v8  ;;  %v5050_v17 = vpack.c.bf16 %v150_v14, %v142_v12  ;;  %v5178_v18 = vpack.c.bf16 %v152_v16, %v144_v15  ;;  %v141_v19 = vld [vmem:[#allocation8 + $0x80] sm:$0xff]  ;;  %v143_v21 = vld [vmem:[#allocation8 + $0x90] sm:$0xff]  ;;  %v158_v24 = vld [vmem:[#allocation8 + $0x108] sm:$0xff] }
  0x81   :  { %5049 = vmatpush1.bf16.msra.mxu0 %v5048_v9  ;;  %v149_v20 = vld [vmem:[#allocation8 + $0xc0] sm:$0xff]  ;;  %v151_v23 = vld [vmem:[#allocation8 + $0xd0] sm:$0xff]  ;;  %v166_v25 = vld [vmem:[#allocation8 + $0x148] sm:$0xff] }
  0x82   :  { %5177 = vmatpush1.bf16.msra.mxu1 %v5176_v13  ;;  %v5052_v22 = vpack.c.bf16 %v149_v20, %v141_v19  ;;  %5051 = vmatprep.subr.bf16.mxu0 %v5050_v17  ;;  %v5180_v26 = vpack.c.bf16 %v151_v23, %v143_v21  ;;  %v5054_v27 = vpack.c.bf16 %v166_v25, %v158_v24  ;;  %v160_v28 = vld [vmem:[#allocation8 + $0x118] sm:$0xff]  ;;  %v157_v30 = vld [vmem:[#allocation8 + $0x100] sm:$0xff]  ;;  %v159_v33 = vld [vmem:[#allocation8 + $0x110] sm:$0xff]  ;;  %s4631_s5 = sshra.s32 %s4630_s18, 3  ;;  %s4641_s8 = sshra.s32 %s4951_s19, 3 }
  0x83   :  { %5179 = vmatprep.subr.bf16.mxu1 %v5178_v18  ;;  %v168_v29 = vld [vmem:[#allocation8 + $0x158] sm:$0xff]  ;;  %v165_v32 = vld [vmem:[#allocation8 + $0x140] sm:$0xff]  ;;  %v167_v34 = vld [vmem:[#allocation8 + $0x150] sm:$0xff]  ;;  %s4634_s1 = sand.u32 7, %s4630_s18  ;;  %s4957_s6 = sshll.u32 %s4631_s5, 4 }
  0x84   :  { %v5182_v31 = vpack.c.bf16 %v168_v29, %v160_v28  ;;  %v5056_v35 = vpack.c.bf16 %v165_v32, %v157_v30  ;;  %v174_v36 = vld [vmem:[#allocation8 + $0x188] sm:$0xff]  ;;  %v176_v38 = vld [vmem:[#allocation8 + $0x198] sm:$0xff]  ;;  %v5184_v39 = vpack.c.bf16 %v167_v34, %v159_v33  ;;  %v173_v42 = vld [vmem:[#allocation8 + $0x180] sm:$0xff]  ;;  %s4644_s22 = sand.u32 7, %s4951_s19  ;;  %s4958_s23 = sshll.u32 %s4641_s8, 4 }
  0x85   :  { %5053 = vmatpush1.bf16.msra.mxu0 %v5052_v22  ;;  %v182_v37 = vld [vmem:[#allocation8 + $0x1c8] sm:$0xff]  ;;  %v184_v41 = vld [vmem:[#allocation8 + $0x1d8] sm:$0xff]  ;;  %v181_v43 = vld [vmem:[#allocation8 + $0x1c0] sm:$0xff]  ;;  %s4637_s24 = sadd.s32 %s4957_s6, %s4634_s1  ;;  %s4647_s4 = sadd.s32 %s4958_s23, %s4644_s22 }
  0x86   :  { %5181 = vmatpush1.bf16.msra.mxu1 %v5180_v26  ;;  %5055 = vmatprep.subr.bf16.mxu0 %v5054_v27  ;;  %v5058_v40 = vpack.c.bf16 %v182_v37, %v174_v36  ;;  %v5186_v44 = vpack.c.bf16 %v184_v41, %v176_v38  ;;  %v175_v45 = vld [vmem:[#allocation8 + $0x190] sm:$0xff]  ;;  %v190_v47 = vld [vmem:[#allocation8 + $0x208] sm:$0xff]  ;;  %v192_v49 = vld [vmem:[#allocation8 + $0x218] sm:$0xff]  ;;  %v5060_v51 = vpack.c.bf16 %v181_v43, %v173_v42  ;;  %s4638_s20 = scalar_lea.vmem [#allocation2], %s4637_s24  ;;  %s4648_s21 = scalar_lea.vmem [#allocation2], %s4647_s4 }
  0x87   :  { %5183 = vmatprep.subr.bf16.mxu1 %v5182_v31  ;;  %v183_v46 = vld [vmem:[#allocation8 + $0x1d0] sm:$0xff]  ;;  %v198_v48 = vld [vmem:[#allocation8 + $0x248] sm:$0xff]  ;;  %v200_v50 = vld [vmem:[#allocation8 + $0x258] sm:$0xff] }
  0x88   :  { %v5188_v52 = vpack.c.bf16 %v183_v46, %v175_v45  ;;  %v5062_v53 = vpack.c.bf16 %v198_v48, %v190_v47  ;;  %v189_v54 = vld [vmem:[#allocation8 + $0x200] sm:$0xff]  ;;  %v191_v56 = vld [vmem:[#allocation8 + $0x210] sm:$0xff]  ;;  %v5190_v57 = vpack.c.bf16 %v200_v50, %v192_v49  ;;  %v206_v59 = vld [vmem:[#allocation8 + $0x288] sm:$0xff] }
  0x89   :  { %5057 = vmatpush1.bf16.msra.mxu0 %v5056_v35  ;;  %v197_v55 = vld [vmem:[#allocation8 + $0x240] sm:$0xff]  ;;  %v199_v58 = vld [vmem:[#allocation8 + $0x250] sm:$0xff]  ;;  %v214_v60 = vld [vmem:[#allocation8 + $0x2c8] sm:$0xff] }
  0x8a   :  { %5185 = vmatpush1.bf16.msra.mxu1 %v5184_v39  ;;  %5059 = vmatprep.subr.bf16.mxu0 %v5058_v40  ;;  %v208_v61 = vld [vmem:[#allocation8 + $0x298] sm:$0xff]  ;;  %v5064_v63 = vpack.c.bf16 %v197_v55, %v189_v54  ;;  %v5192_v0 = vpack.c.bf16 %v199_v58, %v191_v56  ;;  %v5066_v1 = vpack.c.bf16 %v214_v60, %v206_v59  ;;  %v205_v2 = vld [vmem:[#allocation8 + $0x280] sm:$0xff]  ;;  %v207_v4 = vld [vmem:[#allocation8 + $0x290] sm:$0xff] }
  0x8b   :  { %5187 = vmatprep.subr.bf16.mxu1 %v5186_v44  ;;  %v216_v62 = vld [vmem:[#allocation8 + $0x2d8] sm:$0xff]  ;;  %v213_v3 = vld [vmem:[#allocation8 + $0x2c0] sm:$0xff]  ;;  %v215_v6 = vld [vmem:[#allocation8 + $0x2d0] sm:$0xff] }
  0x8c   :  { %v5194_v5 = vpack.c.bf16 %v216_v62, %v208_v61  ;;  %v222_v7 = vld [vmem:[#allocation8 + $0x308] sm:$0xff]  ;;  %v224_v9 = vld [vmem:[#allocation8 + $0x318] sm:$0xff]  ;;  %v5068_v11 = vpack.c.bf16 %v213_v3, %v205_v2  ;;  %v5196_v12 = vpack.c.bf16 %v215_v6, %v207_v4  ;;  %v221_v14 = vld [vmem:[#allocation8 + $0x300] sm:$0xff] }
  0x8d   :  { %5061 = vmatpush1.bf16.msra.mxu0 %v5060_v51  ;;  %v230_v8 = vld [vmem:[#allocation8 + $0x348] sm:$0xff]  ;;  %v232_v10 = vld [vmem:[#allocation8 + $0x358] sm:$0xff]  ;;  %v229_v15 = vld [vmem:[#allocation8 + $0x340] sm:$0xff] }
  0x8e   :  { %5189 = vmatpush1.bf16.msra.mxu1 %v5188_v52  ;;  %5063 = vmatprep.subr.bf16.mxu0 %v5062_v53  ;;  %v5070_v13 = vpack.c.bf16 %v230_v8, %v222_v7  ;;  %v223_v16 = vld [vmem:[#allocation8 + $0x310] sm:$0xff]  ;;  %v5198_v17 = vpack.c.bf16 %v232_v10, %v224_v9  ;;  %v238_v19 = vld [vmem:[#allocation8 + $0x388] sm:$0xff]  ;;  %v240_v21 = vld [vmem:[#allocation8 + $0x398] sm:$0xff]  ;;  %v5072_v23 = vpack.c.bf16 %v229_v15, %v221_v14 }
  0x8f   :  { %5191 = vmatprep.subr.bf16.mxu1 %v5190_v57  ;;  %v231_v18 = vld [vmem:[#allocation8 + $0x350] sm:$0xff]  ;;  %v246_v20 = vld [vmem:[#allocation8 + $0x3c8] sm:$0xff]  ;;  %v248_v22 = vld [vmem:[#allocation8 + $0x3d8] sm:$0xff] }
  0x90   :  { %v5200_v24 = vpack.c.bf16 %v231_v18, %v223_v16  ;;  %v5074_v25 = vpack.c.bf16 %v246_v20, %v238_v19  ;;  %v237_v26 = vld [vmem:[#allocation8 + $0x380] sm:$0xff]  ;;  %v239_v28 = vld [vmem:[#allocation8 + $0x390] sm:$0xff]  ;;  %v5202_v29 = vpack.c.bf16 %v248_v22, %v240_v21  ;;  %v254_v31 = vld [vmem:[#allocation8 + $0x408] sm:$0xff] }
  0x91   :  { %5065 = vmatpush1.bf16.msra.mxu0 %v5064_v63  ;;  %v245_v27 = vld [vmem:[#allocation8 + $0x3c0] sm:$0xff]  ;;  %v247_v30 = vld [vmem:[#allocation8 + $0x3d0] sm:$0xff]  ;;  %v262_v32 = vld [vmem:[#allocation8 + $0x448] sm:$0xff] }
  0x92   :  { %5193 = vmatpush1.bf16.msra.mxu1 %v5192_v0  ;;  %5067 = vmatprep.subr.bf16.mxu0 %v5066_v1  ;;  %v256_v33 = vld [vmem:[#allocation8 + $0x418] sm:$0xff]  ;;  %v5076_v35 = vpack.c.bf16 %v245_v27, %v237_v26  ;;  %v5204_v36 = vpack.c.bf16 %v247_v30, %v239_v28  ;;  %v5078_v37 = vpack.c.bf16 %v262_v32, %v254_v31  ;;  %v253_v38 = vld [vmem:[#allocation8 + $0x400] sm:$0xff]  ;;  %v255_v40 = vld [vmem:[#allocation8 + $0x410] sm:$0xff] }
  0x93   :  { %5195 = vmatprep.subr.bf16.mxu1 %v5194_v5  ;;  %v264_v34 = vld [vmem:[#allocation8 + $0x458] sm:$0xff]  ;;  %v261_v39 = vld [vmem:[#allocation8 + $0x440] sm:$0xff]  ;;  %v263_v42 = vld [vmem:[#allocation8 + $0x450] sm:$0xff] }
  0x94   :  { %v5206_v41 = vpack.c.bf16 %v264_v34, %v256_v33  ;;  %v270_v43 = vld [vmem:[#allocation8 + $0x488] sm:$0xff]  ;;  %v272_v45 = vld [vmem:[#allocation8 + $0x498] sm:$0xff]  ;;  %v5080_v47 = vpack.c.bf16 %v261_v39, %v253_v38  ;;  %v5208_v48 = vpack.c.bf16 %v263_v42, %v255_v40  ;;  %v269_v50 = vld [vmem:[#allocation8 + $0x480] sm:$0xff] }
  0x95   :  { %5069 = vmatpush1.bf16.msra.mxu0 %v5068_v11  ;;  %v278_v44 = vld [vmem:[#allocation8 + $0x4c8] sm:$0xff]  ;;  %v280_v46 = vld [vmem:[#allocation8 + $0x4d8] sm:$0xff]  ;;  %v277_v51 = vld [vmem:[#allocation8 + $0x4c0] sm:$0xff] }
  0x96   :  { %5197 = vmatpush1.bf16.msra.mxu1 %v5196_v12  ;;  %5071 = vmatprep.subr.bf16.mxu0 %v5070_v13  ;;  %v5082_v49 = vpack.c.bf16 %v278_v44, %v270_v43  ;;  %v271_v52 = vld [vmem:[#allocation8 + $0x490] sm:$0xff]  ;;  %v5210_v53 = vpack.c.bf16 %v280_v46, %v272_v45  ;;  %v286_v55 = vld [vmem:[#allocation8 + $0x508] sm:$0xff]  ;;  %v288_v57 = vld [vmem:[#allocation8 + $0x518] sm:$0xff]  ;;  %v5084_v59 = vpack.c.bf16 %v277_v51, %v269_v50 }
  0x97   :  { %5199 = vmatprep.subr.bf16.mxu1 %v5198_v17  ;;  %v279_v54 = vld [vmem:[#allocation8 + $0x4d0] sm:$0xff]  ;;  %v294_v56 = vld [vmem:[#allocation8 + $0x548] sm:$0xff]  ;;  %v296_v58 = vld [vmem:[#allocation8 + $0x558] sm:$0xff] }
  0x98   :  { %v5212_v60 = vpack.c.bf16 %v279_v54, %v271_v52  ;;  %v5086_v61 = vpack.c.bf16 %v294_v56, %v286_v55  ;;  %v285_v62 = vld [vmem:[#allocation8 + $0x500] sm:$0xff]  ;;  %v287_v0 = vld [vmem:[#allocation8 + $0x510] sm:$0xff]  ;;  %v5214_v1 = vpack.c.bf16 %v296_v58, %v288_v57  ;;  %v302_v3 = vld [vmem:[#allocation8 + $0x588] sm:$0xff] }
  0x99   :  { %5073 = vmatpush1.bf16.msra.mxu0 %v5072_v23  ;;  %v293_v63 = vld [vmem:[#allocation8 + $0x540] sm:$0xff]  ;;  %v295_v2 = vld [vmem:[#allocation8 + $0x550] sm:$0xff]  ;;  %v310_v4 = vld [vmem:[#allocation8 + $0x5c8] sm:$0xff] }
  0x9a   :  { %5201 = vmatpush1.bf16.msra.mxu1 %v5200_v24  ;;  %5075 = vmatprep.subr.bf16.mxu0 %v5074_v25  ;;  %v304_v5 = vld [vmem:[#allocation8 + $0x598] sm:$0xff]  ;;  %v5088_v7 = vpack.c.bf16 %v293_v63, %v285_v62  ;;  %v301_v8 = vld [vmem:[#allocation8 + $0x580] sm:$0xff]  ;;  %v5216_v9 = vpack.c.bf16 %v295_v2, %v287_v0  ;;  %v5090_v10 = vpack.c.bf16 %v310_v4, %v302_v3  ;;  %v303_v12 = vld [vmem:[#allocation8 + $0x590] sm:$0xff] }
  0x9b   :  { %5203 = vmatprep.subr.bf16.mxu1 %v5202_v29  ;;  %v312_v6 = vld [vmem:[#allocation8 + $0x5d8] sm:$0xff]  ;;  %v309_v11 = vld [vmem:[#allocation8 + $0x5c0] sm:$0xff]  ;;  %v311_v13 = vld [vmem:[#allocation8 + $0x5d0] sm:$0xff] }
  0x9c   :  { %v5218_v14 = vpack.c.bf16 %v312_v6, %v304_v5  ;;  %v318_v15 = vld [vmem:[#allocation8 + $0x608] sm:$0xff]  ;;  %v320_v18 = vld [vmem:[#allocation8 + $0x618] sm:$0xff]  ;;  %v5092_v20 = vpack.c.bf16 %v309_v11, %v301_v8  ;;  %v5220_v21 = vpack.c.bf16 %v311_v13, %v303_v12  ;;  %v317_v23 = vld [vmem:[#allocation8 + $0x600] sm:$0xff] }
  0x9d   :  { %5077 = vmatpush1.bf16.msra.mxu0 %v5076_v35  ;;  %v326_v16 = vld [vmem:[#allocation8 + $0x648] sm:$0xff]  ;;  %v328_v19 = vld [vmem:[#allocation8 + $0x658] sm:$0xff]  ;;  %v325_v24 = vld [vmem:[#allocation8 + $0x640] sm:$0xff] }
  0x9e   :  { %5205 = vmatpush1.bf16.msra.mxu1 %v5204_v36  ;;  %5079 = vmatprep.subr.bf16.mxu0 %v5078_v37  ;;  %v8259_v17 = vld [vmem:[#allocation7 + $0x8] sm:$0xff]  ;;  %v5094_v22 = vpack.c.bf16 %v326_v16, %v318_v15  ;;  %v319_v25 = vld [vmem:[#allocation8 + $0x610] sm:$0xff]  ;;  %v5222_v26 = vpack.c.bf16 %v328_v19, %v320_v18  ;;  %v336_v30 = vld [vmem:[#allocation8 + $0x698] sm:$0xff]  ;;  %v5096_v32 = vpack.c.bf16 %v325_v24, %v317_v23 }
  0x9f   :  { %5207 = vmatprep.subr.bf16.mxu1 %v5206_v41  ;;  %709 = vmatprep.mubr.f32.mxu0 %v8259_v17  ;;  %v327_v27 = vld [vmem:[#allocation8 + $0x650] sm:$0xff]  ;;  %v334_v28 = vld [vmem:[#allocation8 + $0x688] sm:$0xff]  ;;  %v344_v31 = vld [vmem:[#allocation8 + $0x6d8] sm:$0xff] }
  0xa0   :  { %851 = vmatprep.mubr.f32.mxu1 %v8259_v17  ;;  %v342_v29 = vld [vmem:[#allocation8 + $0x6c8] sm:$0xff]  ;;  %v5224_v33 = vpack.c.bf16 %v327_v27, %v319_v25  ;;  %v333_v35 = vld [vmem:[#allocation8 + $0x680] sm:$0xff]  ;;  %v335_v37 = vld [vmem:[#allocation8 + $0x690] sm:$0xff]  ;;  %v5226_v38 = vpack.c.bf16 %v344_v31, %v336_v30 }
  0xa1   :  { %5081 = vmatpush1.bf16.msra.mxu0 %v5080_v47  ;;  %v5098_v34 = vpack.c.bf16 %v342_v29, %v334_v28  ;;  %v341_v36 = vld [vmem:[#allocation8 + $0x6c0] sm:$0xff]  ;;  %v343_v39 = vld [vmem:[#allocation8 + $0x6d0] sm:$0xff]  ;;  %v350_v40 = vld [vmem:[#allocation8 + $0x708] sm:$0xff] }
  0xa2   :  { %5209 = vmatpush1.bf16.msra.mxu1 %v5208_v48  ;;  %5083 = vmatprep.subr.bf16.mxu0 %v5082_v49  ;;  %v358_v41 = vld [vmem:[#allocation8 + $0x748] sm:$0xff]  ;;  %v352_v42 = vld [vmem:[#allocation8 + $0x718] sm:$0xff]  ;;  %v5100_v44 = vpack.c.bf16 %v341_v36, %v333_v35  ;;  %v5228_v45 = vpack.c.bf16 %v343_v39, %v335_v37  ;;  %v349_v47 = vld [vmem:[#allocation8 + $0x700] sm:$0xff] }
  0xa3   :  { %5211 = vmatprep.subr.bf16.mxu1 %v5210_v53  ;;  %v360_v43 = vld [vmem:[#allocation8 + $0x758] sm:$0xff]  ;;  %v5102_v46 = vpack.c.bf16 %v358_v41, %v350_v40  ;;  %v357_v48 = vld [vmem:[#allocation8 + $0x740] sm:$0xff]  ;;  %v351_v49 = vld [vmem:[#allocation8 + $0x710] sm:$0xff] }
  0xa4   :  { %v5230_v50 = vpack.c.bf16 %v360_v43, %v352_v42  ;;  %v359_v51 = vld [vmem:[#allocation8 + $0x750] sm:$0xff]  ;;  %v366_v52 = vld [vmem:[#allocation8 + $0x788] sm:$0xff]  ;;  %v368_v54 = vld [vmem:[#allocation8 + $0x798] sm:$0xff]  ;;  %v5104_v56 = vpack.c.bf16 %v357_v48, %v349_v47 }
  0xa5   :  { %5085 = vmatpush1.bf16.msra.mxu0 %v5084_v59  ;;  %v374_v53 = vld [vmem:[#allocation8 + $0x7c8] sm:$0xff]  ;;  %v376_v55 = vld [vmem:[#allocation8 + $0x7d8] sm:$0xff]  ;;  %v5232_v57 = vpack.c.bf16 %v359_v51, %v351_v49  ;;  %v365_v59 = vld [vmem:[#allocation8 + $0x780] sm:$0xff] }
  0xa6   :  { %5213 = vmatpush1.bf16.msra.mxu1 %v5212_v60  ;;  %5087 = vmatprep.subr.bf16.mxu0 %v5086_v61  ;;  %v5106_v58 = vpack.c.bf16 %v374_v53, %v366_v52  ;;  %v373_v60 = vld [vmem:[#allocation8 + $0x7c0] sm:$0xff]  ;;  %v367_v61 = vld [vmem:[#allocation8 + $0x790] sm:$0xff]  ;;  %v5234_v62 = vpack.c.bf16 %v376_v55, %v368_v54  ;;  %v382_v0 = vld [vmem:[#allocation8 + $0x808] sm:$0xff] }
  0xa7   :  { %5215 = vmatprep.subr.bf16.mxu1 %v5214_v1  ;;  %v375_v63 = vld [vmem:[#allocation8 + $0x7d0] sm:$0xff]  ;;  %v390_v1 = vld [vmem:[#allocation8 + $0x848] sm:$0xff]  ;;  %v384_v2 = vld [vmem:[#allocation8 + $0x818] sm:$0xff]  ;;  %v5108_v4 = vpack.c.bf16 %v373_v60, %v365_v59 }
  0xa8   :  { %v392_v3 = vld [vmem:[#allocation8 + $0x858] sm:$0xff]  ;;  %v5236_v5 = vpack.c.bf16 %v375_v63, %v367_v61  ;;  %v5110_v6 = vpack.c.bf16 %v390_v1, %v382_v0  ;;  %v389_v8 = vld [vmem:[#allocation8 + $0x840] sm:$0xff]  ;;  %v391_v11 = vld [vmem:[#allocation8 + $0x850] sm:$0xff] }
  0xa9   :  { %5089 = vmatpush1.bf16.msra.mxu0 %v5088_v7  ;;  %v381_v7 = vld [vmem:[#allocation8 + $0x800] sm:$0xff]  ;;  %v398_v12 = vld [vmem:[#allocation8 + $0x888] sm:$0xff]  ;;  %v408_v15 = vld [vmem:[#allocation8 + $0x8d8] sm:$0xff] }
  0xaa   :  { %5217 = vmatpush1.bf16.msra.mxu1 %v5216_v9  ;;  %5091 = vmatprep.subr.bf16.mxu0 %v5090_v10  ;;  %v383_v9 = vld [vmem:[#allocation8 + $0x810] sm:$0xff]  ;;  %v5238_v10 = vpack.c.bf16 %v392_v3, %v384_v2  ;;  %v406_v13 = vld [vmem:[#allocation8 + $0x8c8] sm:$0xff]  ;;  %v121_v16 = vld [vmem:[#allocation7] sm:$0xff]  ;;  %v5112_v18 = vpack.c.bf16 %v389_v8, %v381_v7 }
  0xab   :  { %5219 = vmatprep.subr.bf16.mxu1 %v5218_v14  ;;  %v400_v14 = vld [vmem:[#allocation8 + $0x898] sm:$0xff]  ;;  %v5240_v19 = vpack.c.bf16 %v391_v11, %v383_v9  ;;  %v399_v23 = vld [vmem:[#allocation8 + $0x890] sm:$0xff]  ;;  %v422_v27 = vld [vmem:[#allocation8 + $0x948] sm:$0xff] }
  0xac   :  { %v5242_v24 = vpack.c.bf16 %v408_v15, %v400_v14  ;;  %v407_v25 = vld [vmem:[#allocation8 + $0x8d0] sm:$0xff]  ;;  %v416_v28 = vld [vmem:[#allocation8 + $0x918] sm:$0xff]  ;;  %v438_v39 = vld [vmem:[#allocation8 + $0x9c8] sm:$0xff] }
  0xad   :  { %5093 = vmatpush1.bf16.msra.mxu0 %v5092_v20  ;;  %v5114_v20 = vpack.c.bf16 %v406_v13, %v398_v12  ;;  %v424_v29 = vld [vmem:[#allocation8 + $0x958] sm:$0xff]  ;;  %v5244_v31 = vpack.c.bf16 %v407_v25, %v399_v23  ;;  %v415_v35 = vld [vmem:[#allocation8 + $0x910] sm:$0xff]  ;;  %v454_v51 = vld [vmem:[#allocation8 + $0xa48] sm:$0xff] }
  0xae   :  { %5221 = vmatpush1.bf16.msra.mxu1 %v5220_v21  ;;  %5095 = vmatprep.subr.bf16.mxu0 %v5094_v22  ;;  %v397_v21 = vld [vmem:[#allocation8 + $0x880] sm:$0xff]  ;;  %v5246_v36 = vpack.c.bf16 %v424_v29, %v416_v28  ;;  %v423_v37 = vld [vmem:[#allocation8 + $0x950] sm:$0xff]  ;;  %v432_v40 = vld [vmem:[#allocation8 + $0x998] sm:$0xff] }
  0xaf   :  { %5223 = vmatprep.subr.bf16.mxu1 %v5222_v26  ;;  %v405_v22 = vld [vmem:[#allocation8 + $0x8c0] sm:$0xff]  ;;  %v414_v26 = vld [vmem:[#allocation8 + $0x908] sm:$0xff]  ;;  %v440_v41 = vld [vmem:[#allocation8 + $0x9d8] sm:$0xff]  ;;  %v5248_v43 = vpack.c.bf16 %v423_v37, %v415_v35 }
  0xb0   :  { %v5116_v30 = vpack.c.bf16 %v405_v22, %v397_v21  ;;  %v431_v47 = vld [vmem:[#allocation8 + $0x990] sm:$0xff]  ;;  %v5250_v48 = vpack.c.bf16 %v440_v41, %v432_v40  ;;  %v448_v52 = vld [vmem:[#allocation8 + $0xa18] sm:$0xff]  ;;  %v470_v63 = vld [vmem:[#allocation8 + $0xac8] sm:$0xff] }
  0xb1   :  { %5097 = vmatpush1.bf16.msra.mxu0 %v5096_v32  ;;  %v5118_v32 = vpack.c.bf16 %v422_v27, %v414_v26  ;;  %v439_v49 = vld [vmem:[#allocation8 + $0x9d0] sm:$0xff]  ;;  %v456_v53 = vld [vmem:[#allocation8 + $0xa58] sm:$0xff]  ;;  %v486_v11 = vld [vmem:[#allocation8 + $0xb48] sm:$0xff] }
  0xb2   :  { %5225 = vmatpush1.bf16.msra.mxu1 %v5224_v33  ;;  %5099 = vmatprep.subr.bf16.mxu0 %v5098_v34  ;;  %v413_v33 = vld [vmem:[#allocation8 + $0x900] sm:$0xff]  ;;  %v5252_v55 = vpack.c.bf16 %v439_v49, %v431_v47  ;;  %v447_v59 = vld [vmem:[#allocation8 + $0xa10] sm:$0xff]  ;;  %v5254_v60 = vpack.c.bf16 %v456_v53, %v448_v52  ;;  %v464_v0 = vld [vmem:[#allocation8 + $0xa98] sm:$0xff] }
  0xb3   :  { %5227 = vmatprep.subr.bf16.mxu1 %v5226_v38  ;;  %v421_v34 = vld [vmem:[#allocation8 + $0x940] sm:$0xff]  ;;  %v430_v38 = vld [vmem:[#allocation8 + $0x988] sm:$0xff]  ;;  %v455_v61 = vld [vmem:[#allocation8 + $0xa50] sm:$0xff] }
  0xb4   :  { %v5120_v42 = vpack.c.bf16 %v421_v34, %v413_v33  ;;  %v472_v1 = vld [vmem:[#allocation8 + $0xad8] sm:$0xff]  ;;  %v5256_v3 = vpack.c.bf16 %v455_v61, %v447_v59  ;;  %v463_v7 = vld [vmem:[#allocation8 + $0xa90] sm:$0xff]  ;;  %v477_v15 = vld [vmem:[#allocation8 + $0xb00] sm:$0xff] }
  0xb5   :  { %5101 = vmatpush1.bf16.msra.mxu0 %v5100_v44  ;;  %v5122_v44 = vpack.c.bf16 %v438_v39, %v430_v38  ;;  %v5258_v8 = vpack.c.bf16 %v472_v1, %v464_v0  ;;  %v471_v9 = vld [vmem:[#allocation8 + $0xad0] sm:$0xff]  ;;  %v480_v12 = vld [vmem:[#allocation8 + $0xb18] sm:$0xff]  ;;  %v494_v23 = vld [vmem:[#allocation8 + $0xb88] sm:$0xff] }
  0xb6   :  { %5229 = vmatpush1.bf16.msra.mxu1 %v5228_v45  ;;  %5103 = vmatprep.subr.bf16.mxu0 %v5102_v46  ;;  %v429_v45 = vld [vmem:[#allocation8 + $0x980] sm:$0xff]  ;;  %v488_v13 = vld [vmem:[#allocation8 + $0xb58] sm:$0xff]  ;;  %v487_v21 = vld [vmem:[#allocation8 + $0xb50] sm:$0xff] }
  0xb7   :  { %5231 = vmatprep.subr.bf16.mxu1 %v5230_v50  ;;  %v437_v46 = vld [vmem:[#allocation8 + $0x9c0] sm:$0xff]  ;;  %v446_v50 = vld [vmem:[#allocation8 + $0xa08] sm:$0xff]  ;;  %v5262_v22 = vpack.c.bf16 %v488_v13, %v480_v12  ;;  %v8263_v25 = vld [vmem:[#allocation7 + $0x18] sm:$0xff] }
  0xb8   :  { %v5124_v54 = vpack.c.bf16 %v437_v46, %v429_v45  ;;  %v496_v26 = vld [vmem:[#allocation8 + $0xb98] sm:$0xff]  ;;  %v495_v33 = vld [vmem:[#allocation8 + $0xb90] sm:$0xff]  ;;  %v518_v37 = vld [vmem:[#allocation8 + $0xc48] sm:$0xff] }
  0xb9   :  { %5105 = vmatpush1.bf16.msra.mxu0 %v5104_v56  ;;  %v5126_v56 = vpack.c.bf16 %v454_v51, %v446_v50  ;;  %v504_v27 = vld [vmem:[#allocation8 + $0xbd8] sm:$0xff]  ;;  %v503_v35 = vld [vmem:[#allocation8 + $0xbd0] sm:$0xff]  ;;  %v534_v49 = vld [vmem:[#allocation8 + $0xcc8] sm:$0xff] }
  0xba   :  { %5233 = vmatpush1.bf16.msra.mxu1 %v5232_v57  ;;  %5107 = vmatprep.subr.bf16.mxu0 %v5106_v58  ;;  %v445_v57 = vld [vmem:[#allocation8 + $0xa00] sm:$0xff]  ;;  %v5266_v34 = vpack.c.bf16 %v504_v27, %v496_v26  ;;  %v512_v38 = vld [vmem:[#allocation8 + $0xc18] sm:$0xff]  ;;  %v5268_v41 = vpack.c.bf16 %v503_v35, %v495_v33  ;;  %v511_v45 = vld [vmem:[#allocation8 + $0xc10] sm:$0xff] }
  0xbb   :  { %5235 = vmatprep.subr.bf16.mxu1 %v5234_v62  ;;  %v453_v58 = vld [vmem:[#allocation8 + $0xa40] sm:$0xff]  ;;  %v462_v62 = vld [vmem:[#allocation8 + $0xa88] sm:$0xff]  ;;  %v520_v39 = vld [vmem:[#allocation8 + $0xc58] sm:$0xff] }
  0xbc   :  { %v5128_v2 = vpack.c.bf16 %v453_v58, %v445_v57  ;;  %v5270_v46 = vpack.c.bf16 %v520_v39, %v512_v38  ;;  %v519_v47 = vld [vmem:[#allocation8 + $0xc50] sm:$0xff]  ;;  %v528_v50 = vld [vmem:[#allocation8 + $0xc98] sm:$0xff]  ;;  %v550_v61 = vld [vmem:[#allocation8 + $0xd48] sm:$0xff] }
  0xbd   :  { %5109 = vmatpush1.bf16.msra.mxu0 %v5108_v4  ;;  %v5130_v4 = vpack.c.bf16 %v470_v63, %v462_v62  ;;  %v536_v51 = vld [vmem:[#allocation8 + $0xcd8] sm:$0xff]  ;;  %v5272_v53 = vpack.c.bf16 %v519_v47, %v511_v45  ;;  %v527_v57 = vld [vmem:[#allocation8 + $0xc90] sm:$0xff]  ;;  %v598_v35 = vld [vmem:[#allocation8 + $0xec8] sm:$0xff] }
  0xbe   :  { %5237 = vmatpush1.bf16.msra.mxu1 %v5236_v5  ;;  %5111 = vmatprep.subr.bf16.mxu0 %v5110_v6  ;;  %v461_v5 = vld [vmem:[#allocation8 + $0xa80] sm:$0xff]  ;;  %v5274_v58 = vpack.c.bf16 %v536_v51, %v528_v50  ;;  %v535_v59 = vld [vmem:[#allocation8 + $0xcd0] sm:$0xff]  ;;  %v544_v62 = vld [vmem:[#allocation8 + $0xd18] sm:$0xff] }
  0xbf   :  { %5239 = vmatprep.subr.bf16.mxu1 %v5238_v10  ;;  %v469_v6 = vld [vmem:[#allocation8 + $0xac0] sm:$0xff]  ;;  %v478_v10 = vld [vmem:[#allocation8 + $0xb08] sm:$0xff]  ;;  %v552_v63 = vld [vmem:[#allocation8 + $0xd58] sm:$0xff]  ;;  %v5276_v1 = vpack.c.bf16 %v535_v59, %v527_v57 }
  0xc0   :  { %710 = vmatmul.mubr.f32.vlgmr.msra.gmra.mrb[0].mxu0 %v121_v16  ;;  %v5132_v14 = vpack.c.bf16 %v469_v6, %v461_v5  ;;  %v543_v5 = vld [vmem:[#allocation8 + $0xd10] sm:$0xff]  ;;  %v5278_v6 = vpack.c.bf16 %v552_v63, %v544_v62  ;;  %v614_v47 = vld [vmem:[#allocation8 + $0xf48] sm:$0xff] }
  0xc1   :  { %5113 = vmatpush1.bf16.msra.mxu0 %v5112_v18  ;;  %852 = vmatmul.mubr.f32.vlgmr.msra.gmra.mrb[0].mxu1 %v121_v16  ;;  %v5260_v16 = vpack.c.bf16 %v471_v9, %v463_v7  ;;  %v5134_v18 = vpack.c.bf16 %v486_v11, %v478_v10  ;;  %v551_v7 = vld [vmem:[#allocation8 + $0xd50] sm:$0xff]  ;;  %v566_v9 = vld [vmem:[#allocation8 + $0xdc8] sm:$0xff]  ;;  %v560_v10 = vld [vmem:[#allocation8 + $0xd98] sm:$0xff] }
  0xc2   :  { %5241 = vmatpush1.bf16.msra.mxu1 %v5240_v19  ;;  %5115 = vmatprep.subr.bf16.mxu0 %v5114_v20  ;;  %v485_v19 = vld [vmem:[#allocation8 + $0xb40] sm:$0xff]  ;;  %v479_v20 = vld [vmem:[#allocation8 + $0xb10] sm:$0xff]  ;;  %v568_v11 = vld [vmem:[#allocation8 + $0xdd8] sm:$0xff]  ;;  %v5280_v13 = vpack.c.bf16 %v551_v7, %v543_v5 }
  0xc3   :  { %5243 = vmatprep.subr.bf16.mxu1 %v5242_v24  ;;  %v502_v24 = vld [vmem:[#allocation8 + $0xbc8] sm:$0xff]  ;;  %780 = vmatprep.mubr.f32.mxu0 %v8263_v25  ;;  %v5136_v28 = vpack.c.bf16 %v485_v19, %v477_v15  ;;  %v5264_v29 = vpack.c.bf16 %v487_v21, %v479_v20  ;;  %v557_v15 = vld [vmem:[#allocation8 + $0xd80] sm:$0xff]  ;;  %v5282_v19 = vpack.c.bf16 %v568_v11, %v560_v10  ;;  %v567_v20 = vld [vmem:[#allocation8 + $0xdd0] sm:$0xff] }
  0xc4   :  { %922 = vmatprep.mubr.f32.mxu1 %v8263_v25  ;;  %v574_v21 = vld [vmem:[#allocation8 + $0xe08] sm:$0xff]  ;;  %v583_v33 = vld [vmem:[#allocation8 + $0xe50] sm:$0xff] }
  0xc5   :  { %5117 = vmatpush1.bf16.msra.mxu0 %v5116_v30  ;;  %v5138_v30 = vpack.c.bf16 %v502_v24, %v494_v23  ;;  %v576_v23 = vld [vmem:[#allocation8 + $0xe18] sm:$0xff]  ;;  %v599_v45 = vld [vmem:[#allocation8 + $0xed0] sm:$0xff]  ;;  %v630_v59 = vld [vmem:[#allocation8 + $0xfc8] sm:$0xff] }
  0xc6   :  { %5245 = vmatpush1.bf16.msra.mxu1 %v5244_v31  ;;  %5119 = vmatprep.subr.bf16.mxu0 %v5118_v32  ;;  %v493_v31 = vld [vmem:[#allocation8 + $0xb80] sm:$0xff]  ;;  %v584_v24 = vld [vmem:[#allocation8 + $0xe58] sm:$0xff]  ;;  %v615_v57 = vld [vmem:[#allocation8 + $0xf50] sm:$0xff] }
  0xc7   :  { %5247 = vmatprep.subr.bf16.mxu1 %v5246_v36  ;;  %v501_v32 = vld [vmem:[#allocation8 + $0xbc0] sm:$0xff]  ;;  %v510_v36 = vld [vmem:[#allocation8 + $0xc08] sm:$0xff]  ;;  %v631_v5 = vld [vmem:[#allocation8 + $0xfd0] sm:$0xff] }
  0xc8   :  { %v5140_v40 = vpack.c.bf16 %v501_v32, %v493_v31  ;;  %v575_v31 = vld [vmem:[#allocation8 + $0xe10] sm:$0xff]  ;;  %v5286_v32 = vpack.c.bf16 %v584_v24, %v576_v23  ;;  %v138_v7 = vld [vmem:[#allocation8 + $0x68] sm:$0xff] }
  0xc9   :  { %5121 = vmatpush1.bf16.msra.mxu0 %v5120_v42  ;;  %v5142_v42 = vpack.c.bf16 %v518_v37, %v510_v36  ;;  %v592_v36 = vld [vmem:[#allocation8 + $0xe98] sm:$0xff]  ;;  %v5288_v39 = vpack.c.bf16 %v583_v33, %v575_v31  ;;  %v123_v23 = vld [vmem:[#allocation7 + $0x10] sm:$0xff]  ;;  %v162_v33 = vld [vmem:[#allocation8 + $0x128] sm:$0xff] }
  0xca   :  { %5249 = vmatpush1.bf16.msra.mxu1 %v5248_v43  ;;  %5123 = vmatprep.subr.bf16.mxu0 %v5122_v44  ;;  %v509_v43 = vld [vmem:[#allocation8 + $0xc00] sm:$0xff]  ;;  %v600_v37 = vld [vmem:[#allocation8 + $0xed8] sm:$0xff] }
  0xcb   :  { %5251 = vmatprep.subr.bf16.mxu1 %v5250_v48  ;;  %v517_v44 = vld [vmem:[#allocation8 + $0xc40] sm:$0xff]  ;;  %v526_v48 = vld [vmem:[#allocation8 + $0xc88] sm:$0xff] }
  0xcc   :  { %v5144_v52 = vpack.c.bf16 %v517_v44, %v509_v43  ;;  %v591_v43 = vld [vmem:[#allocation8 + $0xe90] sm:$0xff]  ;;  %v5290_v44 = vpack.c.bf16 %v600_v37, %v592_v36  ;;  %v172_v36 = vld [vmem:[#allocation8 + $0x178] sm:$0xff] }
  0xcd   :  { %5125 = vmatpush1.bf16.msra.mxu0 %v5124_v54  ;;  %v5146_v54 = vpack.c.bf16 %v534_v49, %v526_v48  ;;  %v608_v48 = vld [vmem:[#allocation8 + $0xf18] sm:$0xff]  ;;  %v5292_v51 = vpack.c.bf16 %v599_v45, %v591_v43  ;;  %v178_v45 = vld [vmem:[#allocation8 + $0x1a8] sm:$0xff] }
  0xce   :  { %5253 = vmatpush1.bf16.msra.mxu1 %v5252_v55  ;;  %5127 = vmatprep.subr.bf16.mxu0 %v5126_v56  ;;  %v525_v55 = vld [vmem:[#allocation8 + $0xc80] sm:$0xff]  ;;  %v616_v49 = vld [vmem:[#allocation8 + $0xf58] sm:$0xff] }
  0xcf   :  { %5255 = vmatprep.subr.bf16.mxu1 %v5254_v60  ;;  %v533_v56 = vld [vmem:[#allocation8 + $0xcc0] sm:$0xff]  ;;  %v542_v60 = vld [vmem:[#allocation8 + $0xd08] sm:$0xff] }
  0xd0   :  { %v5148_v0 = vpack.c.bf16 %v533_v56, %v525_v55  ;;  %v607_v55 = vld [vmem:[#allocation8 + $0xf10] sm:$0xff]  ;;  %v5294_v56 = vpack.c.bf16 %v616_v49, %v608_v48  ;;  %v188_v48 = vld [vmem:[#allocation8 + $0x1f8] sm:$0xff] }
  0xd1   :  { %5129 = vmatpush1.bf16.msra.mxu0 %v5128_v2  ;;  %v5150_v2 = vpack.c.bf16 %v550_v61, %v542_v60  ;;  %v624_v60 = vld [vmem:[#allocation8 + $0xf98] sm:$0xff]  ;;  %v5296_v63 = vpack.c.bf16 %v615_v57, %v607_v55  ;;  %v194_v57 = vld [vmem:[#allocation8 + $0x228] sm:$0xff] }
  0xd2   :  { %5257 = vmatpush1.bf16.msra.mxu1 %v5256_v3  ;;  %5131 = vmatprep.subr.bf16.mxu0 %v5130_v4  ;;  %v541_v3 = vld [vmem:[#allocation8 + $0xd00] sm:$0xff]  ;;  %v632_v61 = vld [vmem:[#allocation8 + $0xfd8] sm:$0xff] }
  0xd3   :  { %5259 = vmatprep.subr.bf16.mxu1 %v5258_v8  ;;  %v549_v4 = vld [vmem:[#allocation8 + $0xd40] sm:$0xff]  ;;  %v558_v8 = vld [vmem:[#allocation8 + $0xd88] sm:$0xff] }
  0xd4   :  { %v5152_v12 = vpack.c.bf16 %v549_v4, %v541_v3  ;;  %v623_v3 = vld [vmem:[#allocation8 + $0xf90] sm:$0xff]  ;;  %v5298_v4 = vpack.c.bf16 %v632_v61, %v624_v60  ;;  %v204_v60 = vld [vmem:[#allocation8 + $0x278] sm:$0xff] }
  0xd5   :  { %5133 = vmatpush1.bf16.msra.mxu0 %v5132_v14  ;;  %v5154_v14 = vpack.c.bf16 %v566_v9, %v558_v8  ;;  %v132_v8 = vld [vmem:[#allocation8 + $0x38] sm:$0xff]  ;;  %v5300_v11 = vpack.c.bf16 %v631_v5, %v623_v3  ;;  %v203_v3 = vld [vmem:[#allocation8 + $0x270] sm:$0xff]  ;;  %v218_v5 = vld [vmem:[#allocation8 + $0x2e8] sm:$0xff] }
  0xd6   :  { %5261 = vmatpush1.bf16.msra.mxu1 %v5260_v16  ;;  %5135 = vmatprep.subr.bf16.mxu0 %v5134_v18  ;;  %v565_v16 = vld [vmem:[#allocation8 + $0xdc0] sm:$0xff]  ;;  %v559_v18 = vld [vmem:[#allocation8 + $0xd90] sm:$0xff]  ;;  %v140_v9 = vld [vmem:[#allocation8 + $0x78] sm:$0xff] }
  0xd7   :  { %5263 = vmatprep.subr.bf16.mxu1 %v5262_v22  ;;  %v582_v22 = vld [vmem:[#allocation8 + $0xe48] sm:$0xff]  ;;  %v5156_v26 = vpack.c.bf16 %v565_v16, %v557_v15  ;;  %v5284_v27 = vpack.c.bf16 %v567_v20, %v559_v18  ;;  %v131_v15 = vld [vmem:[#allocation8 + $0x30] sm:$0xff]  ;;  %v5430_v16 = vpack.c.bf16 %v140_v9, %v132_v8 }
  0xd8   :  { %v139_v18 = vld [vmem:[#allocation8 + $0x70] sm:$0xff]  ;;  %v154_v20 = vld [vmem:[#allocation8 + $0xe8] sm:$0xff] }
  0xd9   :  { %5137 = vmatpush1.bf16.msra.mxu0 %v5136_v28  ;;  %v5158_v28 = vpack.c.bf16 %v582_v22, %v574_v21  ;;  %v148_v21 = vld [vmem:[#allocation8 + $0xb8] sm:$0xff] }
  0xda   :  { %5265 = vmatpush1.bf16.msra.mxu1 %v5264_v29  ;;  %5139 = vmatprep.subr.bf16.mxu0 %v5138_v30  ;;  %v573_v29 = vld [vmem:[#allocation8 + $0xe00] sm:$0xff]  ;;  %v156_v22 = vld [vmem:[#allocation8 + $0xf8] sm:$0xff] }
  0xdb   :  { %5267 = vmatprep.subr.bf16.mxu1 %v5266_v34  ;;  %v581_v30 = vld [vmem:[#allocation8 + $0xe40] sm:$0xff]  ;;  %v590_v34 = vld [vmem:[#allocation8 + $0xe88] sm:$0xff]  ;;  %v5434_v31 = vpack.c.bf16 %v156_v22, %v148_v21 }
  0xdc   :  { %v5160_v38 = vpack.c.bf16 %v581_v30, %v573_v29  ;;  %v153_v29 = vld [vmem:[#allocation8 + $0xe0] sm:$0xff]  ;;  %v147_v30 = vld [vmem:[#allocation8 + $0xb0] sm:$0xff] }
  0xdd   :  { %5141 = vmatpush1.bf16.msra.mxu0 %v5140_v40  ;;  %v5162_v40 = vpack.c.bf16 %v598_v35, %v590_v34  ;;  %v170_v34 = vld [vmem:[#allocation8 + $0x168] sm:$0xff]  ;;  %v164_v35 = vld [vmem:[#allocation8 + $0x138] sm:$0xff] }
  0xde   :  { %5269 = vmatpush1.bf16.msra.mxu1 %v5268_v41  ;;  %5143 = vmatprep.subr.bf16.mxu0 %v5142_v42  ;;  %v589_v41 = vld [vmem:[#allocation8 + $0xe80] sm:$0xff]  ;;  %v5438_v43 = vpack.c.bf16 %v172_v36, %v164_v35 }
  0xdf   :  { %5271 = vmatprep.subr.bf16.mxu1 %v5270_v46  ;;  %v597_v42 = vld [vmem:[#allocation8 + $0xec0] sm:$0xff]  ;;  %v606_v46 = vld [vmem:[#allocation8 + $0xf08] sm:$0xff] }
  0xe0   :  { %v5164_v50 = vpack.c.bf16 %v597_v42, %v589_v41  ;;  %v169_v41 = vld [vmem:[#allocation8 + $0x160] sm:$0xff]  ;;  %v163_v42 = vld [vmem:[#allocation8 + $0x130] sm:$0xff] }
  0xe1   :  { %5145 = vmatpush1.bf16.msra.mxu0 %v5144_v52  ;;  %v5166_v52 = vpack.c.bf16 %v614_v47, %v606_v46  ;;  %v186_v46 = vld [vmem:[#allocation8 + $0x1e8] sm:$0xff]  ;;  %v180_v47 = vld [vmem:[#allocation8 + $0x1b8] sm:$0xff] }
  0xe2   :  { %5273 = vmatpush1.bf16.msra.mxu1 %v5272_v53  ;;  %5147 = vmatprep.subr.bf16.mxu0 %v5146_v54  ;;  %v605_v53 = vld [vmem:[#allocation8 + $0xf00] sm:$0xff]  ;;  %v5442_v55 = vpack.c.bf16 %v188_v48, %v180_v47 }
  0xe3   :  { %5275 = vmatprep.subr.bf16.mxu1 %v5274_v58  ;;  %v613_v54 = vld [vmem:[#allocation8 + $0xf40] sm:$0xff]  ;;  %v622_v58 = vld [vmem:[#allocation8 + $0xf88] sm:$0xff] }
  0xe4   :  { %v5168_v62 = vpack.c.bf16 %v613_v54, %v605_v53  ;;  %v185_v53 = vld [vmem:[#allocation8 + $0x1e0] sm:$0xff]  ;;  %v179_v54 = vld [vmem:[#allocation8 + $0x1b0] sm:$0xff] }
  0xe5   :  { %5149 = vmatpush1.bf16.msra.mxu0 %v5148_v0  ;;  %v5170_v0 = vpack.c.bf16 %v630_v59, %v622_v58  ;;  %v202_v58 = vld [vmem:[#allocation8 + $0x268] sm:$0xff]  ;;  %v196_v59 = vld [vmem:[#allocation8 + $0x238] sm:$0xff] }
  0xe6   :  { %5277 = vmatpush1.bf16.msra.mxu1 %v5276_v1  ;;  %5151 = vmatprep.subr.bf16.mxu0 %v5150_v2  ;;  %v621_v1 = vld [vmem:[#allocation8 + $0xf80] sm:$0xff] }
  0xe7   :  { %5279 = vmatprep.subr.bf16.mxu1 %v5278_v6  ;;  %v629_v2 = vld [vmem:[#allocation8 + $0xfc0] sm:$0xff]  ;;  %v130_v6 = vld [vmem:[#allocation8 + $0x28] sm:$0xff] }
  0xe8   :  { %v5172_v10 = vpack.c.bf16 %v629_v2, %v621_v1  ;;  %v195_v1 = vld [vmem:[#allocation8 + $0x230] sm:$0xff]  ;;  %v5446_v2 = vpack.c.bf16 %v204_v60, %v196_v59 }
  0xe9   :  { %5153 = vmatpush1.bf16.msra.mxu0 %v5152_v12  ;;  %v5302_v12 = vpack.c.bf16 %v138_v7, %v130_v6  ;;  %v212_v6 = vld [vmem:[#allocation8 + $0x2b8] sm:$0xff]  ;;  %v5448_v9 = vpack.c.bf16 %v203_v3, %v195_v1  ;;  %v290_v1 = vld [vmem:[#allocation8 + $0x528] sm:$0xff] }
  0xea   :  { %5281 = vmatpush1.bf16.msra.mxu1 %v5280_v13  ;;  %5155 = vmatprep.subr.bf16.mxu0 %v5154_v14  ;;  %v129_v13 = vld [vmem:[#allocation8 + $0x20] sm:$0xff]  ;;  %v220_v7 = vld [vmem:[#allocation8 + $0x2f8] sm:$0xff] }
  0xeb   :  { %5283 = vmatprep.subr.bf16.mxu1 %v5282_v19  ;;  %v137_v14 = vld [vmem:[#allocation8 + $0x60] sm:$0xff]  ;;  %v146_v19 = vld [vmem:[#allocation8 + $0xa8] sm:$0xff]  ;;  %v292_v3 = vld [vmem:[#allocation8 + $0x538] sm:$0xff] }
  0xec   :  { %v5304_v24 = vpack.c.bf16 %v137_v14, %v129_v13  ;;  %v211_v13 = vld [vmem:[#allocation8 + $0x2b0] sm:$0xff]  ;;  %v5450_v14 = vpack.c.bf16 %v220_v7, %v212_v6 }
  0xed   :  { %5157 = vmatpush1.bf16.msra.mxu0 %v5156_v26  ;;  %v5432_v26 = vpack.c.bf16 %v139_v18, %v131_v15  ;;  %v219_v15 = vld [vmem:[#allocation8 + $0x2f0] sm:$0xff]  ;;  %v234_v18 = vld [vmem:[#allocation8 + $0x368] sm:$0xff] }
  0xee   :  { %5285 = vmatpush1.bf16.msra.mxu1 %v5284_v27  ;;  %5159 = vmatprep.subr.bf16.mxu0 %v5158_v28  ;;  %v5306_v27 = vpack.c.bf16 %v154_v20, %v146_v19  ;;  %v145_v28 = vld [vmem:[#allocation8 + $0xa0] sm:$0xff]  ;;  %v228_v19 = vld [vmem:[#allocation8 + $0x338] sm:$0xff]  ;;  %v5452_v22 = vpack.c.bf16 %v219_v15, %v211_v13  ;;  %v306_v13 = vld [vmem:[#allocation8 + $0x5a8] sm:$0xff] }
  0xef   :  { %5287 = vmatprep.subr.bf16.mxu1 %v5286_v32  ;;  %v155_v32 = vld [vmem:[#allocation8 + $0xf0] sm:$0xff]  ;;  %v5308_v37 = vpack.c.bf16 %v153_v29, %v145_v28  ;;  %v236_v20 = vld [vmem:[#allocation8 + $0x378] sm:$0xff] }
  0xf0   :  { %v5454_v28 = vpack.c.bf16 %v236_v20, %v228_v19  ;;  %v235_v29 = vld [vmem:[#allocation8 + $0x370] sm:$0xff]  ;;  %v308_v15 = vld [vmem:[#allocation8 + $0x5b8] sm:$0xff] }
  0xf1   :  { %5161 = vmatpush1.bf16.msra.mxu0 %v5160_v38  ;;  %v5436_v38 = vpack.c.bf16 %v155_v32, %v147_v30  ;;  %v242_v30 = vld [vmem:[#allocation8 + $0x3a8] sm:$0xff]  ;;  %v244_v32 = vld [vmem:[#allocation8 + $0x3b8] sm:$0xff] }
  0xf2   :  { %5289 = vmatpush1.bf16.msra.mxu1 %v5288_v39  ;;  %5163 = vmatprep.subr.bf16.mxu0 %v5162_v40  ;;  %v5310_v39 = vpack.c.bf16 %v170_v34, %v162_v33  ;;  %v161_v40 = vld [vmem:[#allocation8 + $0x120] sm:$0xff]  ;;  %v252_v33 = vld [vmem:[#allocation8 + $0x3f8] sm:$0xff] }
  0xf3   :  { %5291 = vmatprep.subr.bf16.mxu1 %v5290_v44  ;;  %v171_v44 = vld [vmem:[#allocation8 + $0x170] sm:$0xff]  ;;  %v5312_v49 = vpack.c.bf16 %v169_v41, %v161_v40  ;;  %v5458_v40 = vpack.c.bf16 %v252_v33, %v244_v32 }
  0xf4   :  { %v251_v41 = vld [vmem:[#allocation8 + $0x3f0] sm:$0xff] }
  0xf5   :  { %5165 = vmatpush1.bf16.msra.mxu0 %v5164_v50  ;;  %v5440_v50 = vpack.c.bf16 %v171_v44, %v163_v42  ;;  %v258_v42 = vld [vmem:[#allocation8 + $0x428] sm:$0xff]  ;;  %v260_v44 = vld [vmem:[#allocation8 + $0x438] sm:$0xff] }
  0xf6   :  { %5293 = vmatpush1.bf16.msra.mxu1 %v5292_v51  ;;  %5167 = vmatprep.subr.bf16.mxu0 %v5166_v52  ;;  %v5314_v51 = vpack.c.bf16 %v186_v46, %v178_v45  ;;  %v177_v52 = vld [vmem:[#allocation8 + $0x1a0] sm:$0xff]  ;;  %v268_v45 = vld [vmem:[#allocation8 + $0x478] sm:$0xff] }
  0xf7   :  { %5295 = vmatprep.subr.bf16.mxu1 %v5294_v56  ;;  %v187_v56 = vld [vmem:[#allocation8 + $0x1f0] sm:$0xff]  ;;  %v5316_v61 = vpack.c.bf16 %v185_v53, %v177_v52  ;;  %v5462_v52 = vpack.c.bf16 %v268_v45, %v260_v44 }
  0xf8   :  { %v267_v53 = vld [vmem:[#allocation8 + $0x470] sm:$0xff] }
  0xf9   :  { %5169 = vmatpush1.bf16.msra.mxu0 %v5168_v62  ;;  %v5318_v62 = vpack.c.bf16 %v202_v58, %v194_v57  ;;  %v284_v57 = vld [vmem:[#allocation8 + $0x4f8] sm:$0xff] }
  0xfa   :  { %5297 = vmatpush1.bf16.msra.mxu1 %v5296_v63  ;;  %5171 = vmatprep.subr.bf16.mxu0 %v5170_v0  ;;  %v193_v63 = vld [vmem:[#allocation8 + $0x220] sm:$0xff] }
  0xfb   :  { %5299 = vmatprep.subr.bf16.mxu1 %v5298_v4  ;;  %v201_v0 = vld [vmem:[#allocation8 + $0x260] sm:$0xff]  ;;  %v210_v4 = vld [vmem:[#allocation8 + $0x2a8] sm:$0xff] }
  0xfc   :  { %v5320_v8 = vpack.c.bf16 %v201_v0, %v193_v63  ;;  %v283_v0 = vld [vmem:[#allocation8 + $0x4f0] sm:$0xff] }
  0xfd   :  { %5173 = vmatpush1.bf16.msra.mxu0 %v5172_v10  ;;  %v5322_v10 = vpack.c.bf16 %v218_v5, %v210_v4  ;;  %v300_v4 = vld [vmem:[#allocation8 + $0x578] sm:$0xff] }
  0xfe   :  { %5301 = vmatpush1.bf16.msra.mxu1 %v5300_v11  ;;  %5303 = vmatprep.subr.bf16.mxu0 %v5302_v12  ;;  %v209_v11 = vld [vmem:[#allocation8 + $0x2a0] sm:$0xff] }
  0xff   :  { %5431 = vmatprep.subr.bf16.mxu1 %v5430_v16  ;;  %v217_v12 = vld [vmem:[#allocation8 + $0x2e0] sm:$0xff]  ;;  %v226_v16 = vld [vmem:[#allocation8 + $0x328] sm:$0xff] }
 0x100   :  { %781 = vmatmul.mubr.f32.vlgmr.msra.gmra.mrb[0].mxu0 %v123_v23  ;;  %v5324_v21 = vpack.c.bf16 %v217_v12, %v209_v11  ;;  %v5470_v11 = vpack.c.bf16 %v300_v4, %v292_v3  ;;  %v299_v12 = vld [vmem:[#allocation8 + $0x570] sm:$0xff] }
 0x101   :  { %923 = vmatmul.mubr.f32.vlgmr.msra.gmra.mrb[0].mxu1 %v123_v23  ;;  %5305 = vmatpush1.bf16.msra.mxu0 %v5304_v24  ;;  %v5326_v23 = vpack.c.bf16 %v234_v18, %v226_v16  ;;  %v225_v24 = vld [vmem:[#allocation8 + $0x320] sm:$0xff]  ;;  %v316_v16 = vld [vmem:[#allocation8 + $0x5f8] sm:$0xff] }
 0x102   :  { %5433 = vmatpush1.bf16.msra.mxu1 %v5432_v26  ;;  %5307 = vmatprep.subr.bf16.mxu0 %v5306_v27  ;;  %v233_v26 = vld [vmem:[#allocation8 + $0x360] sm:$0xff]  ;;  %v227_v27 = vld [vmem:[#allocation8 + $0x330] sm:$0xff] }
 0x103   :  { %5435 = vmatprep.subr.bf16.mxu1 %v5434_v31  ;;  %993 = vmatprep.mubr.f32.mxu0 %v8259_v17  ;;  %v250_v31 = vld [vmem:[#allocation8 + $0x3e8] sm:$0xff]  ;;  %v5328_v34 = vpack.c.bf16 %v233_v26, %v225_v24  ;;  %v5456_v35 = vpack.c.bf16 %v235_v29, %v227_v27  ;;  %v5474_v24 = vpack.c.bf16 %v316_v16, %v308_v15  ;;  %v315_v26 = vld [vmem:[#allocation8 + $0x5f0] sm:$0xff]  ;;  %v324_v29 = vld [vmem:[#allocation8 + $0x638] sm:$0xff] }
 0x104   :  { %1135 = vmatprep.mubr.f32.mxu1 %v8259_v17  ;;  %v5444_v17 = vpack.c.bf16 %v187_v56, %v179_v54  ;;  %v5330_v36 = vpack.c.bf16 %v250_v31, %v242_v30  ;;  %v274_v54 = vld [vmem:[#allocation8 + $0x4a8] sm:$0xff]  ;;  %v276_v56 = vld [vmem:[#allocation8 + $0x4b8] sm:$0xff] }
 0x105   :  { %5309 = vmatpush1.bf16.msra.mxu0 %v5308_v37  ;;  %v241_v37 = vld [vmem:[#allocation8 + $0x3a0] sm:$0xff]  ;;  %v5466_v63 = vpack.c.bf16 %v284_v57, %v276_v56  ;;  %v322_v27 = vld [vmem:[#allocation8 + $0x628] sm:$0xff]  ;;  %v332_v30 = vld [vmem:[#allocation8 + $0x678] sm:$0xff] }
 0x106   :  { %5437 = vmatpush1.bf16.msra.mxu1 %v5436_v38  ;;  %5311 = vmatprep.subr.bf16.mxu0 %v5310_v39  ;;  %v249_v38 = vld [vmem:[#allocation8 + $0x3e0] sm:$0xff]  ;;  %v243_v39 = vld [vmem:[#allocation8 + $0x3b0] sm:$0xff] }
 0x107   :  { %5439 = vmatprep.subr.bf16.mxu1 %v5438_v43  ;;  %v266_v43 = vld [vmem:[#allocation8 + $0x468] sm:$0xff]  ;;  %v5332_v46 = vpack.c.bf16 %v249_v38, %v241_v37  ;;  %v5460_v47 = vpack.c.bf16 %v251_v41, %v243_v39  ;;  %v5478_v37 = vpack.c.bf16 %v332_v30, %v324_v29  ;;  %v331_v38 = vld [vmem:[#allocation8 + $0x670] sm:$0xff]  ;;  %v340_v41 = vld [vmem:[#allocation8 + $0x6b8] sm:$0xff] }
 0x108   :  { %v5334_v48 = vpack.c.bf16 %v266_v43, %v258_v42  ;;  %v338_v39 = vld [vmem:[#allocation8 + $0x6a8] sm:$0xff]  ;;  %v348_v42 = vld [vmem:[#allocation8 + $0x6f8] sm:$0xff] }
 0x109   :  { %5313 = vmatpush1.bf16.msra.mxu0 %v5312_v49  ;;  %v257_v49 = vld [vmem:[#allocation8 + $0x420] sm:$0xff] }
 0x10a   :  { %5441 = vmatpush1.bf16.msra.mxu1 %v5440_v50  ;;  %5315 = vmatprep.subr.bf16.mxu0 %v5314_v51  ;;  %v265_v50 = vld [vmem:[#allocation8 + $0x460] sm:$0xff]  ;;  %v259_v51 = vld [vmem:[#allocation8 + $0x430] sm:$0xff] }
 0x10b   :  { %5443 = vmatprep.subr.bf16.mxu1 %v5442_v55  ;;  %v282_v55 = vld [vmem:[#allocation8 + $0x4e8] sm:$0xff]  ;;  %v5336_v58 = vpack.c.bf16 %v265_v50, %v257_v49  ;;  %v5464_v59 = vpack.c.bf16 %v267_v53, %v259_v51  ;;  %v5482_v49 = vpack.c.bf16 %v348_v42, %v340_v41  ;;  %v347_v50 = vld [vmem:[#allocation8 + $0x6f0] sm:$0xff]  ;;  %v356_v53 = vld [vmem:[#allocation8 + $0x738] sm:$0xff] }
 0x10c   :  { %v5338_v60 = vpack.c.bf16 %v282_v55, %v274_v54  ;;  %v354_v51 = vld [vmem:[#allocation8 + $0x728] sm:$0xff]  ;;  %v364_v54 = vld [vmem:[#allocation8 + $0x778] sm:$0xff] }
 0x10d   :  { %5317 = vmatpush1.bf16.msra.mxu0 %v5316_v61  ;;  %v273_v61 = vld [vmem:[#allocation8 + $0x4a0] sm:$0xff] }
 0x10e   :  { %5445 = vmatpush1.bf16.msra.mxu1 %v5444_v17  ;;  %5319 = vmatprep.subr.bf16.mxu0 %v5318_v62  ;;  %v281_v17 = vld [vmem:[#allocation8 + $0x4e0] sm:$0xff]  ;;  %v275_v62 = vld [vmem:[#allocation8 + $0x4b0] sm:$0xff] }
 0x10f   :  { %5447 = vmatprep.subr.bf16.mxu1 %v5446_v2  ;;  %v298_v2 = vld [vmem:[#allocation8 + $0x568] sm:$0xff]  ;;  %v5340_v5 = vpack.c.bf16 %v281_v17, %v273_v61  ;;  %v5468_v6 = vpack.c.bf16 %v283_v0, %v275_v62  ;;  %v5486_v61 = vpack.c.bf16 %v364_v54, %v356_v53  ;;  %v363_v17 = vld [vmem:[#allocation8 + $0x770] sm:$0xff]  ;;  %v372_v0 = vld [vmem:[#allocation8 + $0x7b8] sm:$0xff] }
 0x110   :  { %v5342_v7 = vpack.c.bf16 %v298_v2, %v290_v1  ;;  %v370_v62 = vld [vmem:[#allocation8 + $0x7a8] sm:$0xff]  ;;  %v380_v1 = vld [vmem:[#allocation8 + $0x7f8] sm:$0xff] }
 0x111   :  { %5321 = vmatpush1.bf16.msra.mxu0 %v5320_v8  ;;  %v289_v8 = vld [vmem:[#allocation8 + $0x520] sm:$0xff] }
 0x112   :  { %5449 = vmatpush1.bf16.msra.mxu1 %v5448_v9  ;;  %5323 = vmatprep.subr.bf16.mxu0 %v5322_v10  ;;  %v297_v9 = vld [vmem:[#allocation8 + $0x560] sm:$0xff]  ;;  %v291_v10 = vld [vmem:[#allocation8 + $0x530] sm:$0xff] }
 0x113   :  { %5451 = vmatprep.subr.bf16.mxu1 %v5450_v14  ;;  %v314_v14 = vld [vmem:[#allocation8 + $0x5e8] sm:$0xff]  ;;  %v5344_v18 = vpack.c.bf16 %v297_v9, %v289_v8  ;;  %v5472_v19 = vpack.c.bf16 %v299_v12, %v291_v10  ;;  %v5490_v8 = vpack.c.bf16 %v380_v1, %v372_v0  ;;  %v379_v9 = vld [vmem:[#allocation8 + $0x7f0] sm:$0xff]  ;;  %v388_v12 = vld [vmem:[#allocation8 + $0x838] sm:$0xff] }
 0x114   :  { %v5346_v20 = vpack.c.bf16 %v314_v14, %v306_v13  ;;  %v386_v10 = vld [vmem:[#allocation8 + $0x828] sm:$0xff]  ;;  %v396_v13 = vld [vmem:[#allocation8 + $0x878] sm:$0xff] }
 0x115   :  { %5325 = vmatpush1.bf16.msra.mxu0 %v5324_v21  ;;  %v305_v21 = vld [vmem:[#allocation8 + $0x5a0] sm:$0xff] }
 0x116   :  { %5453 = vmatpush1.bf16.msra.mxu1 %v5452_v22  ;;  %5327 = vmatprep.subr.bf16.mxu0 %v5326_v23  ;;  %v313_v22 = vld [vmem:[#allocation8 + $0x5e0] sm:$0xff]  ;;  %v307_v23 = vld [vmem:[#allocation8 + $0x5b0] sm:$0xff] }
 0x117   :  { %5455 = vmatprep.subr.bf16.mxu1 %v5454_v28  ;;  %v330_v28 = vld [vmem:[#allocation8 + $0x668] sm:$0xff]  ;;  %v5348_v31 = vpack.c.bf16 %v313_v22, %v305_v21  ;;  %v5476_v32 = vpack.c.bf16 %v315_v26, %v307_v23  ;;  %v5494_v21 = vpack.c.bf16 %v396_v13, %v388_v12  ;;  %v395_v22 = vld [vmem:[#allocation8 + $0x870] sm:$0xff]  ;;  %v404_v26 = vld [vmem:[#allocation8 + $0x8b8] sm:$0xff] }
 0x118   :  { %v5350_v33 = vpack.c.bf16 %v330_v28, %v322_v27  ;;  %v402_v23 = vld [vmem:[#allocation8 + $0x8a8] sm:$0xff]  ;;  %v412_v27 = vld [vmem:[#allocation8 + $0x8f8] sm:$0xff] }
 0x119   :  { %5329 = vmatpush1.bf16.msra.mxu0 %v5328_v34  ;;  %v321_v34 = vld [vmem:[#allocation8 + $0x620] sm:$0xff] }
 0x11a   :  { %5457 = vmatpush1.bf16.msra.mxu1 %v5456_v35  ;;  %5331 = vmatprep.subr.bf16.mxu0 %v5330_v36  ;;  %v329_v35 = vld [vmem:[#allocation8 + $0x660] sm:$0xff]  ;;  %v323_v36 = vld [vmem:[#allocation8 + $0x630] sm:$0xff] }
 0x11b   :  { %5459 = vmatprep.subr.bf16.mxu1 %v5458_v40  ;;  %v346_v40 = vld [vmem:[#allocation8 + $0x6e8] sm:$0xff]  ;;  %v5352_v43 = vpack.c.bf16 %v329_v35, %v321_v34  ;;  %v5480_v44 = vpack.c.bf16 %v331_v38, %v323_v36  ;;  %v5498_v34 = vpack.c.bf16 %v412_v27, %v404_v26  ;;  %v411_v35 = vld [vmem:[#allocation8 + $0x8f0] sm:$0xff]  ;;  %v7953_v38 = vld [vmem:[#allocation7] sm:$0xff] }
 0x11c   :  { %v5354_v45 = vpack.c.bf16 %v346_v40, %v338_v39  ;;  %v418_v36 = vld [vmem:[#allocation8 + $0x928] sm:$0xff]  ;;  %v420_v39 = vld [vmem:[#allocation8 + $0x938] sm:$0xff] }
 0x11d   :  { %5333 = vmatpush1.bf16.msra.mxu0 %v5332_v46  ;;  %v337_v46 = vld [vmem:[#allocation8 + $0x6a0] sm:$0xff]  ;;  %v428_v40 = vld [vmem:[#allocation8 + $0x978] sm:$0xff] }
 0x11e   :  { %5461 = vmatpush1.bf16.msra.mxu1 %v5460_v47  ;;  %5335 = vmatprep.subr.bf16.mxu0 %v5334_v48  ;;  %v345_v47 = vld [vmem:[#allocation8 + $0x6e0] sm:$0xff]  ;;  %v339_v48 = vld [vmem:[#allocation8 + $0x6b0] sm:$0xff] }
 0x11f   :  { %5463 = vmatprep.subr.bf16.mxu1 %v5462_v52  ;;  %v362_v52 = vld [vmem:[#allocation8 + $0x768] sm:$0xff]  ;;  %v5356_v55 = vpack.c.bf16 %v345_v47, %v337_v46  ;;  %v5484_v56 = vpack.c.bf16 %v347_v50, %v339_v48  ;;  %v419_v46 = vld [vmem:[#allocation8 + $0x930] sm:$0xff]  ;;  %v5502_v47 = vpack.c.bf16 %v428_v40, %v420_v39  ;;  %v497_v40 = vld [vmem:[#allocation8 + $0xba0] sm:$0xff] }
 0x120   :  { %v5358_v57 = vpack.c.bf16 %v362_v52, %v354_v51  ;;  %v427_v48 = vld [vmem:[#allocation8 + $0x970] sm:$0xff]  ;;  %v442_v50 = vld [vmem:[#allocation8 + $0x9e8] sm:$0xff]  ;;  %v436_v51 = vld [vmem:[#allocation8 + $0x9b8] sm:$0xff] }
 0x121   :  { %5337 = vmatpush1.bf16.msra.mxu0 %v5336_v58  ;;  %v353_v58 = vld [vmem:[#allocation8 + $0x720] sm:$0xff]  ;;  %v444_v52 = vld [vmem:[#allocation8 + $0x9f8] sm:$0xff]  ;;  %v5504_v54 = vpack.c.bf16 %v427_v48, %v419_v46  ;;  %v522_v46 = vld [vmem:[#allocation8 + $0xc68] sm:$0xff] }
 0x122   :  { %5465 = vmatpush1.bf16.msra.mxu1 %v5464_v59  ;;  %5339 = vmatprep.subr.bf16.mxu0 %v5338_v60  ;;  %v361_v59 = vld [vmem:[#allocation8 + $0x760] sm:$0xff]  ;;  %v355_v60 = vld [vmem:[#allocation8 + $0x730] sm:$0xff]  ;;  %v524_v48 = vld [vmem:[#allocation8 + $0xc78] sm:$0xff] }
 0x123   :  { %5467 = vmatprep.subr.bf16.mxu1 %v5466_v63  ;;  %v378_v63 = vld [vmem:[#allocation8 + $0x7e8] sm:$0xff]  ;;  %v5360_v2 = vpack.c.bf16 %v361_v59, %v353_v58  ;;  %v5488_v3 = vpack.c.bf16 %v363_v17, %v355_v60  ;;  %v435_v58 = vld [vmem:[#allocation8 + $0x9b0] sm:$0xff]  ;;  %v5506_v59 = vpack.c.bf16 %v444_v52, %v436_v51  ;;  %v513_v52 = vld [vmem:[#allocation8 + $0xc20] sm:$0xff] }
 0x124   :  { %v5362_v4 = vpack.c.bf16 %v378_v63, %v370_v62  ;;  %v443_v60 = vld [vmem:[#allocation8 + $0x9f0] sm:$0xff]  ;;  %v458_v17 = vld [vmem:[#allocation8 + $0xa68] sm:$0xff]  ;;  %v452_v62 = vld [vmem:[#allocation8 + $0xa38] sm:$0xff] }
 0x125   :  { %5341 = vmatpush1.bf16.msra.mxu0 %v5340_v5  ;;  %v369_v5 = vld [vmem:[#allocation8 + $0x7a0] sm:$0xff]  ;;  %v460_v63 = vld [vmem:[#allocation8 + $0xa78] sm:$0xff] }
 0x126   :  { %5469 = vmatpush1.bf16.msra.mxu1 %v5468_v6  ;;  %5343 = vmatprep.subr.bf16.mxu0 %v5342_v7  ;;  %v377_v6 = vld [vmem:[#allocation8 + $0x7e0] sm:$0xff]  ;;  %v371_v7 = vld [vmem:[#allocation8 + $0x7b0] sm:$0xff] }
 0x127   :  { %5471 = vmatprep.subr.bf16.mxu1 %v5470_v11  ;;  %v394_v11 = vld [vmem:[#allocation8 + $0x868] sm:$0xff]  ;;  %v5364_v14 = vpack.c.bf16 %v377_v6, %v369_v5  ;;  %v5492_v15 = vpack.c.bf16 %v379_v9, %v371_v7  ;;  %v5510_v5 = vpack.c.bf16 %v460_v63, %v452_v62  ;;  %v459_v6 = vld [vmem:[#allocation8 + $0xa70] sm:$0xff]  ;;  %v468_v9 = vld [vmem:[#allocation8 + $0xab8] sm:$0xff] }
 0x128   :  { %v5366_v16 = vpack.c.bf16 %v394_v11, %v386_v10  ;;  %v466_v7 = vld [vmem:[#allocation8 + $0xaa8] sm:$0xff]  ;;  %v476_v10 = vld [vmem:[#allocation8 + $0xaf8] sm:$0xff]  ;;  %v529_v63 = vld [vmem:[#allocation8 + $0xca0] sm:$0xff] }
 0x129   :  { %5345 = vmatpush1.bf16.msra.mxu0 %v5344_v18  ;;  %v385_v18 = vld [vmem:[#allocation8 + $0x820] sm:$0xff] }
 0x12a   :  { %5473 = vmatpush1.bf16.msra.mxu1 %v5472_v19  ;;  %5347 = vmatprep.subr.bf16.mxu0 %v5346_v20  ;;  %v393_v19 = vld [vmem:[#allocation8 + $0x860] sm:$0xff]  ;;  %v387_v20 = vld [vmem:[#allocation8 + $0x830] sm:$0xff] }
 0x12b   :  { %5475 = vmatprep.subr.bf16.mxu1 %v5474_v24  ;;  %v410_v24 = vld [vmem:[#allocation8 + $0x8e8] sm:$0xff]  ;;  %v5368_v28 = vpack.c.bf16 %v393_v19, %v385_v18  ;;  %v5496_v29 = vpack.c.bf16 %v395_v22, %v387_v20  ;;  %v5514_v18 = vpack.c.bf16 %v476_v10, %v468_v9  ;;  %v475_v19 = vld [vmem:[#allocation8 + $0xaf0] sm:$0xff]  ;;  %v484_v22 = vld [vmem:[#allocation8 + $0xb38] sm:$0xff] }
 0x12c   :  { %v5370_v30 = vpack.c.bf16 %v410_v24, %v402_v23  ;;  %v482_v20 = vld [vmem:[#allocation8 + $0xb28] sm:$0xff]  ;;  %v492_v23 = vld [vmem:[#allocation8 + $0xb78] sm:$0xff]  ;;  %v545_v10 = vld [vmem:[#allocation8 + $0xd20] sm:$0xff] }
 0x12d   :  { %5349 = vmatpush1.bf16.msra.mxu0 %v5348_v31  ;;  %v401_v31 = vld [vmem:[#allocation8 + $0x8a0] sm:$0xff] }
 0x12e   :  { %5477 = vmatpush1.bf16.msra.mxu1 %v5476_v32  ;;  %5351 = vmatprep.subr.bf16.mxu0 %v5350_v33  ;;  %v409_v32 = vld [vmem:[#allocation8 + $0x8e0] sm:$0xff]  ;;  %v403_v33 = vld [vmem:[#allocation8 + $0x8b0] sm:$0xff] }
 0x12f   :  { %5479 = vmatprep.subr.bf16.mxu1 %v5478_v37  ;;  %v426_v37 = vld [vmem:[#allocation8 + $0x968] sm:$0xff]  ;;  %v5372_v41 = vpack.c.bf16 %v409_v32, %v401_v31  ;;  %v5500_v42 = vpack.c.bf16 %v411_v35, %v403_v33  ;;  %v5518_v31 = vpack.c.bf16 %v492_v23, %v484_v22  ;;  %v491_v32 = vld [vmem:[#allocation8 + $0xb70] sm:$0xff]  ;;  %v500_v35 = vld [vmem:[#allocation8 + $0xbb8] sm:$0xff] }
 0x130   :  { %v498_v33 = vld [vmem:[#allocation8 + $0xba8] sm:$0xff]  ;;  %v561_v23 = vld [vmem:[#allocation8 + $0xda0] sm:$0xff] }
 0x131   :  { %5353 = vmatpush1.bf16.msra.mxu0 %v5352_v43  ;;  %v5374_v43 = vpack.c.bf16 %v426_v37, %v418_v36  ;;  %v508_v36 = vld [vmem:[#allocation8 + $0xbf8] sm:$0xff] }
 0x132   :  { %5481 = vmatpush1.bf16.msra.mxu1 %v5480_v44  ;;  %5355 = vmatprep.subr.bf16.mxu0 %v5354_v45  ;;  %v417_v44 = vld [vmem:[#allocation8 + $0x920] sm:$0xff] }
 0x133   :  { %5483 = vmatprep.subr.bf16.mxu1 %v5482_v49  ;;  %v425_v45 = vld [vmem:[#allocation8 + $0x960] sm:$0xff]  ;;  %v434_v49 = vld [vmem:[#allocation8 + $0x9a8] sm:$0xff] }
 0x134   :  { %v5376_v53 = vpack.c.bf16 %v425_v45, %v417_v44  ;;  %v507_v44 = vld [vmem:[#allocation8 + $0xbf0] sm:$0xff]  ;;  %v514_v45 = vld [vmem:[#allocation8 + $0xc28] sm:$0xff] }
 0x135   :  { %5357 = vmatpush1.bf16.msra.mxu0 %v5356_v55  ;;  %v5378_v55 = vpack.c.bf16 %v442_v50, %v434_v49  ;;  %v5398_v51 = vpack.c.bf16 %v522_v46, %v514_v45 }
 0x136   :  { %5485 = vmatpush1.bf16.msra.mxu1 %v5484_v56  ;;  %5359 = vmatprep.subr.bf16.mxu0 %v5358_v57  ;;  %v433_v56 = vld [vmem:[#allocation8 + $0x9a0] sm:$0xff] }
 0x137   :  { %5487 = vmatprep.subr.bf16.mxu1 %v5486_v61  ;;  %v441_v57 = vld [vmem:[#allocation8 + $0x9e0] sm:$0xff]  ;;  %v450_v61 = vld [vmem:[#allocation8 + $0xa28] sm:$0xff] }
 0x138   :  { %v5380_v0 = vpack.c.bf16 %v441_v57, %v433_v56  ;;  %v5382_v1 = vpack.c.bf16 %v458_v17, %v450_v61  ;;  %v523_v56 = vld [vmem:[#allocation8 + $0xc70] sm:$0xff]  ;;  %v530_v57 = vld [vmem:[#allocation8 + $0xca8] sm:$0xff] }
 0x139   :  { %5361 = vmatpush1.bf16.msra.mxu0 %v5360_v2  ;;  %v449_v2 = vld [vmem:[#allocation8 + $0xa20] sm:$0xff] }
 0x13a   :  { %5489 = vmatpush1.bf16.msra.mxu1 %v5488_v3  ;;  %5363 = vmatprep.subr.bf16.mxu0 %v5362_v4  ;;  %v457_v3 = vld [vmem:[#allocation8 + $0xa60] sm:$0xff]  ;;  %v451_v4 = vld [vmem:[#allocation8 + $0xa30] sm:$0xff] }
 0x13b   :  { %5491 = vmatprep.subr.bf16.mxu1 %v5490_v8  ;;  %v474_v8 = vld [vmem:[#allocation8 + $0xae8] sm:$0xff]  ;;  %v5384_v11 = vpack.c.bf16 %v457_v3, %v449_v2  ;;  %v5512_v12 = vpack.c.bf16 %v459_v6, %v451_v4  ;;  %v539_v2 = vld [vmem:[#allocation8 + $0xcf0] sm:$0xff]  ;;  %v556_v6 = vld [vmem:[#allocation8 + $0xd78] sm:$0xff] }
 0x13c   :  { %v5386_v13 = vpack.c.bf16 %v474_v8, %v466_v7  ;;  %v546_v3 = vld [vmem:[#allocation8 + $0xd28] sm:$0xff] }
 0x13d   :  { %5365 = vmatpush1.bf16.msra.mxu0 %v5364_v14  ;;  %v465_v14 = vld [vmem:[#allocation8 + $0xaa0] sm:$0xff]  ;;  %v554_v4 = vld [vmem:[#allocation8 + $0xd68] sm:$0xff] }
 0x13e   :  { %5493 = vmatpush1.bf16.msra.mxu1 %v5492_v15  ;;  %5367 = vmatprep.subr.bf16.mxu0 %v5366_v16  ;;  %v473_v15 = vld [vmem:[#allocation8 + $0xae0] sm:$0xff]  ;;  %v467_v16 = vld [vmem:[#allocation8 + $0xab0] sm:$0xff]  ;;  %v5406_v9 = vpack.c.bf16 %v554_v4, %v546_v3 }
 0x13f   :  { %5495 = vmatprep.subr.bf16.mxu1 %v5494_v21  ;;  %v490_v21 = vld [vmem:[#allocation8 + $0xb68] sm:$0xff]  ;;  %v5388_v24 = vpack.c.bf16 %v473_v15, %v465_v14  ;;  %v5516_v26 = vpack.c.bf16 %v475_v19, %v467_v16  ;;  %v555_v14 = vld [vmem:[#allocation8 + $0xd70] sm:$0xff]  ;;  %v572_v19 = vld [vmem:[#allocation8 + $0xdf8] sm:$0xff] }
 0x140   :  { %994 = vmatmul.mubr.f32.vlgmr.msra.gmra.mrb[2].mxu0 %v7953_v38  ;;  %v5390_v27 = vpack.c.bf16 %v490_v21, %v482_v20  ;;  %v562_v15 = vld [vmem:[#allocation8 + $0xda8] sm:$0xff] }
 0x141   :  { %5369 = vmatpush1.bf16.msra.mxu0 %v5368_v28  ;;  %1136 = vmatmul.mubr.f32.vlgmr.msra.gmra.mrb[2].mxu1 %v7953_v38  ;;  %v481_v28 = vld [vmem:[#allocation8 + $0xb20] sm:$0xff]  ;;  %v570_v16 = vld [vmem:[#allocation8 + $0xde8] sm:$0xff] }
 0x142   :  { %5497 = vmatpush1.bf16.msra.mxu1 %v5496_v29  ;;  %5371 = vmatprep.subr.bf16.mxu0 %v5370_v30  ;;  %v489_v29 = vld [vmem:[#allocation8 + $0xb60] sm:$0xff]  ;;  %v483_v30 = vld [vmem:[#allocation8 + $0xb30] sm:$0xff]  ;;  %v5410_v22 = vpack.c.bf16 %v570_v16, %v562_v15 }
 0x143   :  { %5499 = vmatprep.subr.bf16.mxu1 %v5498_v34  ;;  %1064 = vmatprep.mubr.f32.mxu0 %v8263_v25  ;;  %v506_v34 = vld [vmem:[#allocation8 + $0xbe8] sm:$0xff]  ;;  %v5392_v37 = vpack.c.bf16 %v489_v29, %v481_v28  ;;  %v5520_v38 = vpack.c.bf16 %v491_v32, %v483_v30  ;;  %v571_v28 = vld [vmem:[#allocation8 + $0xdf0] sm:$0xff]  ;;  %v588_v32 = vld [vmem:[#allocation8 + $0xe78] sm:$0xff] }
 0x144   :  { %1206 = vmatprep.mubr.f32.mxu1 %v8263_v25  ;;  %v5508_v25 = vpack.c.bf16 %v443_v60, %v435_v58  ;;  %v5394_v39 = vpack.c.bf16 %v506_v34, %v498_v33  ;;  %v538_v58 = vld [vmem:[#allocation8 + $0xce8] sm:$0xff]  ;;  %v540_v60 = vld [vmem:[#allocation8 + $0xcf8] sm:$0xff] }
 0x145   :  { %5373 = vmatpush1.bf16.msra.mxu0 %v5372_v41  ;;  %v505_v41 = vld [vmem:[#allocation8 + $0xbe0] sm:$0xff]  ;;  %v5402_v62 = vpack.c.bf16 %v538_v58, %v530_v57  ;;  %v578_v29 = vld [vmem:[#allocation8 + $0xe28] sm:$0xff] }
 0x146   :  { %5501 = vmatpush1.bf16.msra.mxu1 %v5500_v42  ;;  %5375 = vmatprep.subr.bf16.mxu0 %v5374_v43  ;;  %v499_v42 = vld [vmem:[#allocation8 + $0xbb0] sm:$0xff]  ;;  %v5522_v43 = vpack.c.bf16 %v508_v36, %v500_v35  ;;  %v5396_v49 = vpack.c.bf16 %v505_v41, %v497_v40  ;;  %v586_v30 = vld [vmem:[#allocation8 + $0xe68] sm:$0xff]  ;;  %v577_v36 = vld [vmem:[#allocation8 + $0xe20] sm:$0xff] }
 0x147   :  { %5503 = vmatprep.subr.bf16.mxu1 %v5502_v47  ;;  %v516_v47 = vld [vmem:[#allocation8 + $0xc38] sm:$0xff]  ;;  %v5524_v50 = vpack.c.bf16 %v507_v44, %v499_v42  ;;  %v5414_v35 = vpack.c.bf16 %v586_v30, %v578_v29  ;;  %v587_v40 = vld [vmem:[#allocation8 + $0xe70] sm:$0xff]  ;;  %v594_v41 = vld [vmem:[#allocation8 + $0xea8] sm:$0xff] }
 0x148   :  { %v602_v42 = vld [vmem:[#allocation8 + $0xee8] sm:$0xff]  ;;  %v604_v44 = vld [vmem:[#allocation8 + $0xef8] sm:$0xff] }
 0x149   :  { %5377 = vmatpush1.bf16.msra.mxu0 %v5376_v53  ;;  %v521_v53 = vld [vmem:[#allocation8 + $0xc60] sm:$0xff] }
 0x14a   :  { %5505 = vmatpush1.bf16.msra.mxu1 %v5504_v54  ;;  %5379 = vmatprep.subr.bf16.mxu0 %v5378_v55  ;;  %v515_v54 = vld [vmem:[#allocation8 + $0xc30] sm:$0xff]  ;;  %v5526_v55 = vpack.c.bf16 %v524_v48, %v516_v47  ;;  %v5400_v61 = vpack.c.bf16 %v521_v53, %v513_v52  ;;  %v5418_v47 = vpack.c.bf16 %v602_v42, %v594_v41  ;;  %v593_v48 = vld [vmem:[#allocation8 + $0xea0] sm:$0xff]  ;;  %v610_v53 = vld [vmem:[#allocation8 + $0xf28] sm:$0xff] }
 0x14b   :  { %5507 = vmatprep.subr.bf16.mxu1 %v5506_v59  ;;  %v532_v59 = vld [vmem:[#allocation8 + $0xcb8] sm:$0xff]  ;;  %v5528_v17 = vpack.c.bf16 %v523_v56, %v515_v54  ;;  %v603_v52 = vld [vmem:[#allocation8 + $0xef0] sm:$0xff]  ;;  %v618_v54 = vld [vmem:[#allocation8 + $0xf68] sm:$0xff] }
 0x14c   :  { %v620_v56 = vld [vmem:[#allocation8 + $0xf78] sm:$0xff] }
 0x14d   :  { %5381 = vmatpush1.bf16.msra.mxu0 %v5380_v0  ;;  %v537_v0 = vld [vmem:[#allocation8 + $0xce0] sm:$0xff]  ;;  %v1256_v41 = vld [vmem:[#allocation11 + $0x158] sm:$0xff] }
 0x14e   :  { %5509 = vmatpush1.bf16.msra.mxu1 %v5508_v25  ;;  %5383 = vmatprep.subr.bf16.mxu0 %v5382_v1  ;;  %v531_v25 = vld [vmem:[#allocation8 + $0xcb0] sm:$0xff]  ;;  %v5530_v1 = vpack.c.bf16 %v540_v60, %v532_v59  ;;  %v5404_v7 = vpack.c.bf16 %v537_v0, %v529_v63  ;;  %v5422_v59 = vpack.c.bf16 %v618_v54, %v610_v53  ;;  %v609_v60 = vld [vmem:[#allocation8 + $0xf20] sm:$0xff]  ;;  %v626_v0 = vld [vmem:[#allocation8 + $0xfa8] sm:$0xff] }
 0x14f   :  { %5511 = vmatprep.subr.bf16.mxu1 %v5510_v5  ;;  %v548_v5 = vld [vmem:[#allocation8 + $0xd38] sm:$0xff]  ;;  %v5532_v8 = vpack.c.bf16 %v539_v2, %v531_v25  ;;  %v619_v63 = vld [vmem:[#allocation8 + $0xf70] sm:$0xff]  ;;  %v634_v25 = vld [vmem:[#allocation8 + $0xfe8] sm:$0xff] }
 0x150   :  { %v636_v2 = vld [vmem:[#allocation8 + $0xff8] sm:$0xff] }
 0x151   :  { %5385 = vmatpush1.bf16.msra.mxu0 %v5384_v11  ;;  %v553_v11 = vld [vmem:[#allocation8 + $0xd60] sm:$0xff]  ;;  %v1264_v53 = vld [vmem:[#allocation11 + $0x198] sm:$0xff] }
 0x152   :  { %5513 = vmatpush1.bf16.msra.mxu1 %v5512_v12  ;;  %5387 = vmatprep.subr.bf16.mxu0 %v5386_v13  ;;  %v547_v12 = vld [vmem:[#allocation8 + $0xd30] sm:$0xff]  ;;  %v5534_v13 = vpack.c.bf16 %v556_v6, %v548_v5  ;;  %v5408_v20 = vpack.c.bf16 %v553_v11, %v545_v10  ;;  %v5426_v5 = vpack.c.bf16 %v634_v25, %v626_v0  ;;  %v625_v6 = vld [vmem:[#allocation8 + $0xfa0] sm:$0xff]  ;;  %v1214_v11 = vld [vmem:[#allocation11 + $0x8] sm:$0xff] }
 0x153   :  { %5515 = vmatprep.subr.bf16.mxu1 %v5514_v18  ;;  %v564_v18 = vld [vmem:[#allocation8 + $0xdb8] sm:$0xff]  ;;  %v5536_v21 = vpack.c.bf16 %v555_v14, %v547_v12  ;;  %v635_v10 = vld [vmem:[#allocation8 + $0xff0] sm:$0xff]  ;;  %v1222_v12 = vld [vmem:[#allocation11 + $0x48] sm:$0xff] }
 0x154   :  { %v1224_v14 = vld [vmem:[#allocation11 + $0x58] sm:$0xff] }
 0x155   :  { %5389 = vmatpush1.bf16.msra.mxu0 %v5388_v24  ;;  %v569_v24 = vld [vmem:[#allocation8 + $0xde0] sm:$0xff]  ;;  %v1272_v54 = vld [vmem:[#allocation11 + $0x1d8] sm:$0xff] }
 0x156   :  { %5517 = vmatpush1.bf16.msra.mxu1 %v5516_v26  ;;  %5391 = vmatprep.subr.bf16.mxu0 %v5390_v27  ;;  %v563_v26 = vld [vmem:[#allocation8 + $0xdb0] sm:$0xff]  ;;  %v5538_v27 = vpack.c.bf16 %v572_v19, %v564_v18  ;;  %v5412_v33 = vpack.c.bf16 %v569_v24, %v561_v23  ;;  %v8271_v18 = vpack.c.bf16 %v1222_v12, %v1214_v11  ;;  %v1213_v19 = vld [vmem:[#allocation11] sm:$0xff]  ;;  %v1230_v24 = vld [vmem:[#allocation11 + $0x88] sm:$0xff] }
 0x157   :  { %5519 = vmatprep.subr.bf16.mxu1 %v5518_v31  ;;  %v580_v31 = vld [vmem:[#allocation8 + $0xe38] sm:$0xff]  ;;  %v5540_v34 = vpack.c.bf16 %v571_v28, %v563_v26  ;;  %v1223_v23 = vld [vmem:[#allocation11 + $0x50] sm:$0xff]  ;;  %v1238_v26 = vld [vmem:[#allocation11 + $0xc8] sm:$0xff] }
 0x158   :  { %10150 = vst [vmem:[#allocation21_spill] sm:$0xff] %v8271_v18  ;;  %v1240_v28 = vld [vmem:[#allocation11 + $0xd8] sm:$0xff] }
 0x159   :  { %5393 = vmatpush1.bf16.msra.mxu0 %v5392_v37  ;;  %v585_v37 = vld [vmem:[#allocation8 + $0xe60] sm:$0xff]  ;;  %v1280_v0 = vld [vmem:[#allocation11 + $0x218] sm:$0xff] }
 0x15a   :  { %5521 = vmatpush1.bf16.msra.mxu1 %v5520_v38  ;;  %5395 = vmatprep.subr.bf16.mxu0 %v5394_v39  ;;  %v579_v38 = vld [vmem:[#allocation8 + $0xe30] sm:$0xff]  ;;  %v5542_v39 = vpack.c.bf16 %v588_v32, %v580_v31  ;;  %v5416_v45 = vpack.c.bf16 %v585_v37, %v577_v36  ;;  %v8280_v31 = vpack.c.bf16 %v1238_v26, %v1230_v24  ;;  %v1229_v32 = vld [vmem:[#allocation11 + $0x80] sm:$0xff]  ;;  %v1246_v37 = vld [vmem:[#allocation11 + $0x108] sm:$0xff] }
 0x15b   :  { %5523 = vmatprep.subr.bf16.mxu1 %v5522_v43  ;;  %v596_v43 = vld [vmem:[#allocation8 + $0xeb8] sm:$0xff]  ;;  %v5544_v46 = vpack.c.bf16 %v587_v40, %v579_v38  ;;  %v1239_v36 = vld [vmem:[#allocation11 + $0xd0] sm:$0xff]  ;;  %v1254_v38 = vld [vmem:[#allocation11 + $0x148] sm:$0xff] }
 0x15c   :  { %10154 = vst [vmem:[#allocation25_spill] sm:$0xff] %v8280_v31  ;;  %v1248_v40 = vld [vmem:[#allocation11 + $0x118] sm:$0xff]  ;;  %v1310_v24 = vld [vmem:[#allocation11 + $0x308] sm:$0xff] }
 0x15d   :  { %5397 = vmatpush1.bf16.msra.mxu0 %v5396_v49  ;;  %v601_v49 = vld [vmem:[#allocation8 + $0xee0] sm:$0xff]  ;;  %v1288_v25 = vld [vmem:[#allocation11 + $0x258] sm:$0xff]  ;;  %v1318_v26 = vld [vmem:[#allocation11 + $0x348] sm:$0xff] }
 0x15e   :  { %5525 = vmatpush1.bf16.msra.mxu1 %v5524_v50  ;;  %5399 = vmatprep.subr.bf16.mxu0 %v5398_v51  ;;  %v595_v50 = vld [vmem:[#allocation8 + $0xeb0] sm:$0xff]  ;;  %v5546_v51 = vpack.c.bf16 %v604_v44, %v596_v43  ;;  %v5420_v57 = vpack.c.bf16 %v601_v49, %v593_v48  ;;  %v8292_v44 = vpack.c.bf16 %v1254_v38, %v1246_v37  ;;  %v1296_v11 = vld [vmem:[#allocation11 + $0x298] sm:$0xff]  ;;  %v1317_v37 = vld [vmem:[#allocation11 + $0x340] sm:$0xff] }
 0x15f   :  { %5527 = vmatprep.subr.bf16.mxu1 %v5526_v55  ;;  %v612_v55 = vld [vmem:[#allocation8 + $0xf38] sm:$0xff]  ;;  %v5548_v58 = vpack.c.bf16 %v603_v52, %v595_v50  ;;  %v8295_v48 = vpack.c.bf16 %v1256_v41, %v1248_v40  ;;  %v1255_v49 = vld [vmem:[#allocation11 + $0x150] sm:$0xff]  ;;  %v1262_v50 = vld [vmem:[#allocation11 + $0x188] sm:$0xff]  ;;  %v9863_v52 = vmov 0.0  }
 0x160   :  { %10158 = vst [vmem:[#allocation29_spill] sm:$0xff] %v8292_v44  ;;  %v1304_v12 = vld [vmem:[#allocation11 + $0x2d8] sm:$0xff]  ;;  %v1311_v38 = vld [vmem:[#allocation11 + $0x310] sm:$0xff]  ;;  %v1326_v41 = vld [vmem:[#allocation11 + $0x388] sm:$0xff] }
 0x161   :  { %5401 = vmatpush1.bf16.msra.mxu0 %v5400_v61  ;;  %v617_v61 = vld [vmem:[#allocation8 + $0xf60] sm:$0xff]  ;;  %10159 = vst [vmem:[#allocation30_spill] sm:$0xff] %v8295_v48  ;;  %v1319_v40 = vld [vmem:[#allocation11 + $0x350] sm:$0xff] }
 0x162   :  { %5529 = vmatpush1.bf16.msra.mxu1 %v5528_v17  ;;  %5403 = vmatprep.subr.bf16.mxu0 %v5402_v62  ;;  %v611_v17 = vld [vmem:[#allocation8 + $0xf30] sm:$0xff]  ;;  %v5550_v62 = vpack.c.bf16 %v620_v56, %v612_v55  ;;  %v5424_v3 = vpack.c.bf16 %v617_v61, %v609_v60  ;;  %v8309_v61 = vpack.c.bf16 %v1272_v54, %v1264_v53  ;;  %v1325_v53 = vld [vmem:[#allocation11 + $0x380] sm:$0xff] }
 0x163   :  { %5531 = vmatprep.subr.bf16.mxu1 %v5530_v1  ;;  %v628_v1 = vld [vmem:[#allocation8 + $0xfb8] sm:$0xff]  ;;  %v5552_v4 = vpack.c.bf16 %v619_v63, %v611_v17  ;;  %v1263_v60 = vld [vmem:[#allocation11 + $0x190] sm:$0xff]  ;;  %v1286_v63 = vld [vmem:[#allocation11 + $0x248] sm:$0xff] }
 0x164   :  { %10163 = vst [vmem:[#allocation34_spill] sm:$0xff] %v8309_v61  ;;  %v1271_v17 = vld [vmem:[#allocation11 + $0x1d0] sm:$0xff]  ;;  %v1333_v54 = vld [vmem:[#allocation11 + $0x3c0] sm:$0xff] }
 0x165   :  { %5405 = vmatpush1.bf16.msra.mxu0 %v5404_v7  ;;  %v633_v7 = vld [vmem:[#allocation8 + $0xfe0] sm:$0xff] }
 0x166   :  { %5533 = vmatpush1.bf16.msra.mxu1 %v5532_v8  ;;  %5407 = vmatprep.subr.bf16.mxu0 %v5406_v9  ;;  %v627_v8 = vld [vmem:[#allocation8 + $0xfb0] sm:$0xff]  ;;  %v5554_v9 = vpack.c.bf16 %v636_v2, %v628_v1  ;;  %v5428_v15 = vpack.c.bf16 %v633_v7, %v625_v6  ;;  %v8316_v2 = vpack.c.bf16 %v1271_v17, %v1263_v60  ;;  %v1342_v17 = vld [vmem:[#allocation11 + $0x408] sm:$0xff] }
 0x167   :  { %5535 = vmatprep.subr.bf16.mxu1 %v5534_v13  ;;  %v1216_v13 = vld [vmem:[#allocation11 + $0x18] sm:$0xff]  ;;  %v5556_v16 = vpack.c.bf16 %v635_v10, %v627_v8  ;;  %v1279_v6 = vld [vmem:[#allocation11 + $0x210] sm:$0xff]  ;;  %v8321_v7 = vpack.c.bf16 %v1288_v25, %v1280_v0  ;;  %v1302_v10 = vld [vmem:[#allocation11 + $0x2c8] sm:$0xff]  ;;  %v8360_v25 = vpack.c.bf16 %v1333_v54, %v1325_v53 }
 0x168   :  { %10165 = vst [vmem:[#allocation36_spill] sm:$0xff] %v8316_v2  ;;  %v1287_v8 = vld [vmem:[#allocation11 + $0x250] sm:$0xff]  ;;  %v1352_v0 = vld [vmem:[#allocation11 + $0x458] sm:$0xff] }
 0x169   :  { %5409 = vmatpush1.bf16.msra.mxu0 %v5408_v20  ;;  %v1221_v20 = vld [vmem:[#allocation11 + $0x40] sm:$0xff]  ;;  %10167 = vst [vmem:[#allocation38_spill] sm:$0xff] %v8321_v7  ;;  %v1335_v60 = vld [vmem:[#allocation11 + $0x3d0] sm:$0xff]  ;;  %10180 = vst [vmem:[#allocation51_spill] sm:$0xff] %v8360_v25 }
 0x16a   :  { %5537 = vmatpush1.bf16.msra.mxu1 %v5536_v21  ;;  %5411 = vmatprep.subr.bf16.mxu0 %v5410_v22  ;;  %v1215_v21 = vld [vmem:[#allocation11 + $0x10] sm:$0xff]  ;;  %v8273_v22 = vpack.c.bf16 %v1224_v14, %v1216_v13  ;;  %v8275_v29 = vpack.c.bf16 %v1221_v20, %v1213_v19  ;;  %v8328_v14 = vpack.c.bf16 %v1287_v8, %v1279_v6  ;;  %v1301_v19 = vld [vmem:[#allocation11 + $0x2c0] sm:$0xff] }
 0x16b   :  { %5539 = vmatprep.subr.bf16.mxu1 %v5538_v27  ;;  %v1232_v27 = vld [vmem:[#allocation11 + $0x98] sm:$0xff]  ;;  %v8278_v30 = vpack.c.bf16 %v1223_v23, %v1215_v21  ;;  %v1295_v20 = vld [vmem:[#allocation11 + $0x290] sm:$0xff]  ;;  %v8333_v21 = vpack.c.bf16 %v1304_v12, %v1296_v11  ;;  %v1341_v6 = vld [vmem:[#allocation11 + $0x400] sm:$0xff] }
 0x16c   :  { %10151 = vst [vmem:[#allocation22_spill] sm:$0xff] %v8273_v22  ;;  %10152 = vst [vmem:[#allocation23_spill] sm:$0xff] %v8275_v29  ;;  %v1303_v23 = vld [vmem:[#allocation11 + $0x2d0] sm:$0xff]  ;;  %v1349_v8 = vld [vmem:[#allocation11 + $0x440] sm:$0xff] }
 0x16d   :  { %5413 = vmatpush1.bf16.msra.mxu0 %v5412_v33  ;;  %10153 = vst [vmem:[#allocation24_spill] sm:$0xff] %v8278_v30  ;;  %v1237_v33 = vld [vmem:[#allocation11 + $0xc0] sm:$0xff]  ;;  %10169 = vst [vmem:[#allocation40_spill] sm:$0xff] %v8328_v14  ;;  %v1351_v11 = vld [vmem:[#allocation11 + $0x450] sm:$0xff] }
 0x16e   :  { %5541 = vmatpush1.bf16.msra.mxu1 %v5540_v34  ;;  %5415 = vmatprep.subr.bf16.mxu0 %v5414_v35  ;;  %v1231_v34 = vld [vmem:[#allocation11 + $0x90] sm:$0xff]  ;;  %v8283_v35 = vpack.c.bf16 %v1240_v28, %v1232_v27  ;;  %v8286_v42 = vpack.c.bf16 %v1237_v33, %v1229_v32  ;;  %10171 = vst [vmem:[#allocation42_spill] sm:$0xff] %v8333_v21  ;;  %v1312_v27 = vld [vmem:[#allocation11 + $0x318] sm:$0xff]  ;;  %v1358_v12 = vld [vmem:[#allocation11 + $0x488] sm:$0xff] }
 0x16f   :  { %5543 = vmatprep.subr.bf16.mxu1 %v5542_v39  ;;  %v7954_v39 = vld [vmem:[#allocation7 + $0x10] sm:$0xff]  ;;  %v8290_v43 = vpack.c.bf16 %v1239_v36, %v1231_v34  ;;  %v1320_v28 = vld [vmem:[#allocation11 + $0x358] sm:$0xff]  ;;  %v8340_v33 = vpack.c.bf16 %v1303_v23, %v1295_v20  ;;  %v8342_v34 = vpack.c.bf16 %v1318_v26, %v1310_v24  ;;  %v1309_v36 = vld [vmem:[#allocation11 + $0x300] sm:$0xff]  ;;  %v8372_v23 = vpack.c.bf16 %v1349_v8, %v1341_v6 }
 0x170   :  { %10155 = vst [vmem:[#allocation26_spill] sm:$0xff] %v8283_v35  ;;  %10156 = vst [vmem:[#allocation27_spill] sm:$0xff] %v8286_v42  ;;  %v1368_v20 = vld [vmem:[#allocation11 + $0x4d8] sm:$0xff]  ;;  %v1398_v6 = vld [vmem:[#allocation11 + $0x5c8] sm:$0xff] }
 0x171   :  { %5417 = vmatpush1.bf16.msra.mxu0 %v5416_v45  ;;  %10157 = vst [vmem:[#allocation28_spill] sm:$0xff] %v8290_v43  ;;  %v1245_v45 = vld [vmem:[#allocation11 + $0x100] sm:$0xff]  ;;  %10173 = vst [vmem:[#allocation44_spill] sm:$0xff] %v8340_v33  ;;  %v1392_v8 = vld [vmem:[#allocation11 + $0x598] sm:$0xff] }
 0x172   :  { %5545 = vmatpush1.bf16.msra.mxu1 %v5544_v46  ;;  %5419 = vmatprep.subr.bf16.mxu0 %v5418_v47  ;;  %v1253_v46 = vld [vmem:[#allocation11 + $0x140] sm:$0xff]  ;;  %v1247_v47 = vld [vmem:[#allocation11 + $0x110] sm:$0xff]  ;;  %10174 = vst [vmem:[#allocation45_spill] sm:$0xff] %v8342_v34  ;;  %10184 = vst [vmem:[#allocation55_spill] sm:$0xff] %v8372_v23 }
 0x173   :  { %5547 = vmatprep.subr.bf16.mxu1 %v5546_v51  ;;  %v1270_v51 = vld [vmem:[#allocation11 + $0x1c8] sm:$0xff]  ;;  %v8300_v55 = vpack.c.bf16 %v1253_v46, %v1245_v45  ;;  %v8304_v56 = vpack.c.bf16 %v1255_v49, %v1247_v47  ;;  %v1328_v46 = vld [vmem:[#allocation11 + $0x398] sm:$0xff]  ;;  %v8348_v49 = vpack.c.bf16 %v1317_v37, %v1309_v36  ;;  %v1359_v36 = vld [vmem:[#allocation11 + $0x490] sm:$0xff] }
 0x174   :  { %v1334_v45 = vld [vmem:[#allocation11 + $0x3c8] sm:$0xff]  ;;  %v1336_v47 = vld [vmem:[#allocation11 + $0x3d8] sm:$0xff] }
 0x175   :  { %5421 = vmatpush1.bf16.msra.mxu0 %v5420_v57  ;;  %10160 = vst [vmem:[#allocation31_spill] sm:$0xff] %v8300_v55  ;;  %10161 = vst [vmem:[#allocation32_spill] sm:$0xff] %v8304_v56  ;;  %v8306_v57 = vpack.c.bf16 %v1270_v51, %v1262_v50  ;;  %v8352_v50 = vpack.c.bf16 %v1319_v40, %v1311_v38  ;;  %v8354_v51 = vpack.c.bf16 %v1334_v45, %v1326_v41  ;;  %v1367_v38 = vld [vmem:[#allocation11 + $0x4d0] sm:$0xff]  ;;  %v1374_v40 = vld [vmem:[#allocation11 + $0x508] sm:$0xff] }
 0x176   :  { %5549 = vmatpush1.bf16.msra.mxu1 %v5548_v58  ;;  %5423 = vmatprep.subr.bf16.mxu0 %v5422_v59  ;;  %v1261_v58 = vld [vmem:[#allocation11 + $0x180] sm:$0xff]  ;;  %10176 = vst [vmem:[#allocation47_spill] sm:$0xff] %v8348_v49  ;;  %v1382_v41 = vld [vmem:[#allocation11 + $0x548] sm:$0xff]  ;;  %v1376_v45 = vld [vmem:[#allocation11 + $0x518] sm:$0xff]  ;;  %v8388_v53 = vpack.c.bf16 %v1367_v38, %v1359_v36 }
 0x177   :  { %5551 = vmatprep.subr.bf16.mxu1 %v5550_v62  ;;  %10162 = vst [vmem:[#allocation33_spill] sm:$0xff] %v8306_v57  ;;  %v1269_v59 = vld [vmem:[#allocation11 + $0x1c0] sm:$0xff]  ;;  %v1278_v62 = vld [vmem:[#allocation11 + $0x208] sm:$0xff]  ;;  %10177 = vst [vmem:[#allocation48_spill] sm:$0xff] %v8352_v50  ;;  %v8390_v54 = vpack.c.bf16 %v1382_v41, %v1374_v40 }
 0x178   :  { %v8312_v1 = vpack.c.bf16 %v1269_v59, %v1261_v58  ;;  %10178 = vst [vmem:[#allocation49_spill] sm:$0xff] %v8354_v51  ;;  %v1327_v58 = vld [vmem:[#allocation11 + $0x390] sm:$0xff]  ;;  %v8357_v59 = vpack.c.bf16 %v1336_v47, %v1328_v46  ;;  %v1384_v46 = vld [vmem:[#allocation11 + $0x558] sm:$0xff]  ;;  %10189 = vst [vmem:[#allocation60_spill] sm:$0xff] %v8388_v53 }
 0x179   :  { %5425 = vmatpush1.bf16.msra.mxu0 %v5424_v3  ;;  %v8318_v3 = vpack.c.bf16 %v1286_v63, %v1278_v62  ;;  %v1350_v62 = vld [vmem:[#allocation11 + $0x448] sm:$0xff]  ;;  %v1344_v63 = vld [vmem:[#allocation11 + $0x418] sm:$0xff]  ;;  %10190 = vst [vmem:[#allocation61_spill] sm:$0xff] %v8390_v54  ;;  %v1399_v36 = vld [vmem:[#allocation11 + $0x5d0] sm:$0xff] }
 0x17a   :  { %5553 = vmatpush1.bf16.msra.mxu1 %v5552_v4  ;;  %5427 = vmatprep.subr.bf16.mxu0 %v5426_v5  ;;  %10164 = vst [vmem:[#allocation35_spill] sm:$0xff] %v8312_v1  ;;  %v1277_v4 = vld [vmem:[#allocation11 + $0x200] sm:$0xff]  ;;  %10179 = vst [vmem:[#allocation50_spill] sm:$0xff] %v8357_v59  ;;  %v1406_v38 = vld [vmem:[#allocation11 + $0x608] sm:$0xff] }
 0x17b   :  { %5555 = vmatprep.subr.bf16.mxu1 %v5554_v9  ;;  %10166 = vst [vmem:[#allocation37_spill] sm:$0xff] %v8318_v3  ;;  %v1285_v5 = vld [vmem:[#allocation11 + $0x240] sm:$0xff]  ;;  %v1294_v9 = vld [vmem:[#allocation11 + $0x288] sm:$0xff]  ;;  %v1408_v41 = vld [vmem:[#allocation11 + $0x618] sm:$0xff] }
 0x17c   :  { %v8324_v13 = vpack.c.bf16 %v1285_v5, %v1277_v4  ;;  %v8364_v4 = vpack.c.bf16 %v1335_v60, %v1327_v58  ;;  %v8366_v5 = vpack.c.bf16 %v1350_v62, %v1342_v17  ;;  %v1373_v58 = vld [vmem:[#allocation11 + $0x500] sm:$0xff]  ;;  %v1375_v17 = vld [vmem:[#allocation11 + $0x510] sm:$0xff]  ;;  %v8393_v62 = vpack.c.bf16 %v1384_v46, %v1376_v45  ;;  %v1414_v40 = vld [vmem:[#allocation11 + $0x648] sm:$0xff] }
 0x17d   :  { %5429 = vmatpush1.bf16.msra.mxu0 %v5428_v15  ;;  %v8330_v15 = vpack.c.bf16 %v1302_v10, %v1294_v9  ;;  %v1343_v9 = vld [vmem:[#allocation11 + $0x410] sm:$0xff]  ;;  %v8369_v10 = vpack.c.bf16 %v1352_v0, %v1344_v63  ;;  %v1381_v60 = vld [vmem:[#allocation11 + $0x540] sm:$0xff]  ;;  %v1390_v0 = vld [vmem:[#allocation11 + $0x588] sm:$0xff] }
 0x17e   :  { %5557 = vmatpush1.bf16.msra.mxu1 %v5556_v16  ;;  %5559 = vmatprep.subr.bf16.mxu0 %v8271_v18  ;;  %10168 = vst [vmem:[#allocation39_spill] sm:$0xff] %v8324_v13  ;;  %v1293_v16 = vld [vmem:[#allocation11 + $0x280] sm:$0xff]  ;;  %10181 = vst [vmem:[#allocation52_spill] sm:$0xff] %v8364_v4  ;;  %v8376_v24 = vpack.c.bf16 %v1351_v11, %v1343_v9  ;;  %v1383_v63 = vld [vmem:[#allocation11 + $0x550] sm:$0xff]  ;;  %v8396_v11 = vpack.c.bf16 %v1381_v60, %v1373_v58 }
 0x17f   :  { %5623 = vmatprep.subr.bf16.mxu1 %v8273_v22  ;;  %10170 = vst [vmem:[#allocation41_spill] sm:$0xff] %v8330_v15  ;;  %v8336_v32 = vpack.c.bf16 %v1301_v19, %v1293_v16  ;;  %10182 = vst [vmem:[#allocation53_spill] sm:$0xff] %v8366_v5  ;;  %v1366_v16 = vld [vmem:[#allocation11 + $0x4c8] sm:$0xff]  ;;  %v1360_v19 = vld [vmem:[#allocation11 + $0x498] sm:$0xff]  ;;  %v8414_v60 = vpack.c.bf16 %v1414_v40, %v1406_v38 }
 0x180   :  { %1065 = vmatmul.mubr.f32.vlgmr.msra.gmra.mrb[2].mxu0 %v7954_v39  ;;  %10183 = vst [vmem:[#allocation54_spill] sm:$0xff] %v8369_v10  ;;  %10185 = vst [vmem:[#allocation56_spill] sm:$0xff] %v8376_v24  ;;  %v8378_v26 = vpack.c.bf16 %v1366_v16, %v1358_v12  ;;  %v8381_v37 = vpack.c.bf16 %v1368_v20, %v1360_v19  ;;  %v1400_v9 = vld [vmem:[#allocation11 + $0x5d8] sm:$0xff]  ;;  %v8400_v12 = vpack.c.bf16 %v1383_v63, %v1375_v17  ;;  %v1389_v19 = vld [vmem:[#allocation11 + $0x580] sm:$0xff] }
 0x181   :  { %1207 = vmatmul.mubr.f32.vlgmr.msra.gmra.mrb[2].mxu1 %v7954_v39  ;;  %5561 = vmatpush1.bf16.msra.mxu0 %v8275_v29  ;;  %10172 = vst [vmem:[#allocation43_spill] sm:$0xff] %v8336_v32  ;;  %v8345_v39 = vpack.c.bf16 %v1320_v28, %v1312_v27  ;;  %v1357_v27 = vld [vmem:[#allocation11 + $0x480] sm:$0xff]  ;;  %10191 = vst [vmem:[#allocation62_spill] sm:$0xff] %v8393_v62  ;;  %v8402_v16 = vpack.c.bf16 %v1398_v6, %v1390_v0  ;;  %v1416_v45 = vld [vmem:[#allocation11 + $0x658] sm:$0xff] }
 0x182   :  { %5625 = vmatpush1.bf16.msra.mxu1 %v8278_v30  ;;  %5563 = vmatprep.subr.bf16.mxu0 %v8280_v31  ;;  %10186 = vst [vmem:[#allocation57_spill] sm:$0xff] %v8378_v26  ;;  %v1365_v28 = vld [vmem:[#allocation11 + $0x4c0] sm:$0xff]  ;;  %10187 = vst [vmem:[#allocation58_spill] sm:$0xff] %v8381_v37  ;;  %v1407_v0 = vld [vmem:[#allocation11 + $0x610] sm:$0xff]  ;;  %v8417_v6 = vpack.c.bf16 %v1416_v45, %v1408_v41 }
 0x183   :  { %5627 = vmatprep.subr.bf16.mxu1 %v8283_v35  ;;  %1533 = vmatprep.mubr.f32.mxu0 %v9863_v52  ;;  %10175 = vst [vmem:[#allocation46_spill] sm:$0xff] %v8345_v39  ;;  %v8384_v47 = vpack.c.bf16 %v1365_v28, %v1357_v27  ;;  %10192 = vst [vmem:[#allocation63_spill] sm:$0xff] %v8396_v11  ;;  %v1397_v20 = vld [vmem:[#allocation11 + $0x5c0] sm:$0xff]  ;;  %v1391_v27 = vld [vmem:[#allocation11 + $0x590] sm:$0xff]  ;;  %v8405_v28 = vpack.c.bf16 %v1400_v9, %v1392_v8 }
 0x184   :  { %1604 = vmatprep.mubr.f32.mxu1 %v9863_v52  ;;  %10193 = vst [vmem:[#allocation64_spill] sm:$0xff] %v8400_v12  ;;  %10194 = vst [vmem:[#allocation65_spill] sm:$0xff] %v8402_v16  ;;  %v8408_v46 = vpack.c.bf16 %v1397_v20, %v1389_v19  ;;  %v8412_v58 = vpack.c.bf16 %v1399_v36, %v1391_v27  ;;  %v1405_v17 = vld [vmem:[#allocation11 + $0x600] sm:$0xff]  ;;  %v1415_v8 = vld [vmem:[#allocation11 + $0x650] sm:$0xff] }
 0x185   :  { %5565 = vmatpush1.bf16.msra.mxu0 %v8286_v42  ;;  %10188 = vst [vmem:[#allocation59_spill] sm:$0xff] %v8384_v47  ;;  %10195 = vst [vmem:[#allocation66_spill] sm:$0xff] %v8405_v28  ;;  %v1413_v63 = vld [vmem:[#allocation11 + $0x640] sm:$0xff]  ;;  %v1422_v9 = vld [vmem:[#allocation11 + $0x688] sm:$0xff]  ;;  %v8424_v27 = vpack.c.bf16 %v1415_v8, %v1407_v0 }
 0x186   :  { %5629 = vmatpush1.bf16.msra.mxu1 %v8290_v43  ;;  %5567 = vmatprep.subr.bf16.mxu0 %v8292_v44  ;;  %10196 = vst [vmem:[#allocation67_spill] sm:$0xff] %v8408_v46  ;;  %10197 = vst [vmem:[#allocation68_spill] sm:$0xff] %v8412_v58  ;;  %v1430_v52 = vld [vmem:[#allocation11 + $0x6c8] sm:$0xff]  ;;  %v1424_v19 = vld [vmem:[#allocation11 + $0x698] sm:$0xff] }
 0x187   :  { %5631 = vmatprep.subr.bf16.mxu1 %v8295_v48  ;;  %10198 = vst [vmem:[#allocation69_spill] sm:$0xff] %v8414_v60  ;;  %10199 = vst [vmem:[#allocation70_spill] sm:$0xff] %v8417_v6  ;;  %v1432_v20 = vld [vmem:[#allocation11 + $0x6d8] sm:$0xff]  ;;  %v8426_v36 = vpack.c.bf16 %v1430_v52, %v1422_v9  ;;  %v1421_v38 = vld [vmem:[#allocation11 + $0x680] sm:$0xff] }
 0x188   :  { %10201 = vst [vmem:[#allocation72_spill] sm:$0xff] %v8424_v27  ;;  %v1429_v40 = vld [vmem:[#allocation11 + $0x6c0] sm:$0xff]  ;;  %v1423_v41 = vld [vmem:[#allocation11 + $0x690] sm:$0xff]  ;;  %v8429_v45 = vpack.c.bf16 %v1432_v20, %v1424_v19 }
 0x189   :  { %5569 = vmatpush1.bf16.msra.mxu0 %v8300_v55  ;;  %10202 = vst [vmem:[#allocation73_spill] sm:$0xff] %v8426_v36  ;;  %v1437_v8 = vld [vmem:[#allocation11 + $0x700] sm:$0xff]  ;;  %v1439_v19 = vld [vmem:[#allocation11 + $0x710] sm:$0xff] }
 0x18a   :  { %5633 = vmatpush1.bf16.msra.mxu1 %v8304_v56  ;;  %5571 = vmatprep.subr.bf16.mxu0 %v8306_v57  ;;  %10203 = vst [vmem:[#allocation74_spill] sm:$0xff] %v8429_v45  ;;  %v1445_v9 = vld [vmem:[#allocation11 + $0x740] sm:$0xff] }
 0x18b   :  { %5635 = vmatprep.subr.bf16.mxu1 %v8309_v61 }
 0x18d   :  { %5573 = vmatpush1.bf16.msra.mxu0 %v8312_v1 }
 0x18e   :  { %5637 = vmatpush1.bf16.msra.mxu1 %v8316_v2  ;;  %5575 = vmatprep.subr.bf16.mxu0 %v8318_v3 }
 0x18f   :  { %5639 = vmatprep.subr.bf16.mxu1 %v8321_v7 }
 0x191   :  { %5577 = vmatpush1.bf16.msra.mxu0 %v8324_v13 }
 0x192   :  { %5641 = vmatpush1.bf16.msra.mxu1 %v8328_v14  ;;  %5579 = vmatprep.subr.bf16.mxu0 %v8330_v15 }
 0x193   :  { %5643 = vmatprep.subr.bf16.mxu1 %v8333_v21 }
 0x195   :  { %5581 = vmatpush1.bf16.msra.mxu0 %v8336_v32 }
 0x196   :  { %5645 = vmatpush1.bf16.msra.mxu1 %v8340_v33  ;;  %5583 = vmatprep.subr.bf16.mxu0 %v8342_v34 }
 0x197   :  { %5647 = vmatprep.subr.bf16.mxu1 %v8345_v39 }
 0x199   :  { %5585 = vmatpush1.bf16.msra.mxu0 %v8348_v49 }
 0x19a   :  { %5649 = vmatpush1.bf16.msra.mxu1 %v8352_v50  ;;  %5587 = vmatprep.subr.bf16.mxu0 %v8354_v51 }
 0x19b   :  { %5651 = vmatprep.subr.bf16.mxu1 %v8357_v59 }
 0x19d   :  { %5589 = vmatpush1.bf16.msra.mxu0 %v8360_v25 }
 0x19e   :  { %5653 = vmatpush1.bf16.msra.mxu1 %v8364_v4  ;;  %5591 = vmatprep.subr.bf16.mxu0 %v8366_v5 }
 0x19f   :  { %5655 = vmatprep.subr.bf16.mxu1 %v8369_v10 }
 0x1a1   :  { %5593 = vmatpush1.bf16.msra.mxu0 %v8372_v23 }
 0x1a2   :  { %5657 = vmatpush1.bf16.msra.mxu1 %v8376_v24  ;;  %5595 = vmatprep.subr.bf16.mxu0 %v8378_v26 }
 0x1a3   :  { %5659 = vmatprep.subr.bf16.mxu1 %v8381_v37 }
 0x1a5   :  { %5597 = vmatpush1.bf16.msra.mxu0 %v8384_v47 }
 0x1a6   :  { %5661 = vmatpush1.bf16.msra.mxu1 %v8388_v53  ;;  %5599 = vmatprep.subr.bf16.mxu0 %v8390_v54 }
 0x1a7   :  { %5663 = vmatprep.subr.bf16.mxu1 %v8393_v62 }
 0x1a9   :  { %5601 = vmatpush1.bf16.msra.mxu0 %v8396_v11  ;;  %v1266_v11 = vld [vmem:[#allocation11 + $0x1a8] sm:$0xff] }
 0x1aa   :  { %5665 = vmatpush1.bf16.msra.mxu1 %v8400_v12  ;;  %5603 = vmatprep.subr.bf16.mxu0 %v8402_v16  ;;  %v8420_v12 = vpack.c.bf16 %v1413_v63, %v1405_v17  ;;  %v1438_v16 = vld [vmem:[#allocation11 + $0x708] sm:$0xff]  ;;  %v1440_v17 = vld [vmem:[#allocation11 + $0x718] sm:$0xff] }
 0x1ab   :  { %5667 = vmatprep.subr.bf16.mxu1 %v8405_v28  ;;  %v1431_v28 = vld [vmem:[#allocation11 + $0x6d0] sm:$0xff]  ;;  %v1448_v63 = vld [vmem:[#allocation11 + $0x758] sm:$0xff] }
 0x1ac   :  { %10200 = vst [vmem:[#allocation71_spill] sm:$0xff] %v8420_v12  ;;  %v8436_v52 = vpack.c.bf16 %v1431_v28, %v1423_v41  ;;  %v8441_v20 = vpack.c.bf16 %v1448_v63, %v1440_v17  ;;  %v1461_v41 = vld [vmem:[#allocation11 + $0x7c0] sm:$0xff]  ;;  %v1455_v17 = vld [vmem:[#allocation11 + $0x790] sm:$0xff] }
 0x1ad   :  { %5605 = vmatpush1.bf16.msra.mxu0 %v8408_v46  ;;  %v1446_v46 = vld [vmem:[#allocation11 + $0x748] sm:$0xff] }
 0x1ae   :  { %5669 = vmatpush1.bf16.msra.mxu1 %v8412_v58  ;;  %5607 = vmatprep.subr.bf16.mxu0 %v8414_v60  ;;  %v8432_v58 = vpack.c.bf16 %v1429_v40, %v1421_v38  ;;  %10205 = vst [vmem:[#allocation76_spill] sm:$0xff] %v8436_v52  ;;  %v8438_v0 = vpack.c.bf16 %v1446_v46, %v1438_v16  ;;  %10207 = vst [vmem:[#allocation78_spill] sm:$0xff] %v8441_v20  ;;  %v1454_v60 = vld [vmem:[#allocation11 + $0x788] sm:$0xff]  ;;  %v1456_v38 = vld [vmem:[#allocation11 + $0x798] sm:$0xff] }
 0x1af   :  { %5671 = vmatprep.subr.bf16.mxu1 %v8417_v6  ;;  %v1447_v6 = vld [vmem:[#allocation11 + $0x750] sm:$0xff]  ;;  %v1464_v40 = vld [vmem:[#allocation11 + $0x7d8] sm:$0xff]  ;;  %v1453_v46 = vld [vmem:[#allocation11 + $0x780] sm:$0xff] }
 0x1b0   :  { %10204 = vst [vmem:[#allocation75_spill] sm:$0xff] %v8432_v58  ;;  %10206 = vst [vmem:[#allocation77_spill] sm:$0xff] %v8438_v0  ;;  %v8448_v16 = vpack.c.bf16 %v1447_v6, %v1439_v19  ;;  %v8453_v63 = vpack.c.bf16 %v1464_v40, %v1456_v38  ;;  %v1217_v6 = vld [vmem:[#allocation11 + $0x20] sm:$0xff]  ;;  %v1219_v38 = vld [vmem:[#allocation11 + $0x30] sm:$0xff] }
 0x1b1   :  { %5609 = vmatpush1.bf16.msra.mxu0 %v8420_v12  ;;  %v1462_v12 = vld [vmem:[#allocation11 + $0x7c8] sm:$0xff]  ;;  %v1225_v19 = vld [vmem:[#allocation11 + $0x60] sm:$0xff] }
 0x1b2   :  { %5673 = vmatpush1.bf16.msra.mxu1 %v8424_v27  ;;  %5611 = vmatprep.subr.bf16.mxu0 %v8426_v36  ;;  %v8444_v27 = vpack.c.bf16 %v1445_v9, %v1437_v8  ;;  %10209 = vst [vmem:[#allocation80_spill] sm:$0xff] %v8448_v16  ;;  %v8450_v28 = vpack.c.bf16 %v1462_v12, %v1454_v60  ;;  %10211 = vst [vmem:[#allocation82_spill] sm:$0xff] %v8453_v63  ;;  %v1218_v36 = vld [vmem:[#allocation11 + $0x28] sm:$0xff]  ;;  %v1220_v8 = vld [vmem:[#allocation11 + $0x38] sm:$0xff] }
 0x1b3   :  { %5675 = vmatprep.subr.bf16.mxu1 %v8429_v45  ;;  %v1463_v45 = vld [vmem:[#allocation11 + $0x7d0] sm:$0xff]  ;;  %v1228_v9 = vld [vmem:[#allocation11 + $0x78] sm:$0xff] }
 0x1b4   :  { %10208 = vst [vmem:[#allocation79_spill] sm:$0xff] %v8444_v27  ;;  %10210 = vst [vmem:[#allocation81_spill] sm:$0xff] %v8450_v28  ;;  %v8460_v12 = vpack.c.bf16 %v1463_v45, %v1455_v17  ;;  %v8465_v40 = vpack.c.bf16 %v1228_v9, %v1220_v8  ;;  %v1233_v45 = vld [vmem:[#allocation11 + $0xa0] sm:$0xff]  ;;  %v1235_v8 = vld [vmem:[#allocation11 + $0xb0] sm:$0xff] }
 0x1b5   :  { %5613 = vmatpush1.bf16.msra.mxu0 %v8432_v58  ;;  %v1226_v58 = vld [vmem:[#allocation11 + $0x68] sm:$0xff]  ;;  %v1241_v17 = vld [vmem:[#allocation11 + $0xe0] sm:$0xff] }
 0x1b6   :  { %5677 = vmatpush1.bf16.msra.mxu1 %v8436_v52  ;;  %5615 = vmatprep.subr.bf16.mxu0 %v8438_v0  ;;  %v8456_v52 = vpack.c.bf16 %v1461_v41, %v1453_v46  ;;  %10213 = vst [vmem:[#allocation84_spill] sm:$0xff] %v8460_v12  ;;  %v8462_v60 = vpack.c.bf16 %v1226_v58, %v1218_v36  ;;  %10215 = vst [vmem:[#allocation86_spill] sm:$0xff] %v8465_v40  ;;  %v1234_v0 = vld [vmem:[#allocation11 + $0xa8] sm:$0xff]  ;;  %v1236_v46 = vld [vmem:[#allocation11 + $0xb8] sm:$0xff] }
 0x1b7   :  { %5679 = vmatprep.subr.bf16.mxu1 %v8441_v20  ;;  %v1227_v20 = vld [vmem:[#allocation11 + $0x70] sm:$0xff]  ;;  %v1244_v41 = vld [vmem:[#allocation11 + $0xf8] sm:$0xff] }
 0x1b8   :  { %10212 = vst [vmem:[#allocation83_spill] sm:$0xff] %v8456_v52  ;;  %10214 = vst [vmem:[#allocation85_spill] sm:$0xff] %v8462_v60  ;;  %v8472_v58 = vpack.c.bf16 %v1227_v20, %v1219_v38  ;;  %v8477_v9 = vpack.c.bf16 %v1244_v41, %v1236_v46  ;;  %v1249_v38 = vld [vmem:[#allocation11 + $0x120] sm:$0xff]  ;;  %v1251_v41 = vld [vmem:[#allocation11 + $0x130] sm:$0xff] }
 0x1b9   :  { %5617 = vmatpush1.bf16.msra.mxu0 %v8444_v27  ;;  %v1242_v27 = vld [vmem:[#allocation11 + $0xe8] sm:$0xff]  ;;  %v1257_v46 = vld [vmem:[#allocation11 + $0x160] sm:$0xff] }
 0x1ba   :  { %5681 = vmatpush1.bf16.msra.mxu1 %v8448_v16  ;;  %5619 = vmatprep.subr.bf16.mxu0 %v8450_v28  ;;  %v8468_v16 = vpack.c.bf16 %v1225_v19, %v1217_v6  ;;  %10217 = vst [vmem:[#allocation88_spill] sm:$0xff] %v8472_v58  ;;  %v8474_v36 = vpack.c.bf16 %v1242_v27, %v1234_v0  ;;  %10219 = vst [vmem:[#allocation90_spill] sm:$0xff] %v8477_v9  ;;  %v1250_v28 = vld [vmem:[#allocation11 + $0x128] sm:$0xff]  ;;  %v10220_v6 = vmov 0.0   ;;  %v1252_v19 = vld [vmem:[#allocation11 + $0x138] sm:$0xff] }
 0x1bb   :  { %5683 = vmatprep.subr.bf16.mxu1 %v8453_v63  ;;  %v1243_v63 = vld [vmem:[#allocation11 + $0xf0] sm:$0xff]  ;;  %v8482_v27 = vpack.c.bf16 %v1241_v17, %v1233_v45  ;;  %v1268_v45 = vld [vmem:[#allocation11 + $0x1b8] sm:$0xff] }
 0x1bc   :  { %10216 = vst [vmem:[#allocation87_spill] sm:$0xff] %v8468_v16  ;;  %10218 = vst [vmem:[#allocation89_spill] sm:$0xff] %v8474_v36  ;;  %v8486_v0 = vpack.c.bf16 %v1243_v63, %v1235_v8  ;;  %v1276_v17 = vld [vmem:[#allocation11 + $0x1f8] sm:$0xff]  ;;  %v1273_v8 = vld [vmem:[#allocation11 + $0x1e0] sm:$0xff] }
 0x1bd   :  { %5621 = vmatpush1.bf16.msra.mxu0 %v8456_v52  ;;  %v1258_v52 = vld [vmem:[#allocation11 + $0x168] sm:$0xff]  ;;  %10221 = vst [vmem:[#allocation91_spill] sm:$0xff] %v8482_v27 }
 0x1be   :  { %5685 = vmatpush1.bf16.msra.mxu1 %v8460_v12  ;;  %5687 = vmatprep.subr.bf16.mxu0 %v8462_v60  ;;  %v1260_v12 = vld [vmem:[#allocation11 + $0x178] sm:$0xff]  ;;  %10222 = vst [vmem:[#allocation92_spill] sm:$0xff] %v8486_v0  ;;  %v8488_v20 = vpack.c.bf16 %v1258_v52, %v1250_v28  ;;  %v1259_v60 = vld [vmem:[#allocation11 + $0x170] sm:$0xff]  ;;  %v8496_v52 = vpack.c.bf16 %v1257_v46, %v1249_v38 }
 0x1bf   :  { %5751 = vmatprep.subr.bf16.mxu1 %v8465_v40  ;;  %v8491_v40 = vpack.c.bf16 %v1260_v12, %v1252_v19  ;;  %v8500_v28 = vpack.c.bf16 %v1259_v60, %v1251_v41  ;;  %v1265_v12 = vld [vmem:[#allocation11 + $0x1a0] sm:$0xff]  ;;  %v1267_v19 = vld [vmem:[#allocation11 + $0x1b0] sm:$0xff]  ;;  %v1284_v38 = vld [vmem:[#allocation11 + $0x238] sm:$0xff] }
 0x1c0   :  { %1534 = vmatmul.mubr.f32.vlgmr.msra.gmra.mrb[4].mxu0 %v10220_v6  ;;  %10223 = vst [vmem:[#allocation93_spill] sm:$0xff] %v8488_v20  ;;  %10225 = vst [vmem:[#allocation95_spill] sm:$0xff] %v8496_v52  ;;  %v1292_v46 = vld [vmem:[#allocation11 + $0x278] sm:$0xff]  ;;  %v1281_v60 = vld [vmem:[#allocation11 + $0x220] sm:$0xff] }
 0x1c1   :  { %1605 = vmatmul.mubr.f32.vlgmr.msra.gmra.mrb[4].mxu1 %v10220_v6  ;;  %5689 = vmatpush1.bf16.msra.mxu0 %v8468_v16  ;;  %10224 = vst [vmem:[#allocation94_spill] sm:$0xff] %v8491_v40  ;;  %v1274_v16 = vld [vmem:[#allocation11 + $0x1e8] sm:$0xff]  ;;  %10226 = vst [vmem:[#allocation96_spill] sm:$0xff] %v8500_v28  ;;  %v1289_v41 = vld [vmem:[#allocation11 + $0x260] sm:$0xff] }
 0x1c2   :  { %5753 = vmatpush1.bf16.msra.mxu1 %v8472_v58  ;;  %5691 = vmatprep.subr.bf16.mxu0 %v8474_v36  ;;  %v8502_v63 = vpack.c.bf16 %v1274_v16, %v1266_v11  ;;  %v1275_v36 = vld [vmem:[#allocation11 + $0x1f0] sm:$0xff]  ;;  %v1282_v58 = vld [vmem:[#allocation11 + $0x228] sm:$0xff] }
 0x1c3   :  { %5755 = vmatprep.subr.bf16.mxu1 %v8477_v9  ;;  %1675 = vmatprep.mubr.f32.mxu0 %v10220_v6  ;;  %v8505_v9 = vpack.c.bf16 %v1276_v17, %v1268_v45  ;;  %v8512_v11 = vpack.c.bf16 %v1275_v36, %v1267_v19  ;;  %v1283_v45 = vld [vmem:[#allocation11 + $0x230] sm:$0xff]  ;;  %v8517_v17 = vpack.c.bf16 %v1292_v46, %v1284_v38  ;;  %v1305_v19 = vld [vmem:[#allocation11 + $0x2e0] sm:$0xff] }
 0x1c4   :  { %1746 = vmatprep.mubr.f32.mxu1 %v10220_v6  ;;  %10227 = vst [vmem:[#allocation97_spill] sm:$0xff] %v8502_v63  ;;  %v1299_v38 = vld [vmem:[#allocation11 + $0x2b0] sm:$0xff] }
 0x1c5   :  { %5693 = vmatpush1.bf16.msra.mxu0 %v8482_v27  ;;  %10228 = vst [vmem:[#allocation98_spill] sm:$0xff] %v8505_v9  ;;  %v1290_v27 = vld [vmem:[#allocation11 + $0x268] sm:$0xff]  ;;  %10230 = vst [vmem:[#allocation100_spill] sm:$0xff] %v8512_v11 }
 0x1c6   :  { %5757 = vmatpush1.bf16.msra.mxu1 %v8486_v0  ;;  %5695 = vmatprep.subr.bf16.mxu0 %v8488_v20  ;;  %v8508_v0 = vpack.c.bf16 %v1273_v8, %v1265_v12  ;;  %v8514_v16 = vpack.c.bf16 %v1290_v27, %v1282_v58  ;;  %10232 = vst [vmem:[#allocation102_spill] sm:$0xff] %v8517_v17  ;;  %v1298_v20 = vld [vmem:[#allocation11 + $0x2a8] sm:$0xff]  ;;  %v1300_v12 = vld [vmem:[#allocation11 + $0x2b8] sm:$0xff]  ;;  %v1297_v27 = vld [vmem:[#allocation11 + $0x2a0] sm:$0xff] }
 0x1c7   :  { %5759 = vmatprep.subr.bf16.mxu1 %v8491_v40  ;;  %v1291_v40 = vld [vmem:[#allocation11 + $0x270] sm:$0xff]  ;;  %v1308_v8 = vld [vmem:[#allocation11 + $0x2f8] sm:$0xff] }
 0x1c8   :  { %10229 = vst [vmem:[#allocation99_spill] sm:$0xff] %v8508_v0  ;;  %10231 = vst [vmem:[#allocation101_spill] sm:$0xff] %v8514_v16  ;;  %v8524_v58 = vpack.c.bf16 %v1291_v40, %v1283_v45  ;;  %v8529_v46 = vpack.c.bf16 %v1308_v8, %v1300_v12  ;;  %v1321_v45 = vld [vmem:[#allocation11 + $0x360] sm:$0xff]  ;;  %v1315_v12 = vld [vmem:[#allocation11 + $0x330] sm:$0xff] }
 0x1c9   :  { %5697 = vmatpush1.bf16.msra.mxu0 %v8496_v52  ;;  %v1306_v52 = vld [vmem:[#allocation11 + $0x2e8] sm:$0xff] }
 0x1ca   :  { %5761 = vmatpush1.bf16.msra.mxu1 %v8500_v28  ;;  %5699 = vmatprep.subr.bf16.mxu0 %v8502_v63  ;;  %v8520_v28 = vpack.c.bf16 %v1289_v41, %v1281_v60  ;;  %10234 = vst [vmem:[#allocation104_spill] sm:$0xff] %v8524_v58  ;;  %v8526_v36 = vpack.c.bf16 %v1306_v52, %v1298_v20  ;;  %10236 = vst [vmem:[#allocation106_spill] sm:$0xff] %v8529_v46  ;;  %v1314_v63 = vld [vmem:[#allocation11 + $0x328] sm:$0xff]  ;;  %v1316_v60 = vld [vmem:[#allocation11 + $0x338] sm:$0xff] }
 0x1cb   :  { %5763 = vmatprep.subr.bf16.mxu1 %v8505_v9  ;;  %v1307_v9 = vld [vmem:[#allocation11 + $0x2f0] sm:$0xff]  ;;  %v1324_v41 = vld [vmem:[#allocation11 + $0x378] sm:$0xff]  ;;  %v1313_v52 = vld [vmem:[#allocation11 + $0x320] sm:$0xff] }
 0x1cc   :  { %10233 = vst [vmem:[#allocation103_spill] sm:$0xff] %v8520_v28  ;;  %10235 = vst [vmem:[#allocation105_spill] sm:$0xff] %v8526_v36  ;;  %v8536_v40 = vpack.c.bf16 %v1307_v9, %v1299_v38  ;;  %v1332_v9 = vld [vmem:[#allocation11 + $0x3b8] sm:$0xff] }
 0x1cd   :  { %5701 = vmatpush1.bf16.msra.mxu0 %v8508_v0  ;;  %v1322_v0 = vld [vmem:[#allocation11 + $0x368] sm:$0xff]  ;;  %v1340_v38 = vld [vmem:[#allocation11 + $0x3f8] sm:$0xff] }
 0x1ce   :  { %5765 = vmatpush1.bf16.msra.mxu1 %v8512_v11  ;;  %5703 = vmatprep.subr.bf16.mxu0 %v8514_v16  ;;  %v8532_v11 = vpack.c.bf16 %v1305_v19, %v1297_v27  ;;  %10238 = vst [vmem:[#allocation108_spill] sm:$0xff] %v8536_v40  ;;  %v8538_v20 = vpack.c.bf16 %v1322_v0, %v1314_v63  ;;  %v1330_v27 = vld [vmem:[#allocation11 + $0x3a8] sm:$0xff] }
 0x1cf   :  { %5767 = vmatprep.subr.bf16.mxu1 %v8517_v17  ;;  %v8543_v17 = vpack.c.bf16 %v1324_v41, %v1316_v60  ;;  %v1338_v19 = vld [vmem:[#allocation11 + $0x3e8] sm:$0xff]  ;;  %v8552_v63 = vpack.c.bf16 %v1321_v45, %v1313_v52  ;;  %v1348_v52 = vld [vmem:[#allocation11 + $0x438] sm:$0xff] }
 0x1d0   :  { %10237 = vst [vmem:[#allocation107_spill] sm:$0xff] %v8532_v11  ;;  %10239 = vst [vmem:[#allocation109_spill] sm:$0xff] %v8538_v20  ;;  %v8558_v41 = vpack.c.bf16 %v1338_v19, %v1330_v27  ;;  %v1356_v45 = vld [vmem:[#allocation11 + $0x478] sm:$0xff]  ;;  %v1345_v27 = vld [vmem:[#allocation11 + $0x420] sm:$0xff] }
 0x1d1   :  { %5705 = vmatpush1.bf16.msra.mxu0 %v8520_v28  ;;  %10241 = vst [vmem:[#allocation111_spill] sm:$0xff] %v8543_v17  ;;  %v1323_v28 = vld [vmem:[#allocation11 + $0x370] sm:$0xff]  ;;  %10245 = vst [vmem:[#allocation115_spill] sm:$0xff] %v8552_v63  ;;  %v1353_v19 = vld [vmem:[#allocation11 + $0x460] sm:$0xff] }
 0x1d2   :  { %5769 = vmatpush1.bf16.msra.mxu1 %v8524_v58  ;;  %5707 = vmatprep.subr.bf16.mxu0 %v8526_v36  ;;  %v8556_v60 = vpack.c.bf16 %v1323_v28, %v1315_v12  ;;  %10247 = vst [vmem:[#allocation117_spill] sm:$0xff] %v8558_v41  ;;  %v1337_v36 = vld [vmem:[#allocation11 + $0x3e0] sm:$0xff] }
 0x1d3   :  { %v8540_v8 = vpop.f32.mrb[0].mxu0  ;;  %5771 = vmatprep.subr.bf16.mxu1 %v8529_v46  ;;  %v1329_v46 = vld [vmem:[#allocation11 + $0x3a0] sm:$0xff] }
 0x1d4   :  { %10240 = vst [vmem:[#allocation110_spill] sm:$0xff] %v8540_v8  ;;  %v8545_v16 = vpop.f32.mrb[0].mxu1  ;;  %v8547_v58 = vpop.f32.mrb[1].mxu0  ;;  %10246 = vst [vmem:[#allocation116_spill] sm:$0xff] %v8556_v60  ;;  %v1346_v8 = vld [vmem:[#allocation11 + $0x428] sm:$0xff] }
 0x1d5   :  { %10242 = vst [vmem:[#allocation112_spill] sm:$0xff] %v8545_v16  ;;  %10243 = vst [vmem:[#allocation113_spill] sm:$0xff] %v8547_v58  ;;  %v8549_v0 = vpop.f32.mrb[1].mxu1  ;;  %5709 = vmatpush1.bf16.msra.mxu0 %v8532_v11  ;;  %v1331_v16 = vld [vmem:[#allocation11 + $0x3b0] sm:$0xff]  ;;  %v8561_v58 = vpack.c.bf16 %v1340_v38, %v1332_v9  ;;  %v1354_v11 = vld [vmem:[#allocation11 + $0x468] sm:$0xff]  ;;  %v8573_v38 = vpack.c.bf16 %v1356_v45, %v1348_v52 }
 0x1d6   :  { %10244 = vst [vmem:[#allocation114_spill] sm:$0xff] %v8549_v0  ;;  %5773 = vmatpush1.bf16.msra.mxu1 %v8536_v40  ;;  %5711 = vmatprep.subr.bf16.mxu0 %v8538_v20  ;;  %v1339_v0 = vld [vmem:[#allocation11 + $0x3f0] sm:$0xff]  ;;  %v8564_v40 = vpack.c.bf16 %v1337_v36, %v1329_v46  ;;  %v8570_v12 = vpack.c.bf16 %v1354_v11, %v1346_v8  ;;  %v1362_v20 = vld [vmem:[#allocation11 + $0x4a8] sm:$0xff]  ;;  %v1364_v36 = vld [vmem:[#allocation11 + $0x4b8] sm:$0xff] }
 0x1d7   :  { %5775 = vmatprep.subr.bf16.mxu1 %v8543_v17  ;;  %10248 = vst [vmem:[#allocation118_spill] sm:$0xff] %v8561_v58  ;;  %v8568_v28 = vpack.c.bf16 %v1339_v0, %v1331_v16  ;;  %v1347_v9 = vld [vmem:[#allocation11 + $0x430] sm:$0xff]  ;;  %10252 = vst [vmem:[#allocation122_spill] sm:$0xff] %v8573_v38  ;;  %v1372_v46 = vld [vmem:[#allocation11 + $0x4f8] sm:$0xff] }
 0x1d8   :  { %10249 = vst [vmem:[#allocation119_spill] sm:$0xff] %v8564_v40  ;;  %10251 = vst [vmem:[#allocation121_spill] sm:$0xff] %v8570_v12  ;;  %v1355_v17 = vld [vmem:[#allocation11 + $0x470] sm:$0xff]  ;;  %v1361_v8 = vld [vmem:[#allocation11 + $0x4a0] sm:$0xff]  ;;  %v8585_v45 = vpack.c.bf16 %v1372_v46, %v1364_v36 }
 0x1d9   :  { %5713 = vmatpush1.bf16.msra.mxu0 %v8552_v63  ;;  %10250 = vst [vmem:[#allocation120_spill] sm:$0xff] %v8568_v28  ;;  %v1370_v63 = vld [vmem:[#allocation11 + $0x4e8] sm:$0xff]  ;;  %v8580_v11 = vpack.c.bf16 %v1355_v17, %v1347_v9  ;;  %v1369_v0 = vld [vmem:[#allocation11 + $0x4e0] sm:$0xff]  ;;  %v1363_v52 = vld [vmem:[#allocation11 + $0x4b0] sm:$0xff] }
 0x1da   :  { %5777 = vmatpush1.bf16.msra.mxu1 %v8556_v60  ;;  %5715 = vmatprep.subr.bf16.mxu0 %v8558_v41  ;;  %v8576_v60 = vpack.c.bf16 %v1353_v19, %v1345_v27  ;;  %v8582_v16 = vpack.c.bf16 %v1370_v63, %v1362_v20  ;;  %10256 = vst [vmem:[#allocation126_spill] sm:$0xff] %v8585_v45  ;;  %v1378_v41 = vld [vmem:[#allocation11 + $0x528] sm:$0xff]  ;;  %v1380_v27 = vld [vmem:[#allocation11 + $0x538] sm:$0xff]  ;;  %v1377_v63 = vld [vmem:[#allocation11 + $0x520] sm:$0xff] }
 0x1db   :  { %5779 = vmatprep.subr.bf16.mxu1 %v8561_v58  ;;  %10254 = vst [vmem:[#allocation124_spill] sm:$0xff] %v8580_v11  ;;  %v1371_v58 = vld [vmem:[#allocation11 + $0x4f0] sm:$0xff]  ;;  %v1388_v19 = vld [vmem:[#allocation11 + $0x578] sm:$0xff]  ;;  %v1385_v9 = vld [vmem:[#allocation11 + $0x560] sm:$0xff] }
 0x1dc   :  { %10253 = vst [vmem:[#allocation123_spill] sm:$0xff] %v8576_v60  ;;  %10255 = vst [vmem:[#allocation125_spill] sm:$0xff] %v8582_v16  ;;  %v8592_v17 = vpack.c.bf16 %v1371_v58, %v1363_v52  ;;  %v1379_v36 = vld [vmem:[#allocation11 + $0x530] sm:$0xff]  ;;  %v8597_v46 = vpack.c.bf16 %v1388_v19, %v1380_v27  ;;  %v1401_v52 = vld [vmem:[#allocation11 + $0x5e0] sm:$0xff] }
 0x1dd   :  { %5717 = vmatpush1.bf16.msra.mxu0 %v8564_v40  ;;  %v1386_v40 = vld [vmem:[#allocation11 + $0x568] sm:$0xff]  ;;  %v1395_v27 = vld [vmem:[#allocation11 + $0x5b0] sm:$0xff] }
 0x1de   :  { %5781 = vmatpush1.bf16.msra.mxu1 %v8568_v28  ;;  %5719 = vmatprep.subr.bf16.mxu0 %v8570_v12  ;;  %v8588_v28 = vpack.c.bf16 %v1369_v0, %v1361_v8  ;;  %10258 = vst [vmem:[#allocation128_spill] sm:$0xff] %v8592_v17  ;;  %v8594_v20 = vpack.c.bf16 %v1386_v40, %v1378_v41  ;;  %10260 = vst [vmem:[#allocation130_spill] sm:$0xff] %v8597_v46  ;;  %v1394_v12 = vld [vmem:[#allocation11 + $0x5a8] sm:$0xff]  ;;  %v1396_v8 = vld [vmem:[#allocation11 + $0x5b8] sm:$0xff] }
 0x1df   :  { %5783 = vmatprep.subr.bf16.mxu1 %v8573_v38  ;;  %v1387_v38 = vld [vmem:[#allocation11 + $0x570] sm:$0xff]  ;;  %v1404_v0 = vld [vmem:[#allocation11 + $0x5f8] sm:$0xff]  ;;  %v1393_v41 = vld [vmem:[#allocation11 + $0x5a0] sm:$0xff] }
 0x1e0   :  { %10257 = vst [vmem:[#allocation127_spill] sm:$0xff] %v8588_v28  ;;  %10259 = vst [vmem:[#allocation129_spill] sm:$0xff] %v8594_v20  ;;  %v8604_v58 = vpack.c.bf16 %v1387_v38, %v1379_v36  ;;  %v8609_v19 = vpack.c.bf16 %v1404_v0, %v1396_v8  ;;  %v1409_v38 = vld [vmem:[#allocation11 + $0x620] sm:$0xff]  ;;  %v1411_v8 = vld [vmem:[#allocation11 + $0x630] sm:$0xff] }
 0x1e1   :  { %5721 = vmatpush1.bf16.msra.mxu0 %v8576_v60  ;;  %v1402_v60 = vld [vmem:[#allocation11 + $0x5e8] sm:$0xff]  ;;  %v1417_v36 = vld [vmem:[#allocation11 + $0x660] sm:$0xff] }
 0x1e2   :  { %5785 = vmatpush1.bf16.msra.mxu1 %v8580_v11  ;;  %5723 = vmatprep.subr.bf16.mxu0 %v8582_v16  ;;  %v8600_v11 = vpack.c.bf16 %v1385_v9, %v1377_v63  ;;  %10262 = vst [vmem:[#allocation132_spill] sm:$0xff] %v8604_v58  ;;  %v8606_v40 = vpack.c.bf16 %v1402_v60, %v1394_v12  ;;  %10264 = vst [vmem:[#allocation134_spill] sm:$0xff] %v8609_v19  ;;  %v1410_v16 = vld [vmem:[#allocation11 + $0x628] sm:$0xff]  ;;  %v1412_v63 = vld [vmem:[#allocation11 + $0x638] sm:$0xff] }
 0x1e3   :  { %5787 = vmatprep.subr.bf16.mxu1 %v8585_v45  ;;  %v1403_v45 = vld [vmem:[#allocation11 + $0x5f0] sm:$0xff]  ;;  %v1420_v9 = vld [vmem:[#allocation11 + $0x678] sm:$0xff] }
 0x1e4   :  { %10261 = vst [vmem:[#allocation131_spill] sm:$0xff] %v8600_v11  ;;  %10263 = vst [vmem:[#allocation133_spill] sm:$0xff] %v8606_v40  ;;  %v8616_v60 = vpack.c.bf16 %v1403_v45, %v1395_v27  ;;  %v8621_v0 = vpack.c.bf16 %v1420_v9, %v1412_v63  ;;  %v1425_v45 = vld [vmem:[#allocation11 + $0x6a0] sm:$0xff]  ;;  %v1427_v63 = vld [vmem:[#allocation11 + $0x6b0] sm:$0xff] }
 0x1e5   :  { %5725 = vmatpush1.bf16.msra.mxu0 %v8588_v28  ;;  %v1418_v28 = vld [vmem:[#allocation11 + $0x668] sm:$0xff]  ;;  %v1433_v27 = vld [vmem:[#allocation11 + $0x6e0] sm:$0xff] }
 0x1e6   :  { %5789 = vmatpush1.bf16.msra.mxu1 %v8592_v17  ;;  %5727 = vmatprep.subr.bf16.mxu0 %v8594_v20  ;;  %v8612_v17 = vpack.c.bf16 %v1401_v52, %v1393_v41  ;;  %10266 = vst [vmem:[#allocation136_spill] sm:$0xff] %v8616_v60  ;;  %v8618_v12 = vpack.c.bf16 %v1418_v28, %v1410_v16  ;;  %10268 = vst [vmem:[#allocation138_spill] sm:$0xff] %v8621_v0  ;;  %v1426_v20 = vld [vmem:[#allocation11 + $0x6a8] sm:$0xff]  ;;  %v1428_v41 = vld [vmem:[#allocation11 + $0x6b8] sm:$0xff] }
 0x1e7   :  { %5791 = vmatprep.subr.bf16.mxu1 %v8597_v46  ;;  %v1419_v46 = vld [vmem:[#allocation11 + $0x670] sm:$0xff]  ;;  %v1436_v52 = vld [vmem:[#allocation11 + $0x6f8] sm:$0xff] }
 0x1e8   :  { %10265 = vst [vmem:[#allocation135_spill] sm:$0xff] %v8612_v17  ;;  %10267 = vst [vmem:[#allocation137_spill] sm:$0xff] %v8618_v12  ;;  %v8628_v28 = vpack.c.bf16 %v1419_v46, %v1411_v8  ;;  %v8633_v9 = vpack.c.bf16 %v1436_v52, %v1428_v41  ;;  %v1441_v46 = vld [vmem:[#allocation11 + $0x720] sm:$0xff]  ;;  %v1443_v41 = vld [vmem:[#allocation11 + $0x730] sm:$0xff] }
 0x1e9   :  { %5729 = vmatpush1.bf16.msra.mxu0 %v8600_v11  ;;  %v1434_v11 = vld [vmem:[#allocation11 + $0x6e8] sm:$0xff]  ;;  %v1449_v8 = vld [vmem:[#allocation11 + $0x760] sm:$0xff] }
 0x1ea   :  { %5793 = vmatpush1.bf16.msra.mxu1 %v8604_v58  ;;  %5731 = vmatprep.subr.bf16.mxu0 %v8606_v40  ;;  %v8624_v58 = vpack.c.bf16 %v1417_v36, %v1409_v38  ;;  %10270 = vst [vmem:[#allocation140_spill] sm:$0xff] %v8628_v28  ;;  %v8630_v16 = vpack.c.bf16 %v1434_v11, %v1426_v20  ;;  %10272 = vst [vmem:[#allocation142_spill] sm:$0xff] %v8633_v9  ;;  %v1442_v40 = vld [vmem:[#allocation11 + $0x728] sm:$0xff]  ;;  %v1444_v38 = vld [vmem:[#allocation11 + $0x738] sm:$0xff] }
 0x1eb   :  { %5795 = vmatprep.subr.bf16.mxu1 %v8609_v19  ;;  %v1435_v19 = vld [vmem:[#allocation11 + $0x6f0] sm:$0xff]  ;;  %v1452_v36 = vld [vmem:[#allocation11 + $0x778] sm:$0xff] }
 0x1ec   :  { %10269 = vst [vmem:[#allocation139_spill] sm:$0xff] %v8624_v58  ;;  %10271 = vst [vmem:[#allocation141_spill] sm:$0xff] %v8630_v16  ;;  %v8640_v11 = vpack.c.bf16 %v1435_v19, %v1427_v63  ;;  %v8645_v52 = vpack.c.bf16 %v1452_v36, %v1444_v38  ;;  %v1457_v19 = vld [vmem:[#allocation11 + $0x7a0] sm:$0xff]  ;;  %v1459_v36 = vld [vmem:[#allocation11 + $0x7b0] sm:$0xff] }
 0x1ed   :  { %5733 = vmatpush1.bf16.msra.mxu0 %v8612_v17  ;;  %v1450_v17 = vld [vmem:[#allocation11 + $0x768] sm:$0xff]  ;;  %v1465_v63 = vld [vmem:[#allocation11 + $0x7e0] sm:$0xff] }
 0x1ee   :  { %5797 = vmatpush1.bf16.msra.mxu1 %v8616_v60  ;;  %5735 = vmatprep.subr.bf16.mxu0 %v8618_v12  ;;  %v8636_v60 = vpack.c.bf16 %v1433_v27, %v1425_v45  ;;  %10274 = vst [vmem:[#allocation144_spill] sm:$0xff] %v8640_v11  ;;  %v8642_v20 = vpack.c.bf16 %v1450_v17, %v1442_v40  ;;  %10276 = vst [vmem:[#allocation146_spill] sm:$0xff] %v8645_v52  ;;  %v1458_v12 = vld [vmem:[#allocation11 + $0x7a8] sm:$0xff]  ;;  %v1460_v45 = vld [vmem:[#allocation11 + $0x7b8] sm:$0xff] }
 0x1ef   :  { %5799 = vmatprep.subr.bf16.mxu1 %v8621_v0  ;;  %v1451_v0 = vld [vmem:[#allocation11 + $0x770] sm:$0xff]  ;;  %v1468_v27 = vld [vmem:[#allocation11 + $0x7f8] sm:$0xff] }
 0x1f0   :  { %10273 = vst [vmem:[#allocation143_spill] sm:$0xff] %v8636_v60  ;;  %10275 = vst [vmem:[#allocation145_spill] sm:$0xff] %v8642_v20  ;;  %v8652_v17 = vpack.c.bf16 %v1451_v0, %v1443_v41  ;;  %v8657_v38 = vpack.c.bf16 %v1468_v27, %v1460_v45  ;;  %v10287_v41 = vld [vmem:[#allocation67_spill] sm:$0xff]  ;;  %v10288_v45 = vld [vmem:[#allocation68_spill] sm:$0xff] }
 0x1f1   :  { %5737 = vmatpush1.bf16.msra.mxu0 %v8624_v58  ;;  %v1466_v58 = vld [vmem:[#allocation11 + $0x7e8] sm:$0xff] }
 0x1f2   :  { %5801 = vmatpush1.bf16.msra.mxu1 %v8628_v28  ;;  %5739 = vmatprep.subr.bf16.mxu0 %v8630_v16  ;;  %v8648_v28 = vpack.c.bf16 %v1449_v8, %v1441_v46  ;;  %10278 = vst [vmem:[#allocation148_spill] sm:$0xff] %v8652_v17  ;;  %v8654_v40 = vpack.c.bf16 %v1466_v58, %v1458_v12  ;;  %10280 = vst [vmem:[#allocation150_spill] sm:$0xff] %v8657_v38  ;;  %v10283_v58 = vld [vmem:[#allocation63_spill] sm:$0xff]  ;;  %v10284_v12 = vld [vmem:[#allocation64_spill] sm:$0xff] }
 0x1f3   :  { %5803 = vmatprep.subr.bf16.mxu1 %v8633_v9  ;;  %v1467_v9 = vld [vmem:[#allocation11 + $0x7f0] sm:$0xff]  ;;  %v8660_v46 = vpack.c.bf16 %v1465_v63, %v1457_v19  ;;  %v10289_v27 = vld [vmem:[#allocation69_spill] sm:$0xff] }
 0x1f4   :  { %10277 = vst [vmem:[#allocation147_spill] sm:$0xff] %v8648_v28  ;;  %10279 = vst [vmem:[#allocation149_spill] sm:$0xff] %v8654_v40  ;;  %v8664_v0 = vpack.c.bf16 %v1467_v9, %v1459_v36  ;;  %v10285_v9 = vld [vmem:[#allocation65_spill] sm:$0xff]  ;;  %v10286_v8 = vld [vmem:[#allocation66_spill] sm:$0xff] }
 0x1f5   :  { %5741 = vmatpush1.bf16.msra.mxu0 %v8636_v60  ;;  %10281 = vst [vmem:[#allocation151_spill] sm:$0xff] %v8660_v46  ;;  %v10290_v19 = vld [vmem:[#allocation70_spill] sm:$0xff]  ;;  %v10291_v63 = vld [vmem:[#allocation71_spill] sm:$0xff]  ;;  %v10292_v36 = vld [vmem:[#allocation72_spill] sm:$0xff] }
 0x1f6   :  { %5805 = vmatpush1.bf16.msra.mxu1 %v8640_v11  ;;  %5743 = vmatprep.subr.bf16.mxu0 %v8642_v20  ;;  %10282 = vst [vmem:[#allocation152_spill] sm:$0xff] %v8664_v0 }
 0x1f7   :  { %5807 = vmatprep.subr.bf16.mxu1 %v8645_v52 }
 0x1f9   :  { %5745 = vmatpush1.bf16.msra.mxu0 %v8648_v28 }
 0x1fa   :  { %5809 = vmatpush1.bf16.msra.mxu1 %v8652_v17  ;;  %5747 = vmatprep.subr.bf16.mxu0 %v8654_v40 }
 0x1fb   :  { %5811 = vmatprep.subr.bf16.mxu1 %v8657_v38 }
 0x1fd   :  { %5749 = vmatpush1.bf16.msra.mxu0 %v8660_v46 }
 0x1fe   :  { %5813 = vmatpush1.bf16.msra.mxu1 %v8664_v0  ;;  %5815 = vmatprep.subr.bf16.mxu0 %v8271_v18 }
 0x1ff   :  { %5879 = vmatprep.subr.bf16.mxu1 %v8273_v22 }
 0x200   :  { %1676 = vmatmul.mubr.f32.vlgmr.msra.gmra.mrb[6].mxu0 %v10220_v6 }
 0x201   :  { %1747 = vmatmul.mubr.f32.vlgmr.msra.gmra.mrb[6].mxu1 %v10220_v6  ;;  %5817 = vmatpush1.bf16.msra.mxu0 %v8275_v29  ;;  %v10293_v6 = vld [vmem:[#allocation73_spill] sm:$0xff] }
 0x202   :  { %5881 = vmatpush1.bf16.msra.mxu1 %v8278_v30  ;;  %5819 = vmatprep.subr.bf16.mxu0 %v8280_v31 }
 0x203   :  { %5883 = vmatprep.subr.bf16.mxu1 %v8283_v35 }
 0x205   :  { %5821 = vmatpush1.bf16.msra.mxu0 %v8286_v42 }
 0x206   :  { %5885 = vmatpush1.bf16.msra.mxu1 %v8290_v43  ;;  %5823 = vmatprep.subr.bf16.mxu0 %v8292_v44 }
 0x207   :  { %5887 = vmatprep.subr.bf16.mxu1 %v8295_v48 }
 0x209   :  { %5825 = vmatpush1.bf16.msra.mxu0 %v8300_v55 }
 0x20a   :  { %5889 = vmatpush1.bf16.msra.mxu1 %v8304_v56  ;;  %5827 = vmatprep.subr.bf16.mxu0 %v8306_v57 }
 0x20b   :  { %5891 = vmatprep.subr.bf16.mxu1 %v8309_v61 }
 0x20d   :  { %5829 = vmatpush1.bf16.msra.mxu0 %v8312_v1 }
 0x20e   :  { %5893 = vmatpush1.bf16.msra.mxu1 %v8316_v2  ;;  %5831 = vmatprep.subr.bf16.mxu0 %v8318_v3 }
 0x20f   :  { %5895 = vmatprep.subr.bf16.mxu1 %v8321_v7 }
 0x211   :  { %5833 = vmatpush1.bf16.msra.mxu0 %v8324_v13 }
 0x212   :  { %5897 = vmatpush1.bf16.msra.mxu1 %v8328_v14  ;;  %5835 = vmatprep.subr.bf16.mxu0 %v8330_v15 }
 0x213   :  { %5899 = vmatprep.subr.bf16.mxu1 %v8333_v21 }
 0x215   :  { %5837 = vmatpush1.bf16.msra.mxu0 %v8336_v32 }
 0x216   :  { %5901 = vmatpush1.bf16.msra.mxu1 %v8340_v33  ;;  %5839 = vmatprep.subr.bf16.mxu0 %v8342_v34 }
 0x217   :  { %5903 = vmatprep.subr.bf16.mxu1 %v8345_v39 }
 0x219   :  { %5841 = vmatpush1.bf16.msra.mxu0 %v8348_v49 }
 0x21a   :  { %5905 = vmatpush1.bf16.msra.mxu1 %v8352_v50  ;;  %5843 = vmatprep.subr.bf16.mxu0 %v8354_v51 }
 0x21b   :  { %5907 = vmatprep.subr.bf16.mxu1 %v8357_v59 }
 0x21d   :  { %5845 = vmatpush1.bf16.msra.mxu0 %v8360_v25 }
 0x21e   :  { %5909 = vmatpush1.bf16.msra.mxu1 %v8364_v4  ;;  %5847 = vmatprep.subr.bf16.mxu0 %v8366_v5 }
 0x21f   :  { %5911 = vmatprep.subr.bf16.mxu1 %v8369_v10  ;;  %v10313_v10 = vld [vmem:[#allocation114_spill] sm:$0xff] }
 0x221   :  { %5849 = vmatpush1.bf16.msra.mxu0 %v8372_v23 }
 0x222   :  { %5913 = vmatpush1.bf16.msra.mxu1 %v8376_v24  ;;  %5851 = vmatprep.subr.bf16.mxu0 %v8378_v26 }
 0x223   :  { %5915 = vmatprep.subr.bf16.mxu1 %v8381_v37  ;;  %v638_v37 = vld [vmem:[#allocation10 + $0x8] sm:$0xff] }
 0x225   :  { %5853 = vmatpush1.bf16.msra.mxu0 %v8384_v47  ;;  %v637_v47 = vld [vmem:[#allocation10] sm:$0xff] }
 0x226   :  { %5917 = vmatpush1.bf16.msra.mxu1 %v8388_v53  ;;  %5855 = vmatprep.subr.bf16.mxu0 %v8390_v54 }
 0x227   :  { %5919 = vmatprep.subr.bf16.mxu1 %v8393_v62 }
 0x229   :  { %5857 = vmatpush1.bf16.msra.mxu0 %v10283_v58  ;;  %v10294_v58 = vld [vmem:[#allocation74_spill] sm:$0xff] }
 0x22a   :  { %5921 = vmatpush1.bf16.msra.mxu1 %v10284_v12  ;;  %5859 = vmatprep.subr.bf16.mxu0 %v10285_v9  ;;  %v10295_v12 = vld [vmem:[#allocation75_spill] sm:$0xff]  ;;  %v10296_v9 = vld [vmem:[#allocation76_spill] sm:$0xff] }
 0x22b   :  { %5923 = vmatprep.subr.bf16.mxu1 %v10286_v8  ;;  %v10297_v8 = vld [vmem:[#allocation77_spill] sm:$0xff] }
 0x22d   :  { %5861 = vmatpush1.bf16.msra.mxu0 %v10287_v41  ;;  %v10298_v41 = vld [vmem:[#allocation78_spill] sm:$0xff] }
 0x22e   :  { %5925 = vmatpush1.bf16.msra.mxu1 %v10288_v45  ;;  %5863 = vmatprep.subr.bf16.mxu0 %v10289_v27  ;;  %v10299_v45 = vld [vmem:[#allocation79_spill] sm:$0xff]  ;;  %v10300_v27 = vld [vmem:[#allocation80_spill] sm:$0xff] }
 0x22f   :  { %5927 = vmatprep.subr.bf16.mxu1 %v10290_v19  ;;  %v10301_v19 = vld [vmem:[#allocation81_spill] sm:$0xff] }
 0x231   :  { %5865 = vmatpush1.bf16.msra.mxu0 %v10291_v63  ;;  %v10302_v63 = vld [vmem:[#allocation82_spill] sm:$0xff] }
 0x232   :  { %5929 = vmatpush1.bf16.msra.mxu1 %v10292_v36  ;;  %5867 = vmatprep.subr.bf16.mxu0 %v10293_v6  ;;  %v10303_v36 = vld [vmem:[#allocation83_spill] sm:$0xff]  ;;  %v10304_v6 = vld [vmem:[#allocation84_spill] sm:$0xff] }
 0x233   :  { %5931 = vmatprep.subr.bf16.mxu1 %v10294_v58  ;;  %v10305_v58 = vld [vmem:[#allocation85_spill] sm:$0xff] }
 0x235   :  { %5869 = vmatpush1.bf16.msra.mxu0 %v10295_v12  ;;  %v10306_v12 = vld [vmem:[#allocation86_spill] sm:$0xff] }
 0x236   :  { %5933 = vmatpush1.bf16.msra.mxu1 %v10296_v9  ;;  %5871 = vmatprep.subr.bf16.mxu0 %v10297_v8 }
 0x237   :  { %5935 = vmatprep.subr.bf16.mxu1 %v10298_v41 }
 0x239   :  { %5873 = vmatpush1.bf16.msra.mxu0 %v10299_v45 }
 0x23a   :  { %5937 = vmatpush1.bf16.msra.mxu1 %v10300_v27  ;;  %5875 = vmatprep.subr.bf16.mxu0 %v10301_v19  ;;  %v639_v19 = vld [vmem:[#allocation10 + $0x10] sm:$0xff] }
 0x23b   :  { %5939 = vmatprep.subr.bf16.mxu1 %v10302_v63  ;;  %v10307_v63 = vld [vmem:[#allocation110_spill] sm:$0xff] }
 0x23c   :  { %v8738_v26 = vadd.f32 %v10307_v63, %v637_v47 }
 0x23d   :  { %5877 = vmatpush1.bf16.msra.mxu0 %v10303_v36  ;;  %v640_v36 = vld [vmem:[#allocation10 + $0x18] sm:$0xff] }
 0x23e   :  { %5941 = vmatpush1.bf16.msra.mxu1 %v10304_v6  ;;  %5943 = vmatprep.subr.bf16.mxu0 %v10305_v58  ;;  %10308 = vst [vmem:[#allocation110_spill] sm:$0xff] %v8738_v26  ;;  %v10309_v6 = vld [vmem:[#allocation112_spill] sm:$0xff]  ;;  %v10311_v58 = vld [vmem:[#allocation113_spill] sm:$0xff]  ;;  %v8748_v5 = vadd.f32 %v10313_v10, %v640_v36 }
 0x23f   :  { %6007 = vmatprep.subr.bf16.mxu1 %v10306_v12  ;;  %v8741_v24 = vadd.f32 %v10309_v6, %v639_v19  ;;  %v8744_v12 = vadd.f32 %v10311_v58, %v638_v37  ;;  %v641_v19 = vld [vmem:[#allocation10 + $0x20] sm:$0xff] }
 0x240   :  { %10314 = vst [vmem:[#allocation114_spill] sm:$0xff] %v8748_v5 }
 0x241   :  { %10310 = vst [vmem:[#allocation112_spill] sm:$0xff] %v8741_v24  ;;  %10312 = vst [vmem:[#allocation113_spill] sm:$0xff] %v8744_v12 }
 0x253   :  { %v1066_v9 = vpop.f32.mrb[2].mxu0 }
 0x254   :  { %v1208_v8 = vpop.f32.mrb[2].mxu1  ;;  %v1068_v62 = vpop.f32.mrb[3].mxu0 }
 0x255   :  { %v1210_v41 = vpop.f32.mrb[3].mxu1 }
 0x293   :  { %v1535_v54 = vpop.f32.mrb[4].mxu0 }
 0x294   :  { %v1606_v45 = vpop.f32.mrb[4].mxu1  ;;  %v1537_v53 = vpop.f32.mrb[5].mxu0  ;;  %v1753_v23 = vadd.f32 %v8738_v26, %v1535_v54  ;;  %v642_v26 = vld [vmem:[#allocation10 + $0x28] sm:$0xff] }
 0x295   :  { %v1608_v27 = vpop.f32.mrb[5].mxu1  ;;  %v1755_v4 = vadd.f32 %v8741_v24, %v1606_v45  ;;  %v1754_v25 = vadd.f32 %v8744_v12, %v1537_v53  ;;  %v643_v45 = vld [vmem:[#allocation10 + $0x30] sm:$0xff]  ;;  %v644_v12 = vld [vmem:[#allocation10 + $0x38] sm:$0xff] }
 0x296   :  { %v1756_v59 = vadd.f32 %v8748_v5, %v1608_v27  ;;  %v4901_v47 = vmul.f32 -1.442695, %v1753_v23  ;;  %v8753_v23 = vadd.f32 %v1066_v9, %v641_v19 }
 0x297   :  { %v4903_v63 = vmul.f32 -1.442695, %v1755_v4  ;;  %v4902_v51 = vmul.f32 -1.442695, %v1754_v25  ;;  %v8757_v25 = vadd.f32 %v1068_v62, %v642_v26 }
 0x298   :  { %v4904_v50 = vmul.f32 -1.442695, %v1756_v59  ;;  %7693 = vpow2.f32 %v4901_v47  ;;  %v8755_v59 = vadd.f32 %v1208_v8, %v643_v45 }
 0x299   :  { %7695 = vpow2.f32 %v4903_v63 }
 0x29a   :  { %7697 = vpow2.f32 %v4902_v51  ;;  %v8759_v51 = vadd.f32 %v1210_v41, %v644_v12 }
 0x29b   :  { %7699 = vpow2.f32 %v4904_v50 }
 0x2a2   :  { %v7694_v37 = vpop.eup %7693 }
 0x2a3   :  { %v7696_v6 = vpop.eup %7695  ;;  %v1767_v10 = vadd.f32 1.0, %v7694_v37 }
 0x2a4   :  { %v7698_v54 = vpop.eup %7697  ;;  %v1779_v36 = vadd.f32 1.0, %v7696_v6 }
 0x2a5   :  { %v7700_v58 = vpop.eup %7699  ;;  %v1768_v53 = vadd.f32 1.0, %v7698_v54  ;;  %7701 = vrcp.f32 %v1767_v10 }
 0x2a6   :  { %v1780_v27 = vadd.f32 1.0, %v7700_v58  ;;  %7703 = vrcp.f32 %v1779_v36 }
 0x2a7   :  { %7705 = vrcp.f32 %v1768_v53 }
 0x2a8   :  { %7707 = vrcp.f32 %v1780_v27 }
 0x2af   :  { %v7702_v12 = vpop.eup %7701 }
 0x2b0   :  { %v7704_v41 = vpop.eup %7703 }
 0x2b1   :  { %v7706_v54 = vpop.eup %7705  ;;  %v1799_v36 = vmul.f32 0.0, %v7704_v41 }
 0x2b2   :  { %v7708_v58 = vpop.eup %7707 }
 0x2b3   :  { %v1800_v53 = vmul.f32 0.0, %v7708_v58 }
 0x2d3   :  { %v1677_v50 = vpop.f32.mrb[6].mxu0 }
 0x2d4   :  { %v1757_v4 = vadd.f32 %v8753_v23, %v1677_v50  ;;  %v1748_v47 = vpop.f32.mrb[6].mxu1  ;;  %v1679_v63 = vpop.f32.mrb[7].mxu0 }
 0x2d5   :  { %v1759_v37 = vadd.f32 %v8755_v59, %v1748_v47  ;;  %v1758_v9 = vadd.f32 %v8757_v25, %v1679_v63  ;;  %v1750_v6 = vpop.f32.mrb[7].mxu1 }
 0x2d6   :  { %7709 = vtanh.f32 %v1757_v4  ;;  %v1760_v8 = vadd.f32 %v8759_v51, %v1750_v6  ;;  %v8119_v6 = vmov 1966171168  }
 0x2d7   :  { %v4905_v26 = vmul.f32 -1.442695, %v1759_v37  ;;  %7711 = vtanh.f32 %v1758_v9 }
 0x2d8   :  { %v4906_v62 = vmul.f32 -1.442695, %v1760_v8  ;;  %v1815_v8 = vunpack.c.l.s4 %v8119_v6  ;;  %v10319_v6 = vld [vmem:[#allocation90_spill] sm:$0xff] }
 0x2d9   :  { %7713 = vpow2.f32 %v4905_v26  ;;  %v1817_v26 = vlaneseq }
 0x2da   :  { %7715 = vpow2.f32 %v4906_v62  ;;  %v1816_v58 = vunpack.c.0.s8 %v1815_v8 }
 0x2db   :  { %vm8786_vm0 = vcmp.lt.s32.totalorder %v1817_v26, 256 }
 0x2e0   :  { %v7710_v10 = vpop.eup %7709 }
 0x2e1   :  { %v7712_v19 = vpop.eup %7711  ;;  %v1801_v45 = vmul.f32 %v7710_v10, %v7702_v12  ;;  %v8773_v10 = vshrl.u32 %v1817_v26, 7  ;;  %v10329_v26 = vld [vmem:[#allocation97_spill] sm:$0xff] }
 0x2e2   :  { %v1802_v27 = vmul.f32 %v7712_v19, %v7706_v54 }
 0x2e3   :  { %v7714_v50 = vpop.eup %7713  ;;  %v8765_v47 = vadd.f32 %v1801_v45, %v1799_v36  ;;  %10315 = vst [vmem:[#allocation153_spill] sm:$0xff] %v8773_v10 }
 0x2e4   :  { %v7716_v4 = vpop.eup %7715  ;;  %v1793_v63 = vadd.f32 1.0, %v7714_v50  ;;  %v8767_v37 = vadd.f32 %v1802_v27, %v1800_v53  ;;  %v8777_v27 = vsub.s32 %v1816_v58, %v8773_v10  ;;  %v10331_v10 = vld [vmem:[#allocation99_spill] sm:$0xff] }
 0x2e5   :  { %7717 = vtanh.f32 %v8765_v47  ;;  %v1794_v9 = vadd.f32 1.0, %v7716_v4  ;;  %v10316_v4 = vld [vmem:[#allocation87_spill] sm:$0xff] }
 0x2e6   :  { %7719 = vrcp.f32 %v1793_v63  ;;  %v10317_v63 = vld [vmem:[#allocation88_spill] sm:$0xff] }
 0x2e7   :  { %7721 = vtanh.f32 %v8767_v37 }
 0x2e8   :  { %7723 = vrcp.f32 %v1794_v9  ;;  %v10318_v9 = vld [vmem:[#allocation89_spill] sm:$0xff] }
 0x2ef   :  { %v7718_v62 = vpop.eup %7717 }
 0x2f0   :  { %v7720_v12 = vpop.eup %7719 }
 0x2f1   :  { %v7722_v41 = vpop.eup %7721  ;;  %v8771_v54 = vmul.f32 %v7720_v12, %v7718_v62  ;;  %v10320_v62 = vmov 0  ;;  %v10323_v12 = vld [vmem:[#allocation91_spill] sm:$0xff] }
 0x2f2   :  { %v7724_v19 = vpop.eup %7723  ;;  %v10321_v62 = vsel %vm8786_vm0, 4294967295, %v10320_v62 }
 0x2f3   :  { %v1808_v36 = vmul.f32 %v7724_v19, %v7722_v41  ;;  %v1809_v45 = vmax.f32 %v8771_v54, 0.0  ;;  %10322 = vst [vmem:[#allocation87_spill] sm:$0xff] %v10321_v62  ;;  %v10324_v41 = vld [vmem:[#allocation92_spill] sm:$0xff]  ;;  %v10325_v19 = vld [vmem:[#allocation93_spill] sm:$0xff] }
 0x2f4   :  { %v10336_v62 = vld [vmem:[#allocation104_spill] sm:$0xff] }
 0x2f5   :  { %v1810_v53 = vmax.f32 %v1808_v36, 0.0  ;;  %1899 = vmatprep.mubr.f32.mxu0 %v1808_v36  ;;  %1970 = vmatprep.mubr.f32.mxu1 %v1808_v36 }
 0x2f6   :  { %1900 = vmatmul.mubr.f32.vlgmr.msra.gmra.mrb[8].mxu0 %v8771_v54  ;;  %1971 = vmatmul.mubr.f32.vlgmr.msra.gmra.mrb[8].mxu1 %v8771_v54 }
 0x2f7   :  { %v1813_v50 = vcombine.low %v1809_v45, %v1810_v53  ;;  %5945 = vmatpush1.bf16.msra.mxu0 %v10316_v4  ;;  %6009 = vmatpush1.bf16.msra.mxu1 %v10317_v63  ;;  %v10326_v45 = vld [vmem:[#allocation94_spill] sm:$0xff]  ;;  %v10328_v53 = vld [vmem:[#allocation96_spill] sm:$0xff] }
 0x2f8   :  { %2041 = vmatprep.mubr.f32.mxu0 %v1808_v36  ;;  %2112 = vmatprep.mubr.f32.mxu1 %v1808_v36  ;;  %v10327_v36 = vld [vmem:[#allocation95_spill] sm:$0xff] }
 0x2f9   :  { %5947 = vmatprep.subr.bf16.mxu0 %v10318_v9  ;;  %6011 = vmatprep.subr.bf16.mxu1 %v10319_v6  ;;  %v1820_v8 = vrot.slane %v1813_v50, %v8777_v27  ;;  %v10330_v50 = vld [vmem:[#allocation98_spill] sm:$0xff] }
 0x2fb   :  { %5949 = vmatpush1.bf16.msra.mxu0 %v10323_v12  ;;  %6013 = vmatpush1.bf16.msra.mxu1 %v10324_v41  ;;  %v1827_v58 = vrot.slane %v1820_v8, %v8777_v27  ;;  %v10332_v41 = vld [vmem:[#allocation100_spill] sm:$0xff]  ;;  %v10333_v8 = vld [vmem:[#allocation101_spill] sm:$0xff] }
 0x2fc   :  { %5951 = vmatprep.subr.bf16.mxu0 %v10325_v19  ;;  %6015 = vmatprep.subr.bf16.mxu1 %v10326_v45  ;;  %v10334_v19 = vld [vmem:[#allocation102_spill] sm:$0xff]  ;;  %v10335_v45 = vld [vmem:[#allocation103_spill] sm:$0xff] }
 0x2fd   :  { %1833 = vst.msk [vmem:[#allocation2] ss:$8 sm:$0x3] %vm8786_vm0, %v1827_v58  ;;  %v10337_v58 = vld [vmem:[#allocation105_spill] sm:$0xff] }
 0x2ff   :  { %5953 = vmatpush1.bf16.msra.mxu0 %v10327_v36  ;;  %6017 = vmatpush1.bf16.msra.mxu1 %v10328_v53  ;;  %v10338_v36 = vld [vmem:[#allocation106_spill] sm:$0xff]  ;;  %v10339_v53 = vld [vmem:[#allocation107_spill] sm:$0xff] }
 0x300   :  { %5955 = vmatprep.subr.bf16.mxu0 %v10329_v26  ;;  %6019 = vmatprep.subr.bf16.mxu1 %v10330_v50  ;;  %v10340_v26 = vld [vmem:[#allocation108_spill] sm:$0xff]  ;;  %v10341_v50 = vld [vmem:[#allocation109_spill] sm:$0xff] }
 0x303   :  { %5957 = vmatpush1.bf16.msra.mxu0 %v10331_v10  ;;  %6021 = vmatpush1.bf16.msra.mxu1 %v10332_v41  ;;  %v10342_v10 = vld [vmem:[#allocation111_spill] sm:$0xff] }
 0x304   :  { %5959 = vmatprep.subr.bf16.mxu0 %v10333_v8  ;;  %6023 = vmatprep.subr.bf16.mxu1 %v10334_v19  ;;  %v10343_v41 = vld [vmem:[#allocation115_spill] sm:$0xff]  ;;  %v10344_v8 = vld [vmem:[#allocation116_spill] sm:$0xff]  ;;  %v10345_v19 = vld [vmem:[#allocation117_spill] sm:$0xff] }
 0x307   :  { %5961 = vmatpush1.bf16.msra.mxu0 %v10335_v45  ;;  %6025 = vmatpush1.bf16.msra.mxu1 %v10336_v62  ;;  %v10346_v45 = vld [vmem:[#allocation118_spill] sm:$0xff]  ;;  %v10347_v62 = vld [vmem:[#allocation119_spill] sm:$0xff] }
 0x308   :  { %5963 = vmatprep.subr.bf16.mxu0 %v10337_v58  ;;  %6027 = vmatprep.subr.bf16.mxu1 %v10338_v36  ;;  %v10348_v58 = vld [vmem:[#allocation120_spill] sm:$0xff]  ;;  %v10349_v36 = vld [vmem:[#allocation121_spill] sm:$0xff] }
 0x30b   :  { %5965 = vmatpush1.bf16.msra.mxu0 %v10339_v53  ;;  %6029 = vmatpush1.bf16.msra.mxu1 %v10340_v26  ;;  %v10350_v53 = vld [vmem:[#allocation122_spill] sm:$0xff]  ;;  %v10351_v26 = vld [vmem:[#allocation123_spill] sm:$0xff] }
 0x30c   :  { %5967 = vmatprep.subr.bf16.mxu0 %v10341_v50  ;;  %6031 = vmatprep.subr.bf16.mxu1 %v10342_v10  ;;  %v10352_v50 = vld [vmem:[#allocation124_spill] sm:$0xff]  ;;  %v10353_v10 = vld [vmem:[#allocation125_spill] sm:$0xff] }
 0x30f   :  { %5969 = vmatpush1.bf16.msra.mxu0 %v10343_v41  ;;  %6033 = vmatpush1.bf16.msra.mxu1 %v10344_v8  ;;  %v10354_v41 = vld [vmem:[#allocation126_spill] sm:$0xff]  ;;  %v10355_v8 = vld [vmem:[#allocation127_spill] sm:$0xff] }
 0x310   :  { %5971 = vmatprep.subr.bf16.mxu0 %v10345_v19  ;;  %6035 = vmatprep.subr.bf16.mxu1 %v10346_v45  ;;  %v10356_v19 = vld [vmem:[#allocation128_spill] sm:$0xff]  ;;  %v10357_v45 = vld [vmem:[#allocation129_spill] sm:$0xff] }
 0x313   :  { %5973 = vmatpush1.bf16.msra.mxu0 %v10347_v62  ;;  %6037 = vmatpush1.bf16.msra.mxu1 %v10348_v58  ;;  %v10358_v62 = vld [vmem:[#allocation130_spill] sm:$0xff]  ;;  %v10359_v58 = vld [vmem:[#allocation131_spill] sm:$0xff] }
 0x314   :  { %5975 = vmatprep.subr.bf16.mxu0 %v10349_v36  ;;  %6039 = vmatprep.subr.bf16.mxu1 %v10350_v53  ;;  %v10360_v36 = vld [vmem:[#allocation132_spill] sm:$0xff]  ;;  %v10361_v53 = vld [vmem:[#allocation133_spill] sm:$0xff] }
 0x317   :  { %5977 = vmatpush1.bf16.msra.mxu0 %v10351_v26  ;;  %6041 = vmatpush1.bf16.msra.mxu1 %v10352_v50  ;;  %v10362_v26 = vld [vmem:[#allocation134_spill] sm:$0xff]  ;;  %v10363_v50 = vld [vmem:[#allocation135_spill] sm:$0xff] }
 0x318   :  { %5979 = vmatprep.subr.bf16.mxu0 %v10353_v10  ;;  %6043 = vmatprep.subr.bf16.mxu1 %v10354_v41  ;;  %v10364_v10 = vld [vmem:[#allocation136_spill] sm:$0xff]  ;;  %v10365_v41 = vld [vmem:[#allocation137_spill] sm:$0xff] }
 0x31b   :  { %5981 = vmatpush1.bf16.msra.mxu0 %v10355_v8  ;;  %6045 = vmatpush1.bf16.msra.mxu1 %v10356_v19  ;;  %v10366_v8 = vld [vmem:[#allocation138_spill] sm:$0xff]  ;;  %v10367_v19 = vld [vmem:[#allocation139_spill] sm:$0xff] }
 0x31c   :  { %5983 = vmatprep.subr.bf16.mxu0 %v10357_v45  ;;  %6047 = vmatprep.subr.bf16.mxu1 %v10358_v62  ;;  %v10368_v45 = vld [vmem:[#allocation140_spill] sm:$0xff] }
 0x31f   :  { %5985 = vmatpush1.bf16.msra.mxu0 %v10359_v58  ;;  %6049 = vmatpush1.bf16.msra.mxu1 %v10360_v36  ;;  %v10369_v58 = vld [vmem:[#allocation142_spill] sm:$0xff] }
 0x320   :  { %5987 = vmatprep.subr.bf16.mxu0 %v10361_v53  ;;  %6051 = vmatprep.subr.bf16.mxu1 %v10362_v26 }
 0x323   :  { %5989 = vmatpush1.bf16.msra.mxu0 %v10363_v50  ;;  %6053 = vmatpush1.bf16.msra.mxu1 %v10364_v10 }
 0x324   :  { %5991 = vmatprep.subr.bf16.mxu0 %v10365_v41  ;;  %6055 = vmatprep.subr.bf16.mxu1 %v10366_v8 }
 0x327   :  { %5993 = vmatpush1.bf16.msra.mxu0 %v10367_v19  ;;  %6057 = vmatpush1.bf16.msra.mxu1 %v10368_v45 }
 0x328   :  { %5995 = vmatprep.subr.bf16.mxu0 %v8630_v16  ;;  %6059 = vmatprep.subr.bf16.mxu1 %v10369_v58 }
 0x32b   :  { %5997 = vmatpush1.bf16.msra.mxu0 %v8636_v60  ;;  %6061 = vmatpush1.bf16.msra.mxu1 %v8640_v11 }
 0x32c   :  { %5999 = vmatprep.subr.bf16.mxu0 %v8642_v20  ;;  %6063 = vmatprep.subr.bf16.mxu1 %v8645_v52 }
 0x32f   :  { %6001 = vmatpush1.bf16.msra.mxu0 %v8648_v28  ;;  %6065 = vmatpush1.bf16.msra.mxu1 %v8652_v17 }
 0x330   :  { %6003 = vmatprep.subr.bf16.mxu0 %v8654_v40  ;;  %6067 = vmatprep.subr.bf16.mxu1 %v8657_v38 }
 0x333   :  { %6005 = vmatpush1.bf16.msra.mxu0 %v8660_v46  ;;  %6069 = vmatpush1.bf16.msra.mxu1 %v8664_v0 }
 0x334   :  { %6071 = vmatprep.subr.bf16.mxu0 %v8271_v18  ;;  %6135 = vmatprep.subr.bf16.mxu1 %v8273_v22 }
 0x336   :  { %2042 = vmatmul.mubr.f32.vlgmr.msra.gmra.mrb[10].mxu0 %v8771_v54  ;;  %2113 = vmatmul.mubr.f32.vlgmr.msra.gmra.mrb[10].mxu1 %v8771_v54  ;;  %v10370_v54 = vld [vmem:[#allocation48_spill] sm:$0xff] }
 0x337   :  { %6073 = vmatpush1.bf16.msra.mxu0 %v8275_v29  ;;  %6137 = vmatpush1.bf16.msra.mxu1 %v8278_v30 }
 0x338   :  { %6075 = vmatprep.subr.bf16.mxu0 %v8280_v31  ;;  %6139 = vmatprep.subr.bf16.mxu1 %v8283_v35 }
 0x33b   :  { %6077 = vmatpush1.bf16.msra.mxu0 %v8286_v42  ;;  %6141 = vmatpush1.bf16.msra.mxu1 %v8290_v43 }
 0x33c   :  { %6079 = vmatprep.subr.bf16.mxu0 %v8292_v44  ;;  %6143 = vmatprep.subr.bf16.mxu1 %v8295_v48 }
 0x33f   :  { %6081 = vmatpush1.bf16.msra.mxu0 %v8300_v55  ;;  %6145 = vmatpush1.bf16.msra.mxu1 %v8304_v56 }
 0x340   :  { %6083 = vmatprep.subr.bf16.mxu0 %v8306_v57  ;;  %6147 = vmatprep.subr.bf16.mxu1 %v8309_v61  ;;  %v2192_v57 = vrot.slane %v8767_v37, 7 }
 0x343   :  { %6085 = vmatpush1.bf16.msra.mxu0 %v8312_v1  ;;  %6149 = vmatpush1.bf16.msra.mxu1 %v8316_v2 }
 0x344   :  { %6087 = vmatprep.subr.bf16.mxu0 %v8318_v3  ;;  %6151 = vmatprep.subr.bf16.mxu1 %v8321_v7  ;;  %v10371_v7 = vld [vmem:[#allocation49_spill] sm:$0xff] }
 0x347   :  { %6089 = vmatpush1.bf16.msra.mxu0 %v8324_v13  ;;  %6153 = vmatpush1.bf16.msra.mxu1 %v8328_v14  ;;  %v10372_v13 = vld [vmem:[#allocation50_spill] sm:$0xff]  ;;  %v10373_v14 = vld [vmem:[#allocation51_spill] sm:$0xff] }
 0x348   :  { %6091 = vmatprep.subr.bf16.mxu0 %v8330_v15  ;;  %6155 = vmatprep.subr.bf16.mxu1 %v8333_v21  ;;  %v10374_v15 = vld [vmem:[#allocation52_spill] sm:$0xff]  ;;  %v10375_v21 = vld [vmem:[#allocation53_spill] sm:$0xff] }
 0x34b   :  { %6093 = vmatpush1.bf16.msra.mxu0 %v8336_v32  ;;  %6157 = vmatpush1.bf16.msra.mxu1 %v8340_v33  ;;  %v10376_v32 = vld [vmem:[#allocation54_spill] sm:$0xff]  ;;  %v10377_v33 = vld [vmem:[#allocation55_spill] sm:$0xff] }
 0x34c   :  { %6095 = vmatprep.subr.bf16.mxu0 %v8342_v34  ;;  %6159 = vmatprep.subr.bf16.mxu1 %v8345_v39  ;;  %v10378_v34 = vld [vmem:[#allocation56_spill] sm:$0xff]  ;;  %v10379_v39 = vld [vmem:[#allocation57_spill] sm:$0xff] }
 0x34f   :  { %6097 = vmatpush1.bf16.msra.mxu0 %v8348_v49  ;;  %6161 = vmatpush1.bf16.msra.mxu1 %v10370_v54  ;;  %v10380_v49 = vld [vmem:[#allocation58_spill] sm:$0xff]  ;;  %v10381_v54 = vld [vmem:[#allocation59_spill] sm:$0xff] }
 0x350   :  { %6099 = vmatprep.subr.bf16.mxu0 %v10371_v7  ;;  %6163 = vmatprep.subr.bf16.mxu1 %v10372_v13  ;;  %v10382_v7 = vld [vmem:[#allocation60_spill] sm:$0xff]  ;;  %v10383_v13 = vld [vmem:[#allocation61_spill] sm:$0xff] }
 0x353   :  { %6101 = vmatpush1.bf16.msra.mxu0 %v10373_v14  ;;  %6165 = vmatpush1.bf16.msra.mxu1 %v10374_v15  ;;  %v10384_v14 = vld [vmem:[#allocation62_spill] sm:$0xff]  ;;  %v10385_v15 = vld [vmem:[#allocation63_spill] sm:$0xff] }
 0x354   :  { %6103 = vmatprep.subr.bf16.mxu0 %v10375_v21  ;;  %6167 = vmatprep.subr.bf16.mxu1 %v10376_v32  ;;  %v10386_v21 = vld [vmem:[#allocation64_spill] sm:$0xff]  ;;  %v10387_v32 = vld [vmem:[#allocation65_spill] sm:$0xff] }
 0x357   :  { %6105 = vmatpush1.bf16.msra.mxu0 %v10377_v33  ;;  %6169 = vmatpush1.bf16.msra.mxu1 %v10378_v34  ;;  %v10388_v33 = vld [vmem:[#allocation66_spill] sm:$0xff]  ;;  %v10389_v34 = vld [vmem:[#allocation67_spill] sm:$0xff] }
 0x358   :  { %6107 = vmatprep.subr.bf16.mxu0 %v10379_v39  ;;  %6171 = vmatprep.subr.bf16.mxu1 %v10380_v49  ;;  %v10390_v39 = vld [vmem:[#allocation68_spill] sm:$0xff]  ;;  %v10391_v49 = vld [vmem:[#allocation69_spill] sm:$0xff] }
 0x35b   :  { %6109 = vmatpush1.bf16.msra.mxu0 %v10381_v54  ;;  %6173 = vmatpush1.bf16.msra.mxu1 %v10382_v7  ;;  %v10392_v54 = vld [vmem:[#allocation70_spill] sm:$0xff]  ;;  %v10393_v7 = vld [vmem:[#allocation71_spill] sm:$0xff] }
 0x35c   :  { %6111 = vmatprep.subr.bf16.mxu0 %v10383_v13  ;;  %6175 = vmatprep.subr.bf16.mxu1 %v10384_v14  ;;  %v10394_v13 = vld [vmem:[#allocation72_spill] sm:$0xff]  ;;  %v10395_v14 = vld [vmem:[#allocation73_spill] sm:$0xff] }
 0x35f   :  { %6113 = vmatpush1.bf16.msra.mxu0 %v10385_v15  ;;  %6177 = vmatpush1.bf16.msra.mxu1 %v10386_v21  ;;  %v10396_v15 = vld [vmem:[#allocation74_spill] sm:$0xff]  ;;  %v10397_v21 = vld [vmem:[#allocation75_spill] sm:$0xff] }
 0x360   :  { %6115 = vmatprep.subr.bf16.mxu0 %v10387_v32  ;;  %6179 = vmatprep.subr.bf16.mxu1 %v10388_v33  ;;  %v10398_v32 = vld [vmem:[#allocation76_spill] sm:$0xff]  ;;  %v10399_v33 = vld [vmem:[#allocation77_spill] sm:$0xff] }
 0x363   :  { %6117 = vmatpush1.bf16.msra.mxu0 %v10389_v34  ;;  %6181 = vmatpush1.bf16.msra.mxu1 %v10390_v39  ;;  %v10400_v34 = vld [vmem:[#allocation78_spill] sm:$0xff]  ;;  %v10401_v39 = vld [vmem:[#allocation79_spill] sm:$0xff] }
 0x364   :  { %6119 = vmatprep.subr.bf16.mxu0 %v10391_v49  ;;  %6183 = vmatprep.subr.bf16.mxu1 %v10392_v54  ;;  %v10402_v49 = vld [vmem:[#allocation80_spill] sm:$0xff]  ;;  %v10403_v54 = vld [vmem:[#allocation81_spill] sm:$0xff] }
 0x367   :  { %6121 = vmatpush1.bf16.msra.mxu0 %v10393_v7  ;;  %6185 = vmatpush1.bf16.msra.mxu1 %v10394_v13  ;;  %v10404_v7 = vld [vmem:[#allocation82_spill] sm:$0xff]  ;;  %v10405_v13 = vld [vmem:[#allocation83_spill] sm:$0xff] }
 0x368   :  { %6123 = vmatprep.subr.bf16.mxu0 %v10395_v14  ;;  %6187 = vmatprep.subr.bf16.mxu1 %v10396_v15  ;;  %v10406_v14 = vld [vmem:[#allocation84_spill] sm:$0xff]  ;;  %v10407_v15 = vld [vmem:[#allocation85_spill] sm:$0xff] }
 0x36b   :  { %6125 = vmatpush1.bf16.msra.mxu0 %v10397_v21  ;;  %6189 = vmatpush1.bf16.msra.mxu1 %v10398_v32  ;;  %v10408_v21 = vld [vmem:[#allocation86_spill] sm:$0xff] }
 0x36c   :  { %6127 = vmatprep.subr.bf16.mxu0 %v10399_v33  ;;  %6191 = vmatprep.subr.bf16.mxu1 %v10400_v34 }
 0x36f   :  { %6129 = vmatpush1.bf16.msra.mxu0 %v10401_v39  ;;  %6193 = vmatpush1.bf16.msra.mxu1 %v10402_v49 }
 0x370   :  { %6131 = vmatprep.subr.bf16.mxu0 %v10403_v54  ;;  %6195 = vmatprep.subr.bf16.mxu1 %v10404_v7 }
 0x373   :  { %6133 = vmatpush1.bf16.msra.mxu0 %v10405_v13  ;;  %6197 = vmatpush1.bf16.msra.mxu1 %v10406_v14 }
 0x374   :  { %6199 = vmatprep.subr.bf16.mxu0 %v10407_v15  ;;  %6263 = vmatprep.subr.bf16.mxu1 %v10408_v21  ;;  %v2191_v21 = vrot.slane %v8765_v47, 7 }
 0x3c9   :  { %v1901_v32 = vpop.f32.mrb[8].mxu0  ;;  %v1972_v33 = vpop.f32.mrb[8].mxu1 }
 0x3ca   :  { %v2129_v3 = vrot.slane %v1972_v33, 7  ;;  %v1903_v34 = vpop.f32.mrb[9].mxu0  ;;  %v1974_v2 = vpop.f32.mrb[9].mxu1 }
 0x3cb   :  { %v2130_v39 = vrot.slane %v1974_v2, 7 }
 0x3cc   :  { %v2145_v49 = vadd.f32 %v8741_v24, %v2129_v3  ;;  %v2127_v24 = vrot.slane %v1901_v32, 7 }
 0x3cd   :  { %v2146_v54 = vadd.f32 %v8748_v5, %v2130_v39  ;;  %v2128_v39 = vrot.slane %v1903_v34, 7 }
 0x3ce   :  { %v4909_v1 = vmul.f32 -1.442695, %v2145_v49  ;;  %v10409_v49 = vld [vmem:[#allocation110_spill] sm:$0xff] }
 0x3cf   :  { %v4910_v7 = vmul.f32 -1.442695, %v2146_v54  ;;  %v2143_v54 = vadd.f32 %v10409_v49, %v2127_v24 }
 0x3d0   :  { %7725 = vpow2.f32 %v4909_v1  ;;  %v10410_v1 = vld [vmem:[#allocation113_spill] sm:$0xff] }
 0x3d1   :  { %7727 = vpow2.f32 %v4910_v7  ;;  %v2144_v7 = vadd.f32 %v10410_v1, %v2128_v39  ;;  %v4907_v5 = vmul.f32 -1.442695, %v2143_v54 }
 0x3da   :  { %v7726_v13 = vpop.eup %7725 }
 0x3db   :  { %v2169_v14 = vadd.f32 1.0, %v7726_v13  ;;  %v7728_v61 = vpop.eup %7727  ;;  %v4908_v13 = vmul.f32 -1.442695, %v2144_v7 }
 0x3dc   :  { %v2170_v15 = vadd.f32 1.0, %v7728_v61 }
 0x3dd   :  { %7729 = vrcp.f32 %v2169_v14 }
 0x3de   :  { %7731 = vrcp.f32 %v2170_v15 }
 0x3df   :  { %7733 = vpow2.f32 %v4907_v5 }
 0x3e0   :  { %7735 = vpow2.f32 %v4908_v13 }
 0x3e7   :  { %v7730_v33 = vpop.eup %7729 }
 0x3e8   :  { %v2195_v2 = vmul.f32 %v7730_v33, %v2191_v21  ;;  %v7732_v56 = vpop.eup %7731 }
 0x3e9   :  { %v2196_v3 = vmul.f32 %v7732_v56, %v2192_v57  ;;  %v7734_v61 = vpop.eup %7733 }
 0x3ea   :  { %v7736_v14 = vpop.eup %7735  ;;  %v2157_v15 = vadd.f32 1.0, %v7734_v61 }
 0x3eb   :  { %v2158_v47 = vadd.f32 1.0, %v7736_v14 }
 0x3ec   :  { %7737 = vrcp.f32 %v2157_v15 }
 0x3ed   :  { %7739 = vrcp.f32 %v2158_v47 }
 0x409   :  { %v2043_v55 = vpop.f32.mrb[10].mxu0  ;;  %v2114_v48 = vpop.f32.mrb[10].mxu1 }
 0x40a   :  { %v2131_v37 = vrot.slane %v2043_v55, 7  ;;  %v2133_v21 = vrot.slane %v2114_v48, 7  ;;  %v2045_v33 = vpop.f32.mrb[11].mxu0  ;;  %v2116_v56 = vpop.f32.mrb[11].mxu1 }
 0x40b   :  { %v2132_v57 = vrot.slane %v2045_v33, 7  ;;  %v2134_v32 = vrot.slane %v2116_v56, 7  ;;  %v7738_v48 = vpop.eup %7737 }
 0x40c   :  { %v2147_v34 = vadd.f32 %v8753_v23, %v2131_v37  ;;  %v2149_v24 = vadd.f32 %v8755_v59, %v2133_v21  ;;  %v7740_v55 = vpop.eup %7739 }
 0x40d   :  { %v2148_v5 = vadd.f32 %v8757_v25, %v2132_v57  ;;  %v2150_v39 = vadd.f32 %v8759_v51, %v2134_v32 }
 0x40e   :  { %7741 = vtanh.f32 %v2147_v34  ;;  %v4911_v54 = vmul.f32 -1.442695, %v2149_v24 }
 0x40f   :  { %7743 = vtanh.f32 %v2148_v5  ;;  %v4912_v7 = vmul.f32 -1.442695, %v2150_v39 }
 0x410   :  { %7745 = vpow2.f32 %v4911_v54 }
 0x411   :  { %7747 = vpow2.f32 %v4912_v7 }
 0x418   :  { %v7742_v13 = vpop.eup %7741 }
 0x419   :  { %v7744_v61 = vpop.eup %7743  ;;  %v2197_v14 = vmul.f32 %v7742_v13, %v7738_v48 }
 0x41a   :  { %v7746_v15 = vpop.eup %7745  ;;  %v2198_v37 = vmul.f32 %v7744_v61, %v7740_v55 }
 0x41b   :  { %v7748_v33 = vpop.eup %7747  ;;  %v8929_v21 = vadd.f32 %v2197_v14, %v2195_v2  ;;  %v2183_v47 = vadd.f32 1.0, %v7746_v15  ;;  %v10411_v14 = vld [vmem:[#allocation92_spill] sm:$0xff] }
 0x41c   :  { %v8931_v56 = vadd.f32 %v2198_v37, %v2196_v3  ;;  %v2184_v57 = vadd.f32 1.0, %v7748_v33  ;;  %v10412_v37 = vld [vmem:[#allocation93_spill] sm:$0xff]  ;;  %v10413_v33 = vld [vmem:[#allocation94_spill] sm:$0xff] }
 0x41d   :  { %7749 = vtanh.f32 %v8929_v21 }
 0x41e   :  { %7751 = vrcp.f32 %v2183_v47  ;;  %v4797_v47 = vld [vmem:[%s9860_s7 + $0x60] sm:$0xff] }
 0x41f   :  { %7753 = vtanh.f32 %v8931_v56 }
 0x420   :  { %7755 = vrcp.f32 %v2184_v57  ;;  %v10415_v57 = vld [vmem:[#allocation95_spill] sm:$0xff] }
 0x427   :  { %v7750_v32 = vpop.eup %7749 }
 0x428   :  { %v7752_v34 = vpop.eup %7751 }
 0x429   :  { %v7754_v24 = vpop.eup %7753  ;;  %v2203_v5 = vmul.f32 %v7752_v34, %v7750_v32  ;;  %v10416_v32 = vld [vmem:[#allocation96_spill] sm:$0xff]  ;;  %v10417_v34 = vld [vmem:[#allocation97_spill] sm:$0xff] }
 0x42a   :  { %v7756_v39 = vpop.eup %7755 }
 0x42b   :  { %v2204_v54 = vmul.f32 %v7756_v39, %v7754_v24  ;;  %v2205_v7 = vmax.f32 %v2203_v5, 0.0  ;;  %v8935_v55 = vrot.slane %v2203_v5, 1  ;;  %v10418_v24 = vld [vmem:[#allocation98_spill] sm:$0xff]  ;;  %v10419_v5 = vld [vmem:[#allocation99_spill] sm:$0xff]  ;;  %v10420_v39 = vld [vmem:[#allocation100_spill] sm:$0xff] }
 0x42d   :  { %v2206_v48 = vmax.f32 %v2204_v54, 0.0  ;;  %v2232_v2 = vrot.slane %v2204_v54, 1  ;;  %v10421_v54 = vld [vmem:[#allocation101_spill] sm:$0xff] }
 0x42f   :  { %2299 = vmatprep.mubr.f32.mxu0 %v2232_v2  ;;  %2370 = vmatprep.mubr.f32.mxu1 %v2232_v2  ;;  %v2209_v3 = vcombine.low %v2205_v7, %v2206_v48  ;;  %v10422_v7 = vld [vmem:[#allocation102_spill] sm:$0xff]  ;;  %v10423_v48 = vld [vmem:[#allocation103_spill] sm:$0xff] }
 0x430   :  { %2300 = vmatmul.mubr.f32.vlgmr.msra.gmra.mrb[12].mxu0 %v8935_v55  ;;  %2371 = vmatmul.mubr.f32.vlgmr.msra.gmra.mrb[12].mxu1 %v8935_v55 }
 0x431   :  { %6201 = vmatpush1.bf16.msra.mxu0 %v10316_v4  ;;  %6265 = vmatpush1.bf16.msra.mxu1 %v10317_v63  ;;  %v2216_v13 = vrot.slane %v2209_v3, %v8777_v27  ;;  %v10425_v3 = vld [vmem:[#allocation105_spill] sm:$0xff] }
 0x432   :  { %2441 = vmatprep.mubr.f32.mxu0 %v2232_v2  ;;  %2512 = vmatprep.mubr.f32.mxu1 %v2232_v2  ;;  %v10424_v2 = vld [vmem:[#allocation104_spill] sm:$0xff] }
 0x433   :  { %6203 = vmatprep.subr.bf16.mxu0 %v10318_v9  ;;  %6267 = vmatprep.subr.bf16.mxu1 %v10319_v6  ;;  %v2217_v61 = vcombine.high %v2216_v13, %v2216_v13  ;;  %v10426_v13 = vld [vmem:[#allocation106_spill] sm:$0xff] }
 0x435   :  { %6205 = vmatpush1.bf16.msra.mxu0 %v10323_v12  ;;  %6269 = vmatpush1.bf16.msra.mxu1 %v10411_v14  ;;  %v2224_v15 = vrot.slane %v2217_v61, %v8777_v27  ;;  %v10427_v61 = vld [vmem:[#allocation107_spill] sm:$0xff] }
 0x436   :  { %6207 = vmatprep.subr.bf16.mxu0 %v10412_v37  ;;  %6271 = vmatprep.subr.bf16.mxu1 %v10413_v33 }
 0x437   :  { %2227 = vst.msk [vmem:[#allocation2 + $0x1] ss:$8 sm:$0x3] %vm8786_vm0, %v2224_v15  ;;  %v10428_v15 = vld [vmem:[#allocation108_spill] sm:$0xff] }
 0x439   :  { %6209 = vmatpush1.bf16.msra.mxu0 %v10415_v57  ;;  %6273 = vmatpush1.bf16.msra.mxu1 %v10416_v32 }
 0x43a   :  { %6211 = vmatprep.subr.bf16.mxu0 %v10417_v34  ;;  %6275 = vmatprep.subr.bf16.mxu1 %v10418_v24  ;;  %v10429_v24 = vld [vmem:[#allocation109_spill] sm:$0xff] }
 0x43d   :  { %6213 = vmatpush1.bf16.msra.mxu0 %v10419_v5  ;;  %6277 = vmatpush1.bf16.msra.mxu1 %v10420_v39  ;;  %v10430_v5 = vld [vmem:[#allocation111_spill] sm:$0xff] }
 0x43e   :  { %6215 = vmatprep.subr.bf16.mxu0 %v10421_v54  ;;  %6279 = vmatprep.subr.bf16.mxu1 %v10422_v7  ;;  %v10431_v39 = vld [vmem:[#allocation115_spill] sm:$0xff]  ;;  %v10432_v54 = vld [vmem:[#allocation116_spill] sm:$0xff]  ;;  %v10433_v7 = vld [vmem:[#allocation117_spill] sm:$0xff] }
 0x441   :  { %6217 = vmatpush1.bf16.msra.mxu0 %v10423_v48  ;;  %6281 = vmatpush1.bf16.msra.mxu1 %v10424_v2  ;;  %v10434_v48 = vld [vmem:[#allocation118_spill] sm:$0xff]  ;;  %v10435_v2 = vld [vmem:[#allocation119_spill] sm:$0xff] }
 0x442   :  { %6219 = vmatprep.subr.bf16.mxu0 %v10425_v3  ;;  %6283 = vmatprep.subr.bf16.mxu1 %v10426_v13  ;;  %v10436_v3 = vld [vmem:[#allocation120_spill] sm:$0xff]  ;;  %v10437_v13 = vld [vmem:[#allocation121_spill] sm:$0xff] }
 0x445   :  { %6221 = vmatpush1.bf16.msra.mxu0 %v10427_v61  ;;  %6285 = vmatpush1.bf16.msra.mxu1 %v10428_v15  ;;  %v10438_v61 = vld [vmem:[#allocation122_spill] sm:$0xff]  ;;  %v10439_v15 = vld [vmem:[#allocation123_spill] sm:$0xff] }
 0x446   :  { %6223 = vmatprep.subr.bf16.mxu0 %v10429_v24  ;;  %6287 = vmatprep.subr.bf16.mxu1 %v10430_v5  ;;  %v10440_v24 = vld [vmem:[#allocation124_spill] sm:$0xff]  ;;  %v10441_v5 = vld [vmem:[#allocation125_spill] sm:$0xff] }
 0x449   :  { %6225 = vmatpush1.bf16.msra.mxu0 %v10431_v39  ;;  %6289 = vmatpush1.bf16.msra.mxu1 %v10432_v54  ;;  %v10442_v39 = vld [vmem:[#allocation126_spill] sm:$0xff]  ;;  %v10443_v54 = vld [vmem:[#allocation127_spill] sm:$0xff] }
 0x44a   :  { %6227 = vmatprep.subr.bf16.mxu0 %v10433_v7  ;;  %6291 = vmatprep.subr.bf16.mxu1 %v10434_v48  ;;  %v10444_v7 = vld [vmem:[#allocation128_spill] sm:$0xff]  ;;  %v10445_v48 = vld [vmem:[#allocation129_spill] sm:$0xff] }
 0x44d   :  { %6229 = vmatpush1.bf16.msra.mxu0 %v10435_v2  ;;  %6293 = vmatpush1.bf16.msra.mxu1 %v10436_v3  ;;  %v10446_v3 = vld [vmem:[#allocation131_spill] sm:$0xff] }
 0x44e   :  { %6231 = vmatprep.subr.bf16.mxu0 %v10437_v13  ;;  %6295 = vmatprep.subr.bf16.mxu1 %v10438_v61 }
 0x451   :  { %6233 = vmatpush1.bf16.msra.mxu0 %v10439_v15  ;;  %6297 = vmatpush1.bf16.msra.mxu1 %v10440_v24 }
 0x452   :  { %6235 = vmatprep.subr.bf16.mxu0 %v10441_v5  ;;  %6299 = vmatprep.subr.bf16.mxu1 %v10442_v39 }
 0x455   :  { %6237 = vmatpush1.bf16.msra.mxu0 %v10443_v54  ;;  %6301 = vmatpush1.bf16.msra.mxu1 %v10444_v7 }
 0x456   :  { %6239 = vmatprep.subr.bf16.mxu0 %v10445_v48  ;;  %6303 = vmatprep.subr.bf16.mxu1 %v10358_v62 }
 0x459   :  { %6241 = vmatpush1.bf16.msra.mxu0 %v10446_v3  ;;  %6305 = vmatpush1.bf16.msra.mxu1 %v10360_v36 }
 0x45a   :  { %6243 = vmatprep.subr.bf16.mxu0 %v10361_v53  ;;  %6307 = vmatprep.subr.bf16.mxu1 %v10362_v26 }
 0x45d   :  { %6245 = vmatpush1.bf16.msra.mxu0 %v10363_v50  ;;  %6309 = vmatpush1.bf16.msra.mxu1 %v10364_v10 }
 0x45e   :  { %6247 = vmatprep.subr.bf16.mxu0 %v10365_v41  ;;  %6311 = vmatprep.subr.bf16.mxu1 %v10366_v8 }
 0x461   :  { %6249 = vmatpush1.bf16.msra.mxu0 %v10367_v19  ;;  %6313 = vmatpush1.bf16.msra.mxu1 %v10368_v45 }
 0x462   :  { %6251 = vmatprep.subr.bf16.mxu0 %v8630_v16  ;;  %6315 = vmatprep.subr.bf16.mxu1 %v10369_v58 }
 0x465   :  { %6253 = vmatpush1.bf16.msra.mxu0 %v8636_v60  ;;  %6317 = vmatpush1.bf16.msra.mxu1 %v8640_v11 }
 0x466   :  { %6255 = vmatprep.subr.bf16.mxu0 %v8642_v20  ;;  %6319 = vmatprep.subr.bf16.mxu1 %v8645_v52  ;;  %v2592_v20 = vrot.slane %v8931_v56, 7 }
 0x469   :  { %6257 = vmatpush1.bf16.msra.mxu0 %v8648_v28  ;;  %6321 = vmatpush1.bf16.msra.mxu1 %v8652_v17  ;;  %v10505_v17 = vld [vmem:[#allocation114_spill] sm:$0xff] }
 0x46a   :  { %6259 = vmatprep.subr.bf16.mxu0 %v8654_v40  ;;  %6323 = vmatprep.subr.bf16.mxu1 %v8657_v38  ;;  %v10504_v40 = vld [vmem:[#allocation112_spill] sm:$0xff] }
 0x46d   :  { %6261 = vmatpush1.bf16.msra.mxu0 %v8660_v46  ;;  %6325 = vmatpush1.bf16.msra.mxu1 %v8664_v0  ;;  %v10449_v0 = vld [vmem:[#allocation32_spill] sm:$0xff] }
 0x46e   :  { %6327 = vmatprep.subr.bf16.mxu0 %v8271_v18  ;;  %6391 = vmatprep.subr.bf16.mxu1 %v8273_v22  ;;  %v10447_v18 = vld [vmem:[#allocation30_spill] sm:$0xff]  ;;  %v10448_v22 = vld [vmem:[#allocation31_spill] sm:$0xff] }
 0x470   :  { %2442 = vmatmul.mubr.f32.vlgmr.msra.gmra.mrb[14].mxu0 %v8935_v55  ;;  %2513 = vmatmul.mubr.f32.vlgmr.msra.gmra.mrb[14].mxu1 %v8935_v55  ;;  %v10450_v55 = vld [vmem:[#allocation33_spill] sm:$0xff] }
 0x471   :  { %6329 = vmatpush1.bf16.msra.mxu0 %v8275_v29  ;;  %6393 = vmatpush1.bf16.msra.mxu1 %v8278_v30  ;;  %v10451_v29 = vld [vmem:[#allocation34_spill] sm:$0xff]  ;;  %v10452_v30 = vld [vmem:[#allocation35_spill] sm:$0xff] }
 0x472   :  { %6331 = vmatprep.subr.bf16.mxu0 %v8280_v31  ;;  %6395 = vmatprep.subr.bf16.mxu1 %v8283_v35  ;;  %v10453_v31 = vld [vmem:[#allocation36_spill] sm:$0xff]  ;;  %v10454_v35 = vld [vmem:[#allocation37_spill] sm:$0xff] }
 0x475   :  { %6333 = vmatpush1.bf16.msra.mxu0 %v8286_v42  ;;  %6397 = vmatpush1.bf16.msra.mxu1 %v8290_v43  ;;  %v10455_v42 = vld [vmem:[#allocation38_spill] sm:$0xff]  ;;  %v10456_v43 = vld [vmem:[#allocation39_spill] sm:$0xff] }
 0x476   :  { %6335 = vmatprep.subr.bf16.mxu0 %v8292_v44  ;;  %6399 = vmatprep.subr.bf16.mxu1 %v10447_v18  ;;  %v10457_v44 = vld [vmem:[#allocation40_spill] sm:$0xff]  ;;  %v10458_v18 = vld [vmem:[#allocation41_spill] sm:$0xff] }
 0x479   :  { %6337 = vmatpush1.bf16.msra.mxu0 %v10448_v22  ;;  %6401 = vmatpush1.bf16.msra.mxu1 %v10449_v0  ;;  %v10459_v22 = vld [vmem:[#allocation42_spill] sm:$0xff]  ;;  %v10460_v0 = vld [vmem:[#allocation43_spill] sm:$0xff] }
 0x47a   :  { %6339 = vmatprep.subr.bf16.mxu0 %v10450_v55  ;;  %6403 = vmatprep.subr.bf16.mxu1 %v10451_v29  ;;  %v10461_v55 = vld [vmem:[#allocation44_spill] sm:$0xff]  ;;  %v10462_v29 = vld [vmem:[#allocation45_spill] sm:$0xff] }
 0x47d   :  { %6341 = vmatpush1.bf16.msra.mxu0 %v10452_v30  ;;  %6405 = vmatpush1.bf16.msra.mxu1 %v10453_v31  ;;  %v10463_v30 = vld [vmem:[#allocation46_spill] sm:$0xff]  ;;  %v10464_v31 = vld [vmem:[#allocation47_spill] sm:$0xff] }
 0x47e   :  { %6343 = vmatprep.subr.bf16.mxu0 %v10454_v35  ;;  %6407 = vmatprep.subr.bf16.mxu1 %v10455_v42  ;;  %v10465_v35 = vld [vmem:[#allocation48_spill] sm:$0xff]  ;;  %v10466_v42 = vld [vmem:[#allocation49_spill] sm:$0xff] }
 0x481   :  { %6345 = vmatpush1.bf16.msra.mxu0 %v10456_v43  ;;  %6409 = vmatpush1.bf16.msra.mxu1 %v10457_v44  ;;  %v10467_v43 = vld [vmem:[#allocation50_spill] sm:$0xff]  ;;  %v10468_v44 = vld [vmem:[#allocation51_spill] sm:$0xff] }
 0x482   :  { %6347 = vmatprep.subr.bf16.mxu0 %v10458_v18  ;;  %6411 = vmatprep.subr.bf16.mxu1 %v10459_v22  ;;  %v10469_v18 = vld [vmem:[#allocation52_spill] sm:$0xff]  ;;  %v10470_v22 = vld [vmem:[#allocation53_spill] sm:$0xff] }
 0x485   :  { %6349 = vmatpush1.bf16.msra.mxu0 %v10460_v0  ;;  %6413 = vmatpush1.bf16.msra.mxu1 %v10461_v55  ;;  %v10471_v0 = vld [vmem:[#allocation54_spill] sm:$0xff]  ;;  %v10472_v55 = vld [vmem:[#allocation55_spill] sm:$0xff] }
 0x486   :  { %6351 = vmatprep.subr.bf16.mxu0 %v10462_v29  ;;  %6415 = vmatprep.subr.bf16.mxu1 %v10463_v30  ;;  %v10473_v29 = vld [vmem:[#allocation56_spill] sm:$0xff]  ;;  %v10474_v30 = vld [vmem:[#allocation57_spill] sm:$0xff] }
 0x489   :  { %6353 = vmatpush1.bf16.msra.mxu0 %v10464_v31  ;;  %6417 = vmatpush1.bf16.msra.mxu1 %v10465_v35  ;;  %v10475_v31 = vld [vmem:[#allocation58_spill] sm:$0xff]  ;;  %v10476_v35 = vld [vmem:[#allocation59_spill] sm:$0xff] }
 0x48a   :  { %6355 = vmatprep.subr.bf16.mxu0 %v10466_v42  ;;  %6419 = vmatprep.subr.bf16.mxu1 %v10467_v43  ;;  %v10477_v42 = vld [vmem:[#allocation60_spill] sm:$0xff]  ;;  %v10478_v43 = vld [vmem:[#allocation61_spill] sm:$0xff] }
 0x48d   :  { %6357 = vmatpush1.bf16.msra.mxu0 %v10468_v44  ;;  %6421 = vmatpush1.bf16.msra.mxu1 %v10469_v18  ;;  %v10479_v44 = vld [vmem:[#allocation62_spill] sm:$0xff]  ;;  %v10480_v18 = vld [vmem:[#allocation63_spill] sm:$0xff] }
 0x48e   :  { %6359 = vmatprep.subr.bf16.mxu0 %v10470_v22  ;;  %6423 = vmatprep.subr.bf16.mxu1 %v10471_v0  ;;  %v10481_v22 = vld [vmem:[#allocation64_spill] sm:$0xff]  ;;  %v10482_v0 = vld [vmem:[#allocation65_spill] sm:$0xff] }
 0x491   :  { %6361 = vmatpush1.bf16.msra.mxu0 %v10472_v55  ;;  %6425 = vmatpush1.bf16.msra.mxu1 %v10473_v29  ;;  %v10483_v55 = vld [vmem:[#allocation66_spill] sm:$0xff]  ;;  %v10484_v29 = vld [vmem:[#allocation67_spill] sm:$0xff] }
 0x492   :  { %6363 = vmatprep.subr.bf16.mxu0 %v10474_v30  ;;  %6427 = vmatprep.subr.bf16.mxu1 %v10475_v31  ;;  %v10485_v30 = vld [vmem:[#allocation68_spill] sm:$0xff]  ;;  %v10486_v31 = vld [vmem:[#allocation69_spill] sm:$0xff] }
 0x495   :  { %6365 = vmatpush1.bf16.msra.mxu0 %v10476_v35  ;;  %6429 = vmatpush1.bf16.msra.mxu1 %v10477_v42  ;;  %v10487_v35 = vld [vmem:[#allocation70_spill] sm:$0xff]  ;;  %v10488_v42 = vld [vmem:[#allocation71_spill] sm:$0xff] }
 0x496   :  { %6367 = vmatprep.subr.bf16.mxu0 %v10478_v43  ;;  %6431 = vmatprep.subr.bf16.mxu1 %v10479_v44  ;;  %v10489_v43 = vld [vmem:[#allocation72_spill] sm:$0xff]  ;;  %v10490_v44 = vld [vmem:[#allocation73_spill] sm:$0xff] }
 0x499   :  { %6369 = vmatpush1.bf16.msra.mxu0 %v10480_v18  ;;  %6433 = vmatpush1.bf16.msra.mxu1 %v10481_v22  ;;  %v10491_v18 = vld [vmem:[#allocation74_spill] sm:$0xff]  ;;  %v10492_v22 = vld [vmem:[#allocation75_spill] sm:$0xff] }
 0x49a   :  { %6371 = vmatprep.subr.bf16.mxu0 %v10482_v0  ;;  %6435 = vmatprep.subr.bf16.mxu1 %v10483_v55  ;;  %v10493_v0 = vld [vmem:[#allocation76_spill] sm:$0xff]  ;;  %v10494_v55 = vld [vmem:[#allocation77_spill] sm:$0xff] }
 0x49d   :  { %6373 = vmatpush1.bf16.msra.mxu0 %v10484_v29  ;;  %6437 = vmatpush1.bf16.msra.mxu1 %v10485_v30  ;;  %v10495_v29 = vld [vmem:[#allocation78_spill] sm:$0xff]  ;;  %v10496_v30 = vld [vmem:[#allocation79_spill] sm:$0xff] }
 0x49e   :  { %6375 = vmatprep.subr.bf16.mxu0 %v10486_v31  ;;  %6439 = vmatprep.subr.bf16.mxu1 %v10487_v35  ;;  %v10497_v31 = vld [vmem:[#allocation80_spill] sm:$0xff]  ;;  %v10498_v35 = vld [vmem:[#allocation81_spill] sm:$0xff] }
 0x4a1   :  { %6377 = vmatpush1.bf16.msra.mxu0 %v10488_v42  ;;  %6441 = vmatpush1.bf16.msra.mxu1 %v10489_v43  ;;  %v10499_v42 = vld [vmem:[#allocation82_spill] sm:$0xff]  ;;  %v10500_v43 = vld [vmem:[#allocation83_spill] sm:$0xff] }
 0x4a2   :  { %6379 = vmatprep.subr.bf16.mxu0 %v10490_v44  ;;  %6443 = vmatprep.subr.bf16.mxu1 %v10491_v18  ;;  %v10501_v44 = vld [vmem:[#allocation84_spill] sm:$0xff]  ;;  %v10502_v18 = vld [vmem:[#allocation85_spill] sm:$0xff] }
 0x4a5   :  { %6381 = vmatpush1.bf16.msra.mxu0 %v10492_v22  ;;  %6445 = vmatpush1.bf16.msra.mxu1 %v10493_v0  ;;  %v10503_v22 = vld [vmem:[#allocation86_spill] sm:$0xff] }
 0x4a6   :  { %6383 = vmatprep.subr.bf16.mxu0 %v10494_v55  ;;  %6447 = vmatprep.subr.bf16.mxu1 %v10495_v29 }
 0x4a9   :  { %6385 = vmatpush1.bf16.msra.mxu0 %v10496_v30  ;;  %6449 = vmatpush1.bf16.msra.mxu1 %v10497_v31 }
 0x4aa   :  { %6387 = vmatprep.subr.bf16.mxu0 %v10498_v35  ;;  %6451 = vmatprep.subr.bf16.mxu1 %v10499_v42 }
 0x4ad   :  { %6389 = vmatpush1.bf16.msra.mxu0 %v10500_v43  ;;  %6453 = vmatpush1.bf16.msra.mxu1 %v10501_v44 }
 0x4ae   :  { %6455 = vmatprep.subr.bf16.mxu0 %v10502_v18  ;;  %6519 = vmatprep.subr.bf16.mxu1 %v10503_v22  ;;  %v2591_v22 = vrot.slane %v8929_v21, 7 }
 0x503   :  { %v2301_v0 = vpop.f32.mrb[12].mxu0  ;;  %v2372_v55 = vpop.f32.mrb[12].mxu1 }
 0x504   :  { %v2529_v46 = vrot.slane %v2372_v55, 6  ;;  %v2303_v29 = vpop.f32.mrb[13].mxu0  ;;  %v2374_v38 = vpop.f32.mrb[13].mxu1 }
 0x505   :  { %v2530_v30 = vrot.slane %v2374_v38, 6 }
 0x506   :  { %v2545_v31 = vadd.f32 %v10504_v40, %v2529_v46  ;;  %v2527_v40 = vrot.slane %v2301_v0, 6 }
 0x507   :  { %v2546_v35 = vadd.f32 %v10505_v17, %v2530_v30  ;;  %v2528_v30 = vrot.slane %v2303_v29, 6 }
 0x508   :  { %v4915_v28 = vmul.f32 -1.442695, %v2545_v31  ;;  %v2543_v31 = vadd.f32 %v10409_v49, %v2527_v40 }
 0x509   :  { %v4916_v42 = vmul.f32 -1.442695, %v2546_v35  ;;  %v2544_v35 = vadd.f32 %v10410_v1, %v2528_v30 }
 0x50a   :  { %7757 = vpow2.f32 %v4915_v28 }
 0x50b   :  { %7759 = vpow2.f32 %v4916_v42  ;;  %v4913_v42 = vmul.f32 -1.442695, %v2543_v31 }
 0x514   :  { %v7758_v43 = vpop.eup %7757 }
 0x515   :  { %v2569_v44 = vadd.f32 1.0, %v7758_v43  ;;  %v7760_v52 = vpop.eup %7759  ;;  %v4914_v43 = vmul.f32 -1.442695, %v2544_v35 }
 0x516   :  { %v2570_v18 = vadd.f32 1.0, %v7760_v52 }
 0x517   :  { %7761 = vrcp.f32 %v2569_v44 }
 0x518   :  { %7763 = vrcp.f32 %v2570_v18 }
 0x519   :  { %7765 = vpow2.f32 %v4913_v42 }
 0x51a   :  { %7767 = vpow2.f32 %v4914_v43 }
 0x521   :  { %v7762_v55 = vpop.eup %7761 }
 0x522   :  { %v2595_v38 = vmul.f32 %v7762_v55, %v2591_v22  ;;  %v7764_v11 = vpop.eup %7763 }
 0x523   :  { %v2596_v46 = vmul.f32 %v7764_v11, %v2592_v20  ;;  %v7766_v44 = vpop.eup %7765 }
 0x524   :  { %v7768_v18 = vpop.eup %7767  ;;  %v2557_v28 = vadd.f32 1.0, %v7766_v44 }
 0x525   :  { %v2558_v52 = vadd.f32 1.0, %v7768_v18 }
 0x526   :  { %7769 = vrcp.f32 %v2557_v28 }
 0x527   :  { %7771 = vrcp.f32 %v2558_v52 }
 0x543   :  { %v2443_v21 = vpop.f32.mrb[14].mxu0  ;;  %v2514_v17 = vpop.f32.mrb[14].mxu1 }
 0x544   :  { %v2531_v56 = vrot.slane %v2443_v21, 6  ;;  %v2533_v22 = vrot.slane %v2514_v17, 6  ;;  %v2445_v55 = vpop.f32.mrb[15].mxu0  ;;  %v2516_v11 = vpop.f32.mrb[15].mxu1 }
 0x545   :  { %v2532_v20 = vrot.slane %v2445_v55, 6  ;;  %v2534_v29 = vrot.slane %v2516_v11, 6  ;;  %v7770_v17 = vpop.eup %7769 }
 0x546   :  { %v2547_v40 = vadd.f32 %v8753_v23, %v2531_v56  ;;  %v2549_v0 = vadd.f32 %v8755_v59, %v2533_v22  ;;  %v7772_v43 = vpop.eup %7771 }
 0x547   :  { %v2548_v30 = vadd.f32 %v8757_v25, %v2532_v20  ;;  %v2550_v31 = vadd.f32 %v8759_v51, %v2534_v29 }
 0x548   :  { %7773 = vtanh.f32 %v2547_v40  ;;  %v4917_v35 = vmul.f32 -1.442695, %v2549_v0 }
 0x549   :  { %7775 = vtanh.f32 %v2548_v30  ;;  %v4918_v42 = vmul.f32 -1.442695, %v2550_v31 }
 0x54a   :  { %7777 = vpow2.f32 %v4917_v35 }
 0x54b   :  { %7779 = vpow2.f32 %v4918_v42 }
 0x552   :  { %v7774_v44 = vpop.eup %7773 }
 0x553   :  { %v7776_v18 = vpop.eup %7775  ;;  %v2597_v28 = vmul.f32 %v7774_v44, %v7770_v17 }
 0x554   :  { %v7778_v21 = vpop.eup %7777  ;;  %v2598_v56 = vmul.f32 %v7776_v18, %v7772_v43 }
 0x555   :  { %v7780_v55 = vpop.eup %7779  ;;  %v9083_v22 = vadd.f32 %v2597_v28, %v2595_v38  ;;  %v2583_v52 = vadd.f32 1.0, %v7778_v21  ;;  %v10506_v21 = vld [vmem:[#allocation98_spill] sm:$0xff] }
 0x556   :  { %v9085_v11 = vadd.f32 %v2598_v56, %v2596_v46  ;;  %v2584_v20 = vadd.f32 1.0, %v7780_v55  ;;  %v10507_v56 = vld [vmem:[#allocation99_spill] sm:$0xff]  ;;  %v10508_v55 = vld [vmem:[#allocation100_spill] sm:$0xff] }
 0x557   :  { %7781 = vtanh.f32 %v9083_v22 }
 0x558   :  { %7783 = vrcp.f32 %v2583_v52  ;;  %v10509_v52 = vld [vmem:[#allocation101_spill] sm:$0xff] }
 0x559   :  { %7785 = vtanh.f32 %v9085_v11 }
 0x55a   :  { %7787 = vrcp.f32 %v2584_v20  ;;  %v10510_v20 = vld [vmem:[#allocation102_spill] sm:$0xff] }
 0x561   :  { %v7782_v29 = vpop.eup %7781 }
 0x562   :  { %v7784_v40 = vpop.eup %7783 }
 0x563   :  { %v7786_v0 = vpop.eup %7785  ;;  %v2603_v30 = vmul.f32 %v7784_v40, %v7782_v29  ;;  %v10511_v29 = vld [vmem:[#allocation103_spill] sm:$0xff]  ;;  %v10512_v40 = vld [vmem:[#allocation104_spill] sm:$0xff] }
 0x564   :  { %v7788_v31 = vpop.eup %7787 }
 0x565   :  { %v2604_v35 = vmul.f32 %v7788_v31, %v7786_v0  ;;  %v2605_v42 = vmax.f32 %v2603_v30, 0.0  ;;  %v9089_v43 = vrot.slane %v2603_v30, 2  ;;  %v10513_v0 = vld [vmem:[#allocation105_spill] sm:$0xff]  ;;  %v10514_v30 = vld [vmem:[#allocation106_spill] sm:$0xff]  ;;  %v10515_v31 = vld [vmem:[#allocation107_spill] sm:$0xff] }
 0x567   :  { %v2606_v17 = vmax.f32 %v2604_v35, 0.0  ;;  %v2632_v38 = vrot.slane %v2604_v35, 2  ;;  %v10516_v35 = vld [vmem:[#allocation108_spill] sm:$0xff] }
 0x569   :  { %2699 = vmatprep.mubr.f32.mxu0 %v2632_v38  ;;  %2770 = vmatprep.mubr.f32.mxu1 %v2632_v38  ;;  %v2609_v46 = vcombine.low %v2605_v42, %v2606_v17  ;;  %v10517_v42 = vld [vmem:[#allocation109_spill] sm:$0xff]  ;;  %v10518_v17 = vld [vmem:[#allocation111_spill] sm:$0xff] }
 0x56a   :  { %2700 = vmatmul.mubr.f32.vlgmr.msra.gmra.mrb[16].mxu0 %v9089_v43  ;;  %2771 = vmatmul.mubr.f32.vlgmr.msra.gmra.mrb[16].mxu1 %v9089_v43 }
 0x56b   :  { %6457 = vmatpush1.bf16.msra.mxu0 %v10316_v4  ;;  %6521 = vmatpush1.bf16.msra.mxu1 %v10317_v63  ;;  %v2616_v44 = vrot.slane %v2609_v46, %v8777_v27  ;;  %v10520_v46 = vld [vmem:[#allocation116_spill] sm:$0xff] }
 0x56c   :  { %2841 = vmatprep.mubr.f32.mxu0 %v2632_v38  ;;  %2912 = vmatprep.mubr.f32.mxu1 %v2632_v38  ;;  %v10519_v38 = vld [vmem:[#allocation115_spill] sm:$0xff] }
 0x56d   :  { %6459 = vmatprep.subr.bf16.mxu0 %v10318_v9  ;;  %6523 = vmatprep.subr.bf16.mxu1 %v10319_v6  ;;  %v2623_v18 = vrot.slane %v2616_v44, %v8777_v27  ;;  %v10521_v44 = vld [vmem:[#allocation117_spill] sm:$0xff] }
 0x56f   :  { %6461 = vmatpush1.bf16.msra.mxu0 %v10323_v12  ;;  %6525 = vmatpush1.bf16.msra.mxu1 %v10411_v14  ;;  %v2624_v28 = vcombine.high %v2623_v18, %v2623_v18  ;;  %v10522_v18 = vld [vmem:[#allocation118_spill] sm:$0xff] }
 0x570   :  { %6463 = vmatprep.subr.bf16.mxu0 %v10412_v37  ;;  %6527 = vmatprep.subr.bf16.mxu1 %v10413_v33 }
 0x571   :  { %2627 = vst.msk [vmem:[#allocation2 + $0x2] ss:$8 sm:$0x3] %vm8786_vm0, %v2624_v28  ;;  %v10523_v28 = vld [vmem:[#allocation120_spill] sm:$0xff] }
 0x573   :  { %6465 = vmatpush1.bf16.msra.mxu0 %v10415_v57  ;;  %6529 = vmatpush1.bf16.msra.mxu1 %v10416_v32 }
 0x574   :  { %6467 = vmatprep.subr.bf16.mxu0 %v10417_v34  ;;  %6531 = vmatprep.subr.bf16.mxu1 %v10506_v21 }
 0x577   :  { %6469 = vmatpush1.bf16.msra.mxu0 %v10507_v56  ;;  %6533 = vmatpush1.bf16.msra.mxu1 %v10508_v55 }
 0x578   :  { %6471 = vmatprep.subr.bf16.mxu0 %v10509_v52  ;;  %6535 = vmatprep.subr.bf16.mxu1 %v10510_v20 }
 0x57b   :  { %6473 = vmatpush1.bf16.msra.mxu0 %v10511_v29  ;;  %6537 = vmatpush1.bf16.msra.mxu1 %v10512_v40 }
 0x57c   :  { %6475 = vmatprep.subr.bf16.mxu0 %v10513_v0  ;;  %6539 = vmatprep.subr.bf16.mxu1 %v10514_v30 }
 0x57f   :  { %6477 = vmatpush1.bf16.msra.mxu0 %v10515_v31  ;;  %6541 = vmatpush1.bf16.msra.mxu1 %v10516_v35 }
 0x580   :  { %6479 = vmatprep.subr.bf16.mxu0 %v10517_v42  ;;  %6543 = vmatprep.subr.bf16.mxu1 %v10518_v17 }
 0x583   :  { %6481 = vmatpush1.bf16.msra.mxu0 %v10519_v38  ;;  %6545 = vmatpush1.bf16.msra.mxu1 %v10520_v46 }
 0x584   :  { %6483 = vmatprep.subr.bf16.mxu0 %v10521_v44  ;;  %6547 = vmatprep.subr.bf16.mxu1 %v10522_v18 }
 0x587   :  { %6485 = vmatpush1.bf16.msra.mxu0 %v10435_v2  ;;  %6549 = vmatpush1.bf16.msra.mxu1 %v10523_v28 }
 0x588   :  { %6487 = vmatprep.subr.bf16.mxu0 %v10437_v13  ;;  %6551 = vmatprep.subr.bf16.mxu1 %v10438_v61 }
 0x58b   :  { %6489 = vmatpush1.bf16.msra.mxu0 %v10439_v15  ;;  %6553 = vmatpush1.bf16.msra.mxu1 %v10440_v24 }
 0x58c   :  { %6491 = vmatprep.subr.bf16.mxu0 %v10441_v5  ;;  %6555 = vmatprep.subr.bf16.mxu1 %v10442_v39 }
 0x58f   :  { %6493 = vmatpush1.bf16.msra.mxu0 %v10443_v54  ;;  %6557 = vmatpush1.bf16.msra.mxu1 %v10444_v7  ;;  %v2992_v54 = vrot.slane %v9085_v11, 7 }
 0x590   :  { %6495 = vmatprep.subr.bf16.mxu0 %v10445_v48  ;;  %6559 = vmatprep.subr.bf16.mxu1 %v10358_v62  ;;  %v10600_v62 = vld [vmem:[#allocation114_spill] sm:$0xff] }
 0x593   :  { %6497 = vmatpush1.bf16.msra.mxu0 %v10446_v3  ;;  %6561 = vmatpush1.bf16.msra.mxu1 %v10360_v36  ;;  %v10599_v3 = vld [vmem:[#allocation112_spill] sm:$0xff] }
 0x594   :  { %6499 = vmatprep.subr.bf16.mxu0 %v10361_v53  ;;  %6563 = vmatprep.subr.bf16.mxu1 %v10362_v26  ;;  %v10524_v53 = vld [vmem:[#allocation144_spill] sm:$0xff]  ;;  %v10525_v26 = vld [vmem:[#allocation145_spill] sm:$0xff] }
 0x597   :  { %6501 = vmatpush1.bf16.msra.mxu0 %v10363_v50  ;;  %6565 = vmatpush1.bf16.msra.mxu1 %v10364_v10  ;;  %v10526_v50 = vld [vmem:[#allocation146_spill] sm:$0xff]  ;;  %v10527_v10 = vld [vmem:[#allocation147_spill] sm:$0xff] }
 0x598   :  { %6503 = vmatprep.subr.bf16.mxu0 %v10365_v41  ;;  %6567 = vmatprep.subr.bf16.mxu1 %v10366_v8  ;;  %v10528_v41 = vld [vmem:[#allocation148_spill] sm:$0xff]  ;;  %v10529_v8 = vld [vmem:[#allocation149_spill] sm:$0xff] }
 0x59b   :  { %6505 = vmatpush1.bf16.msra.mxu0 %v10367_v19  ;;  %6569 = vmatpush1.bf16.msra.mxu1 %v10368_v45  ;;  %v10530_v19 = vld [vmem:[#allocation150_spill] sm:$0xff]  ;;  %v10531_v45 = vld [vmem:[#allocation151_spill] sm:$0xff] }
 0x59c   :  { %6507 = vmatprep.subr.bf16.mxu0 %v8630_v16  ;;  %6571 = vmatprep.subr.bf16.mxu1 %v10369_v58  ;;  %v10532_v16 = vld [vmem:[#allocation152_spill] sm:$0xff]  ;;  %v10533_v58 = vld [vmem:[#allocation21_spill] sm:$0xff] }
 0x59f   :  { %6509 = vmatpush1.bf16.msra.mxu0 %v8636_v60  ;;  %6573 = vmatpush1.bf16.msra.mxu1 %v10524_v53  ;;  %v10534_v60 = vld [vmem:[#allocation22_spill] sm:$0xff] }
 0x5a0   :  { %6511 = vmatprep.subr.bf16.mxu0 %v10525_v26  ;;  %6575 = vmatprep.subr.bf16.mxu1 %v10526_v50  ;;  %v10535_v50 = vld [vmem:[#allocation23_spill] sm:$0xff]  ;;  %v10544_v26 = vld [vmem:[#allocation32_spill] sm:$0xff] }
 0x5a3   :  { %6513 = vmatpush1.bf16.msra.mxu0 %v10527_v10  ;;  %6577 = vmatpush1.bf16.msra.mxu1 %v10528_v41  ;;  %v10536_v10 = vld [vmem:[#allocation24_spill] sm:$0xff]  ;;  %v10537_v41 = vld [vmem:[#allocation25_spill] sm:$0xff] }
 0x5a4   :  { %6515 = vmatprep.subr.bf16.mxu0 %v10529_v8  ;;  %6579 = vmatprep.subr.bf16.mxu1 %v10530_v19  ;;  %v10538_v8 = vld [vmem:[#allocation26_spill] sm:$0xff]  ;;  %v10539_v19 = vld [vmem:[#allocation27_spill] sm:$0xff] }
 0x5a7   :  { %6517 = vmatpush1.bf16.msra.mxu0 %v10531_v45  ;;  %6581 = vmatpush1.bf16.msra.mxu1 %v10532_v16  ;;  %v10540_v45 = vld [vmem:[#allocation28_spill] sm:$0xff]  ;;  %v10541_v16 = vld [vmem:[#allocation29_spill] sm:$0xff] }
 0x5a8   :  { %6583 = vmatprep.subr.bf16.mxu0 %v10533_v58  ;;  %6647 = vmatprep.subr.bf16.mxu1 %v10534_v60  ;;  %v10542_v58 = vld [vmem:[#allocation30_spill] sm:$0xff]  ;;  %v10543_v60 = vld [vmem:[#allocation31_spill] sm:$0xff] }
 0x5aa   :  { %2842 = vmatmul.mubr.f32.vlgmr.msra.gmra.mrb[18].mxu0 %v9089_v43  ;;  %2913 = vmatmul.mubr.f32.vlgmr.msra.gmra.mrb[18].mxu1 %v9089_v43  ;;  %v10545_v43 = vld [vmem:[#allocation33_spill] sm:$0xff] }
 0x5ab   :  { %6585 = vmatpush1.bf16.msra.mxu0 %v10535_v50  ;;  %6649 = vmatpush1.bf16.msra.mxu1 %v10536_v10  ;;  %v10546_v50 = vld [vmem:[#allocation34_spill] sm:$0xff]  ;;  %v10547_v10 = vld [vmem:[#allocation35_spill] sm:$0xff] }
 0x5ac   :  { %6587 = vmatprep.subr.bf16.mxu0 %v10537_v41  ;;  %6651 = vmatprep.subr.bf16.mxu1 %v10538_v8  ;;  %v10548_v41 = vld [vmem:[#allocation36_spill] sm:$0xff]  ;;  %v10549_v8 = vld [vmem:[#allocation37_spill] sm:$0xff] }
 0x5af   :  { %6589 = vmatpush1.bf16.msra.mxu0 %v10539_v19  ;;  %6653 = vmatpush1.bf16.msra.mxu1 %v10540_v45  ;;  %v10550_v19 = vld [vmem:[#allocation38_spill] sm:$0xff]  ;;  %v10551_v45 = vld [vmem:[#allocation39_spill] sm:$0xff] }
 0x5b0   :  { %6591 = vmatprep.subr.bf16.mxu0 %v10541_v16  ;;  %6655 = vmatprep.subr.bf16.mxu1 %v10542_v58  ;;  %v10552_v16 = vld [vmem:[#allocation40_spill] sm:$0xff]  ;;  %v10553_v58 = vld [vmem:[#allocation41_spill] sm:$0xff] }
 0x5b3   :  { %6593 = vmatpush1.bf16.msra.mxu0 %v10543_v60  ;;  %6657 = vmatpush1.bf16.msra.mxu1 %v10544_v26  ;;  %v10554_v60 = vld [vmem:[#allocation42_spill] sm:$0xff]  ;;  %v10555_v26 = vld [vmem:[#allocation43_spill] sm:$0xff] }
 0x5b4   :  { %6595 = vmatprep.subr.bf16.mxu0 %v10545_v43  ;;  %6659 = vmatprep.subr.bf16.mxu1 %v10546_v50  ;;  %v10556_v43 = vld [vmem:[#allocation44_spill] sm:$0xff]  ;;  %v10557_v50 = vld [vmem:[#allocation45_spill] sm:$0xff] }
 0x5b7   :  { %6597 = vmatpush1.bf16.msra.mxu0 %v10547_v10  ;;  %6661 = vmatpush1.bf16.msra.mxu1 %v10548_v41  ;;  %v10558_v10 = vld [vmem:[#allocation46_spill] sm:$0xff]  ;;  %v10559_v41 = vld [vmem:[#allocation47_spill] sm:$0xff] }
 0x5b8   :  { %6599 = vmatprep.subr.bf16.mxu0 %v10549_v8  ;;  %6663 = vmatprep.subr.bf16.mxu1 %v10550_v19  ;;  %v10560_v8 = vld [vmem:[#allocation48_spill] sm:$0xff]  ;;  %v10561_v19 = vld [vmem:[#allocation49_spill] sm:$0xff] }
 0x5bb   :  { %6601 = vmatpush1.bf16.msra.mxu0 %v10551_v45  ;;  %6665 = vmatpush1.bf16.msra.mxu1 %v10552_v16  ;;  %v10562_v45 = vld [vmem:[#allocation50_spill] sm:$0xff]  ;;  %v10563_v16 = vld [vmem:[#allocation51_spill] sm:$0xff] }
 0x5bc   :  { %6603 = vmatprep.subr.bf16.mxu0 %v10553_v58  ;;  %6667 = vmatprep.subr.bf16.mxu1 %v10554_v60  ;;  %v10564_v58 = vld [vmem:[#allocation52_spill] sm:$0xff]  ;;  %v10565_v60 = vld [vmem:[#allocation53_spill] sm:$0xff] }
 0x5bf   :  { %6605 = vmatpush1.bf16.msra.mxu0 %v10555_v26  ;;  %6669 = vmatpush1.bf16.msra.mxu1 %v10556_v43  ;;  %v10566_v26 = vld [vmem:[#allocation54_spill] sm:$0xff]  ;;  %v10567_v43 = vld [vmem:[#allocation55_spill] sm:$0xff] }
 0x5c0   :  { %6607 = vmatprep.subr.bf16.mxu0 %v10557_v50  ;;  %6671 = vmatprep.subr.bf16.mxu1 %v10558_v10  ;;  %v10568_v50 = vld [vmem:[#allocation56_spill] sm:$0xff]  ;;  %v10569_v10 = vld [vmem:[#allocation57_spill] sm:$0xff] }
 0x5c3   :  { %6609 = vmatpush1.bf16.msra.mxu0 %v10559_v41  ;;  %6673 = vmatpush1.bf16.msra.mxu1 %v10560_v8  ;;  %v10570_v41 = vld [vmem:[#allocation58_spill] sm:$0xff]  ;;  %v10571_v8 = vld [vmem:[#allocation59_spill] sm:$0xff] }
 0x5c4   :  { %6611 = vmatprep.subr.bf16.mxu0 %v10561_v19  ;;  %6675 = vmatprep.subr.bf16.mxu1 %v10562_v45  ;;  %v10572_v19 = vld [vmem:[#allocation60_spill] sm:$0xff]  ;;  %v10573_v45 = vld [vmem:[#allocation61_spill] sm:$0xff] }
 0x5c7   :  { %6613 = vmatpush1.bf16.msra.mxu0 %v10563_v16  ;;  %6677 = vmatpush1.bf16.msra.mxu1 %v10564_v58  ;;  %v10574_v16 = vld [vmem:[#allocation62_spill] sm:$0xff]  ;;  %v10575_v58 = vld [vmem:[#allocation63_spill] sm:$0xff] }
 0x5c8   :  { %6615 = vmatprep.subr.bf16.mxu0 %v10565_v60  ;;  %6679 = vmatprep.subr.bf16.mxu1 %v10566_v26  ;;  %v10576_v60 = vld [vmem:[#allocation64_spill] sm:$0xff]  ;;  %v10577_v26 = vld [vmem:[#allocation65_spill] sm:$0xff] }
 0x5cb   :  { %6617 = vmatpush1.bf16.msra.mxu0 %v10567_v43  ;;  %6681 = vmatpush1.bf16.msra.mxu1 %v10568_v50  ;;  %v10578_v43 = vld [vmem:[#allocation66_spill] sm:$0xff]  ;;  %v10579_v50 = vld [vmem:[#allocation67_spill] sm:$0xff] }
 0x5cc   :  { %6619 = vmatprep.subr.bf16.mxu0 %v10569_v10  ;;  %6683 = vmatprep.subr.bf16.mxu1 %v10570_v41  ;;  %v10580_v10 = vld [vmem:[#allocation68_spill] sm:$0xff]  ;;  %v10581_v41 = vld [vmem:[#allocation69_spill] sm:$0xff] }
 0x5cf   :  { %6621 = vmatpush1.bf16.msra.mxu0 %v10571_v8  ;;  %6685 = vmatpush1.bf16.msra.mxu1 %v10572_v19  ;;  %v10582_v8 = vld [vmem:[#allocation70_spill] sm:$0xff]  ;;  %v10583_v19 = vld [vmem:[#allocation71_spill] sm:$0xff] }
 0x5d0   :  { %6623 = vmatprep.subr.bf16.mxu0 %v10573_v45  ;;  %6687 = vmatprep.subr.bf16.mxu1 %v10574_v16  ;;  %v10584_v45 = vld [vmem:[#allocation72_spill] sm:$0xff]  ;;  %v10585_v16 = vld [vmem:[#allocation73_spill] sm:$0xff] }
 0x5d3   :  { %6625 = vmatpush1.bf16.msra.mxu0 %v10575_v58  ;;  %6689 = vmatpush1.bf16.msra.mxu1 %v10576_v60  ;;  %v10586_v58 = vld [vmem:[#allocation74_spill] sm:$0xff]  ;;  %v10587_v60 = vld [vmem:[#allocation75_spill] sm:$0xff] }
 0x5d4   :  { %6627 = vmatprep.subr.bf16.mxu0 %v10577_v26  ;;  %6691 = vmatprep.subr.bf16.mxu1 %v10578_v43  ;;  %v10588_v26 = vld [vmem:[#allocation76_spill] sm:$0xff]  ;;  %v10589_v43 = vld [vmem:[#allocation77_spill] sm:$0xff] }
 0x5d7   :  { %6629 = vmatpush1.bf16.msra.mxu0 %v10579_v50  ;;  %6693 = vmatpush1.bf16.msra.mxu1 %v10580_v10  ;;  %v10590_v50 = vld [vmem:[#allocation78_spill] sm:$0xff]  ;;  %v10591_v10 = vld [vmem:[#allocation79_spill] sm:$0xff] }
 0x5d8   :  { %6631 = vmatprep.subr.bf16.mxu0 %v10581_v41  ;;  %6695 = vmatprep.subr.bf16.mxu1 %v10582_v8  ;;  %v10592_v41 = vld [vmem:[#allocation80_spill] sm:$0xff]  ;;  %v10593_v8 = vld [vmem:[#allocation81_spill] sm:$0xff] }
 0x5db   :  { %6633 = vmatpush1.bf16.msra.mxu0 %v10583_v19  ;;  %6697 = vmatpush1.bf16.msra.mxu1 %v10584_v45  ;;  %v10594_v19 = vld [vmem:[#allocation82_spill] sm:$0xff]  ;;  %v10595_v45 = vld [vmem:[#allocation83_spill] sm:$0xff] }
 0x5dc   :  { %6635 = vmatprep.subr.bf16.mxu0 %v10585_v16  ;;  %6699 = vmatprep.subr.bf16.mxu1 %v10586_v58  ;;  %v10596_v16 = vld [vmem:[#allocation84_spill] sm:$0xff]  ;;  %v10597_v58 = vld [vmem:[#allocation85_spill] sm:$0xff] }
 0x5df   :  { %6637 = vmatpush1.bf16.msra.mxu0 %v10587_v60  ;;  %6701 = vmatpush1.bf16.msra.mxu1 %v10588_v26  ;;  %v10598_v60 = vld [vmem:[#allocation86_spill] sm:$0xff] }
 0x5e0   :  { %6639 = vmatprep.subr.bf16.mxu0 %v10589_v43  ;;  %6703 = vmatprep.subr.bf16.mxu1 %v10590_v50 }
 0x5e3   :  { %6641 = vmatpush1.bf16.msra.mxu0 %v10591_v10  ;;  %6705 = vmatpush1.bf16.msra.mxu1 %v10592_v41 }
 0x5e4   :  { %6643 = vmatprep.subr.bf16.mxu0 %v10593_v8  ;;  %6707 = vmatprep.subr.bf16.mxu1 %v10594_v19 }
 0x5e7   :  { %6645 = vmatpush1.bf16.msra.mxu0 %v10595_v45  ;;  %6709 = vmatpush1.bf16.msra.mxu1 %v10596_v16 }
 0x5e8   :  { %6711 = vmatprep.subr.bf16.mxu0 %v10597_v58  ;;  %6775 = vmatprep.subr.bf16.mxu1 %v10598_v60  ;;  %v2991_v60 = vrot.slane %v9083_v22, 7 }
 0x63d   :  { %v2701_v26 = vpop.f32.mrb[16].mxu0  ;;  %v2772_v43 = vpop.f32.mrb[16].mxu1 }
 0x63e   :  { %v2929_v53 = vrot.slane %v2772_v43, 5  ;;  %v2703_v50 = vpop.f32.mrb[17].mxu0  ;;  %v2774_v36 = vpop.f32.mrb[17].mxu1 }
 0x63f   :  { %v2930_v10 = vrot.slane %v2774_v36, 5 }
 0x640   :  { %v2945_v41 = vadd.f32 %v10599_v3, %v2929_v53  ;;  %v2927_v3 = vrot.slane %v2701_v26, 5 }
 0x641   :  { %v2946_v8 = vadd.f32 %v10600_v62, %v2930_v10  ;;  %v2928_v10 = vrot.slane %v2703_v50, 5 }
 0x642   :  { %v4921_v48 = vmul.f32 -1.442695, %v2945_v41  ;;  %v2943_v41 = vadd.f32 %v10409_v49, %v2927_v3 }
 0x643   :  { %v4922_v19 = vmul.f32 -1.442695, %v2946_v8 }
 0x644   :  { %7789 = vpow2.f32 %v4921_v48  ;;  %v4919_v8 = vmul.f32 -1.442695, %v2943_v41 }
 0x645   :  { %7791 = vpow2.f32 %v4922_v19  ;;  %v2944_v19 = vadd.f32 %v10410_v1, %v2928_v10 }
 0x64e   :  { %v7790_v45 = vpop.eup %7789 }
 0x64f   :  { %v2969_v16 = vadd.f32 1.0, %v7790_v45  ;;  %v7792_v7 = vpop.eup %7791  ;;  %v4920_v45 = vmul.f32 -1.442695, %v2944_v19 }
 0x650   :  { %v2970_v58 = vadd.f32 1.0, %v7792_v7 }
 0x651   :  { %7793 = vrcp.f32 %v2969_v16 }
 0x652   :  { %7795 = vrcp.f32 %v2970_v58 }
 0x653   :  { %7797 = vpow2.f32 %v4919_v8 }
 0x654   :  { %7799 = vpow2.f32 %v4920_v45 }
 0x65b   :  { %v7794_v43 = vpop.eup %7793 }
 0x65c   :  { %v2995_v36 = vmul.f32 %v7794_v43, %v2991_v60  ;;  %v7796_v39 = vpop.eup %7795 }
 0x65d   :  { %v2996_v53 = vmul.f32 %v7796_v39, %v2992_v54  ;;  %v7798_v16 = vpop.eup %7797 }
 0x65e   :  { %v7800_v58 = vpop.eup %7799  ;;  %v2957_v7 = vadd.f32 1.0, %v7798_v16 }
 0x65f   :  { %v2958_v48 = vadd.f32 1.0, %v7800_v58 }
 0x660   :  { %7801 = vrcp.f32 %v2957_v7 }
 0x661   :  { %7803 = vrcp.f32 %v2958_v48 }
 0x67d   :  { %v2843_v22 = vpop.f32.mrb[18].mxu0  ;;  %v2914_v62 = vpop.f32.mrb[18].mxu1 }
 0x67e   :  { %v2931_v11 = vrot.slane %v2843_v22, 5  ;;  %v2933_v60 = vrot.slane %v2914_v62, 5  ;;  %v2845_v43 = vpop.f32.mrb[19].mxu0  ;;  %v2916_v39 = vpop.f32.mrb[19].mxu1 }
 0x67f   :  { %v2932_v26 = vrot.slane %v2845_v43, 5  ;;  %v2934_v50 = vrot.slane %v2916_v39, 5  ;;  %v7802_v62 = vpop.eup %7801 }
 0x680   :  { %v2947_v54 = vadd.f32 %v8753_v23, %v2931_v11  ;;  %v2949_v3 = vadd.f32 %v8755_v59, %v2933_v60  ;;  %v7804_v45 = vpop.eup %7803 }
 0x681   :  { %v2948_v10 = vadd.f32 %v8757_v25, %v2932_v26  ;;  %v2950_v41 = vadd.f32 %v8759_v51, %v2934_v50 }
 0x682   :  { %7805 = vtanh.f32 %v2947_v54  ;;  %v4923_v19 = vmul.f32 -1.442695, %v2949_v3 }
 0x683   :  { %7807 = vtanh.f32 %v2948_v10  ;;  %v4924_v8 = vmul.f32 -1.442695, %v2950_v41 }
 0x684   :  { %7809 = vpow2.f32 %v4923_v19 }
 0x685   :  { %7811 = vpow2.f32 %v4924_v8 }
 0x68c   :  { %v7806_v16 = vpop.eup %7805 }
 0x68d   :  { %v7808_v58 = vpop.eup %7807  ;;  %v2997_v7 = vmul.f32 %v7806_v16, %v7802_v62 }
 0x68e   :  { %v7810_v22 = vpop.eup %7809  ;;  %v2998_v11 = vmul.f32 %v7808_v58, %v7804_v45 }
 0x68f   :  { %v7812_v43 = vpop.eup %7811  ;;  %v9237_v60 = vadd.f32 %v2997_v7, %v2995_v36  ;;  %v2983_v48 = vadd.f32 1.0, %v7810_v22 }
 0x690   :  { %v9239_v39 = vadd.f32 %v2998_v11, %v2996_v53  ;;  %v2984_v26 = vadd.f32 1.0, %v7812_v43  ;;  %v10601_v11 = vld [vmem:[#allocation126_spill] sm:$0xff]  ;;  %v10602_v43 = vld [vmem:[#allocation127_spill] sm:$0xff] }
 0x691   :  { %7813 = vtanh.f32 %v9237_v60 }
 0x692   :  { %7815 = vrcp.f32 %v2983_v48  ;;  %v10603_v48 = vld [vmem:[#allocation128_spill] sm:$0xff] }
 0x693   :  { %7817 = vtanh.f32 %v9239_v39 }
 0x694   :  { %7819 = vrcp.f32 %v2984_v26  ;;  %v10604_v26 = vld [vmem:[#allocation129_spill] sm:$0xff] }
 0x69b   :  { %v7814_v50 = vpop.eup %7813 }
 0x69c   :  { %v7816_v54 = vpop.eup %7815 }
 0x69d   :  { %v7818_v3 = vpop.eup %7817  ;;  %v3003_v10 = vmul.f32 %v7816_v54, %v7814_v50  ;;  %v10605_v50 = vld [vmem:[#allocation130_spill] sm:$0xff]  ;;  %v10606_v54 = vld [vmem:[#allocation131_spill] sm:$0xff] }
 0x69e   :  { %v7820_v41 = vpop.eup %7819 }
 0x69f   :  { %v3004_v19 = vmul.f32 %v7820_v41, %v7818_v3  ;;  %v3005_v8 = vmax.f32 %v3003_v10, 0.0  ;;  %v9243_v45 = vrot.slane %v3003_v10, 3  ;;  %v10607_v3 = vld [vmem:[#allocation132_spill] sm:$0xff]  ;;  %v10608_v10 = vld [vmem:[#allocation133_spill] sm:$0xff]  ;;  %v10609_v41 = vld [vmem:[#allocation134_spill] sm:$0xff] }
 0x6a1   :  { %v3006_v62 = vmax.f32 %v3004_v19, 0.0  ;;  %v3033_v36 = vrot.slane %v3004_v19, 3  ;;  %v10610_v19 = vld [vmem:[#allocation135_spill] sm:$0xff] }
 0x6a3   :  { %3100 = vmatprep.mubr.f32.mxu0 %v3033_v36  ;;  %3171 = vmatprep.mubr.f32.mxu1 %v3033_v36  ;;  %v3009_v53 = vcombine.low %v3005_v8, %v3006_v62  ;;  %v10611_v8 = vld [vmem:[#allocation136_spill] sm:$0xff]  ;;  %v10612_v62 = vld [vmem:[#allocation137_spill] sm:$0xff] }
 0x6a4   :  { %3101 = vmatmul.mubr.f32.vlgmr.msra.gmra.mrb[20].mxu0 %v9243_v45  ;;  %3172 = vmatmul.mubr.f32.vlgmr.msra.gmra.mrb[20].mxu1 %v9243_v45 }
 0x6a5   :  { %6713 = vmatpush1.bf16.msra.mxu0 %v10316_v4  ;;  %6777 = vmatpush1.bf16.msra.mxu1 %v10317_v63  ;;  %v3016_v16 = vrot.slane %v3009_v53, %v8777_v27  ;;  %v10614_v53 = vld [vmem:[#allocation139_spill] sm:$0xff] }
 0x6a6   :  { %3242 = vmatprep.mubr.f32.mxu0 %v3033_v36  ;;  %3313 = vmatprep.mubr.f32.mxu1 %v3033_v36  ;;  %v10613_v36 = vld [vmem:[#allocation138_spill] sm:$0xff] }
 0x6a7   :  { %6715 = vmatprep.subr.bf16.mxu0 %v10318_v9  ;;  %6779 = vmatprep.subr.bf16.mxu1 %v10319_v6  ;;  %v3017_v58 = vcombine.high %v3016_v16, %v3016_v16  ;;  %v10615_v16 = vld [vmem:[#allocation140_spill] sm:$0xff] }
 0x6a9   :  { %6717 = vmatpush1.bf16.msra.mxu0 %v10323_v12  ;;  %6781 = vmatpush1.bf16.msra.mxu1 %v10411_v14  ;;  %v3024_v7 = vrot.slane %v3017_v58, %v8777_v27  ;;  %v10616_v58 = vld [vmem:[#allocation141_spill] sm:$0xff] }
 0x6aa   :  { %6719 = vmatprep.subr.bf16.mxu0 %v10412_v37  ;;  %6783 = vmatprep.subr.bf16.mxu1 %v10413_v33 }
 0x6ab   :  { %v3025_v22 = vcombine.high %v3024_v7, %v3024_v7  ;;  %v10617_v7 = vld [vmem:[#allocation142_spill] sm:$0xff] }
 0x6ad   :  { %6721 = vmatpush1.bf16.msra.mxu0 %v10415_v57  ;;  %6785 = vmatpush1.bf16.msra.mxu1 %v10416_v32  ;;  %3028 = vst.msk [vmem:[#allocation2 + $0x3] ss:$8 sm:$0x3] %vm8786_vm0, %v3025_v22  ;;  %v10618_v22 = vld [vmem:[#allocation143_spill] sm:$0xff] }
 0x6ae   :  { %6723 = vmatprep.subr.bf16.mxu0 %v10417_v34  ;;  %6787 = vmatprep.subr.bf16.mxu1 %v10506_v21 }
 0x6b1   :  { %6725 = vmatpush1.bf16.msra.mxu0 %v10507_v56  ;;  %6789 = vmatpush1.bf16.msra.mxu1 %v10508_v55 }
 0x6b2   :  { %6727 = vmatprep.subr.bf16.mxu0 %v10509_v52  ;;  %6791 = vmatprep.subr.bf16.mxu1 %v10510_v20 }
 0x6b5   :  { %6729 = vmatpush1.bf16.msra.mxu0 %v10511_v29  ;;  %6793 = vmatpush1.bf16.msra.mxu1 %v10512_v40 }
 0x6b6   :  { %6731 = vmatprep.subr.bf16.mxu0 %v10513_v0  ;;  %6795 = vmatprep.subr.bf16.mxu1 %v10514_v30 }
 0x6b9   :  { %6733 = vmatpush1.bf16.msra.mxu0 %v10515_v31  ;;  %6797 = vmatpush1.bf16.msra.mxu1 %v10516_v35 }
 0x6ba   :  { %6735 = vmatprep.subr.bf16.mxu0 %v10517_v42  ;;  %6799 = vmatprep.subr.bf16.mxu1 %v10518_v17 }
 0x6bd   :  { %6737 = vmatpush1.bf16.msra.mxu0 %v10519_v38  ;;  %6801 = vmatpush1.bf16.msra.mxu1 %v10520_v46 }
 0x6be   :  { %6739 = vmatprep.subr.bf16.mxu0 %v10521_v44  ;;  %6803 = vmatprep.subr.bf16.mxu1 %v10522_v18 }
 0x6c1   :  { %6741 = vmatpush1.bf16.msra.mxu0 %v10435_v2  ;;  %6805 = vmatpush1.bf16.msra.mxu1 %v10523_v28 }
 0x6c2   :  { %6743 = vmatprep.subr.bf16.mxu0 %v10437_v13  ;;  %6807 = vmatprep.subr.bf16.mxu1 %v10438_v61 }
 0x6c5   :  { %6745 = vmatpush1.bf16.msra.mxu0 %v10439_v15  ;;  %6809 = vmatpush1.bf16.msra.mxu1 %v10440_v24 }
 0x6c6   :  { %6747 = vmatprep.subr.bf16.mxu0 %v10441_v5  ;;  %6811 = vmatprep.subr.bf16.mxu1 %v10601_v11 }
 0x6c9   :  { %6749 = vmatpush1.bf16.msra.mxu0 %v10602_v43  ;;  %6813 = vmatpush1.bf16.msra.mxu1 %v10603_v48  ;;  %v3393_v43 = vrot.slane %v9239_v39, 7 }
 0x6ca   :  { %6751 = vmatprep.subr.bf16.mxu0 %v10604_v26  ;;  %6815 = vmatprep.subr.bf16.mxu1 %v10605_v50  ;;  %v10695_v50 = vld [vmem:[#allocation114_spill] sm:$0xff] }
 0x6cd   :  { %6753 = vmatpush1.bf16.msra.mxu0 %v10606_v54  ;;  %6817 = vmatpush1.bf16.msra.mxu1 %v10607_v3  ;;  %v10694_v54 = vld [vmem:[#allocation112_spill] sm:$0xff] }
 0x6ce   :  { %6755 = vmatprep.subr.bf16.mxu0 %v10608_v10  ;;  %6819 = vmatprep.subr.bf16.mxu1 %v10609_v41  ;;  %v10619_v10 = vld [vmem:[#allocation144_spill] sm:$0xff]  ;;  %v10620_v41 = vld [vmem:[#allocation145_spill] sm:$0xff] }
 0x6d1   :  { %6757 = vmatpush1.bf16.msra.mxu0 %v10610_v19  ;;  %6821 = vmatpush1.bf16.msra.mxu1 %v10611_v8  ;;  %v10621_v19 = vld [vmem:[#allocation146_spill] sm:$0xff]  ;;  %v10622_v8 = vld [vmem:[#allocation147_spill] sm:$0xff] }
 0x6d2   :  { %6759 = vmatprep.subr.bf16.mxu0 %v10612_v62  ;;  %6823 = vmatprep.subr.bf16.mxu1 %v10613_v36  ;;  %v10623_v62 = vld [vmem:[#allocation148_spill] sm:$0xff]  ;;  %v10624_v36 = vld [vmem:[#allocation149_spill] sm:$0xff] }
 0x6d5   :  { %6761 = vmatpush1.bf16.msra.mxu0 %v10614_v53  ;;  %6825 = vmatpush1.bf16.msra.mxu1 %v10615_v16  ;;  %v10625_v53 = vld [vmem:[#allocation150_spill] sm:$0xff]  ;;  %v10626_v16 = vld [vmem:[#allocation151_spill] sm:$0xff] }
 0x6d6   :  { %6763 = vmatprep.subr.bf16.mxu0 %v10616_v58  ;;  %6827 = vmatprep.subr.bf16.mxu1 %v10617_v7  ;;  %v10627_v58 = vld [vmem:[#allocation152_spill] sm:$0xff]  ;;  %v10628_v7 = vld [vmem:[#allocation21_spill] sm:$0xff] }
 0x6d9   :  { %6765 = vmatpush1.bf16.msra.mxu0 %v10618_v22  ;;  %6829 = vmatpush1.bf16.msra.mxu1 %v10619_v10  ;;  %v10629_v22 = vld [vmem:[#allocation22_spill] sm:$0xff] }
 0x6da   :  { %6767 = vmatprep.subr.bf16.mxu0 %v10620_v41  ;;  %6831 = vmatprep.subr.bf16.mxu1 %v10621_v19  ;;  %v10630_v19 = vld [vmem:[#allocation23_spill] sm:$0xff]  ;;  %v10639_v41 = vld [vmem:[#allocation32_spill] sm:$0xff] }
 0x6dd   :  { %6769 = vmatpush1.bf16.msra.mxu0 %v10622_v8  ;;  %6833 = vmatpush1.bf16.msra.mxu1 %v10623_v62  ;;  %v10631_v8 = vld [vmem:[#allocation24_spill] sm:$0xff]  ;;  %v10632_v62 = vld [vmem:[#allocation25_spill] sm:$0xff] }
 0x6de   :  { %6771 = vmatprep.subr.bf16.mxu0 %v10624_v36  ;;  %6835 = vmatprep.subr.bf16.mxu1 %v10625_v53  ;;  %v10633_v36 = vld [vmem:[#allocation26_spill] sm:$0xff]  ;;  %v10634_v53 = vld [vmem:[#allocation27_spill] sm:$0xff] }
 0x6e1   :  { %6773 = vmatpush1.bf16.msra.mxu0 %v10626_v16  ;;  %6837 = vmatpush1.bf16.msra.mxu1 %v10627_v58  ;;  %v10635_v16 = vld [vmem:[#allocation28_spill] sm:$0xff]  ;;  %v10636_v58 = vld [vmem:[#allocation29_spill] sm:$0xff] }
 0x6e2   :  { %6839 = vmatprep.subr.bf16.mxu0 %v10628_v7  ;;  %6903 = vmatprep.subr.bf16.mxu1 %v10629_v22  ;;  %v10637_v7 = vld [vmem:[#allocation30_spill] sm:$0xff]  ;;  %v10638_v22 = vld [vmem:[#allocation31_spill] sm:$0xff] }
 0x6e4   :  { %3243 = vmatmul.mubr.f32.vlgmr.msra.gmra.mrb[22].mxu0 %v9243_v45  ;;  %3314 = vmatmul.mubr.f32.vlgmr.msra.gmra.mrb[22].mxu1 %v9243_v45  ;;  %v10640_v45 = vld [vmem:[#allocation33_spill] sm:$0xff] }
 0x6e5   :  { %6841 = vmatpush1.bf16.msra.mxu0 %v10630_v19  ;;  %6905 = vmatpush1.bf16.msra.mxu1 %v10631_v8  ;;  %v10641_v19 = vld [vmem:[#allocation34_spill] sm:$0xff]  ;;  %v10642_v8 = vld [vmem:[#allocation35_spill] sm:$0xff] }
 0x6e6   :  { %6843 = vmatprep.subr.bf16.mxu0 %v10632_v62  ;;  %6907 = vmatprep.subr.bf16.mxu1 %v10633_v36  ;;  %v10643_v62 = vld [vmem:[#allocation36_spill] sm:$0xff]  ;;  %v10644_v36 = vld [vmem:[#allocation37_spill] sm:$0xff] }
 0x6e9   :  { %6845 = vmatpush1.bf16.msra.mxu0 %v10634_v53  ;;  %6909 = vmatpush1.bf16.msra.mxu1 %v10635_v16  ;;  %v10645_v53 = vld [vmem:[#allocation38_spill] sm:$0xff]  ;;  %v10646_v16 = vld [vmem:[#allocation39_spill] sm:$0xff] }
 0x6ea   :  { %6847 = vmatprep.subr.bf16.mxu0 %v10636_v58  ;;  %6911 = vmatprep.subr.bf16.mxu1 %v10637_v7  ;;  %v10647_v58 = vld [vmem:[#allocation40_spill] sm:$0xff]  ;;  %v10648_v7 = vld [vmem:[#allocation41_spill] sm:$0xff] }
 0x6ed   :  { %6849 = vmatpush1.bf16.msra.mxu0 %v10638_v22  ;;  %6913 = vmatpush1.bf16.msra.mxu1 %v10639_v41  ;;  %v10649_v22 = vld [vmem:[#allocation42_spill] sm:$0xff]  ;;  %v10650_v41 = vld [vmem:[#allocation43_spill] sm:$0xff] }
 0x6ee   :  { %6851 = vmatprep.subr.bf16.mxu0 %v10640_v45  ;;  %6915 = vmatprep.subr.bf16.mxu1 %v10641_v19  ;;  %v10651_v45 = vld [vmem:[#allocation44_spill] sm:$0xff]  ;;  %v10652_v19 = vld [vmem:[#allocation45_spill] sm:$0xff] }
 0x6f1   :  { %6853 = vmatpush1.bf16.msra.mxu0 %v10642_v8  ;;  %6917 = vmatpush1.bf16.msra.mxu1 %v10643_v62  ;;  %v10653_v8 = vld [vmem:[#allocation46_spill] sm:$0xff]  ;;  %v10654_v62 = vld [vmem:[#allocation47_spill] sm:$0xff] }
 0x6f2   :  { %6855 = vmatprep.subr.bf16.mxu0 %v10644_v36  ;;  %6919 = vmatprep.subr.bf16.mxu1 %v10645_v53  ;;  %v10655_v36 = vld [vmem:[#allocation48_spill] sm:$0xff]  ;;  %v10656_v53 = vld [vmem:[#allocation49_spill] sm:$0xff] }
 0x6f5   :  { %6857 = vmatpush1.bf16.msra.mxu0 %v10646_v16  ;;  %6921 = vmatpush1.bf16.msra.mxu1 %v10647_v58  ;;  %v10657_v16 = vld [vmem:[#allocation50_spill] sm:$0xff]  ;;  %v10658_v58 = vld [vmem:[#allocation51_spill] sm:$0xff] }
 0x6f6   :  { %6859 = vmatprep.subr.bf16.mxu0 %v10648_v7  ;;  %6923 = vmatprep.subr.bf16.mxu1 %v10649_v22  ;;  %v10659_v7 = vld [vmem:[#allocation52_spill] sm:$0xff]  ;;  %v10660_v22 = vld [vmem:[#allocation53_spill] sm:$0xff] }
 0x6f9   :  { %6861 = vmatpush1.bf16.msra.mxu0 %v10650_v41  ;;  %6925 = vmatpush1.bf16.msra.mxu1 %v10651_v45  ;;  %v10661_v41 = vld [vmem:[#allocation54_spill] sm:$0xff]  ;;  %v10662_v45 = vld [vmem:[#allocation55_spill] sm:$0xff] }
 0x6fa   :  { %6863 = vmatprep.subr.bf16.mxu0 %v10652_v19  ;;  %6927 = vmatprep.subr.bf16.mxu1 %v10653_v8  ;;  %v10663_v19 = vld [vmem:[#allocation56_spill] sm:$0xff]  ;;  %v10664_v8 = vld [vmem:[#allocation57_spill] sm:$0xff] }
 0x6fd   :  { %6865 = vmatpush1.bf16.msra.mxu0 %v10654_v62  ;;  %6929 = vmatpush1.bf16.msra.mxu1 %v10655_v36  ;;  %v10665_v62 = vld [vmem:[#allocation58_spill] sm:$0xff]  ;;  %v10666_v36 = vld [vmem:[#allocation59_spill] sm:$0xff] }
 0x6fe   :  { %6867 = vmatprep.subr.bf16.mxu0 %v10656_v53  ;;  %6931 = vmatprep.subr.bf16.mxu1 %v10657_v16  ;;  %v10667_v53 = vld [vmem:[#allocation60_spill] sm:$0xff]  ;;  %v10668_v16 = vld [vmem:[#allocation61_spill] sm:$0xff] }
 0x701   :  { %6869 = vmatpush1.bf16.msra.mxu0 %v10658_v58  ;;  %6933 = vmatpush1.bf16.msra.mxu1 %v10659_v7  ;;  %v10669_v58 = vld [vmem:[#allocation62_spill] sm:$0xff]  ;;  %v10670_v7 = vld [vmem:[#allocation63_spill] sm:$0xff] }
 0x702   :  { %6871 = vmatprep.subr.bf16.mxu0 %v10660_v22  ;;  %6935 = vmatprep.subr.bf16.mxu1 %v10661_v41  ;;  %v10671_v22 = vld [vmem:[#allocation64_spill] sm:$0xff]  ;;  %v10672_v41 = vld [vmem:[#allocation65_spill] sm:$0xff] }
 0x705   :  { %6873 = vmatpush1.bf16.msra.mxu0 %v10662_v45  ;;  %6937 = vmatpush1.bf16.msra.mxu1 %v10663_v19  ;;  %v10673_v45 = vld [vmem:[#allocation66_spill] sm:$0xff]  ;;  %v10674_v19 = vld [vmem:[#allocation67_spill] sm:$0xff] }
 0x706   :  { %6875 = vmatprep.subr.bf16.mxu0 %v10664_v8  ;;  %6939 = vmatprep.subr.bf16.mxu1 %v10665_v62  ;;  %v10675_v8 = vld [vmem:[#allocation68_spill] sm:$0xff]  ;;  %v10676_v62 = vld [vmem:[#allocation69_spill] sm:$0xff] }
 0x709   :  { %6877 = vmatpush1.bf16.msra.mxu0 %v10666_v36  ;;  %6941 = vmatpush1.bf16.msra.mxu1 %v10667_v53  ;;  %v10677_v36 = vld [vmem:[#allocation70_spill] sm:$0xff]  ;;  %v10678_v53 = vld [vmem:[#allocation71_spill] sm:$0xff] }
 0x70a   :  { %6879 = vmatprep.subr.bf16.mxu0 %v10668_v16  ;;  %6943 = vmatprep.subr.bf16.mxu1 %v10669_v58  ;;  %v10679_v16 = vld [vmem:[#allocation72_spill] sm:$0xff]  ;;  %v10680_v58 = vld [vmem:[#allocation73_spill] sm:$0xff] }
 0x70d   :  { %6881 = vmatpush1.bf16.msra.mxu0 %v10670_v7  ;;  %6945 = vmatpush1.bf16.msra.mxu1 %v10671_v22  ;;  %v10681_v7 = vld [vmem:[#allocation74_spill] sm:$0xff]  ;;  %v10682_v22 = vld [vmem:[#allocation75_spill] sm:$0xff] }
 0x70e   :  { %6883 = vmatprep.subr.bf16.mxu0 %v10672_v41  ;;  %6947 = vmatprep.subr.bf16.mxu1 %v10673_v45  ;;  %v10683_v41 = vld [vmem:[#allocation76_spill] sm:$0xff]  ;;  %v10684_v45 = vld [vmem:[#allocation77_spill] sm:$0xff] }
 0x711   :  { %6885 = vmatpush1.bf16.msra.mxu0 %v10674_v19  ;;  %6949 = vmatpush1.bf16.msra.mxu1 %v10675_v8  ;;  %v10685_v19 = vld [vmem:[#allocation78_spill] sm:$0xff]  ;;  %v10686_v8 = vld [vmem:[#allocation79_spill] sm:$0xff] }
 0x712   :  { %6887 = vmatprep.subr.bf16.mxu0 %v10676_v62  ;;  %6951 = vmatprep.subr.bf16.mxu1 %v10677_v36  ;;  %v10687_v62 = vld [vmem:[#allocation80_spill] sm:$0xff]  ;;  %v10688_v36 = vld [vmem:[#allocation81_spill] sm:$0xff] }
 0x715   :  { %6889 = vmatpush1.bf16.msra.mxu0 %v10678_v53  ;;  %6953 = vmatpush1.bf16.msra.mxu1 %v10679_v16  ;;  %v10689_v53 = vld [vmem:[#allocation82_spill] sm:$0xff]  ;;  %v10690_v16 = vld [vmem:[#allocation83_spill] sm:$0xff] }
 0x716   :  { %6891 = vmatprep.subr.bf16.mxu0 %v10680_v58  ;;  %6955 = vmatprep.subr.bf16.mxu1 %v10681_v7  ;;  %v10691_v58 = vld [vmem:[#allocation84_spill] sm:$0xff]  ;;  %v10692_v7 = vld [vmem:[#allocation85_spill] sm:$0xff] }
 0x719   :  { %6893 = vmatpush1.bf16.msra.mxu0 %v10682_v22  ;;  %6957 = vmatpush1.bf16.msra.mxu1 %v10683_v41  ;;  %v10693_v22 = vld [vmem:[#allocation86_spill] sm:$0xff] }
 0x71a   :  { %6895 = vmatprep.subr.bf16.mxu0 %v10684_v45  ;;  %6959 = vmatprep.subr.bf16.mxu1 %v10685_v19 }
 0x71d   :  { %6897 = vmatpush1.bf16.msra.mxu0 %v10686_v8  ;;  %6961 = vmatpush1.bf16.msra.mxu1 %v10687_v62 }
 0x71e   :  { %6899 = vmatprep.subr.bf16.mxu0 %v10688_v36  ;;  %6963 = vmatprep.subr.bf16.mxu1 %v10689_v53 }
 0x721   :  { %6901 = vmatpush1.bf16.msra.mxu0 %v10690_v16  ;;  %6965 = vmatpush1.bf16.msra.mxu1 %v10691_v58 }
 0x722   :  { %6967 = vmatprep.subr.bf16.mxu0 %v10692_v7  ;;  %7031 = vmatprep.subr.bf16.mxu1 %v10693_v22  ;;  %v3392_v22 = vrot.slane %v9237_v60, 7 }
 0x777   :  { %v3102_v41 = vpop.f32.mrb[20].mxu0  ;;  %v3173_v45 = vpop.f32.mrb[20].mxu1 }
 0x778   :  { %v3330_v10 = vrot.slane %v3173_v45, 4  ;;  %v3104_v19 = vpop.f32.mrb[21].mxu0  ;;  %v3175_v3 = vpop.f32.mrb[21].mxu1 }
 0x779   :  { %v3331_v8 = vrot.slane %v3175_v3, 4 }
 0x77a   :  { %v3346_v62 = vadd.f32 %v10694_v54, %v3330_v10  ;;  %v3328_v54 = vrot.slane %v3102_v41, 4 }
 0x77b   :  { %v3347_v36 = vadd.f32 %v10695_v50, %v3331_v8  ;;  %v3329_v8 = vrot.slane %v3104_v19, 4 }
 0x77c   :  { %v4927_v26 = vmul.f32 -1.442695, %v3346_v62  ;;  %v3344_v62 = vadd.f32 %v10409_v49, %v3328_v54 }
 0x77d   :  { %v4928_v53 = vmul.f32 -1.442695, %v3347_v36 }
 0x77e   :  { %7821 = vpow2.f32 %v4927_v26  ;;  %v3345_v26 = vadd.f32 %v10410_v1, %v3329_v8  ;;  %v4925_v36 = vmul.f32 -1.442695, %v3344_v62 }
 0x77f   :  { %7823 = vpow2.f32 %v4928_v53 }
 0x780   :  { %v4926_v53 = vmul.f32 -1.442695, %v3345_v26 }
 0x788   :  { %v7822_v16 = vpop.eup %7821 }
 0x789   :  { %v3370_v58 = vadd.f32 1.0, %v7822_v16  ;;  %v7824_v48 = vpop.eup %7823 }
 0x78a   :  { %v3371_v7 = vadd.f32 1.0, %v7824_v48 }
 0x78b   :  { %7825 = vrcp.f32 %v3370_v58 }
 0x78c   :  { %7827 = vrcp.f32 %v3371_v7 }
 0x78d   :  { %7829 = vpow2.f32 %v4925_v36 }
 0x78e   :  { %7831 = vpow2.f32 %v4926_v53 }
 0x795   :  { %v7826_v45 = vpop.eup %7825 }
 0x796   :  { %v3396_v3 = vmul.f32 %v7826_v45, %v3392_v22  ;;  %v7828_v11 = vpop.eup %7827 }
 0x797   :  { %v3397_v10 = vmul.f32 %v7828_v11, %v3393_v43  ;;  %v7830_v48 = vpop.eup %7829 }
 0x798   :  { %v7832_v16 = vpop.eup %7831  ;;  %v3358_v58 = vadd.f32 1.0, %v7830_v48 }
 0x799   :  { %v3359_v60 = vadd.f32 1.0, %v7832_v16 }
 0x79a   :  { %7833 = vrcp.f32 %v3358_v58 }
 0x79b   :  { %7835 = vrcp.f32 %v3359_v60 }
 0x7b7   :  { %v3244_v7 = vpop.f32.mrb[22].mxu0  ;;  %v3315_v50 = vpop.f32.mrb[22].mxu1 }
 0x7b8   :  { %v3332_v39 = vrot.slane %v3244_v7, 4  ;;  %v3334_v22 = vrot.slane %v3315_v50, 4  ;;  %v3246_v45 = vpop.f32.mrb[23].mxu0  ;;  %v3317_v11 = vpop.f32.mrb[23].mxu1 }
 0x7b9   :  { %v3333_v43 = vrot.slane %v3246_v45, 4  ;;  %v3335_v41 = vrot.slane %v3317_v11, 4  ;;  %v7834_v50 = vpop.eup %7833 }
 0x7ba   :  { %v3348_v54 = vadd.f32 %v8753_v23, %v3332_v39  ;;  %v3350_v19 = vadd.f32 %v8755_v59, %v3334_v22  ;;  %v7836_v53 = vpop.eup %7835 }
 0x7bb   :  { %v3349_v8 = vadd.f32 %v8757_v25, %v3333_v43  ;;  %v3351_v62 = vadd.f32 %v8759_v51, %v3335_v41 }
 0x7bc   :  { %7837 = vtanh.f32 %v3348_v54  ;;  %v4929_v26 = vmul.f32 -1.442695, %v3350_v19 }
 0x7bd   :  { %7839 = vtanh.f32 %v3349_v8  ;;  %v4930_v36 = vmul.f32 -1.442695, %v3351_v62 }
 0x7be   :  { %7841 = vpow2.f32 %v4929_v26 }
 0x7bf   :  { %7843 = vpow2.f32 %v4930_v36 }
 0x7c6   :  { %v7838_v48 = vpop.eup %7837 }
 0x7c7   :  { %v7840_v16 = vpop.eup %7839  ;;  %v3398_v58 = vmul.f32 %v7838_v48, %v7834_v50 }
 0x7c8   :  { %v7842_v7 = vpop.eup %7841  ;;  %v3399_v39 = vmul.f32 %v7840_v16, %v7836_v53 }
 0x7c9   :  { %v7844_v45 = vpop.eup %7843  ;;  %v9391_v22 = vadd.f32 %v3398_v58, %v3396_v3  ;;  %v3384_v60 = vadd.f32 1.0, %v7842_v7  ;;  %v10696_v58 = vld [vmem:[#allocation126_spill] sm:$0xff]  ;;  %v10697_v7 = vld [vmem:[#allocation127_spill] sm:$0xff] }
 0x7ca   :  { %v9393_v11 = vadd.f32 %v3399_v39, %v3397_v10  ;;  %v3385_v43 = vadd.f32 1.0, %v7844_v45  ;;  %v10698_v39 = vld [vmem:[#allocation128_spill] sm:$0xff]  ;;  %v10699_v45 = vld [vmem:[#allocation129_spill] sm:$0xff] }
 0x7cb   :  { %7845 = vtanh.f32 %v9391_v22 }
 0x7cc   :  { %7847 = vrcp.f32 %v3384_v60  ;;  %v10700_v60 = vld [vmem:[#allocation130_spill] sm:$0xff] }
 0x7cd   :  { %7849 = vtanh.f32 %v9393_v11 }
 0x7ce   :  { %7851 = vrcp.f32 %v3385_v43  ;;  %v10701_v43 = vld [vmem:[#allocation131_spill] sm:$0xff] }
 0x7d5   :  { %v7846_v41 = vpop.eup %7845 }
 0x7d6   :  { %v7848_v54 = vpop.eup %7847 }
 0x7d7   :  { %v7850_v19 = vpop.eup %7849  ;;  %v3404_v8 = vmul.f32 %v7848_v54, %v7846_v41  ;;  %v10702_v41 = vld [vmem:[#allocation132_spill] sm:$0xff]  ;;  %v10703_v54 = vld [vmem:[#allocation133_spill] sm:$0xff] }
 0x7d8   :  { %v7852_v62 = vpop.eup %7851 }
 0x7d9   :  { %v3405_v26 = vmul.f32 %v7852_v62, %v7850_v19  ;;  %v3406_v36 = vmax.f32 %v3404_v8, 0.0  ;;  %v9397_v53 = vrot.slane %v3404_v8, 4  ;;  %v10704_v19 = vld [vmem:[#allocation134_spill] sm:$0xff]  ;;  %v10705_v8 = vld [vmem:[#allocation135_spill] sm:$0xff]  ;;  %v10706_v62 = vld [vmem:[#allocation136_spill] sm:$0xff] }
 0x7db   :  { %v3407_v50 = vmax.f32 %v3405_v26, 0.0  ;;  %v3432_v3 = vrot.slane %v3405_v26, 4  ;;  %v10707_v26 = vld [vmem:[#allocation137_spill] sm:$0xff] }
 0x7dd   :  { %3499 = vmatprep.mubr.f32.mxu0 %v3432_v3  ;;  %3570 = vmatprep.mubr.f32.mxu1 %v3432_v3  ;;  %v3410_v10 = vcombine.high %v3406_v36, %v3407_v50  ;;  %v10708_v36 = vld [vmem:[#allocation138_spill] sm:$0xff]  ;;  %v10709_v50 = vld [vmem:[#allocation139_spill] sm:$0xff] }
 0x7de   :  { %3500 = vmatmul.mubr.f32.vlgmr.msra.gmra.mrb[24].mxu0 %v9397_v53  ;;  %3571 = vmatmul.mubr.f32.vlgmr.msra.gmra.mrb[24].mxu1 %v9397_v53 }
 0x7df   :  { %6969 = vmatpush1.bf16.msra.mxu0 %v10316_v4  ;;  %7033 = vmatpush1.bf16.msra.mxu1 %v10317_v63  ;;  %v3417_v48 = vrot.slane %v3410_v10, %v8777_v27  ;;  %v10711_v10 = vld [vmem:[#allocation141_spill] sm:$0xff] }
 0x7e0   :  { %3641 = vmatprep.mubr.f32.mxu0 %v3432_v3  ;;  %3712 = vmatprep.mubr.f32.mxu1 %v3432_v3  ;;  %v10710_v3 = vld [vmem:[#allocation140_spill] sm:$0xff] }
 0x7e1   :  { %6971 = vmatprep.subr.bf16.mxu0 %v10318_v9  ;;  %7035 = vmatprep.subr.bf16.mxu1 %v10319_v6  ;;  %v3424_v16 = vrot.slane %v3417_v48, %v8777_v27  ;;  %v10712_v48 = vld [vmem:[#allocation142_spill] sm:$0xff] }
 0x7e3   :  { %6973 = vmatpush1.bf16.msra.mxu0 %v10323_v12  ;;  %7037 = vmatpush1.bf16.msra.mxu1 %v10411_v14  ;;  %3427 = vst.msk [vmem:[#allocation2 + $0x4] ss:$8 sm:$0x3] %vm8786_vm0, %v3424_v16  ;;  %v10713_v16 = vld [vmem:[#allocation143_spill] sm:$0xff] }
 0x7e4   :  { %6975 = vmatprep.subr.bf16.mxu0 %v10412_v37  ;;  %7039 = vmatprep.subr.bf16.mxu1 %v10413_v33 }
 0x7e7   :  { %6977 = vmatpush1.bf16.msra.mxu0 %v10415_v57  ;;  %7041 = vmatpush1.bf16.msra.mxu1 %v10416_v32 }
 0x7e8   :  { %6979 = vmatprep.subr.bf16.mxu0 %v10417_v34  ;;  %7043 = vmatprep.subr.bf16.mxu1 %v10506_v21 }
 0x7eb   :  { %6981 = vmatpush1.bf16.msra.mxu0 %v10507_v56  ;;  %7045 = vmatpush1.bf16.msra.mxu1 %v10508_v55 }
 0x7ec   :  { %6983 = vmatprep.subr.bf16.mxu0 %v10509_v52  ;;  %7047 = vmatprep.subr.bf16.mxu1 %v10510_v20 }
 0x7ef   :  { %6985 = vmatpush1.bf16.msra.mxu0 %v10511_v29  ;;  %7049 = vmatpush1.bf16.msra.mxu1 %v10512_v40 }
 0x7f0   :  { %6987 = vmatprep.subr.bf16.mxu0 %v10513_v0  ;;  %7051 = vmatprep.subr.bf16.mxu1 %v10514_v30 }
 0x7f3   :  { %6989 = vmatpush1.bf16.msra.mxu0 %v10515_v31  ;;  %7053 = vmatpush1.bf16.msra.mxu1 %v10516_v35 }
 0x7f4   :  { %6991 = vmatprep.subr.bf16.mxu0 %v10517_v42  ;;  %7055 = vmatprep.subr.bf16.mxu1 %v10518_v17 }
 0x7f7   :  { %6993 = vmatpush1.bf16.msra.mxu0 %v10519_v38  ;;  %7057 = vmatpush1.bf16.msra.mxu1 %v10520_v46 }
 0x7f8   :  { %6995 = vmatprep.subr.bf16.mxu0 %v10521_v44  ;;  %7059 = vmatprep.subr.bf16.mxu1 %v10522_v18 }
 0x7fb   :  { %6997 = vmatpush1.bf16.msra.mxu0 %v10435_v2  ;;  %7061 = vmatpush1.bf16.msra.mxu1 %v10523_v28 }
 0x7fc   :  { %6999 = vmatprep.subr.bf16.mxu0 %v10437_v13  ;;  %7063 = vmatprep.subr.bf16.mxu1 %v10438_v61 }
 0x7ff   :  { %7001 = vmatpush1.bf16.msra.mxu0 %v10439_v15  ;;  %7065 = vmatpush1.bf16.msra.mxu1 %v10440_v24 }
 0x800   :  { %7003 = vmatprep.subr.bf16.mxu0 %v10441_v5  ;;  %7067 = vmatprep.subr.bf16.mxu1 %v10696_v58 }
 0x803   :  { %7005 = vmatpush1.bf16.msra.mxu0 %v10697_v7  ;;  %7069 = vmatpush1.bf16.msra.mxu1 %v10698_v39  ;;  %v3792_v7 = vrot.slane %v9393_v11, 7 }
 0x804   :  { %7007 = vmatprep.subr.bf16.mxu0 %v10699_v45  ;;  %7071 = vmatprep.subr.bf16.mxu1 %v10700_v60  ;;  %v10790_v60 = vld [vmem:[#allocation114_spill] sm:$0xff] }
 0x807   :  { %7009 = vmatpush1.bf16.msra.mxu0 %v10701_v43  ;;  %7073 = vmatpush1.bf16.msra.mxu1 %v10702_v41  ;;  %v10789_v43 = vld [vmem:[#allocation112_spill] sm:$0xff] }
 0x808   :  { %7011 = vmatprep.subr.bf16.mxu0 %v10703_v54  ;;  %7075 = vmatprep.subr.bf16.mxu1 %v10704_v19  ;;  %v10714_v54 = vld [vmem:[#allocation144_spill] sm:$0xff]  ;;  %v10715_v19 = vld [vmem:[#allocation145_spill] sm:$0xff] }
 0x80b   :  { %7013 = vmatpush1.bf16.msra.mxu0 %v10705_v8  ;;  %7077 = vmatpush1.bf16.msra.mxu1 %v10706_v62  ;;  %v10716_v8 = vld [vmem:[#allocation146_spill] sm:$0xff]  ;;  %v10717_v62 = vld [vmem:[#allocation147_spill] sm:$0xff] }
 0x80c   :  { %7015 = vmatprep.subr.bf16.mxu0 %v10707_v26  ;;  %7079 = vmatprep.subr.bf16.mxu1 %v10708_v36  ;;  %v10718_v26 = vld [vmem:[#allocation148_spill] sm:$0xff]  ;;  %v10719_v36 = vld [vmem:[#allocation149_spill] sm:$0xff] }
 0x80f   :  { %7017 = vmatpush1.bf16.msra.mxu0 %v10709_v50  ;;  %7081 = vmatpush1.bf16.msra.mxu1 %v10710_v3  ;;  %v10720_v50 = vld [vmem:[#allocation150_spill] sm:$0xff]  ;;  %v10721_v3 = vld [vmem:[#allocation151_spill] sm:$0xff] }
 0x810   :  { %7019 = vmatprep.subr.bf16.mxu0 %v10711_v10  ;;  %7083 = vmatprep.subr.bf16.mxu1 %v10712_v48  ;;  %v10722_v10 = vld [vmem:[#allocation152_spill] sm:$0xff]  ;;  %v10723_v48 = vld [vmem:[#allocation21_spill] sm:$0xff] }
 0x813   :  { %7021 = vmatpush1.bf16.msra.mxu0 %v10713_v16  ;;  %7085 = vmatpush1.bf16.msra.mxu1 %v10714_v54  ;;  %v10724_v16 = vld [vmem:[#allocation22_spill] sm:$0xff] }
 0x814   :  { %7023 = vmatprep.subr.bf16.mxu0 %v10715_v19  ;;  %7087 = vmatprep.subr.bf16.mxu1 %v10716_v8  ;;  %v10725_v8 = vld [vmem:[#allocation23_spill] sm:$0xff]  ;;  %v10734_v19 = vld [vmem:[#allocation32_spill] sm:$0xff] }
 0x817   :  { %7025 = vmatpush1.bf16.msra.mxu0 %v10717_v62  ;;  %7089 = vmatpush1.bf16.msra.mxu1 %v10718_v26  ;;  %v10726_v62 = vld [vmem:[#allocation24_spill] sm:$0xff]  ;;  %v10727_v26 = vld [vmem:[#allocation25_spill] sm:$0xff] }
 0x818   :  { %7027 = vmatprep.subr.bf16.mxu0 %v10719_v36  ;;  %7091 = vmatprep.subr.bf16.mxu1 %v10720_v50  ;;  %v10728_v36 = vld [vmem:[#allocation26_spill] sm:$0xff]  ;;  %v10729_v50 = vld [vmem:[#allocation27_spill] sm:$0xff] }
 0x81b   :  { %7029 = vmatpush1.bf16.msra.mxu0 %v10721_v3  ;;  %7093 = vmatpush1.bf16.msra.mxu1 %v10722_v10  ;;  %v10730_v3 = vld [vmem:[#allocation28_spill] sm:$0xff]  ;;  %v10731_v10 = vld [vmem:[#allocation29_spill] sm:$0xff] }
 0x81c   :  { %7095 = vmatprep.subr.bf16.mxu0 %v10723_v48  ;;  %7159 = vmatprep.subr.bf16.mxu1 %v10724_v16  ;;  %v10732_v48 = vld [vmem:[#allocation30_spill] sm:$0xff]  ;;  %v10733_v16 = vld [vmem:[#allocation31_spill] sm:$0xff] }
 0x81e   :  { %3642 = vmatmul.mubr.f32.vlgmr.msra.gmra.mrb[26].mxu0 %v9397_v53  ;;  %3713 = vmatmul.mubr.f32.vlgmr.msra.gmra.mrb[26].mxu1 %v9397_v53  ;;  %v10735_v53 = vld [vmem:[#allocation33_spill] sm:$0xff] }
 0x81f   :  { %7097 = vmatpush1.bf16.msra.mxu0 %v10725_v8  ;;  %7161 = vmatpush1.bf16.msra.mxu1 %v10726_v62  ;;  %v10736_v8 = vld [vmem:[#allocation34_spill] sm:$0xff]  ;;  %v10737_v62 = vld [vmem:[#allocation35_spill] sm:$0xff] }
 0x820   :  { %7099 = vmatprep.subr.bf16.mxu0 %v10727_v26  ;;  %7163 = vmatprep.subr.bf16.mxu1 %v10728_v36  ;;  %v10738_v26 = vld [vmem:[#allocation36_spill] sm:$0xff]  ;;  %v10739_v36 = vld [vmem:[#allocation37_spill] sm:$0xff] }
 0x823   :  { %7101 = vmatpush1.bf16.msra.mxu0 %v10729_v50  ;;  %7165 = vmatpush1.bf16.msra.mxu1 %v10730_v3  ;;  %v10740_v50 = vld [vmem:[#allocation38_spill] sm:$0xff]  ;;  %v10741_v3 = vld [vmem:[#allocation39_spill] sm:$0xff] }
 0x824   :  { %7103 = vmatprep.subr.bf16.mxu0 %v10731_v10  ;;  %7167 = vmatprep.subr.bf16.mxu1 %v10732_v48  ;;  %v10742_v10 = vld [vmem:[#allocation40_spill] sm:$0xff]  ;;  %v10743_v48 = vld [vmem:[#allocation41_spill] sm:$0xff] }
 0x827   :  { %7105 = vmatpush1.bf16.msra.mxu0 %v10733_v16  ;;  %7169 = vmatpush1.bf16.msra.mxu1 %v10734_v19  ;;  %v10744_v16 = vld [vmem:[#allocation42_spill] sm:$0xff]  ;;  %v10745_v19 = vld [vmem:[#allocation43_spill] sm:$0xff] }
 0x828   :  { %7107 = vmatprep.subr.bf16.mxu0 %v10735_v53  ;;  %7171 = vmatprep.subr.bf16.mxu1 %v10736_v8  ;;  %v10746_v53 = vld [vmem:[#allocation44_spill] sm:$0xff]  ;;  %v10747_v8 = vld [vmem:[#allocation45_spill] sm:$0xff] }
 0x82b   :  { %7109 = vmatpush1.bf16.msra.mxu0 %v10737_v62  ;;  %7173 = vmatpush1.bf16.msra.mxu1 %v10738_v26  ;;  %v10748_v62 = vld [vmem:[#allocation46_spill] sm:$0xff]  ;;  %v10749_v26 = vld [vmem:[#allocation47_spill] sm:$0xff] }
 0x82c   :  { %7111 = vmatprep.subr.bf16.mxu0 %v10739_v36  ;;  %7175 = vmatprep.subr.bf16.mxu1 %v10740_v50  ;;  %v10750_v36 = vld [vmem:[#allocation48_spill] sm:$0xff]  ;;  %v10751_v50 = vld [vmem:[#allocation49_spill] sm:$0xff] }
 0x82f   :  { %7113 = vmatpush1.bf16.msra.mxu0 %v10741_v3  ;;  %7177 = vmatpush1.bf16.msra.mxu1 %v10742_v10  ;;  %v10752_v3 = vld [vmem:[#allocation50_spill] sm:$0xff]  ;;  %v10753_v10 = vld [vmem:[#allocation51_spill] sm:$0xff] }
 0x830   :  { %7115 = vmatprep.subr.bf16.mxu0 %v10743_v48  ;;  %7179 = vmatprep.subr.bf16.mxu1 %v10744_v16  ;;  %v10754_v48 = vld [vmem:[#allocation52_spill] sm:$0xff]  ;;  %v10755_v16 = vld [vmem:[#allocation53_spill] sm:$0xff] }
 0x833   :  { %7117 = vmatpush1.bf16.msra.mxu0 %v10745_v19  ;;  %7181 = vmatpush1.bf16.msra.mxu1 %v10746_v53  ;;  %v10756_v19 = vld [vmem:[#allocation54_spill] sm:$0xff]  ;;  %v10757_v53 = vld [vmem:[#allocation55_spill] sm:$0xff] }
 0x834   :  { %7119 = vmatprep.subr.bf16.mxu0 %v10747_v8  ;;  %7183 = vmatprep.subr.bf16.mxu1 %v10748_v62  ;;  %v10758_v8 = vld [vmem:[#allocation56_spill] sm:$0xff]  ;;  %v10759_v62 = vld [vmem:[#allocation57_spill] sm:$0xff] }
 0x837   :  { %7121 = vmatpush1.bf16.msra.mxu0 %v10749_v26  ;;  %7185 = vmatpush1.bf16.msra.mxu1 %v10750_v36  ;;  %v10760_v26 = vld [vmem:[#allocation58_spill] sm:$0xff]  ;;  %v10761_v36 = vld [vmem:[#allocation59_spill] sm:$0xff] }
 0x838   :  { %7123 = vmatprep.subr.bf16.mxu0 %v10751_v50  ;;  %7187 = vmatprep.subr.bf16.mxu1 %v10752_v3  ;;  %v10762_v50 = vld [vmem:[#allocation60_spill] sm:$0xff]  ;;  %v10763_v3 = vld [vmem:[#allocation61_spill] sm:$0xff] }
 0x83b   :  { %7125 = vmatpush1.bf16.msra.mxu0 %v10753_v10  ;;  %7189 = vmatpush1.bf16.msra.mxu1 %v10754_v48  ;;  %v10764_v10 = vld [vmem:[#allocation62_spill] sm:$0xff]  ;;  %v10765_v48 = vld [vmem:[#allocation63_spill] sm:$0xff] }
 0x83c   :  { %7127 = vmatprep.subr.bf16.mxu0 %v10755_v16  ;;  %7191 = vmatprep.subr.bf16.mxu1 %v10756_v19  ;;  %v10766_v16 = vld [vmem:[#allocation64_spill] sm:$0xff]  ;;  %v10767_v19 = vld [vmem:[#allocation65_spill] sm:$0xff] }
 0x83f   :  { %7129 = vmatpush1.bf16.msra.mxu0 %v10757_v53  ;;  %7193 = vmatpush1.bf16.msra.mxu1 %v10758_v8  ;;  %v10768_v53 = vld [vmem:[#allocation66_spill] sm:$0xff]  ;;  %v10769_v8 = vld [vmem:[#allocation67_spill] sm:$0xff] }
 0x840   :  { %7131 = vmatprep.subr.bf16.mxu0 %v10759_v62  ;;  %7195 = vmatprep.subr.bf16.mxu1 %v10760_v26  ;;  %v10770_v62 = vld [vmem:[#allocation68_spill] sm:$0xff]  ;;  %v10771_v26 = vld [vmem:[#allocation69_spill] sm:$0xff] }
 0x843   :  { %7133 = vmatpush1.bf16.msra.mxu0 %v10761_v36  ;;  %7197 = vmatpush1.bf16.msra.mxu1 %v10762_v50  ;;  %v10772_v36 = vld [vmem:[#allocation70_spill] sm:$0xff]  ;;  %v10773_v50 = vld [vmem:[#allocation71_spill] sm:$0xff] }
 0x844   :  { %7135 = vmatprep.subr.bf16.mxu0 %v10763_v3  ;;  %7199 = vmatprep.subr.bf16.mxu1 %v10764_v10  ;;  %v10774_v3 = vld [vmem:[#allocation72_spill] sm:$0xff]  ;;  %v10775_v10 = vld [vmem:[#allocation73_spill] sm:$0xff] }
 0x847   :  { %7137 = vmatpush1.bf16.msra.mxu0 %v10765_v48  ;;  %7201 = vmatpush1.bf16.msra.mxu1 %v10766_v16  ;;  %v10776_v48 = vld [vmem:[#allocation74_spill] sm:$0xff]  ;;  %v10777_v16 = vld [vmem:[#allocation75_spill] sm:$0xff] }
 0x848   :  { %7139 = vmatprep.subr.bf16.mxu0 %v10767_v19  ;;  %7203 = vmatprep.subr.bf16.mxu1 %v10768_v53  ;;  %v10778_v19 = vld [vmem:[#allocation76_spill] sm:$0xff]  ;;  %v10779_v53 = vld [vmem:[#allocation77_spill] sm:$0xff] }
 0x84b   :  { %7141 = vmatpush1.bf16.msra.mxu0 %v10769_v8  ;;  %7205 = vmatpush1.bf16.msra.mxu1 %v10770_v62  ;;  %v10780_v8 = vld [vmem:[#allocation78_spill] sm:$0xff]  ;;  %v10781_v62 = vld [vmem:[#allocation79_spill] sm:$0xff] }
 0x84c   :  { %7143 = vmatprep.subr.bf16.mxu0 %v10771_v26  ;;  %7207 = vmatprep.subr.bf16.mxu1 %v10772_v36  ;;  %v10782_v26 = vld [vmem:[#allocation80_spill] sm:$0xff]  ;;  %v10783_v36 = vld [vmem:[#allocation81_spill] sm:$0xff] }
 0x84f   :  { %7145 = vmatpush1.bf16.msra.mxu0 %v10773_v50  ;;  %7209 = vmatpush1.bf16.msra.mxu1 %v10774_v3  ;;  %v10784_v50 = vld [vmem:[#allocation82_spill] sm:$0xff]  ;;  %v10785_v3 = vld [vmem:[#allocation83_spill] sm:$0xff] }
 0x850   :  { %7147 = vmatprep.subr.bf16.mxu0 %v10775_v10  ;;  %7211 = vmatprep.subr.bf16.mxu1 %v10776_v48  ;;  %v10786_v10 = vld [vmem:[#allocation84_spill] sm:$0xff]  ;;  %v10787_v48 = vld [vmem:[#allocation85_spill] sm:$0xff] }
 0x853   :  { %7149 = vmatpush1.bf16.msra.mxu0 %v10777_v16  ;;  %7213 = vmatpush1.bf16.msra.mxu1 %v10778_v19  ;;  %v10788_v16 = vld [vmem:[#allocation86_spill] sm:$0xff] }
 0x854   :  { %7151 = vmatprep.subr.bf16.mxu0 %v10779_v53  ;;  %7215 = vmatprep.subr.bf16.mxu1 %v10780_v8 }
 0x857   :  { %7153 = vmatpush1.bf16.msra.mxu0 %v10781_v62  ;;  %7217 = vmatpush1.bf16.msra.mxu1 %v10782_v26 }
 0x858   :  { %7155 = vmatprep.subr.bf16.mxu0 %v10783_v36  ;;  %7219 = vmatprep.subr.bf16.mxu1 %v10784_v50 }
 0x85b   :  { %7157 = vmatpush1.bf16.msra.mxu0 %v10785_v3  ;;  %7221 = vmatpush1.bf16.msra.mxu1 %v10786_v10 }
 0x85c   :  { %7223 = vmatprep.subr.bf16.mxu0 %v10787_v48  ;;  %7287 = vmatprep.subr.bf16.mxu1 %v10788_v16  ;;  %v3791_v16 = vrot.slane %v9391_v22, 7 }
 0x8b1   :  { %v3501_v19 = vpop.f32.mrb[24].mxu0  ;;  %v3572_v53 = vpop.f32.mrb[24].mxu1 }
 0x8b2   :  { %v3729_v54 = vrot.slane %v3572_v53, 3  ;;  %v3503_v8 = vpop.f32.mrb[25].mxu0  ;;  %v3574_v41 = vpop.f32.mrb[25].mxu1 }
 0x8b3   :  { %v3730_v62 = vrot.slane %v3574_v41, 3 }
 0x8b4   :  { %v3745_v26 = vadd.f32 %v10789_v43, %v3729_v54  ;;  %v3727_v43 = vrot.slane %v3501_v19, 3 }
 0x8b5   :  { %v3746_v36 = vadd.f32 %v10790_v60, %v3730_v62  ;;  %v3728_v62 = vrot.slane %v3503_v8, 3 }
 0x8b6   :  { %v4933_v45 = vmul.f32 -1.442695, %v3745_v26  ;;  %v3743_v26 = vadd.f32 %v10409_v49, %v3727_v43 }
 0x8b7   :  { %v4934_v50 = vmul.f32 -1.442695, %v3746_v36 }
 0x8b8   :  { %7853 = vpow2.f32 %v4933_v45  ;;  %v3744_v45 = vadd.f32 %v10410_v1, %v3728_v62  ;;  %v4931_v36 = vmul.f32 -1.442695, %v3743_v26 }
 0x8b9   :  { %7855 = vpow2.f32 %v4934_v50 }
 0x8ba   :  { %v4932_v50 = vmul.f32 -1.442695, %v3744_v45 }
 0x8c2   :  { %v7854_v3 = vpop.eup %7853 }
 0x8c3   :  { %v3769_v10 = vadd.f32 1.0, %v7854_v3  ;;  %v7856_v39 = vpop.eup %7855 }
 0x8c4   :  { %v3770_v48 = vadd.f32 1.0, %v7856_v39 }
 0x8c5   :  { %7857 = vrcp.f32 %v3769_v10 }
 0x8c6   :  { %7859 = vrcp.f32 %v3770_v48 }
 0x8c7   :  { %7861 = vpow2.f32 %v4931_v36 }
 0x8c8   :  { %7863 = vpow2.f32 %v4932_v50 }
 0x8cf   :  { %v7858_v53 = vpop.eup %7857 }
 0x8d0   :  { %v3795_v41 = vmul.f32 %v7858_v53, %v3791_v16  ;;  %v7860_v58 = vpop.eup %7859 }
 0x8d1   :  { %v3796_v54 = vmul.f32 %v7860_v58, %v3792_v7  ;;  %v7862_v39 = vpop.eup %7861 }
 0x8d2   :  { %v7864_v3 = vpop.eup %7863  ;;  %v3757_v10 = vadd.f32 1.0, %v7862_v39 }
 0x8d3   :  { %v3758_v22 = vadd.f32 1.0, %v7864_v3 }
 0x8d4   :  { %7865 = vrcp.f32 %v3757_v10 }
 0x8d5   :  { %7867 = vrcp.f32 %v3758_v22 }
 0x8f1   :  { %v3643_v48 = vpop.f32.mrb[26].mxu0  ;;  %v3714_v60 = vpop.f32.mrb[26].mxu1 }
 0x8f2   :  { %v3731_v11 = vrot.slane %v3643_v48, 3  ;;  %v3733_v16 = vrot.slane %v3714_v60, 3  ;;  %v3645_v53 = vpop.f32.mrb[27].mxu0  ;;  %v3716_v58 = vpop.f32.mrb[27].mxu1 }
 0x8f3   :  { %v3732_v7 = vrot.slane %v3645_v53, 3  ;;  %v3734_v19 = vrot.slane %v3716_v58, 3  ;;  %v7866_v60 = vpop.eup %7865 }
 0x8f4   :  { %v3747_v43 = vadd.f32 %v8753_v23, %v3731_v11  ;;  %v3749_v8 = vadd.f32 %v8755_v59, %v3733_v16  ;;  %v7868_v50 = vpop.eup %7867 }
 0x8f5   :  { %v3748_v62 = vadd.f32 %v8757_v25, %v3732_v7  ;;  %v3750_v26 = vadd.f32 %v8759_v51, %v3734_v19 }
 0x8f6   :  { %7869 = vtanh.f32 %v3747_v43  ;;  %v4935_v45 = vmul.f32 -1.442695, %v3749_v8 }
 0x8f7   :  { %7871 = vtanh.f32 %v3748_v62  ;;  %v4936_v36 = vmul.f32 -1.442695, %v3750_v26 }
 0x8f8   :  { %7873 = vpow2.f32 %v4935_v45 }
 0x8f9   :  { %7875 = vpow2.f32 %v4936_v36 }
 0x900   :  { %v7870_v39 = vpop.eup %7869 }
 0x901   :  { %v7872_v3 = vpop.eup %7871  ;;  %v3797_v10 = vmul.f32 %v7870_v39, %v7866_v60 }
 0x902   :  { %v7874_v48 = vpop.eup %7873  ;;  %v3798_v11 = vmul.f32 %v7872_v3, %v7868_v50 }
 0x903   :  { %v7876_v53 = vpop.eup %7875  ;;  %v9545_v16 = vadd.f32 %v3797_v10, %v3795_v41  ;;  %v3783_v22 = vadd.f32 1.0, %v7874_v48  ;;  %v10791_v48 = vld [vmem:[#allocation126_spill] sm:$0xff] }
 0x904   :  { %v9547_v58 = vadd.f32 %v3798_v11, %v3796_v54  ;;  %v3784_v7 = vadd.f32 1.0, %v7876_v53  ;;  %v10792_v11 = vld [vmem:[#allocation127_spill] sm:$0xff]  ;;  %v10793_v53 = vld [vmem:[#allocation128_spill] sm:$0xff] }
 0x905   :  { %7877 = vtanh.f32 %v9545_v16 }
 0x906   :  { %7879 = vrcp.f32 %v3783_v22  ;;  %v10794_v22 = vld [vmem:[#allocation129_spill] sm:$0xff] }
 0x907   :  { %7881 = vtanh.f32 %v9547_v58 }
 0x908   :  { %7883 = vrcp.f32 %v3784_v7  ;;  %v10795_v7 = vld [vmem:[#allocation130_spill] sm:$0xff] }
 0x90f   :  { %v7878_v19 = vpop.eup %7877 }
 0x910   :  { %v7880_v43 = vpop.eup %7879 }
 0x911   :  { %v7882_v8 = vpop.eup %7881  ;;  %v3803_v62 = vmul.f32 %v7880_v43, %v7878_v19  ;;  %v10796_v19 = vld [vmem:[#allocation131_spill] sm:$0xff]  ;;  %v10797_v43 = vld [vmem:[#allocation132_spill] sm:$0xff] }
 0x912   :  { %v7884_v26 = vpop.eup %7883 }
 0x913   :  { %v3804_v45 = vmul.f32 %v7884_v26, %v7882_v8  ;;  %v3805_v36 = vmax.f32 %v3803_v62, 0.0  ;;  %v9551_v50 = vrot.slane %v3803_v62, 5  ;;  %v10798_v8 = vld [vmem:[#allocation133_spill] sm:$0xff]  ;;  %v10799_v62 = vld [vmem:[#allocation134_spill] sm:$0xff]  ;;  %v10800_v26 = vld [vmem:[#allocation135_spill] sm:$0xff] }
 0x915   :  { %v3806_v60 = vmax.f32 %v3804_v45, 0.0  ;;  %v3832_v41 = vrot.slane %v3804_v45, 5  ;;  %v10801_v45 = vld [vmem:[#allocation136_spill] sm:$0xff] }
 0x917   :  { %3899 = vmatprep.mubr.f32.mxu0 %v3832_v41  ;;  %3970 = vmatprep.mubr.f32.mxu1 %v3832_v41  ;;  %v3809_v54 = vcombine.high %v3805_v36, %v3806_v60  ;;  %v10802_v36 = vld [vmem:[#allocation137_spill] sm:$0xff]  ;;  %v10803_v60 = vld [vmem:[#allocation138_spill] sm:$0xff] }
 0x918   :  { %3900 = vmatmul.mubr.f32.vlgmr.msra.gmra.mrb[28].mxu0 %v9551_v50  ;;  %3971 = vmatmul.mubr.f32.vlgmr.msra.gmra.mrb[28].mxu1 %v9551_v50 }
 0x919   :  { %7225 = vmatpush1.bf16.msra.mxu0 %v10316_v4  ;;  %7289 = vmatpush1.bf16.msra.mxu1 %v10317_v63  ;;  %v3816_v39 = vrot.slane %v3809_v54, %v8777_v27  ;;  %v10805_v54 = vld [vmem:[#allocation140_spill] sm:$0xff] }
 0x91a   :  { %4041 = vmatprep.mubr.f32.mxu0 %v3832_v41  ;;  %4112 = vmatprep.mubr.f32.mxu1 %v3832_v41  ;;  %v10804_v41 = vld [vmem:[#allocation139_spill] sm:$0xff] }
 0x91b   :  { %7227 = vmatprep.subr.bf16.mxu0 %v10318_v9  ;;  %7291 = vmatprep.subr.bf16.mxu1 %v10319_v6  ;;  %v3817_v3 = vcombine.high %v3816_v39, %v3816_v39  ;;  %v10806_v39 = vld [vmem:[#allocation141_spill] sm:$0xff] }
 0x91d   :  { %7229 = vmatpush1.bf16.msra.mxu0 %v10323_v12  ;;  %7293 = vmatpush1.bf16.msra.mxu1 %v10411_v14  ;;  %v3824_v10 = vrot.slane %v3817_v3, %v8777_v27  ;;  %v10807_v3 = vld [vmem:[#allocation142_spill] sm:$0xff] }
 0x91e   :  { %7231 = vmatprep.subr.bf16.mxu0 %v10412_v37  ;;  %7295 = vmatprep.subr.bf16.mxu1 %v10413_v33 }
 0x91f   :  { %3827 = vst.msk [vmem:[#allocation2 + $0x5] ss:$8 sm:$0x3] %vm8786_vm0, %v3824_v10  ;;  %v10808_v10 = vld [vmem:[#allocation143_spill] sm:$0xff] }
 0x921   :  { %7233 = vmatpush1.bf16.msra.mxu0 %v10415_v57  ;;  %7297 = vmatpush1.bf16.msra.mxu1 %v10416_v32 }
 0x922   :  { %7235 = vmatprep.subr.bf16.mxu0 %v10417_v34  ;;  %7299 = vmatprep.subr.bf16.mxu1 %v10506_v21 }
 0x925   :  { %7237 = vmatpush1.bf16.msra.mxu0 %v10507_v56  ;;  %7301 = vmatpush1.bf16.msra.mxu1 %v10508_v55 }
 0x926   :  { %7239 = vmatprep.subr.bf16.mxu0 %v10509_v52  ;;  %7303 = vmatprep.subr.bf16.mxu1 %v10510_v20 }
 0x929   :  { %7241 = vmatpush1.bf16.msra.mxu0 %v10511_v29  ;;  %7305 = vmatpush1.bf16.msra.mxu1 %v10512_v40 }
 0x92a   :  { %7243 = vmatprep.subr.bf16.mxu0 %v10513_v0  ;;  %7307 = vmatprep.subr.bf16.mxu1 %v10514_v30 }
 0x92d   :  { %7245 = vmatpush1.bf16.msra.mxu0 %v10515_v31  ;;  %7309 = vmatpush1.bf16.msra.mxu1 %v10516_v35 }
 0x92e   :  { %7247 = vmatprep.subr.bf16.mxu0 %v10517_v42  ;;  %7311 = vmatprep.subr.bf16.mxu1 %v10518_v17 }
 0x931   :  { %7249 = vmatpush1.bf16.msra.mxu0 %v10519_v38  ;;  %7313 = vmatpush1.bf16.msra.mxu1 %v10520_v46 }
 0x932   :  { %7251 = vmatprep.subr.bf16.mxu0 %v10521_v44  ;;  %7315 = vmatprep.subr.bf16.mxu1 %v10522_v18 }
 0x935   :  { %7253 = vmatpush1.bf16.msra.mxu0 %v10435_v2  ;;  %7317 = vmatpush1.bf16.msra.mxu1 %v10523_v28 }
 0x936   :  { %7255 = vmatprep.subr.bf16.mxu0 %v10437_v13  ;;  %7319 = vmatprep.subr.bf16.mxu1 %v10438_v61 }
 0x939   :  { %7257 = vmatpush1.bf16.msra.mxu0 %v10439_v15  ;;  %7321 = vmatpush1.bf16.msra.mxu1 %v10440_v24 }
 0x93a   :  { %7259 = vmatprep.subr.bf16.mxu0 %v10441_v5  ;;  %7323 = vmatprep.subr.bf16.mxu1 %v10791_v48 }
 0x93d   :  { %7261 = vmatpush1.bf16.msra.mxu0 %v10792_v11  ;;  %7325 = vmatpush1.bf16.msra.mxu1 %v10793_v53  ;;  %v4192_v11 = vrot.slane %v9547_v58, 7 }
 0x93e   :  { %7263 = vmatprep.subr.bf16.mxu0 %v10794_v22  ;;  %7327 = vmatprep.subr.bf16.mxu1 %v10795_v7  ;;  %v10885_v7 = vld [vmem:[#allocation114_spill] sm:$0xff] }
 0x941   :  { %7265 = vmatpush1.bf16.msra.mxu0 %v10796_v19  ;;  %7329 = vmatpush1.bf16.msra.mxu1 %v10797_v43  ;;  %v10884_v19 = vld [vmem:[#allocation112_spill] sm:$0xff] }
 0x942   :  { %7267 = vmatprep.subr.bf16.mxu0 %v10798_v8  ;;  %7331 = vmatprep.subr.bf16.mxu1 %v10799_v62  ;;  %v10809_v8 = vld [vmem:[#allocation144_spill] sm:$0xff]  ;;  %v10810_v62 = vld [vmem:[#allocation145_spill] sm:$0xff] }
 0x945   :  { %7269 = vmatpush1.bf16.msra.mxu0 %v10800_v26  ;;  %7333 = vmatpush1.bf16.msra.mxu1 %v10801_v45  ;;  %v10811_v26 = vld [vmem:[#allocation146_spill] sm:$0xff]  ;;  %v10812_v45 = vld [vmem:[#allocation147_spill] sm:$0xff] }
 0x946   :  { %7271 = vmatprep.subr.bf16.mxu0 %v10802_v36  ;;  %7335 = vmatprep.subr.bf16.mxu1 %v10803_v60  ;;  %v10813_v36 = vld [vmem:[#allocation148_spill] sm:$0xff]  ;;  %v10814_v60 = vld [vmem:[#allocation149_spill] sm:$0xff] }
 0x949   :  { %7273 = vmatpush1.bf16.msra.mxu0 %v10804_v41  ;;  %7337 = vmatpush1.bf16.msra.mxu1 %v10805_v54  ;;  %v10815_v41 = vld [vmem:[#allocation150_spill] sm:$0xff]  ;;  %v10816_v54 = vld [vmem:[#allocation151_spill] sm:$0xff] }
 0x94a   :  { %7275 = vmatprep.subr.bf16.mxu0 %v10806_v39  ;;  %7339 = vmatprep.subr.bf16.mxu1 %v10807_v3  ;;  %v10817_v39 = vld [vmem:[#allocation152_spill] sm:$0xff]  ;;  %v10818_v3 = vld [vmem:[#allocation21_spill] sm:$0xff] }
 0x94d   :  { %7277 = vmatpush1.bf16.msra.mxu0 %v10808_v10  ;;  %7341 = vmatpush1.bf16.msra.mxu1 %v10809_v8  ;;  %v10819_v10 = vld [vmem:[#allocation22_spill] sm:$0xff] }
 0x94e   :  { %7279 = vmatprep.subr.bf16.mxu0 %v10810_v62  ;;  %7343 = vmatprep.subr.bf16.mxu1 %v10811_v26  ;;  %v10820_v26 = vld [vmem:[#allocation23_spill] sm:$0xff]  ;;  %v10829_v62 = vld [vmem:[#allocation32_spill] sm:$0xff] }
 0x951   :  { %7281 = vmatpush1.bf16.msra.mxu0 %v10812_v45  ;;  %7345 = vmatpush1.bf16.msra.mxu1 %v10813_v36  ;;  %v10821_v45 = vld [vmem:[#allocation24_spill] sm:$0xff]  ;;  %v10822_v36 = vld [vmem:[#allocation25_spill] sm:$0xff] }
 0x952   :  { %7283 = vmatprep.subr.bf16.mxu0 %v10814_v60  ;;  %7347 = vmatprep.subr.bf16.mxu1 %v10815_v41  ;;  %v10823_v60 = vld [vmem:[#allocation26_spill] sm:$0xff]  ;;  %v10824_v41 = vld [vmem:[#allocation27_spill] sm:$0xff] }
 0x955   :  { %7285 = vmatpush1.bf16.msra.mxu0 %v10816_v54  ;;  %7349 = vmatpush1.bf16.msra.mxu1 %v10817_v39  ;;  %v10825_v54 = vld [vmem:[#allocation28_spill] sm:$0xff]  ;;  %v10826_v39 = vld [vmem:[#allocation29_spill] sm:$0xff] }
 0x956   :  { %7351 = vmatprep.subr.bf16.mxu0 %v10818_v3  ;;  %7415 = vmatprep.subr.bf16.mxu1 %v10819_v10  ;;  %v10827_v3 = vld [vmem:[#allocation30_spill] sm:$0xff]  ;;  %v10828_v10 = vld [vmem:[#allocation31_spill] sm:$0xff] }
 0x958   :  { %4042 = vmatmul.mubr.f32.vlgmr.msra.gmra.mrb[30].mxu0 %v9551_v50  ;;  %4113 = vmatmul.mubr.f32.vlgmr.msra.gmra.mrb[30].mxu1 %v9551_v50  ;;  %v10830_v50 = vld [vmem:[#allocation33_spill] sm:$0xff] }
 0x959   :  { %7353 = vmatpush1.bf16.msra.mxu0 %v10820_v26  ;;  %7417 = vmatpush1.bf16.msra.mxu1 %v10821_v45  ;;  %v10831_v26 = vld [vmem:[#allocation34_spill] sm:$0xff]  ;;  %v10832_v45 = vld [vmem:[#allocation35_spill] sm:$0xff] }
 0x95a   :  { %7355 = vmatprep.subr.bf16.mxu0 %v10822_v36  ;;  %7419 = vmatprep.subr.bf16.mxu1 %v10823_v60  ;;  %v10833_v36 = vld [vmem:[#allocation36_spill] sm:$0xff]  ;;  %v10834_v60 = vld [vmem:[#allocation37_spill] sm:$0xff] }
 0x95d   :  { %7357 = vmatpush1.bf16.msra.mxu0 %v10824_v41  ;;  %7421 = vmatpush1.bf16.msra.mxu1 %v10825_v54  ;;  %v10835_v41 = vld [vmem:[#allocation38_spill] sm:$0xff]  ;;  %v10836_v54 = vld [vmem:[#allocation39_spill] sm:$0xff] }
 0x95e   :  { %7359 = vmatprep.subr.bf16.mxu0 %v10826_v39  ;;  %7423 = vmatprep.subr.bf16.mxu1 %v10827_v3  ;;  %v10837_v39 = vld [vmem:[#allocation40_spill] sm:$0xff]  ;;  %v10838_v3 = vld [vmem:[#allocation41_spill] sm:$0xff] }
 0x961   :  { %7361 = vmatpush1.bf16.msra.mxu0 %v10828_v10  ;;  %7425 = vmatpush1.bf16.msra.mxu1 %v10829_v62  ;;  %v10839_v10 = vld [vmem:[#allocation42_spill] sm:$0xff]  ;;  %v10840_v62 = vld [vmem:[#allocation43_spill] sm:$0xff] }
 0x962   :  { %7363 = vmatprep.subr.bf16.mxu0 %v10830_v50  ;;  %7427 = vmatprep.subr.bf16.mxu1 %v10831_v26  ;;  %v10841_v50 = vld [vmem:[#allocation44_spill] sm:$0xff]  ;;  %v10842_v26 = vld [vmem:[#allocation45_spill] sm:$0xff] }
 0x965   :  { %7365 = vmatpush1.bf16.msra.mxu0 %v10832_v45  ;;  %7429 = vmatpush1.bf16.msra.mxu1 %v10833_v36  ;;  %v10843_v45 = vld [vmem:[#allocation46_spill] sm:$0xff]  ;;  %v10844_v36 = vld [vmem:[#allocation47_spill] sm:$0xff] }
 0x966   :  { %7367 = vmatprep.subr.bf16.mxu0 %v10834_v60  ;;  %7431 = vmatprep.subr.bf16.mxu1 %v10835_v41  ;;  %v10845_v60 = vld [vmem:[#allocation48_spill] sm:$0xff]  ;;  %v10846_v41 = vld [vmem:[#allocation49_spill] sm:$0xff] }
 0x969   :  { %7369 = vmatpush1.bf16.msra.mxu0 %v10836_v54  ;;  %7433 = vmatpush1.bf16.msra.mxu1 %v10837_v39  ;;  %v10847_v54 = vld [vmem:[#allocation50_spill] sm:$0xff]  ;;  %v10848_v39 = vld [vmem:[#allocation51_spill] sm:$0xff] }
 0x96a   :  { %7371 = vmatprep.subr.bf16.mxu0 %v10838_v3  ;;  %7435 = vmatprep.subr.bf16.mxu1 %v10839_v10  ;;  %v10849_v3 = vld [vmem:[#allocation52_spill] sm:$0xff]  ;;  %v10850_v10 = vld [vmem:[#allocation53_spill] sm:$0xff] }
 0x96d   :  { %7373 = vmatpush1.bf16.msra.mxu0 %v10840_v62  ;;  %7437 = vmatpush1.bf16.msra.mxu1 %v10841_v50  ;;  %v10851_v62 = vld [vmem:[#allocation54_spill] sm:$0xff]  ;;  %v10852_v50 = vld [vmem:[#allocation55_spill] sm:$0xff] }
 0x96e   :  { %7375 = vmatprep.subr.bf16.mxu0 %v10842_v26  ;;  %7439 = vmatprep.subr.bf16.mxu1 %v10843_v45  ;;  %v10853_v26 = vld [vmem:[#allocation56_spill] sm:$0xff]  ;;  %v10854_v45 = vld [vmem:[#allocation57_spill] sm:$0xff] }
 0x971   :  { %7377 = vmatpush1.bf16.msra.mxu0 %v10844_v36  ;;  %7441 = vmatpush1.bf16.msra.mxu1 %v10845_v60  ;;  %v10855_v36 = vld [vmem:[#allocation58_spill] sm:$0xff]  ;;  %v10856_v60 = vld [vmem:[#allocation59_spill] sm:$0xff] }
 0x972   :  { %7379 = vmatprep.subr.bf16.mxu0 %v10846_v41  ;;  %7443 = vmatprep.subr.bf16.mxu1 %v10847_v54  ;;  %v10857_v41 = vld [vmem:[#allocation60_spill] sm:$0xff]  ;;  %v10858_v54 = vld [vmem:[#allocation61_spill] sm:$0xff] }
 0x975   :  { %7381 = vmatpush1.bf16.msra.mxu0 %v10848_v39  ;;  %7445 = vmatpush1.bf16.msra.mxu1 %v10849_v3  ;;  %v10859_v39 = vld [vmem:[#allocation62_spill] sm:$0xff]  ;;  %v10860_v3 = vld [vmem:[#allocation63_spill] sm:$0xff] }
 0x976   :  { %7383 = vmatprep.subr.bf16.mxu0 %v10850_v10  ;;  %7447 = vmatprep.subr.bf16.mxu1 %v10851_v62  ;;  %v10861_v10 = vld [vmem:[#allocation64_spill] sm:$0xff]  ;;  %v10862_v62 = vld [vmem:[#allocation65_spill] sm:$0xff] }
 0x979   :  { %7385 = vmatpush1.bf16.msra.mxu0 %v10852_v50  ;;  %7449 = vmatpush1.bf16.msra.mxu1 %v10853_v26  ;;  %v10863_v50 = vld [vmem:[#allocation66_spill] sm:$0xff]  ;;  %v10864_v26 = vld [vmem:[#allocation67_spill] sm:$0xff] }
 0x97a   :  { %7387 = vmatprep.subr.bf16.mxu0 %v10854_v45  ;;  %7451 = vmatprep.subr.bf16.mxu1 %v10855_v36  ;;  %v10865_v45 = vld [vmem:[#allocation68_spill] sm:$0xff]  ;;  %v10866_v36 = vld [vmem:[#allocation69_spill] sm:$0xff] }
 0x97d   :  { %7389 = vmatpush1.bf16.msra.mxu0 %v10856_v60  ;;  %7453 = vmatpush1.bf16.msra.mxu1 %v10857_v41  ;;  %v10867_v60 = vld [vmem:[#allocation70_spill] sm:$0xff]  ;;  %v10868_v41 = vld [vmem:[#allocation71_spill] sm:$0xff] }
 0x97e   :  { %7391 = vmatprep.subr.bf16.mxu0 %v10858_v54  ;;  %7455 = vmatprep.subr.bf16.mxu1 %v10859_v39  ;;  %v10869_v54 = vld [vmem:[#allocation72_spill] sm:$0xff]  ;;  %v10870_v39 = vld [vmem:[#allocation73_spill] sm:$0xff] }
 0x981   :  { %7393 = vmatpush1.bf16.msra.mxu0 %v10860_v3  ;;  %7457 = vmatpush1.bf16.msra.mxu1 %v10861_v10  ;;  %v10871_v3 = vld [vmem:[#allocation74_spill] sm:$0xff]  ;;  %v10872_v10 = vld [vmem:[#allocation75_spill] sm:$0xff] }
 0x982   :  { %7395 = vmatprep.subr.bf16.mxu0 %v10862_v62  ;;  %7459 = vmatprep.subr.bf16.mxu1 %v10863_v50  ;;  %v10873_v62 = vld [vmem:[#allocation76_spill] sm:$0xff]  ;;  %v10874_v50 = vld [vmem:[#allocation77_spill] sm:$0xff] }
 0x985   :  { %7397 = vmatpush1.bf16.msra.mxu0 %v10864_v26  ;;  %7461 = vmatpush1.bf16.msra.mxu1 %v10865_v45  ;;  %v10875_v26 = vld [vmem:[#allocation78_spill] sm:$0xff]  ;;  %v10876_v45 = vld [vmem:[#allocation79_spill] sm:$0xff] }
 0x986   :  { %7399 = vmatprep.subr.bf16.mxu0 %v10866_v36  ;;  %7463 = vmatprep.subr.bf16.mxu1 %v10867_v60  ;;  %v10877_v36 = vld [vmem:[#allocation80_spill] sm:$0xff]  ;;  %v10878_v60 = vld [vmem:[#allocation81_spill] sm:$0xff] }
 0x989   :  { %7401 = vmatpush1.bf16.msra.mxu0 %v10868_v41  ;;  %7465 = vmatpush1.bf16.msra.mxu1 %v10869_v54  ;;  %v10879_v41 = vld [vmem:[#allocation82_spill] sm:$0xff]  ;;  %v10880_v54 = vld [vmem:[#allocation83_spill] sm:$0xff] }
 0x98a   :  { %7403 = vmatprep.subr.bf16.mxu0 %v10870_v39  ;;  %7467 = vmatprep.subr.bf16.mxu1 %v10871_v3  ;;  %v10881_v39 = vld [vmem:[#allocation84_spill] sm:$0xff]  ;;  %v10882_v3 = vld [vmem:[#allocation85_spill] sm:$0xff] }
 0x98d   :  { %7405 = vmatpush1.bf16.msra.mxu0 %v10872_v10  ;;  %7469 = vmatpush1.bf16.msra.mxu1 %v10873_v62  ;;  %v10883_v10 = vld [vmem:[#allocation86_spill] sm:$0xff] }
 0x98e   :  { %7407 = vmatprep.subr.bf16.mxu0 %v10874_v50  ;;  %7471 = vmatprep.subr.bf16.mxu1 %v10875_v26 }
 0x991   :  { %7409 = vmatpush1.bf16.msra.mxu0 %v10876_v45  ;;  %7473 = vmatpush1.bf16.msra.mxu1 %v10877_v36 }
 0x992   :  { %7411 = vmatprep.subr.bf16.mxu0 %v10878_v60  ;;  %7475 = vmatprep.subr.bf16.mxu1 %v10879_v41 }
 0x995   :  { %7413 = vmatpush1.bf16.msra.mxu0 %v10880_v54  ;;  %7477 = vmatpush1.bf16.msra.mxu1 %v10881_v39 }
 0x996   :  { %7479 = vmatprep.subr.bf16.mxu0 %v10882_v3  ;;  %7543 = vmatprep.subr.bf16.mxu1 %v10883_v10  ;;  %v4191_v10 = vrot.slane %v9545_v16, 7 }
 0x9eb   :  { %v3901_v62 = vpop.f32.mrb[28].mxu0  ;;  %v3972_v50 = vpop.f32.mrb[28].mxu1 }
 0x9ec   :  { %v4129_v8 = vrot.slane %v3972_v50, 2  ;;  %v3903_v26 = vpop.f32.mrb[29].mxu0  ;;  %v3974_v43 = vpop.f32.mrb[29].mxu1 }
 0x9ed   :  { %v4130_v45 = vrot.slane %v3974_v43, 2 }
 0x9ee   :  { %v4145_v36 = vadd.f32 %v10884_v19, %v4129_v8  ;;  %v4127_v19 = vrot.slane %v3901_v62, 2 }
 0x9ef   :  { %v4146_v60 = vadd.f32 %v10885_v7, %v4130_v45  ;;  %v4128_v45 = vrot.slane %v3903_v26, 2 }
 0x9f0   :  { %v4939_v22 = vmul.f32 -1.442695, %v4145_v36  ;;  %v4143_v36 = vadd.f32 %v10409_v49, %v4127_v19 }
 0x9f1   :  { %v4940_v41 = vmul.f32 -1.442695, %v4146_v60 }
 0x9f2   :  { %7885 = vpow2.f32 %v4939_v22  ;;  %v4144_v22 = vadd.f32 %v10410_v1, %v4128_v45  ;;  %v4937_v60 = vmul.f32 -1.442695, %v4143_v36 }
 0x9f3   :  { %7887 = vpow2.f32 %v4940_v41 }
 0x9f4   :  { %v4938_v41 = vmul.f32 -1.442695, %v4144_v22 }
 0x9fc   :  { %v7886_v54 = vpop.eup %7885 }
 0x9fd   :  { %v4169_v39 = vadd.f32 1.0, %v7886_v54  ;;  %v7888_v53 = vpop.eup %7887 }
 0x9fe   :  { %v4170_v3 = vadd.f32 1.0, %v7888_v53 }
 0x9ff   :  { %7889 = vrcp.f32 %v4169_v39 }
 0xa00   :  { %7891 = vrcp.f32 %v4170_v3 }
 0xa01   :  { %7893 = vpow2.f32 %v4937_v60 }
 0xa02   :  { %7895 = vpow2.f32 %v4938_v41 }
 0xa09   :  { %v7890_v50 = vpop.eup %7889 }
 0xa0a   :  { %v4195_v43 = vmul.f32 %v7890_v50, %v4191_v10  ;;  %v7892_v48 = vpop.eup %7891 }
 0xa0b   :  { %v4196_v8 = vmul.f32 %v7892_v48, %v4192_v11  ;;  %v7894_v53 = vpop.eup %7893 }
 0xa0c   :  { %v7896_v54 = vpop.eup %7895  ;;  %v4157_v39 = vadd.f32 1.0, %v7894_v53 }
 0xa0d   :  { %v4158_v16 = vadd.f32 1.0, %v7896_v54 }
 0xa0e   :  { %7897 = vrcp.f32 %v4157_v39 }
 0xa0f   :  { %7899 = vrcp.f32 %v4158_v16 }
 0xa2b   :  { %v4043_v3 = vpop.f32.mrb[30].mxu0  ;;  %v4114_v7 = vpop.f32.mrb[30].mxu1 }
 0xa2c   :  { %v4131_v58 = vrot.slane %v4043_v3, 2  ;;  %v4133_v10 = vrot.slane %v4114_v7, 2  ;;  %v4045_v50 = vpop.f32.mrb[31].mxu0  ;;  %v4116_v48 = vpop.f32.mrb[31].mxu1 }
 0xa2d   :  { %v4132_v11 = vrot.slane %v4045_v50, 2  ;;  %v4134_v62 = vrot.slane %v4116_v48, 2  ;;  %v7898_v7 = vpop.eup %7897 }
 0xa2e   :  { %v4147_v19 = vadd.f32 %v8753_v23, %v4131_v58  ;;  %v4149_v26 = vadd.f32 %v8755_v59, %v4133_v10  ;;  %v7900_v41 = vpop.eup %7899 }
 0xa2f   :  { %v4148_v45 = vadd.f32 %v8757_v25, %v4132_v11  ;;  %v4150_v36 = vadd.f32 %v8759_v51, %v4134_v62 }
 0xa30   :  { %7901 = vtanh.f32 %v4147_v19  ;;  %v4941_v22 = vmul.f32 -1.442695, %v4149_v26 }
 0xa31   :  { %7903 = vtanh.f32 %v4148_v45  ;;  %v4942_v60 = vmul.f32 -1.442695, %v4150_v36 }
 0xa32   :  { %7905 = vpow2.f32 %v4941_v22 }
 0xa33   :  { %7907 = vpow2.f32 %v4942_v60 }
 0xa3a   :  { %v7902_v53 = vpop.eup %7901 }
 0xa3b   :  { %v7904_v54 = vpop.eup %7903  ;;  %v4197_v39 = vmul.f32 %v7902_v53, %v7898_v7 }
 0xa3c   :  { %v7906_v3 = vpop.eup %7905  ;;  %v4198_v58 = vmul.f32 %v7904_v54, %v7900_v41 }
 0xa3d   :  { %v7908_v50 = vpop.eup %7907  ;;  %v9699_v10 = vadd.f32 %v4197_v39, %v4195_v43  ;;  %v4183_v16 = vadd.f32 1.0, %v7906_v3 }
 0xa3e   :  { %v9701_v48 = vadd.f32 %v4198_v58, %v4196_v8  ;;  %v4184_v11 = vadd.f32 1.0, %v7908_v50  ;;  %v4677_v58 = vld [vmem:[#allocation13 + $0x10] sm:$0xff]  ;;  %v4678_v50 = vld [vmem:[#allocation13 + $0x18] sm:$0xff] }
 0xa3f   :  { %7909 = vtanh.f32 %v9699_v10 }
 0xa40   :  { %7911 = vrcp.f32 %v4183_v16  ;;  %v7612_v16 = vpack.c.bf16 %v4678_v50, %v4677_v58  ;;  %v10913_v58 = vld [vmem:[#allocation112_spill] sm:$0xff] }
 0xa41   :  { %7913 = vtanh.f32 %v9701_v48 }
 0xa42   :  { %7915 = vrcp.f32 %v4184_v11  ;;  %v4695_v11 = vld [vmem:[#allocation13 + $0xa0] sm:$0xff] }
 0xa49   :  { %v7910_v62 = vpop.eup %7909 }
 0xa4a   :  { %v7912_v19 = vpop.eup %7911 }
 0xa4b   :  { %v7914_v26 = vpop.eup %7913  ;;  %v4203_v45 = vmul.f32 %v7912_v19, %v7910_v62  ;;  %v4696_v62 = vld [vmem:[#allocation13 + $0xa8] sm:$0xff] }
 0xa4c   :  { %v7916_v36 = vpop.eup %7915  ;;  %v7614_v19 = vpack.c.bf16 %v4696_v62, %v4695_v11  ;;  %v10914_v11 = vld [vmem:[#allocation114_spill] sm:$0xff] }
 0xa4d   :  { %v4204_v22 = vmul.f32 %v7916_v36, %v7914_v26  ;;  %v4205_v60 = vmax.f32 %v4203_v45, 0.0  ;;  %v9705_v41 = vrot.slane %v4203_v45, 6  ;;  %v4679_v26 = vld [vmem:[#allocation13 + $0x20] sm:$0xff]  ;;  %v4680_v45 = vld [vmem:[#allocation13 + $0x28] sm:$0xff] }
 0xa4e   :  { %v7616_v36 = vpack.c.bf16 %v4680_v45, %v4679_v26  ;;  %v4792_v26 = vld [vmem:[%s9860_s7 + $0x38] sm:$0xff] }
 0xa4f   :  { %v4206_v7 = vmax.f32 %v4204_v22, 0.0  ;;  %v4232_v43 = vrot.slane %v4204_v22, 6  ;;  %v4697_v22 = vld [vmem:[#allocation13 + $0xb0] sm:$0xff] }
 0xa51   :  { %4299 = vmatprep.mubr.f32.mxu0 %v4232_v43  ;;  %4370 = vmatprep.mubr.f32.mxu1 %v4232_v43  ;;  %v4209_v8 = vcombine.high %v4205_v60, %v4206_v7  ;;  %v4698_v60 = vld [vmem:[#allocation13 + $0xb8] sm:$0xff] }
 0xa52   :  { %4300 = vmatmul.mubr.f32.vlgmr.msra.gmra.mrb[32].mxu0 %v9705_v41  ;;  %4371 = vmatmul.mubr.f32.vlgmr.msra.gmra.mrb[32].mxu1 %v9705_v41  ;;  %v7618_v7 = vpack.c.bf16 %v4698_v60, %v4697_v22  ;;  %v4793_v60 = vld [vmem:[%s9860_s7 + $0x40] sm:$0xff] }
 0xa53   :  { %7481 = vmatpush1.bf16.msra.mxu0 %v10316_v4  ;;  %7545 = vmatpush1.bf16.msra.mxu1 %v10317_v63  ;;  %v4216_v53 = vrot.slane %v4209_v8, %v8777_v27  ;;  %v10886_v4 = vld [vmem:[#allocation126_spill] sm:$0xff]  ;;  %v10887_v63 = vld [vmem:[#allocation127_spill] sm:$0xff]  ;;  %v4699_v8 = vld [vmem:[#allocation13 + $0xc0] sm:$0xff] }
 0xa54   :  { %4441 = vmatprep.mubr.f32.mxu0 %v4232_v43  ;;  %4512 = vmatprep.mubr.f32.mxu1 %v4232_v43  ;;  %v4681_v43 = vld [vmem:[#allocation13 + $0x30] sm:$0xff] }
 0xa55   :  { %7483 = vmatprep.subr.bf16.mxu0 %v10318_v9  ;;  %7547 = vmatprep.subr.bf16.mxu1 %v10319_v6  ;;  %v4223_v54 = vrot.slane %v4216_v53, %v8777_v27  ;;  %v10888_v9 = vld [vmem:[#allocation128_spill] sm:$0xff]  ;;  %v10889_v6 = vld [vmem:[#allocation129_spill] sm:$0xff] }
 0xa57   :  { %7485 = vmatpush1.bf16.msra.mxu0 %v10323_v12  ;;  %7549 = vmatpush1.bf16.msra.mxu1 %v10411_v14  ;;  %v4224_v39 = vcombine.high %v4223_v54, %v4223_v54  ;;  %v10890_v12 = vld [vmem:[#allocation130_spill] sm:$0xff]  ;;  %v10891_v14 = vld [vmem:[#allocation131_spill] sm:$0xff] }
 0xa58   :  { %7487 = vmatprep.subr.bf16.mxu0 %v10412_v37  ;;  %7551 = vmatprep.subr.bf16.mxu1 %v10413_v33  ;;  %v10892_v37 = vld [vmem:[#allocation132_spill] sm:$0xff]  ;;  %v10893_v33 = vld [vmem:[#allocation133_spill] sm:$0xff] }
 0xa59   :  { %4227 = vst.msk [vmem:[#allocation2 + $0x6] ss:$8 sm:$0x3] %vm8786_vm0, %v4224_v39  ;;  %v4700_v54 = vld [vmem:[#allocation13 + $0xc8] sm:$0xff]  ;;  %v4683_v39 = vld [vmem:[#allocation13 + $0x40] sm:$0xff] }
 0xa5b   :  { %7489 = vmatpush1.bf16.msra.mxu0 %v10415_v57  ;;  %7553 = vmatpush1.bf16.msra.mxu1 %v10416_v32  ;;  %v10894_v57 = vld [vmem:[#allocation134_spill] sm:$0xff]  ;;  %v10895_v32 = vld [vmem:[#allocation135_spill] sm:$0xff] }
 0xa5c   :  { %7491 = vmatprep.subr.bf16.mxu0 %v10417_v34  ;;  %7555 = vmatprep.subr.bf16.mxu1 %v10506_v21  ;;  %v10896_v34 = vld [vmem:[#allocation136_spill] sm:$0xff]  ;;  %v10903_v21 = vld [vmem:[#allocation143_spill] sm:$0xff] }
 0xa5f   :  { %7493 = vmatpush1.bf16.msra.mxu0 %v10507_v56  ;;  %7557 = vmatpush1.bf16.msra.mxu1 %v10508_v55  ;;  %v10904_v56 = vld [vmem:[#allocation144_spill] sm:$0xff]  ;;  %v10905_v55 = vld [vmem:[#allocation145_spill] sm:$0xff] }
 0xa60   :  { %7495 = vmatprep.subr.bf16.mxu0 %v10509_v52  ;;  %7559 = vmatprep.subr.bf16.mxu1 %v10510_v20  ;;  %v10906_v52 = vld [vmem:[#allocation146_spill] sm:$0xff]  ;;  %v10907_v20 = vld [vmem:[#allocation147_spill] sm:$0xff] }
 0xa63   :  { %7497 = vmatpush1.bf16.msra.mxu0 %v10511_v29  ;;  %7561 = vmatpush1.bf16.msra.mxu1 %v10512_v40  ;;  %v10908_v29 = vld [vmem:[#allocation148_spill] sm:$0xff]  ;;  %v10909_v40 = vld [vmem:[#allocation149_spill] sm:$0xff] }
 0xa64   :  { %7499 = vmatprep.subr.bf16.mxu0 %v10513_v0  ;;  %7563 = vmatprep.subr.bf16.mxu1 %v10514_v30  ;;  %v10910_v0 = vld [vmem:[#allocation150_spill] sm:$0xff]  ;;  %v10911_v30 = vld [vmem:[#allocation151_spill] sm:$0xff] }
 0xa67   :  { %7501 = vmatpush1.bf16.msra.mxu0 %v10515_v31  ;;  %7565 = vmatpush1.bf16.msra.mxu1 %v10516_v35  ;;  %v10912_v31 = vld [vmem:[#allocation152_spill] sm:$0xff] }
 0xa68   :  { %7503 = vmatprep.subr.bf16.mxu0 %v10517_v42  ;;  %7567 = vmatprep.subr.bf16.mxu1 %v10518_v17  ;;  %v4691_v35 = vld [vmem:[#allocation13 + $0x80] sm:$0xff]  ;;  %v4692_v42 = vld [vmem:[#allocation13 + $0x88] sm:$0xff] }
 0xa69   :  { %v7606_v17 = vpack.c.bf16 %v4692_v42, %v4691_v35 }
 0xa6b   :  { %7505 = vmatpush1.bf16.msra.mxu0 %v10519_v38  ;;  %7569 = vmatpush1.bf16.msra.mxu1 %v10520_v46  ;;  %v4675_v38 = vld [vmem:[#allocation13] sm:$0xff]  ;;  %v4676_v46 = vld [vmem:[#allocation13 + $0x8] sm:$0xff] }
 0xa6c   :  { %7507 = vmatprep.subr.bf16.mxu0 %v10521_v44  ;;  %7571 = vmatprep.subr.bf16.mxu1 %v10522_v18  ;;  %v7608_v44 = vpack.c.bf16 %v4676_v46, %v4675_v38  ;;  %v4693_v18 = vld [vmem:[#allocation13 + $0x90] sm:$0xff] }
 0xa6d   :  { %v4789_v38 = vld [vmem:[%s9860_s7 + $0x20] sm:$0xff]  ;;  %v4790_v46 = vld [vmem:[%s9860_s7 + $0x28] sm:$0xff] }
 0xa6f   :  { %7509 = vmatpush1.bf16.msra.mxu0 %v10435_v2  ;;  %7573 = vmatpush1.bf16.msra.mxu1 %v10523_v28  ;;  %v10899_v2 = vld [vmem:[#allocation139_spill] sm:$0xff] }
 0xa70   :  { %7511 = vmatprep.subr.bf16.mxu0 %v10437_v13  ;;  %7575 = vmatprep.subr.bf16.mxu1 %v10438_v61  ;;  %v10900_v13 = vld [vmem:[#allocation140_spill] sm:$0xff]  ;;  %v10901_v61 = vld [vmem:[#allocation141_spill] sm:$0xff] }
 0xa71   :  { %v4694_v28 = vld [vmem:[#allocation13 + $0x98] sm:$0xff] }
 0xa72   :  { %v7610_v3 = vpack.c.bf16 %v4694_v28, %v4693_v18 }
 0xa73   :  { %7513 = vmatpush1.bf16.msra.mxu0 %v10439_v15  ;;  %7577 = vmatpush1.bf16.msra.mxu1 %v10440_v24  ;;  %v10897_v24 = vld [vmem:[#allocation137_spill] sm:$0xff]  ;;  %v10902_v15 = vld [vmem:[#allocation142_spill] sm:$0xff] }
 0xa74   :  { %7515 = vmatprep.subr.bf16.mxu0 %v10441_v5  ;;  %7579 = vmatprep.subr.bf16.mxu1 %v10886_v4  ;;  %v10898_v5 = vld [vmem:[#allocation138_spill] sm:$0xff] }
 0xa75   :  { %v4684_v4 = vld [vmem:[#allocation13 + $0x48] sm:$0xff] }
 0xa77   :  { %7517 = vmatpush1.bf16.msra.mxu0 %v10887_v63  ;;  %7581 = vmatpush1.bf16.msra.mxu1 %v10888_v9  ;;  %v7622_v63 = vpack.c.bf16 %v4700_v54, %v4699_v8  ;;  %v4701_v9 = vld [vmem:[#allocation13 + $0xd0] sm:$0xff]  ;;  %v4796_v8 = vld [vmem:[%s9860_s7 + $0x58] sm:$0xff] }
 0xa78   :  { %7519 = vmatprep.subr.bf16.mxu0 %v10889_v6  ;;  %7583 = vmatprep.subr.bf16.mxu1 %v10890_v12  ;;  %v4702_v6 = vld [vmem:[#allocation13 + $0xd8] sm:$0xff]  ;;  %v7624_v12 = vpack.c.bf16 %v4684_v4, %v4683_v39 }
 0xa7b   :  { %7521 = vmatpush1.bf16.msra.mxu0 %v10891_v14  ;;  %7585 = vmatpush1.bf16.msra.mxu1 %v10892_v37  ;;  %v7626_v14 = vpack.c.bf16 %v4702_v6, %v4701_v9  ;;  %v4685_v37 = vld [vmem:[#allocation13 + $0x50] sm:$0xff]  ;;  %v4591_v9 = vrot.slane %v9699_v10, 7 }
 0xa7c   :  { %7523 = vmatprep.subr.bf16.mxu0 %v10893_v33  ;;  %7587 = vmatprep.subr.bf16.mxu1 %v10894_v57  ;;  %v4686_v33 = vld [vmem:[#allocation13 + $0x58] sm:$0xff]  ;;  %v4703_v57 = vld [vmem:[#allocation13 + $0xe0] sm:$0xff] }
 0xa7f   :  { %7525 = vmatpush1.bf16.msra.mxu0 %v10895_v32  ;;  %7589 = vmatpush1.bf16.msra.mxu1 %v10896_v34  ;;  %v4704_v32 = vld [vmem:[#allocation13 + $0xe8] sm:$0xff]  ;;  %v7628_v34 = vpack.c.bf16 %v4686_v33, %v4685_v37 }
 0xa80   :  { %7527 = vmatprep.subr.bf16.mxu0 %v10897_v24  ;;  %7591 = vmatprep.subr.bf16.mxu1 %v10898_v5  ;;  %v7630_v24 = vpack.c.bf16 %v4704_v32, %v4703_v57  ;;  %v4687_v5 = vld [vmem:[#allocation13 + $0x60] sm:$0xff] }
 0xa83   :  { %7529 = vmatpush1.bf16.msra.mxu0 %v10899_v2  ;;  %7593 = vmatpush1.bf16.msra.mxu1 %v10900_v13  ;;  %v4688_v2 = vld [vmem:[#allocation13 + $0x68] sm:$0xff]  ;;  %v4705_v13 = vld [vmem:[#allocation13 + $0xf0] sm:$0xff] }
 0xa84   :  { %7531 = vmatprep.subr.bf16.mxu0 %v10901_v61  ;;  %7595 = vmatprep.subr.bf16.mxu1 %v10902_v15  ;;  %v4706_v61 = vld [vmem:[#allocation13 + $0xf8] sm:$0xff]  ;;  %v7632_v15 = vpack.c.bf16 %v4688_v2, %v4687_v5 }
 0xa87   :  { %7533 = vmatpush1.bf16.msra.mxu0 %v10903_v21  ;;  %7597 = vmatpush1.bf16.msra.mxu1 %v10904_v56  ;;  %v7634_v21 = vpack.c.bf16 %v4706_v61, %v4705_v13  ;;  %v4689_v56 = vld [vmem:[#allocation13 + $0x70] sm:$0xff] }
 0xa88   :  { %7535 = vmatprep.subr.bf16.mxu0 %v10905_v55  ;;  %7599 = vmatprep.subr.bf16.mxu1 %v10906_v52  ;;  %v4690_v55 = vld [vmem:[#allocation13 + $0x78] sm:$0xff] }
 0xa89   :  { %v7636_v52 = vpack.c.bf16 %v4690_v55, %v4689_v56 }
 0xa8b   :  { %7537 = vmatpush1.bf16.msra.mxu0 %v10907_v20  ;;  %7601 = vmatpush1.bf16.msra.mxu1 %v10908_v29  ;;  %v4785_v20 = vld [vmem:[%s9860_s7] sm:$0xff]  ;;  %v4786_v29 = vld [vmem:[%s9860_s7 + $0x8] sm:$0xff] }
 0xa8c   :  { %7539 = vmatprep.subr.bf16.mxu0 %v10909_v40  ;;  %7603 = vmatprep.subr.bf16.mxu1 %v10910_v0  ;;  %v4787_v40 = vld [vmem:[%s9860_s7 + $0x10] sm:$0xff]  ;;  %v8120_v0 = vmov 0.0|0.0  }
 0xa8f   :  { %7541 = vmatpush1.bf16.msra.mxu0 %v10911_v30  ;;  %7605 = vmatpush1.bf16.msra.mxu1 %v10912_v31  ;;  %v7639_v30 = vpack.c.bf16 %v4786_v29, %v4785_v20  ;;  %v4788_v31 = vld [vmem:[%s9860_s7 + $0x18] sm:$0xff] }
 0xa90   :  { %7607 = vmatprep.subr.bf16.mxu0 %v7606_v17  ;;  %7638 = vmatprep.subr.bf16.mxu1 %v8120_v0  ;;  %v7642_v35 = vpack.c.bf16 %v4788_v31, %v4787_v40 }
 0xa92   :  { %4442 = vmatmul.mubr.f32.vlgmr.msra.gmra.mrb[34].mxu0 %v9705_v41  ;;  %4513 = vmatmul.mubr.f32.vlgmr.msra.gmra.mrb[34].mxu1 %v9705_v41  ;;  %v4682_v41 = vld [vmem:[#allocation13 + $0x38] sm:$0xff] }
 0xa93   :  { %7609 = vmatpush3.bf16.msra.mxu0 %v7608_v44  ;;  %v7620_v53 = vpack.c.bf16 %v4682_v41, %v4681_v43  ;;  %7640 = vmatpush3.bf16.msra.mxu1 %v7639_v30  ;;  %v4795_v41 = vld [vmem:[%s9860_s7 + $0x50] sm:$0xff] }
 0xa94   :  { %7611 = vmatprep.subr.bf16.mxu0 %v7610_v3  ;;  %7641 = vmatprep.subr.bf16.mxu1 %v8120_v0 }
 0xa97   :  { %7613 = vmatpush3.bf16.msra.mxu0 %v7612_v16  ;;  %7643 = vmatpush3.bf16.msra.mxu1 %v7642_v35  ;;  %v7645_v16 = vpack.c.bf16 %v4790_v46, %v4789_v38 }
 0xa98   :  { %7615 = vmatprep.subr.bf16.mxu0 %v7614_v19  ;;  %7644 = vmatprep.subr.bf16.mxu1 %v8120_v0  ;;  %v4791_v19 = vld [vmem:[%s9860_s7 + $0x30] sm:$0xff] }
 0xa99   :  { %v7648_v22 = vpack.c.bf16 %v4792_v26, %v4791_v19 }
 0xa9b   :  { %7617 = vmatpush3.bf16.msra.mxu0 %v7616_v36  ;;  %7646 = vmatpush3.bf16.msra.mxu1 %v7645_v16 }
 0xa9c   :  { %7619 = vmatprep.subr.bf16.mxu0 %v7618_v7  ;;  %7647 = vmatprep.subr.bf16.mxu1 %v8120_v0  ;;  %v4794_v7 = vld [vmem:[%s9860_s7 + $0x48] sm:$0xff] }
 0xa9d   :  { %v7651_v43 = vpack.c.bf16 %v4794_v7, %v4793_v60 }
 0xa9f   :  { %7621 = vmatpush3.bf16.msra.mxu0 %v7620_v53  ;;  %7649 = vmatpush3.bf16.msra.mxu1 %v7648_v22  ;;  %v7654_v53 = vpack.c.bf16 %v4796_v8, %v4795_v41  ;;  %v10915_v8 = vld [vmem:[#allocation153_spill] sm:$0xff] }
 0xaa0   :  { %7623 = vmatprep.subr.bf16.mxu0 %v7622_v63  ;;  %7650 = vmatprep.subr.bf16.mxu1 %v8120_v0 }
 0xaa3   :  { %7625 = vmatpush3.bf16.msra.mxu0 %v7624_v12  ;;  %7652 = vmatpush3.bf16.msra.mxu1 %v7651_v43  ;;  %v4592_v12 = vrot.slane %v9701_v48, 7 }
 0xaa4   :  { %7627 = vmatprep.subr.bf16.mxu0 %v7626_v14  ;;  %7653 = vmatprep.subr.bf16.mxu1 %v8120_v0 }
 0xaa7   :  { %7629 = vmatpush3.bf16.msra.mxu0 %v7628_v34  ;;  %7655 = vmatpush3.bf16.msra.mxu1 %v7654_v53  ;;  %v4657_v53 = vsub.s32 1, %v10915_v8 }
 0xaa8   :  { %7631 = vmatprep.subr.bf16.mxu0 %v7630_v24  ;;  %7656 = vmatprep.subr.bf16.mxu1 %v8120_v0 }
 0xaab   :  { %7633 = vmatpush3.bf16.msra.mxu0 %v7632_v15 }
 0xaac   :  { %7635 = vmatprep.subr.bf16.mxu0 %v7634_v21 }
 0xaaf   :  { %7637 = vmatpush3.bf16.msra.mxu0 %v7636_v52 }
 0xb25   :  { %v4301_v42 = vpop.f32.mrb[32].mxu0  ;;  %v4372_v17 = vpop.f32.mrb[32].mxu1 }
 0xb26   :  { %v4529_v44 = vrot.slane %v4372_v17, 1  ;;  %v4303_v18 = vpop.f32.mrb[33].mxu0  ;;  %v4374_v28 = vpop.f32.mrb[33].mxu1  ;;  %v4527_v57 = vrot.slane %v4301_v42, 1 }
 0xb27   :  { %v4530_v3 = vrot.slane %v4374_v28, 1  ;;  %v4528_v32 = vrot.slane %v4303_v18, 1 }
 0xb28   :  { %v4545_v50 = vadd.f32 %v10913_v58, %v4529_v44  ;;  %v4543_v34 = vadd.f32 %v10409_v49, %v4527_v57  ;;  %v4799_v57 = vld [vmem:[%s9860_s7 + $0x70] sm:$0xff] }
 0xb29   :  { %v4546_v62 = vadd.f32 %v10914_v11, %v4530_v3  ;;  %v4544_v24 = vadd.f32 %v10410_v1, %v4528_v32  ;;  %v4800_v32 = vld [vmem:[%s9860_s7 + $0x78] sm:$0xff] }
 0xb2a   :  { %v4945_v45 = vmul.f32 -1.442695, %v4545_v50  ;;  %v4943_v5 = vmul.f32 -1.442695, %v4543_v34  ;;  %v7660_v34 = vpack.c.bf16 %v4800_v32, %v4799_v57 }
 0xb2b   :  { %v4946_v36 = vmul.f32 -1.442695, %v4546_v62  ;;  %v4944_v2 = vmul.f32 -1.442695, %v4544_v24  ;;  %v10916_v24 = vmov 0.0  }
 0xb2c   :  { %7917 = vpow2.f32 %v4945_v45  ;;  %5043 = vmatprep.mubr.msk.f32.mxu1 %vm8121_vm2, %v10916_v24 }
 0xb2d   :  { %7919 = vpow2.f32 %v4946_v36 }
 0xb36   :  { %v7918_v54 = vpop.eup %7917 }
 0xb37   :  { %v4569_v39 = vadd.f32 1.0, %v7918_v54  ;;  %v7920_v4 = vpop.eup %7919  ;;  %v4653_v54 = vsub.s32 0, %v10915_v8 }
 0xb38   :  { %v4570_v63 = vadd.f32 1.0, %v7920_v4 }
 0xb39   :  { %7921 = vrcp.f32 %v4569_v39 }
 0xb3a   :  { %7923 = vrcp.f32 %v4570_v63 }
 0xb3b   :  { %7925 = vpow2.f32 %v4943_v5 }
 0xb3c   :  { %7927 = vpow2.f32 %v4944_v2  ;;  %v4954_v2 = vld [vmem:[#allocation14] ss:$0 sm:$0xff] }
 0xb43   :  { %v7922_v6 = vpop.eup %7921 }
 0xb44   :  { %v4595_v14 = vmul.f32 %v7922_v6, %v4591_v9  ;;  %v7924_v37 = vpop.eup %7923 }
 0xb45   :  { %v4596_v33 = vmul.f32 %v7924_v37, %v4592_v12  ;;  %v7926_v13 = vpop.eup %7925  ;;  %v4798_v37 = vld [vmem:[%s9860_s7 + $0x68] sm:$0xff] }
 0xb46   :  { %v7928_v61 = vpop.eup %7927  ;;  %v4557_v15 = vadd.f32 1.0, %v7926_v13 }
 0xb47   :  { %v4558_v10 = vadd.f32 1.0, %v7928_v61 }
 0xb48   :  { %7929 = vrcp.f32 %v4557_v15 }
 0xb49   :  { %7931 = vrcp.f32 %v4558_v10 }
 0xb52   :  { %v7930_v17 = vpop.eup %7929 }
 0xb53   :  { %v7932_v38 = vpop.eup %7931 }
 0xb65   :  { %v4443_v21 = vpop.f32.mrb[34].mxu0  ;;  %v4514_v56 = vpop.f32.mrb[34].mxu1 }
 0xb66   :  { %v4531_v48 = vrot.slane %v4443_v21, 1  ;;  %v4533_v55 = vrot.slane %v4514_v56, 1  ;;  %v4445_v52 = vpop.f32.mrb[35].mxu0  ;;  %v4516_v20 = vpop.f32.mrb[35].mxu1 }
 0xb67   :  { %v4532_v29 = vrot.slane %v4445_v52, 1  ;;  %v4534_v40 = vrot.slane %v4516_v20, 1 }
 0xb68   :  { %v4547_v49 = vadd.f32 %v8753_v23, %v4531_v48  ;;  %v4549_v1 = vadd.f32 %v8755_v59, %v4533_v55 }
 0xb69   :  { %v4548_v30 = vadd.f32 %v8757_v25, %v4532_v29  ;;  %v4550_v31 = vadd.f32 %v8759_v51, %v4534_v40 }
 0xb6a   :  { %7933 = vtanh.f32 %v4547_v49  ;;  %v4947_v35 = vmul.f32 -1.442695, %v4549_v1 }
 0xb6b   :  { %7935 = vtanh.f32 %v4548_v30  ;;  %v4948_v42 = vmul.f32 -1.442695, %v4550_v31 }
 0xb6c   :  { %7937 = vpow2.f32 %v4947_v35 }
 0xb6d   :  { %7939 = vpow2.f32 %v4948_v42 }
 0xb74   :  { %v7934_v46 = vpop.eup %7933 }
 0xb75   :  { %v7936_v44 = vpop.eup %7935  ;;  %v4597_v18 = vmul.f32 %v7934_v46, %v7930_v17 }
 0xb76   :  { %v7938_v28 = vpop.eup %7937  ;;  %v4598_v23 = vmul.f32 %v7936_v44, %v7932_v38 }
 0xb77   :  { %v7940_v3 = vpop.eup %7939  ;;  %v4599_v59 = vadd.f32 %v4597_v18, %v4595_v14  ;;  %v4583_v58 = vadd.f32 1.0, %v7938_v28 }
 0xb78   :  { %v4600_v50 = vadd.f32 %v4598_v23, %v4596_v33  ;;  %v4584_v25 = vadd.f32 1.0, %v7940_v3  ;;  %v7657_v33 = vpack.c.bf16 %v4798_v37, %v4797_v47 }
 0xb79   :  { %7941 = vtanh.f32 %v4599_v59 }
 0xb7a   :  { %7943 = vrcp.f32 %v4583_v58  ;;  %7658 = vmatpush3.bf16.msra.mxu1 %v7657_v33 }
 0xb7b   :  { %7945 = vtanh.f32 %v4600_v50  ;;  %7659 = vmatprep.subr.bf16.mxu1 %v8120_v0  ;;  %v4955_v0 = vld [vmem:[#allocation3] ss:$0 sm:$0xff] }
 0xb7c   :  { %7947 = vrcp.f32 %v4584_v25 }
 0xb7e   :  { %7661 = vmatpush3.bf16.msra.mxu1 %v7660_v34 }
 0xb83   :  { %v7942_v51 = vpop.eup %7941 }
 0xb84   :  { %v7944_v16 = vpop.eup %7943 }
 0xb85   :  { %v7946_v11 = vpop.eup %7945  ;;  %v4603_v62 = vmul.f32 %v7944_v16, %v7942_v51 }
 0xb86   :  { %v7948_v19 = vpop.eup %7947 }
 0xb87   :  { %v4605_v26 = vmax.f32 %v4603_v62, 0.0  ;;  %v4604_v45 = vmul.f32 %v7948_v19, %v7946_v11 }
 0xb89   :  { %v4606_v36 = vmax.f32 %v4604_v45, 0.0 }
 0xb8b   :  { %v4609_v22 = vcombine.high %v4605_v26, %v4606_v36 }
 0xb8d   :  { %v4616_v60 = vrot.slane %v4609_v22, %v8777_v27 }
 0xb8f   :  { %v4617_v7 = vcombine.high %v4616_v60, %v4616_v60 }
 0xb91   :  { %v4624_v43 = vrot.slane %v4617_v7, %v8777_v27 }
 0xb93   :  { %v4625_v41 = vcombine.high %v4624_v43, %v4624_v43 }
 0xb95   :  { %4628 = vst.msk [vmem:[#allocation2 + $0x7] ss:$8 sm:$0x3] %vm8786_vm0, %v4625_v41 }
 0xb9c   :  { %v4639_v39 = vld [vmem:[%s4638_s20] ss:$8 sm:$0x3] }
 0xb9d   :  { %v4649_v4 = vld [vmem:[%s4648_s21] ss:$8 sm:$0x3]  ;;  %v4658_v27 = vrot.slane %v4639_v39, %v4657_v53  ;;  %v4654_v9 = vrot.slane %v4639_v39, %v4653_v54 }
 0xb9e   :  { %v4669_v63 = vrot.slane %v4649_v4, %v4657_v53  ;;  %v4665_v6 = vrot.slane %v4649_v4, %v4653_v54 }
 0xba0   :  { %v4674_v12 = vsel %vm4672_vm1, %v4658_v27, %v4669_v63  ;;  %v4673_v14 = vsel %vm4672_vm1, %v4654_v9, %v4665_v6 }
 0xba1   :  { %4778 = vmatprep.mubr.f32.mxu0 %v4674_v12 }
 0xba2   :  { %4779 = vmatmul.mubr.f32.vlgmr.msra.gmra.mrb[36].mxu0 %v4673_v14 }
 0xc75   :  { %v4991_v5 = vpop.f32.mrb[36].mxu0 }
 0xc76   :  { %v4992_v13 = vpop.f32.mrb[37].mxu0 }
 0xc77   :  { %v4993_v61 = vadd.f32 %v4992_v13, %v4991_v5 }
 0xc79   :  { %v4781_v15 = vadd.f32 %v4993_v61, %v4954_v2 }
 0xc7b   :  { %v4784_v10 = vmax.f32 %v4781_v15, 0.0 }
 0xc7d   :  { %5044 = vmatmul.mubr.f32.vlgmr.msra.gmra.mrb[36].mxu1 %v4784_v10 }
 0xd50   :  { %v4874_v21 = vpop.f32.mrb[36].mxu1 }
 0xd51   :  { %v4875_v56 = vadd.f32 %v4955_v0, %v4874_v21  ;;  %v5045_v48 = vpop.f32.mrb[37].mxu1 }
 0xd53   :  { %v4956_v55 = vmul.f32 -1.442695, %v4875_v56 }
 0xd55   :  { %7949 = vpow2.f32 %v4956_v55 }
 0xd5f   :  { %v7950_v52 = vpop.eup %7949 }
 0xd60   :  { %v4881_v20 = vadd.f32 1.0, %v7950_v52 }
 0xd62   :  { %7951 = vrcp.f32 %v4881_v20 }
 0xd6c   :  { %v7952_v29 = vpop.eup %7951 }
 0xd6d   :  { %4885 = vst.msk [vmem:[%s9862_s9] sm:$0x3] %vm4884_vm3, %v7952_v29 }
 0xd6e   :  { %4890 = vsyncpa [#allocation5], 1 }
 0xd6f   :  { %4891 = vsyncpa [#allocation9], 1 }
 0xd70   :  { %4892 = vsyncpa [#allocation12], 1 }
 0xd71   :  { %4893 = vsyncpa [#allocation15], 1 }
 0xd72   :  { %4894 = vsyncpa [#allocation6], 1 }

</bundles_post_ra>
